<compile_context>
chip_gen: v5e
topology: v5e:2x2
jax: 0.10.0
libtpu: 0.0.40
codegen_flags: <defaults>
</compile_context>

<pallas_src>
import functools

import jax
import jax.numpy as jnp
from jax.experimental import pallas as pl
from jax.experimental.pallas import tpu as pltpu

# Deterministic "params" (mirrors params['train']['loss'] of the repo defaults).
DT = 0.005
LOSS_W = 1.0e6      # params['train']['loss']['w']
HUBER = 0.005       # params['train']['loss']['huber']

_SUBTILE = 8 * 128          # elements per (8,128) vreg tile
_MAX_SUB_PER_STEP = 16      # (8,128) tiles per grid step (~6.75 MiB inputs/step)

# Taylor coefficients for the per-sample exp with dt folded in:
#   q_w  = cos(theta/2),  q_vec = [dt*sin(theta/2)/theta] * w,  theta^2 = K*s,
#   s = |w|^2, K = dt^2.  Horner in s.
_K = DT * DT
_CW0, _CW1, _CW2, _CW3 = 1.0, -_K / 8.0, _K * _K / 384.0, -(_K ** 3) / 46080.0
_CV0, _CV1, _CV2, _CV3 = (0.5 * DT, -DT * _K / 48.0,
                          DT * _K * _K / 3840.0, -DT * (_K ** 3) / 645120.0)


# ---------- in-kernel helpers (operate on (8, 128) float32 tiles) ----------

def _acos(x):
    """arccos via A&S 4.4.46 polynomial (sqrt + mul/add only, |err| ~ 2e-8)."""
    xa = jnp.abs(x)
    p = -0.0012624911
    for c in (0.0066700901, -0.0170881256, 0.0308918810,
              -0.0501743046, 0.0889789874, -0.2145988016, 1.5707963050):
        p = p * xa + c
    r = jnp.sqrt(jnp.maximum(1.0 - xa, 0.0)) * p
    return jnp.where(x >= 0.0, r, jnp.float32(jnp.pi) - r)


def _q_mul(a, b):
    """Hamilton product: R(a*b) = R(a) @ R(b)."""
    aw, ax, ay, az = a
    bw, bx, by, bz = b
    return (aw * bw - ax * bx - ay * by - az * bz,
            aw * bx + ax * bw + ay * bz - az * by,
            aw * by - ax * bz + ay * bw + az * bx,
            aw * bz + ax * by - ay * bx + az * bw)


def _q_conj_mul(a, b):
    """conj(a) * b  (== R(a)^T @ R(b), i.e. bmtm) with the negations folded in."""
    aw, ax, ay, az = a
    bw, bx, by, bz = b
    return (aw * bw + ax * bx + ay * by + az * bz,
            aw * bx - ax * bw - ay * bz + az * by,
            aw * by + ax * bz - ay * bw - az * bx,
            aw * bz - ax * by + ay * bx - az * bw)


def _q_exp_small_dt(wx, wy, wz):
    """Quaternion of SO3.exp(dt * w); dt folded into the Taylor coefficients.

    Valid for |dt*w| < ~0.7 rad (gyro rates below ~140 rad/s); rel. err < 1e-7.
    """
    s = wx * wx + wy * wy + wz * wz
    qw = _CW0 + s * (_CW1 + s * (_CW2 + s * _CW3))
    c = _CV0 + s * (_CV1 + s * (_CV2 + s * _CV3))
    return qw, c * wx, c * wy, c * wz


def _q_exp(vx, vy, vz):
    """Quaternion of SO3.exp(v), branch-free general angle with a Taylor blend
    near zero (avoids the eps-distortion for near-stationary GT increments)."""
    s = vx * vx + vy * vy + vz * vz
    # Taylor branch (|v| small)
    qw_t = 1.0 + s * (-1.0 / 8.0 + s * (1.0 / 384.0))
    c_t = 0.5 + s * (-1.0 / 48.0 + s * (1.0 / 3840.0))
    # general branch
    inv = jax.lax.rsqrt(jnp.maximum(s, 1e-12))
    ang = s * inv
    half = 0.5 * ang
    qw_g = jnp.cos(half)
    c_g = jnp.sin(half) * inv
    small = s < 1e-6
    qw = jnp.where(small, qw_t, qw_g)
    c = jnp.where(small, c_t, c_g)
    return qw, c * vx, c * vy, c * vz


def _q_log(q):
    """SO3.log of the rotation represented by quaternion q.

    Matches the trace-based matrix log: cos(ang) = 2*w^2 - 1,
    vee(R - R^T) = 4*w*v, omega = 0.5*ang/sin(ang) * vee = 2*ang*w/sin(ang) * v.
    sin(ang) computed as sqrt(1 - c^2) (no EUP sin, no approx reciprocal).
    """
    w, x, y, z = q
    n2 = w * w + x * x + y * y + z * z          # ~1; renormalize against f32 drift
    inv_n = jax.lax.rsqrt(n2)
    wn = w * inv_n
    c = jnp.clip(2.0 * wn * wn - 1.0, -1.0, 1.0)
    ang = _acos(c)
    fac = ((2.0 * ang) * wn
           * jax.lax.rsqrt(jnp.maximum(1.0 - c * c, 0.0) + 1e-20) * inv_n)
    return fac * x, fac * y, fac * z


def _smooth_l1(z):          # SmoothL1Loss element (beta = 1.0)
    az = jnp.abs(z)
    return jnp.where(az < 1.0, 0.5 * z * z, az - 0.5)


# ---------------------------------- kernel ----------------------------------

def _dga_loss_kernel(w_ref, g16_ref, g32_ref, mask_ref, l16_ref, l32_ref, *, n_sub):
    # ref shapes: w (n_sub, 96, 8, 128), g16 (n_sub, 6, ...), g32/mask (n_sub, 3, ...)
    # outputs: l16/l32 (1, 8, 128) -- one accumulated partial per grid step.
    inv_h = jnp.float32(1.0 / HUBER)

    def sl3(r):
        return (_smooth_l1(r[0] * inv_h) + _smooth_l1(r[1] * inv_h)
                + _smooth_l1(r[2] * inv_h))

    def body(j, carry):
        acc16, acc32 = carry

        def q_hat(t):
            # Stream the 3 component rows of each sample from VMEM at use time.
            return _q_exp_small_dt(w_ref[j, 3 * t],
                                   w_ref[j, 3 * t + 1],
                                   w_ref[j, 3 * t + 2])

        def half_prod(t0):
            # Pairwise products (matching drot[::2].bmm(drot[1::2])) then a fold
            # over the 8 pair products: each iteration exposes 2 independent exps
            # + 1 independent product of ILP against the serial accumulator chain
            # while keeping the live set well under 64 vregs.
            acc = _q_mul(q_hat(t0), q_hat(t0 + 1))
            for p in range(1, 8):
                acc = _q_mul(acc, _q_mul(q_hat(t0 + 2 * p), q_hat(t0 + 2 * p + 1)))
            return acc

        qa = half_prod(0)                                   # samples 0..15
        ga = _q_exp(g16_ref[j, 0], g16_ref[j, 1], g16_ref[j, 2])
        l16 = sl3(_q_log(_q_conj_mul(qa, ga))) * mask_ref[j, 0]

        qb = half_prod(16)                                  # samples 16..31
        gb = _q_exp(g16_ref[j, 3], g16_ref[j, 4], g16_ref[j, 5])
        l16 = l16 + sl3(_q_log(_q_conj_mul(qb, gb))) * mask_ref[j, 1]

        q32 = _q_mul(qa, qb)                                # the 5th halving
        g32q = _q_exp(g32_ref[j, 0], g32_ref[j, 1], g32_ref[j, 2])
        l32 = sl3(_q_log(_q_conj_mul(q32, g32q))) * mask_ref[j, 2]

        return acc16 + l16, acc32 + l32

    zero = jnp.zeros((8, 128), jnp.float32)
    if n_sub == 1:
        acc16, acc32 = body(0, (zero, zero))
    else:
        acc16, acc32 = jax.lax.fori_loop(0, n_sub, body, (zero, zero), unroll=2)
    l16_ref[0] = acc16
    l32_ref[0] = acc32


# --------------------------------- wrapper ----------------------------------

@jax.jit
def dga_loss(w_hat, dw_16_gt, dw_32_gt):
    w_hat = w_hat.astype(jnp.float32)
    dw_16_gt = dw_16_gt.astype(jnp.float32)
    dw_32_gt = dw_32_gt.astype(jnp.float32)
    B, N, _ = w_hat.shape
    assert N % 32 == 0
    n16, n32 = N // 16, N // 32
    assert n16 > 5 and n32 > 2, "reference slicing [:,5:] / [:,2:] needs longer seq"
    M = B * n32

    # Per-32-chunk row views: row index = 3*t + c (w), 3*p + c (g16), c (g32).
    # TODO(synk): this repack is an extra HBM round trip; ideally the producing
    #   layer emits w_hat chunk-major (or use allow_input_fusion) to fuse it away.
    wk = w_hat.reshape(M, 96)
    g16 = dw_16_gt[:, ::16].reshape(M, 6)
    g32 = dw_32_gt[:, ::32].reshape(M, 3)

    # masks reproducing the reference's [:, 5:] (16-level) and [:, 2:] (32-level)
    # slices; padded chunks get mask 0.
    j32 = jnp.arange(M) % n32
    mask = jnp.stack([(2 * j32 >= 5), (2 * j32 + 1 >= 5), (j32 >= 2)],
                     axis=1).astype(jnp.float32)                      # (M, 3)

    # Grid sizing: big blocks (amortize ~0.35us/step), but keep an even step
    # count >= 2 when there is enough work so v7x's 2 TensorCores split evenly.
    n_sub_total = pl.cdiv(M, _SUBTILE)
    if n_sub_total <= 1:
        n_steps, sub_per_step = 1, 1
    elif n_sub_total <= 2 * _MAX_SUB_PER_STEP:
        n_steps = 2
        sub_per_step = pl.cdiv(n_sub_total, 2)
    else:
        n_steps = pl.cdiv(n_sub_total, _MAX_SUB_PER_STEP)
        if n_steps % 2:
            n_steps += 1
        sub_per_step = pl.cdiv(n_sub_total, n_steps)
    n_sub_pad = n_steps * sub_per_step
    m_pad = n_sub_pad * _SUBTILE

    def pack(a):        # (M, rows) -> (n_sub_pad, rows, 8, 128), contiguous blocks
        a = jnp.pad(a, ((0, m_pad - M), (0, 0)))
        a = a.reshape(n_sub_pad, 8, 128, a.shape[1])
        return jnp.transpose(a, (0, 3, 1, 2))

    wk, g16, g32, mask = pack(wk), pack(g16), pack(g32), pack(mask)

    def in_spec(rows):
        return pl.BlockSpec((sub_per_step, rows, 8, 128), lambda i: (i, 0, 0, 0))

    out_spec = pl.BlockSpec((1, 8, 128), lambda i: (i, 0, 0))

    l16, l32 = pl.pallas_call(
        functools.partial(_dga_loss_kernel, n_sub=sub_per_step),
        out_shape=(jax.ShapeDtypeStruct((n_steps, 8, 128), jnp.float32),
                   jax.ShapeDtypeStruct((n_steps, 8, 128), jnp.float32)),
        grid=(n_steps,),
        in_specs=[in_spec(96), in_spec(6), in_spec(3), in_spec(3)],
        out_specs=(out_spec, out_spec),
        compiler_params=pltpu.CompilerParams(dimension_semantics=("parallel",)),
    )(wk, g16, g32, mask)

    # f_huber: w * SmoothL1(mean over kept elements)(rs/huber) * huber^2
    cnt16 = B * (n16 - 5) * 3
    cnt32 = B * (n32 - 2) * 3
    loss16 = LOSS_W * (jnp.sum(l16) / cnt16) * HUBER ** 2
    loss32 = LOSS_W * (jnp.sum(l32) / cnt32) * HUBER ** 2 / 2.0
    return loss16 + loss32


if __name__ == "__main__":
    key = jax.random.PRNGKey(0)
    k1, k2, k3 = jax.random.split(key, 3)
    B, N = 2, 192  # N multiple of 32; N/16 > 5 and N/32 > 2 as the slicing requires
    w_hat = jax.random.normal(k1, (B, N, 3), dtype=jnp.float32) * 2.0   # gyro [rad/s]
    dw_16_gt = jax.random.normal(k2, (B, N, 3), dtype=jnp.float32) * 0.05
    dw_32_gt = jax.random.normal(k3, (B, N, 3), dtype=jnp.float32) * 0.10

    loss = dga_loss(w_hat, dw_16_gt, dw_32_gt)
    jax.block_until_ready(loss)
    print("KERNEL_OK")
</pallas_src>

<mosaic_0001>
module attributes {stable_mosaic.version = 11 : i64} {
  func.func @_dga_loss_kernel(%arg0: i32, %arg1: memref<1x96x8x128xf32, #tpu.memory_space<vmem>>, %arg2: memref<1x6x8x128xf32, #tpu.memory_space<vmem>>, %arg3: memref<1x3x8x128xf32, #tpu.memory_space<vmem>>, %arg4: memref<1x3x8x128xf32, #tpu.memory_space<vmem>>, %arg5: memref<1x8x128xf32, #tpu.memory_space<vmem>>, %arg6: memref<1x8x128xf32, #tpu.memory_space<vmem>>) attributes {dimension_semantics = [#tpu.dimension_semantics<parallel>], iteration_bounds = array<i64: 1>, scalar_prefetch = 0 : i64, scratch_operands = 0 : i64, tpu.core_type = #tpu.core_type<tc>, window_params = [{transform_indices = @transform_0, window_bounds = array<i64: 1, 96, 8, 128>}, {transform_indices = @transform_1, window_bounds = array<i64: 1, 6, 8, 128>}, {transform_indices = @transform_2, window_bounds = array<i64: 1, 3, 8, 128>}, {transform_indices = @transform_3, window_bounds = array<i64: 1, 3, 8, 128>}, {transform_indices = @transform_4, window_bounds = array<i64: 1, 8, 128>}, {transform_indices = @transform_5, window_bounds = array<i64: 1, 8, 128>}]} {
    %cst = arith.constant 0.000000e+00 : f32
    %0 = vector.broadcast %cst : f32 to vector<8x128xf32>
    %c0 = arith.constant 0 : index
    %c0_0 = arith.constant 0 : index
    %c0_1 = arith.constant 0 : index
    %c0_2 = arith.constant 0 : index
    %1 = vector.load %arg1[%c0, %c0_0, %c0_1, %c0_2] : memref<1x96x8x128xf32, #tpu.memory_space<vmem>>, vector<1x1x8x128xf32>
    %2 = vector.shape_cast %1 : vector<1x1x8x128xf32> to vector<8x128xf32>
    %c0_3 = arith.constant 0 : index
    %c1 = arith.constant 1 : index
    %c0_4 = arith.constant 0 : index
    %c0_5 = arith.constant 0 : index
    %3 = vector.load %arg1[%c0_3, %c1, %c0_4, %c0_5] : memref<1x96x8x128xf32, #tpu.memory_space<vmem>>, vector<1x1x8x128xf32>
    %4 = vector.shape_cast %3 : vector<1x1x8x128xf32> to vector<8x128xf32>
    %c0_6 = arith.constant 0 : index
    %c2 = arith.constant 2 : index
    %c0_7 = arith.constant 0 : index
    %c0_8 = arith.constant 0 : index
    %5 = vector.load %arg1[%c0_6, %c2, %c0_7, %c0_8] : memref<1x96x8x128xf32, #tpu.memory_space<vmem>>, vector<1x1x8x128xf32>
    %6 = vector.shape_cast %5 : vector<1x1x8x128xf32> to vector<8x128xf32>
    %7 = arith.mulf %2, %2 : vector<8x128xf32>
    %8 = arith.mulf %4, %4 : vector<8x128xf32>
    %9 = arith.addf %7, %8 : vector<8x128xf32>
    %10 = arith.mulf %6, %6 : vector<8x128xf32>
    %11 = arith.addf %9, %10 : vector<8x128xf32>
    %cst_9 = arith.constant -3.3908421E-19 : f32
    %12 = vector.broadcast %cst_9 : f32 to vector<8x128xf32>
    %13 = arith.mulf %11, %12 : vector<8x128xf32>
    %cst_10 = arith.constant 1.62760419E-12 : f32
    %14 = vector.broadcast %cst_10 : f32 to vector<8x128xf32>
    %15 = arith.addf %14, %13 : vector<8x128xf32>
    %16 = arith.mulf %11, %15 : vector<8x128xf32>
    %cst_11 = arith.constant -3.125000e-06 : f32
    %17 = vector.broadcast %cst_11 : f32 to vector<8x128xf32>
    %18 = arith.addf %17, %16 : vector<8x128xf32>
    %19 = arith.mulf %11, %18 : vector<8x128xf32>
    %cst_12 = arith.constant 1.000000e+00 : f32
    %20 = vector.broadcast %cst_12 : f32 to vector<8x128xf32>
    %21 = arith.addf %20, %19 : vector<8x128xf32>
    %cst_13 = arith.constant -1.21101496E-22 : f32
    %22 = vector.broadcast %cst_13 : f32 to vector<8x128xf32>
    %23 = arith.mulf %11, %22 : vector<8x128xf32>
    %cst_14 = arith.constant 8.13802098E-16 : f32
    %24 = vector.broadcast %cst_14 : f32 to vector<8x128xf32>
    %25 = arith.addf %24, %23 : vector<8x128xf32>
    %26 = arith.mulf %11, %25 : vector<8x128xf32>
    %cst_15 = arith.constant -2.60416666E-9 : f32
    %27 = vector.broadcast %cst_15 : f32 to vector<8x128xf32>
    %28 = arith.addf %27, %26 : vector<8x128xf32>
    %29 = arith.mulf %11, %28 : vector<8x128xf32>
    %cst_16 = arith.constant 2.500000e-03 : f32
    %30 = vector.broadcast %cst_16 : f32 to vector<8x128xf32>
    %31 = arith.addf %30, %29 : vector<8x128xf32>
    %32 = arith.mulf %31, %2 : vector<8x128xf32>
    %33 = arith.mulf %31, %4 : vector<8x128xf32>
    %34 = arith.mulf %31, %6 : vector<8x128xf32>
    %c0_17 = arith.constant 0 : index
    %c3 = arith.constant 3 : index
    %c0_18 = arith.constant 0 : index
    %c0_19 = arith.constant 0 : index
    %35 = vector.load %arg1[%c0_17, %c3, %c0_18, %c0_19] : memref<1x96x8x128xf32, #tpu.memory_space<vmem>>, vector<1x1x8x128xf32>
    %36 = vector.shape_cast %35 : vector<1x1x8x128xf32> to vector<8x128xf32>
    %c0_20 = arith.constant 0 : index
    %c4 = arith.constant 4 : index
    %c0_21 = arith.constant 0 : index
    %c0_22 = arith.constant 0 : index
    %37 = vector.load %arg1[%c0_20, %c4, %c0_21, %c0_22] : memref<1x96x8x128xf32, #tpu.memory_space<vmem>>, vector<1x1x8x128xf32>
    %38 = vector.shape_cast %37 : vector<1x1x8x128xf32> to vector<8x128xf32>
    %c0_23 = arith.constant 0 : index
    %c5 = arith.constant 5 : index
    %c0_24 = arith.constant 0 : index
    %c0_25 = arith.constant 0 : index
    %39 = vector.load %arg1[%c0_23, %c5, %c0_24, %c0_25] : memref<1x96x8x128xf32, #tpu.memory_space<vmem>>, vector<1x1x8x128xf32>
    %40 = vector.shape_cast %39 : vector<1x1x8x128xf32> to vector<8x128xf32>
    %41 = arith.mulf %36, %36 : vector<8x128xf32>
    %42 = arith.mulf %38, %38 : vector<8x128xf32>
    %43 = arith.addf %41, %42 : vector<8x128xf32>
    %44 = arith.mulf %40, %40 : vector<8x128xf32>
    %45 = arith.addf %43, %44 : vector<8x128xf32>
    %cst_26 = arith.constant -3.3908421E-19 : f32
    %46 = vector.broadcast %cst_26 : f32 to vector<8x128xf32>
    %47 = arith.mulf %45, %46 : vector<8x128xf32>
    %cst_27 = arith.constant 1.62760419E-12 : f32
    %48 = vector.broadcast %cst_27 : f32 to vector<8x128xf32>
    %49 = arith.addf %48, %47 : vector<8x128xf32>
    %50 = arith.mulf %45, %49 : vector<8x128xf32>
    %cst_28 = arith.constant -3.125000e-06 : f32
    %51 = vector.broadcast %cst_28 : f32 to vector<8x128xf32>
    %52 = arith.addf %51, %50 : vector<8x128xf32>
    %53 = arith.mulf %45, %52 : vector<8x128xf32>
    %cst_29 = arith.constant 1.000000e+00 : f32
    %54 = vector.broadcast %cst_29 : f32 to vector<8x128xf32>
    %55 = arith.addf %54, %53 : vector<8x128xf32>
    %cst_30 = arith.constant -1.21101496E-22 : f32
    %56 = vector.broadcast %cst_30 : f32 to vector<8x128xf32>
    %57 = arith.mulf %45, %56 : vector<8x128xf32>
    %cst_31 = arith.constant 8.13802098E-16 : f32
    %58 = vector.broadcast %cst_31 : f32 to vector<8x128xf32>
    %59 = arith.addf %58, %57 : vector<8x128xf32>
    %60 = arith.mulf %45, %59 : vector<8x128xf32>
    %cst_32 = arith.constant -2.60416666E-9 : f32
    %61 = vector.broadcast %cst_32 : f32 to vector<8x128xf32>
    %62 = arith.addf %61, %60 : vector<8x128xf32>
    %63 = arith.mulf %45, %62 : vector<8x128xf32>
    %cst_33 = arith.constant 2.500000e-03 : f32
    %64 = vector.broadcast %cst_33 : f32 to vector<8x128xf32>
    %65 = arith.addf %64, %63 : vector<8x128xf32>
    %66 = arith.mulf %65, %36 : vector<8x128xf32>
    %67 = arith.mulf %65, %38 : vector<8x128xf32>
    %68 = arith.mulf %65, %40 : vector<8x128xf32>
    %69 = arith.mulf %21, %55 : vector<8x128xf32>
    %70 = arith.mulf %32, %66 : vector<8x128xf32>
    %71 = arith.subf %69, %70 : vector<8x128xf32>
    %72 = arith.mulf %33, %67 : vector<8x128xf32>
    %73 = arith.subf %71, %72 : vector<8x128xf32>
    %74 = arith.mulf %34, %68 : vector<8x128xf32>
    %75 = arith.subf %73, %74 : vector<8x128xf32>
    %76 = arith.mulf %21, %66 : vector<8x128xf32>
    %77 = arith.mulf %32, %55 : vector<8x128xf32>
    %78 = arith.addf %76, %77 : vector<8x128xf32>
    %79 = arith.mulf %33, %68 : vector<8x128xf32>
    %80 = arith.addf %78, %79 : vector<8x128xf32>
    %81 = arith.mulf %34, %67 : vector<8x128xf32>
    %82 = arith.subf %80, %81 : vector<8x128xf32>
    %83 = arith.mulf %21, %67 : vector<8x128xf32>
    %84 = arith.mulf %32, %68 : vector<8x128xf32>
    %85 = arith.subf %83, %84 : vector<8x128xf32>
    %86 = arith.mulf %33, %55 : vector<8x128xf32>
    %87 = arith.addf %85, %86 : vector<8x128xf32>
    %88 = arith.mulf %34, %66 : vector<8x128xf32>
    %89 = arith.addf %87, %88 : vector<8x128xf32>
    %90 = arith.mulf %21, %68 : vector<8x128xf32>
    %91 = arith.mulf %32, %67 : vector<8x128xf32>
    %92 = arith.addf %90, %91 : vector<8x128xf32>
    %93 = arith.mulf %33, %66 : vector<8x128xf32>
    %94 = arith.subf %92, %93 : vector<8x128xf32>
    %95 = arith.mulf %34, %55 : vector<8x128xf32>
    %96 = arith.addf %94, %95 : vector<8x128xf32>
    %c0_34 = arith.constant 0 : index
    %c6 = arith.constant 6 : index
    %c0_35 = arith.constant 0 : index
    %c0_36 = arith.constant 0 : index
    %97 = vector.load %arg1[%c0_34, %c6, %c0_35, %c0_36] : memref<1x96x8x128xf32, #tpu.memory_space<vmem>>, vector<1x1x8x128xf32>
    %98 = vector.shape_cast %97 : vector<1x1x8x128xf32> to vector<8x128xf32>
    %c0_37 = arith.constant 0 : index
    %c7 = arith.constant 7 : index
    %c0_38 = arith.constant 0 : index
    %c0_39 = arith.constant 0 : index
    %99 = vector.load %arg1[%c0_37, %c7, %c0_38, %c0_39] : memref<1x96x8x128xf32, #tpu.memory_space<vmem>>, vector<1x1x8x128xf32>
    %100 = vector.shape_cast %99 : vector<1x1x8x128xf32> to vector<8x128xf32>
    %c0_40 = arith.constant 0 : index
    %c8 = arith.constant 8 : index
    %c0_41 = arith.constant 0 : index
    %c0_42 = arith.constant 0 : index
    %101 = vector.load %arg1[%c0_40, %c8, %c0_41, %c0_42] : memref<1x96x8x128xf32, #tpu.memory_space<vmem>>, vector<1x1x8x128xf32>
    %102 = vector.shape_cast %101 : vector<1x1x8x128xf32> to vector<8x128xf32>
    %103 = arith.mulf %98, %98 : vector<8x128xf32>
    %104 = arith.mulf %100, %100 : vector<8x128xf32>
    %105 = arith.addf %103, %104 : vector<8x128xf32>
    %106 = arith.mulf %102, %102 : vector<8x128xf32>
    %107 = arith.addf %105, %106 : vector<8x128xf32>
    %cst_43 = arith.constant -3.3908421E-19 : f32
    %108 = vector.broadcast %cst_43 : f32 to vector<8x128xf32>
    %109 = arith.mulf %107, %108 : vector<8x128xf32>
    %cst_44 = arith.constant 1.62760419E-12 : f32
    %110 = vector.broadcast %cst_44 : f32 to vector<8x128xf32>
    %111 = arith.addf %110, %109 : vector<8x128xf32>
    %112 = arith.mulf %107, %111 : vector<8x128xf32>
    %cst_45 = arith.constant -3.125000e-06 : f32
    %113 = vector.broadcast %cst_45 : f32 to vector<8x128xf32>
    %114 = arith.addf %113, %112 : vector<8x128xf32>
    %115 = arith.mulf %107, %114 : vector<8x128xf32>
    %cst_46 = arith.constant 1.000000e+00 : f32
    %116 = vector.broadcast %cst_46 : f32 to vector<8x128xf32>
    %117 = arith.addf %116, %115 : vector<8x128xf32>
    %cst_47 = arith.constant -1.21101496E-22 : f32
    %118 = vector.broadcast %cst_47 : f32 to vector<8x128xf32>
    %119 = arith.mulf %107, %118 : vector<8x128xf32>
    %cst_48 = arith.constant 8.13802098E-16 : f32
    %120 = vector.broadcast %cst_48 : f32 to vector<8x128xf32>
    %121 = arith.addf %120, %119 : vector<8x128xf32>
    %122 = arith.mulf %107, %121 : vector<8x128xf32>
    %cst_49 = arith.constant -2.60416666E-9 : f32
    %123 = vector.broadcast %cst_49 : f32 to vector<8x128xf32>
    %124 = arith.addf %123, %122 : vector<8x128xf32>
    %125 = arith.mulf %107, %124 : vector<8x128xf32>
    %cst_50 = arith.constant 2.500000e-03 : f32
    %126 = vector.broadcast %cst_50 : f32 to vector<8x128xf32>
    %127 = arith.addf %126, %125 : vector<8x128xf32>
    %128 = arith.mulf %127, %98 : vector<8x128xf32>
    %129 = arith.mulf %127, %100 : vector<8x128xf32>
    %130 = arith.mulf %127, %102 : vector<8x128xf32>
    %c0_51 = arith.constant 0 : index
    %c9 = arith.constant 9 : index
    %c0_52 = arith.constant 0 : index
    %c0_53 = arith.constant 0 : index
    %131 = vector.load %arg1[%c0_51, %c9, %c0_52, %c0_53] : memref<1x96x8x128xf32, #tpu.memory_space<vmem>>, vector<1x1x8x128xf32>
    %132 = vector.shape_cast %131 : vector<1x1x8x128xf32> to vector<8x128xf32>
    %c0_54 = arith.constant 0 : index
    %c10 = arith.constant 10 : index
    %c0_55 = arith.constant 0 : index
    %c0_56 = arith.constant 0 : index
    %133 = vector.load %arg1[%c0_54, %c10, %c0_55, %c0_56] : memref<1x96x8x128xf32, #tpu.memory_space<vmem>>, vector<1x1x8x128xf32>
    %134 = vector.shape_cast %133 : vector<1x1x8x128xf32> to vector<8x128xf32>
    %c0_57 = arith.constant 0 : index
    %c11 = arith.constant 11 : index
    %c0_58 = arith.constant 0 : index
    %c0_59 = arith.constant 0 : index
    %135 = vector.load %arg1[%c0_57, %c11, %c0_58, %c0_59] : memref<1x96x8x128xf32, #tpu.memory_space<vmem>>, vector<1x1x8x128xf32>
    %136 = vector.shape_cast %135 : vector<1x1x8x128xf32> to vector<8x128xf32>
    %137 = arith.mulf %132, %132 : vector<8x128xf32>
    %138 = arith.mulf %134, %134 : vector<8x128xf32>
    %139 = arith.addf %137, %138 : vector<8x128xf32>
    %140 = arith.mulf %136, %136 : vector<8x128xf32>
    %141 = arith.addf %139, %140 : vector<8x128xf32>
    %cst_60 = arith.constant -3.3908421E-19 : f32
    %142 = vector.broadcast %cst_60 : f32 to vector<8x128xf32>
    %143 = arith.mulf %141, %142 : vector<8x128xf32>
    %cst_61 = arith.constant 1.62760419E-12 : f32
    %144 = vector.broadcast %cst_61 : f32 to vector<8x128xf32>
    %145 = arith.addf %144, %143 : vector<8x128xf32>
    %146 = arith.mulf %141, %145 : vector<8x128xf32>
    %cst_62 = arith.constant -3.125000e-06 : f32
    %147 = vector.broadcast %cst_62 : f32 to vector<8x128xf32>
    %148 = arith.addf %147, %146 : vector<8x128xf32>
    %149 = arith.mulf %141, %148 : vector<8x128xf32>
    %cst_63 = arith.constant 1.000000e+00 : f32
    %150 = vector.broadcast %cst_63 : f32 to vector<8x128xf32>
    %151 = arith.addf %150, %149 : vector<8x128xf32>
    %cst_64 = arith.constant -1.21101496E-22 : f32
    %152 = vector.broadcast %cst_64 : f32 to vector<8x128xf32>
    %153 = arith.mulf %141, %152 : vector<8x128xf32>
    %cst_65 = arith.constant 8.13802098E-16 : f32
    %154 = vector.broadcast %cst_65 : f32 to vector<8x128xf32>
    %155 = arith.addf %154, %153 : vector<8x128xf32>
    %156 = arith.mulf %141, %155 : vector<8x128xf32>
    %cst_66 = arith.constant -2.60416666E-9 : f32
    %157 = vector.broadcast %cst_66 : f32 to vector<8x128xf32>
    %158 = arith.addf %157, %156 : vector<8x128xf32>
    %159 = arith.mulf %141, %158 : vector<8x128xf32>
    %cst_67 = arith.constant 2.500000e-03 : f32
    %160 = vector.broadcast %cst_67 : f32 to vector<8x128xf32>
    %161 = arith.addf %160, %159 : vector<8x128xf32>
    %162 = arith.mulf %161, %132 : vector<8x128xf32>
    %163 = arith.mulf %161, %134 : vector<8x128xf32>
    %164 = arith.mulf %161, %136 : vector<8x128xf32>
    %165 = arith.mulf %117, %151 : vector<8x128xf32>
    %166 = arith.mulf %128, %162 : vector<8x128xf32>
    %167 = arith.subf %165, %166 : vector<8x128xf32>
    %168 = arith.mulf %129, %163 : vector<8x128xf32>
    %169 = arith.subf %167, %168 : vector<8x128xf32>
    %170 = arith.mulf %130, %164 : vector<8x128xf32>
    %171 = arith.subf %169, %170 : vector<8x128xf32>
    %172 = arith.mulf %117, %162 : vector<8x128xf32>
    %173 = arith.mulf %128, %151 : vector<8x128xf32>
    %174 = arith.addf %172, %173 : vector<8x128xf32>
    %175 = arith.mulf %129, %164 : vector<8x128xf32>
    %176 = arith.addf %174, %175 : vector<8x128xf32>
    %177 = arith.mulf %130, %163 : vector<8x128xf32>
    %178 = arith.subf %176, %177 : vector<8x128xf32>
    %179 = arith.mulf %117, %163 : vector<8x128xf32>
    %180 = arith.mulf %128, %164 : vector<8x128xf32>
    %181 = arith.subf %179, %180 : vector<8x128xf32>
    %182 = arith.mulf %129, %151 : vector<8x128xf32>
    %183 = arith.addf %181, %182 : vector<8x128xf32>
    %184 = arith.mulf %130, %162 : vector<8x128xf32>
    %185 = arith.addf %183, %184 : vector<8x128xf32>
    %186 = arith.mulf %117, %164 : vector<8x128xf32>
    %187 = arith.mulf %128, %163 : vector<8x128xf32>
    %188 = arith.addf %186, %187 : vector<8x128xf32>
    %189 = arith.mulf %129, %162 : vector<8x128xf32>
    %190 = arith.subf %188, %189 : vector<8x128xf32>
    %191 = arith.mulf %130, %151 : vector<8x128xf32>
    %192 = arith.addf %190, %191 : vector<8x128xf32>
    %193 = arith.mulf %75, %171 : vector<8x128xf32>
    %194 = arith.mulf %82, %178 : vector<8x128xf32>
    %195 = arith.subf %193, %194 : vector<8x128xf32>
    %196 = arith.mulf %89, %185 : vector<8x128xf32>
    %197 = arith.subf %195, %196 : vector<8x128xf32>
    %198 = arith.mulf %96, %192 : vector<8x128xf32>
    %199 = arith.subf %197, %198 : vector<8x128xf32>
    %200 = arith.mulf %75, %178 : vector<8x128xf32>
    %201 = arith.mulf %82, %171 : vector<8x128xf32>
    %202 = arith.addf %200, %201 : vector<8x128xf32>
    %203 = arith.mulf %89, %192 : vector<8x128xf32>
    %204 = arith.addf %202, %203 : vector<8x128xf32>
    %205 = arith.mulf %96, %185 : vector<8x128xf32>
    %206 = arith.subf %204, %205 : vector<8x128xf32>
    %207 = arith.mulf %75, %185 : vector<8x128xf32>
    %208 = arith.mulf %82, %192 : vector<8x128xf32>
    %209 = arith.subf %207, %208 : vector<8x128xf32>
    %210 = arith.mulf %89, %171 : vector<8x128xf32>
    %211 = arith.addf %209, %210 : vector<8x128xf32>
    %212 = arith.mulf %96, %178 : vector<8x128xf32>
    %213 = arith.addf %211, %212 : vector<8x128xf32>
    %214 = arith.mulf %75, %192 : vector<8x128xf32>
    %215 = arith.mulf %82, %185 : vector<8x128xf32>
    %216 = arith.addf %214, %215 : vector<8x128xf32>
    %217 = arith.mulf %89, %178 : vector<8x128xf32>
    %218 = arith.subf %216, %217 : vector<8x128xf32>
    %219 = arith.mulf %96, %171 : vector<8x128xf32>
    %220 = arith.addf %218, %219 : vector<8x128xf32>
    %c0_68 = arith.constant 0 : index
    %c12 = arith.constant 12 : index
    %c0_69 = arith.constant 0 : index
    %c0_70 = arith.constant 0 : index
    %221 = vector.load %arg1[%c0_68, %c12, %c0_69, %c0_70] : memref<1x96x8x128xf32, #tpu.memory_space<vmem>>, vector<1x1x8x128xf32>
    %222 = vector.shape_cast %221 : vector<1x1x8x128xf32> to vector<8x128xf32>
    %c0_71 = arith.constant 0 : index
    %c13 = arith.constant 13 : index
    %c0_72 = arith.constant 0 : index
    %c0_73 = arith.constant 0 : index
    %223 = vector.load %arg1[%c0_71, %c13, %c0_72, %c0_73] : memref<1x96x8x128xf32, #tpu.memory_space<vmem>>, vector<1x1x8x128xf32>
    %224 = vector.shape_cast %223 : vector<1x1x8x128xf32> to vector<8x128xf32>
    %c0_74 = arith.constant 0 : index
    %c14 = arith.constant 14 : index
    %c0_75 = arith.constant 0 : index
    %c0_76 = arith.constant 0 : index
    %225 = vector.load %arg1[%c0_74, %c14, %c0_75, %c0_76] : memref<1x96x8x128xf32, #tpu.memory_space<vmem>>, vector<1x1x8x128xf32>
    %226 = vector.shape_cast %225 : vector<1x1x8x128xf32> to vector<8x128xf32>
    %227 = arith.mulf %222, %222 : vector<8x128xf32>
    %228 = arith.mulf %224, %224 : vector<8x128xf32>
    %229 = arith.addf %227, %228 : vector<8x128xf32>
    %230 = arith.mulf %226, %226 : vector<8x128xf32>
    %231 = arith.addf %229, %230 : vector<8x128xf32>
    %cst_77 = arith.constant -3.3908421E-19 : f32
    %232 = vector.broadcast %cst_77 : f32 to vector<8x128xf32>
    %233 = arith.mulf %231, %232 : vector<8x128xf32>
    %cst_78 = arith.constant 1.62760419E-12 : f32
    %234 = vector.broadcast %cst_78 : f32 to vector<8x128xf32>
    %235 = arith.addf %234, %233 : vector<8x128xf32>
    %236 = arith.mulf %231, %235 : vector<8x128xf32>
    %cst_79 = arith.constant -3.125000e-06 : f32
    %237 = vector.broadcast %cst_79 : f32 to vector<8x128xf32>
    %238 = arith.addf %237, %236 : vector<8x128xf32>
    %239 = arith.mulf %231, %238 : vector<8x128xf32>
    %cst_80 = arith.constant 1.000000e+00 : f32
    %240 = vector.broadcast %cst_80 : f32 to vector<8x128xf32>
    %241 = arith.addf %240, %239 : vector<8x128xf32>
    %cst_81 = arith.constant -1.21101496E-22 : f32
    %242 = vector.broadcast %cst_81 : f32 to vector<8x128xf32>
    %243 = arith.mulf %231, %242 : vector<8x128xf32>
    %cst_82 = arith.constant 8.13802098E-16 : f32
    %244 = vector.broadcast %cst_82 : f32 to vector<8x128xf32>
    %245 = arith.addf %244, %243 : vector<8x128xf32>
    %246 = arith.mulf %231, %245 : vector<8x128xf32>
    %cst_83 = arith.constant -2.60416666E-9 : f32
    %247 = vector.broadcast %cst_83 : f32 to vector<8x128xf32>
    %248 = arith.addf %247, %246 : vector<8x128xf32>
    %249 = arith.mulf %231, %248 : vector<8x128xf32>
    %cst_84 = arith.constant 2.500000e-03 : f32
    %250 = vector.broadcast %cst_84 : f32 to vector<8x128xf32>
    %251 = arith.addf %250, %249 : vector<8x128xf32>
    %252 = arith.mulf %251, %222 : vector<8x128xf32>
    %253 = arith.mulf %251, %224 : vector<8x128xf32>
    %254 = arith.mulf %251, %226 : vector<8x128xf32>
    %c0_85 = arith.constant 0 : index
    %c15 = arith.constant 15 : index
    %c0_86 = arith.constant 0 : index
    %c0_87 = arith.constant 0 : index
    %255 = vector.load %arg1[%c0_85, %c15, %c0_86, %c0_87] : memref<1x96x8x128xf32, #tpu.memory_space<vmem>>, vector<1x1x8x128xf32>
    %256 = vector.shape_cast %255 : vector<1x1x8x128xf32> to vector<8x128xf32>
    %c0_88 = arith.constant 0 : index
    %c16 = arith.constant 16 : index
    %c0_89 = arith.constant 0 : index
    %c0_90 = arith.constant 0 : index
    %257 = vector.load %arg1[%c0_88, %c16, %c0_89, %c0_90] : memref<1x96x8x128xf32, #tpu.memory_space<vmem>>, vector<1x1x8x128xf32>
    %258 = vector.shape_cast %257 : vector<1x1x8x128xf32> to vector<8x128xf32>
    %c0_91 = arith.constant 0 : index
    %c17 = arith.constant 17 : index
    %c0_92 = arith.constant 0 : index
    %c0_93 = arith.constant 0 : index
    %259 = vector.load %arg1[%c0_91, %c17, %c0_92, %c0_93] : memref<1x96x8x128xf32, #tpu.memory_space<vmem>>, vector<1x1x8x128xf32>
    %260 = vector.shape_cast %259 : vector<1x1x8x128xf32> to vector<8x128xf32>
    %261 = arith.mulf %256, %256 : vector<8x128xf32>
    %262 = arith.mulf %258, %258 : vector<8x128xf32>
    %263 = arith.addf %261, %262 : vector<8x128xf32>
    %264 = arith.mulf %260, %260 : vector<8x128xf32>
    %265 = arith.addf %263, %264 : vector<8x128xf32>
    %cst_94 = arith.constant -3.3908421E-19 : f32
    %266 = vector.broadcast %cst_94 : f32 to vector<8x128xf32>
    %267 = arith.mulf %265, %266 : vector<8x128xf32>
    %cst_95 = arith.constant 1.62760419E-12 : f32
    %268 = vector.broadcast %cst_95 : f32 to vector<8x128xf32>
    %269 = arith.addf %268, %267 : vector<8x128xf32>
    %270 = arith.mulf %265, %269 : vector<8x128xf32>
    %cst_96 = arith.constant -3.125000e-06 : f32
    %271 = vector.broadcast %cst_96 : f32 to vector<8x128xf32>
    %272 = arith.addf %271, %270 : vector<8x128xf32>
    %273 = arith.mulf %265, %272 : vector<8x128xf32>
    %cst_97 = arith.constant 1.000000e+00 : f32
    %274 = vector.broadcast %cst_97 : f32 to vector<8x128xf32>
    %275 = arith.addf %274, %273 : vector<8x128xf32>
    %cst_98 = arith.constant -1.21101496E-22 : f32
    %276 = vector.broadcast %cst_98 : f32 to vector<8x128xf32>
    %277 = arith.mulf %265, %276 : vector<8x128xf32>
    %cst_99 = arith.constant 8.13802098E-16 : f32
    %278 = vector.broadcast %cst_99 : f32 to vector<8x128xf32>
    %279 = arith.addf %278, %277 : vector<8x128xf32>
    %280 = arith.mulf %265, %279 : vector<8x128xf32>
    %cst_100 = arith.constant -2.60416666E-9 : f32
    %281 = vector.broadcast %cst_100 : f32 to vector<8x128xf32>
    %282 = arith.addf %281, %280 : vector<8x128xf32>
    %283 = arith.mulf %265, %282 : vector<8x128xf32>
    %cst_101 = arith.constant 2.500000e-03 : f32
    %284 = vector.broadcast %cst_101 : f32 to vector<8x128xf32>
    %285 = arith.addf %284, %283 : vector<8x128xf32>
    %286 = arith.mulf %285, %256 : vector<8x128xf32>
    %287 = arith.mulf %285, %258 : vector<8x128xf32>
    %288 = arith.mulf %285, %260 : vector<8x128xf32>
    %289 = arith.mulf %241, %275 : vector<8x128xf32>
    %290 = arith.mulf %252, %286 : vector<8x128xf32>
    %291 = arith.subf %289, %290 : vector<8x128xf32>
    %292 = arith.mulf %253, %287 : vector<8x128xf32>
    %293 = arith.subf %291, %292 : vector<8x128xf32>
    %294 = arith.mulf %254, %288 : vector<8x128xf32>
    %295 = arith.subf %293, %294 : vector<8x128xf32>
    %296 = arith.mulf %241, %286 : vector<8x128xf32>
    %297 = arith.mulf %252, %275 : vector<8x128xf32>
    %298 = arith.addf %296, %297 : vector<8x128xf32>
    %299 = arith.mulf %253, %288 : vector<8x128xf32>
    %300 = arith.addf %298, %299 : vector<8x128xf32>
    %301 = arith.mulf %254, %287 : vector<8x128xf32>
    %302 = arith.subf %300, %301 : vector<8x128xf32>
    %303 = arith.mulf %241, %287 : vector<8x128xf32>
    %304 = arith.mulf %252, %288 : vector<8x128xf32>
    %305 = arith.subf %303, %304 : vector<8x128xf32>
    %306 = arith.mulf %253, %275 : vector<8x128xf32>
    %307 = arith.addf %305, %306 : vector<8x128xf32>
    %308 = arith.mulf %254, %286 : vector<8x128xf32>
    %309 = arith.addf %307, %308 : vector<8x128xf32>
    %310 = arith.mulf %241, %288 : vector<8x128xf32>
    %311 = arith.mulf %252, %287 : vector<8x128xf32>
    %312 = arith.addf %310, %311 : vector<8x128xf32>
    %313 = arith.mulf %253, %286 : vector<8x128xf32>
    %314 = arith.subf %312, %313 : vector<8x128xf32>
    %315 = arith.mulf %254, %275 : vector<8x128xf32>
    %316 = arith.addf %314, %315 : vector<8x128xf32>
    %317 = arith.mulf %199, %295 : vector<8x128xf32>
    %318 = arith.mulf %206, %302 : vector<8x128xf32>
    %319 = arith.subf %317, %318 : vector<8x128xf32>
    %320 = arith.mulf %213, %309 : vector<8x128xf32>
    %321 = arith.subf %319, %320 : vector<8x128xf32>
    %322 = arith.mulf %220, %316 : vector<8x128xf32>
    %323 = arith.subf %321, %322 : vector<8x128xf32>
    %324 = arith.mulf %199, %302 : vector<8x128xf32>
    %325 = arith.mulf %206, %295 : vector<8x128xf32>
    %326 = arith.addf %324, %325 : vector<8x128xf32>
    %327 = arith.mulf %213, %316 : vector<8x128xf32>
    %328 = arith.addf %326, %327 : vector<8x128xf32>
    %329 = arith.mulf %220, %309 : vector<8x128xf32>
    %330 = arith.subf %328, %329 : vector<8x128xf32>
    %331 = arith.mulf %199, %309 : vector<8x128xf32>
    %332 = arith.mulf %206, %316 : vector<8x128xf32>
    %333 = arith.subf %331, %332 : vector<8x128xf32>
    %334 = arith.mulf %213, %295 : vector<8x128xf32>
    %335 = arith.addf %333, %334 : vector<8x128xf32>
    %336 = arith.mulf %220, %302 : vector<8x128xf32>
    %337 = arith.addf %335, %336 : vector<8x128xf32>
    %338 = arith.mulf %199, %316 : vector<8x128xf32>
    %339 = arith.mulf %206, %309 : vector<8x128xf32>
    %340 = arith.addf %338, %339 : vector<8x128xf32>
    %341 = arith.mulf %213, %302 : vector<8x128xf32>
    %342 = arith.subf %340, %341 : vector<8x128xf32>
    %343 = arith.mulf %220, %295 : vector<8x128xf32>
    %344 = arith.addf %342, %343 : vector<8x128xf32>
    %c0_102 = arith.constant 0 : index
    %c18 = arith.constant 18 : index
    %c0_103 = arith.constant 0 : index
    %c0_104 = arith.constant 0 : index
    %345 = vector.load %arg1[%c0_102, %c18, %c0_103, %c0_104] : memref<1x96x8x128xf32, #tpu.memory_space<vmem>>, vector<1x1x8x128xf32>
    %346 = vector.shape_cast %345 : vector<1x1x8x128xf32> to vector<8x128xf32>
    %c0_105 = arith.constant 0 : index
    %c19 = arith.constant 19 : index
    %c0_106 = arith.constant 0 : index
    %c0_107 = arith.constant 0 : index
    %347 = vector.load %arg1[%c0_105, %c19, %c0_106, %c0_107] : memref<1x96x8x128xf32, #tpu.memory_space<vmem>>, vector<1x1x8x128xf32>
    %348 = vector.shape_cast %347 : vector<1x1x8x128xf32> to vector<8x128xf32>
    %c0_108 = arith.constant 0 : index
    %c20 = arith.constant 20 : index
    %c0_109 = arith.constant 0 : index
    %c0_110 = arith.constant 0 : index
    %349 = vector.load %arg1[%c0_108, %c20, %c0_109, %c0_110] : memref<1x96x8x128xf32, #tpu.memory_space<vmem>>, vector<1x1x8x128xf32>
    %350 = vector.shape_cast %349 : vector<1x1x8x128xf32> to vector<8x128xf32>
    %351 = arith.mulf %346, %346 : vector<8x128xf32>
    %352 = arith.mulf %348, %348 : vector<8x128xf32>
    %353 = arith.addf %351, %352 : vector<8x128xf32>
    %354 = arith.mulf %350, %350 : vector<8x128xf32>
    %355 = arith.addf %353, %354 : vector<8x128xf32>
    %cst_111 = arith.constant -3.3908421E-19 : f32
    %356 = vector.broadcast %cst_111 : f32 to vector<8x128xf32>
    %357 = arith.mulf %355, %356 : vector<8x128xf32>
    %cst_112 = arith.constant 1.62760419E-12 : f32
    %358 = vector.broadcast %cst_112 : f32 to vector<8x128xf32>
    %359 = arith.addf %358, %357 : vector<8x128xf32>
    %360 = arith.mulf %355, %359 : vector<8x128xf32>
    %cst_113 = arith.constant -3.125000e-06 : f32
    %361 = vector.broadcast %cst_113 : f32 to vector<8x128xf32>
    %362 = arith.addf %361, %360 : vector<8x128xf32>
    %363 = arith.mulf %355, %362 : vector<8x128xf32>
    %cst_114 = arith.constant 1.000000e+00 : f32
    %364 = vector.broadcast %cst_114 : f32 to vector<8x128xf32>
    %365 = arith.addf %364, %363 : vector<8x128xf32>
    %cst_115 = arith.constant -1.21101496E-22 : f32
    %366 = vector.broadcast %cst_115 : f32 to vector<8x128xf32>
    %367 = arith.mulf %355, %366 : vector<8x128xf32>
    %cst_116 = arith.constant 8.13802098E-16 : f32
    %368 = vector.broadcast %cst_116 : f32 to vector<8x128xf32>
    %369 = arith.addf %368, %367 : vector<8x128xf32>
    %370 = arith.mulf %355, %369 : vector<8x128xf32>
    %cst_117 = arith.constant -2.60416666E-9 : f32
    %371 = vector.broadcast %cst_117 : f32 to vector<8x128xf32>
    %372 = arith.addf %371, %370 : vector<8x128xf32>
    %373 = arith.mulf %355, %372 : vector<8x128xf32>
    %cst_118 = arith.constant 2.500000e-03 : f32
    %374 = vector.broadcast %cst_118 : f32 to vector<8x128xf32>
    %375 = arith.addf %374, %373 : vector<8x128xf32>
    %376 = arith.mulf %375, %346 : vector<8x128xf32>
    %377 = arith.mulf %375, %348 : vector<8x128xf32>
    %378 = arith.mulf %375, %350 : vector<8x128xf32>
    %c0_119 = arith.constant 0 : index
    %c21 = arith.constant 21 : index
    %c0_120 = arith.constant 0 : index
    %c0_121 = arith.constant 0 : index
    %379 = vector.load %arg1[%c0_119, %c21, %c0_120, %c0_121] : memref<1x96x8x128xf32, #tpu.memory_space<vmem>>, vector<1x1x8x128xf32>
    %380 = vector.shape_cast %379 : vector<1x1x8x128xf32> to vector<8x128xf32>
    %c0_122 = arith.constant 0 : index
    %c22 = arith.constant 22 : index
    %c0_123 = arith.constant 0 : index
    %c0_124 = arith.constant 0 : index
    %381 = vector.load %arg1[%c0_122, %c22, %c0_123, %c0_124] : memref<1x96x8x128xf32, #tpu.memory_space<vmem>>, vector<1x1x8x128xf32>
    %382 = vector.shape_cast %381 : vector<1x1x8x128xf32> to vector<8x128xf32>
    %c0_125 = arith.constant 0 : index
    %c23 = arith.constant 23 : index
    %c0_126 = arith.constant 0 : index
    %c0_127 = arith.constant 0 : index
    %383 = vector.load %arg1[%c0_125, %c23, %c0_126, %c0_127] : memref<1x96x8x128xf32, #tpu.memory_space<vmem>>, vector<1x1x8x128xf32>
    %384 = vector.shape_cast %383 : vector<1x1x8x128xf32> to vector<8x128xf32>
    %385 = arith.mulf %380, %380 : vector<8x128xf32>
    %386 = arith.mulf %382, %382 : vector<8x128xf32>
    %387 = arith.addf %385, %386 : vector<8x128xf32>
    %388 = arith.mulf %384, %384 : vector<8x128xf32>
    %389 = arith.addf %387, %388 : vector<8x128xf32>
    %cst_128 = arith.constant -3.3908421E-19 : f32
    %390 = vector.broadcast %cst_128 : f32 to vector<8x128xf32>
    %391 = arith.mulf %389, %390 : vector<8x128xf32>
    %cst_129 = arith.constant 1.62760419E-12 : f32
    %392 = vector.broadcast %cst_129 : f32 to vector<8x128xf32>
    %393 = arith.addf %392, %391 : vector<8x128xf32>
    %394 = arith.mulf %389, %393 : vector<8x128xf32>
    %cst_130 = arith.constant -3.125000e-06 : f32
    %395 = vector.broadcast %cst_130 : f32 to vector<8x128xf32>
    %396 = arith.addf %395, %394 : vector<8x128xf32>
    %397 = arith.mulf %389, %396 : vector<8x128xf32>
    %cst_131 = arith.constant 1.000000e+00 : f32
    %398 = vector.broadcast %cst_131 : f32 to vector<8x128xf32>
    %399 = arith.addf %398, %397 : vector<8x128xf32>
    %cst_132 = arith.constant -1.21101496E-22 : f32
    %400 = vector.broadcast %cst_132 : f32 to vector<8x128xf32>
    %401 = arith.mulf %389, %400 : vector<8x128xf32>
    %cst_133 = arith.constant 8.13802098E-16 : f32
    %402 = vector.broadcast %cst_133 : f32 to vector<8x128xf32>
    %403 = arith.addf %402, %401 : vector<8x128xf32>
    %404 = arith.mulf %389, %403 : vector<8x128xf32>
    %cst_134 = arith.constant -2.60416666E-9 : f32
    %405 = vector.broadcast %cst_134 : f32 to vector<8x128xf32>
    %406 = arith.addf %405, %404 : vector<8x128xf32>
    %407 = arith.mulf %389, %406 : vector<8x128xf32>
    %cst_135 = arith.constant 2.500000e-03 : f32
    %408 = vector.broadcast %cst_135 : f32 to vector<8x128xf32>
    %409 = arith.addf %408, %407 : vector<8x128xf32>
    %410 = arith.mulf %409, %380 : vector<8x128xf32>
    %411 = arith.mulf %409, %382 : vector<8x128xf32>
    %412 = arith.mulf %409, %384 : vector<8x128xf32>
    %413 = arith.mulf %365, %399 : vector<8x128xf32>
    %414 = arith.mulf %376, %410 : vector<8x128xf32>
    %415 = arith.subf %413, %414 : vector<8x128xf32>
    %416 = arith.mulf %377, %411 : vector<8x128xf32>
    %417 = arith.subf %415, %416 : vector<8x128xf32>
    %418 = arith.mulf %378, %412 : vector<8x128xf32>
    %419 = arith.subf %417, %418 : vector<8x128xf32>
    %420 = arith.mulf %365, %410 : vector<8x128xf32>
    %421 = arith.mulf %376, %399 : vector<8x128xf32>
    %422 = arith.addf %420, %421 : vector<8x128xf32>
    %423 = arith.mulf %377, %412 : vector<8x128xf32>
    %424 = arith.addf %422, %423 : vector<8x128xf32>
    %425 = arith.mulf %378, %411 : vector<8x128xf32>
    %426 = arith.subf %424, %425 : vector<8x128xf32>
    %427 = arith.mulf %365, %411 : vector<8x128xf32>
    %428 = arith.mulf %376, %412 : vector<8x128xf32>
    %429 = arith.subf %427, %428 : vector<8x128xf32>
    %430 = arith.mulf %377, %399 : vector<8x128xf32>
    %431 = arith.addf %429, %430 : vector<8x128xf32>
    %432 = arith.mulf %378, %410 : vector<8x128xf32>
    %433 = arith.addf %431, %432 : vector<8x128xf32>
    %434 = arith.mulf %365, %412 : vector<8x128xf32>
    %435 = arith.mulf %376, %411 : vector<8x128xf32>
    %436 = arith.addf %434, %435 : vector<8x128xf32>
    %437 = arith.mulf %377, %410 : vector<8x128xf32>
    %438 = arith.subf %436, %437 : vector<8x128xf32>
    %439 = arith.mulf %378, %399 : vector<8x128xf32>
    %440 = arith.addf %438, %439 : vector<8x128xf32>
    %441 = arith.mulf %323, %419 : vector<8x128xf32>
    %442 = arith.mulf %330, %426 : vector<8x128xf32>
    %443 = arith.subf %441, %442 : vector<8x128xf32>
    %444 = arith.mulf %337, %433 : vector<8x128xf32>
    %445 = arith.subf %443, %444 : vector<8x128xf32>
    %446 = arith.mulf %344, %440 : vector<8x128xf32>
    %447 = arith.subf %445, %446 : vector<8x128xf32>
    %448 = arith.mulf %323, %426 : vector<8x128xf32>
    %449 = arith.mulf %330, %419 : vector<8x128xf32>
    %450 = arith.addf %448, %449 : vector<8x128xf32>
    %451 = arith.mulf %337, %440 : vector<8x128xf32>
    %452 = arith.addf %450, %451 : vector<8x128xf32>
    %453 = arith.mulf %344, %433 : vector<8x128xf32>
    %454 = arith.subf %452, %453 : vector<8x128xf32>
    %455 = arith.mulf %323, %433 : vector<8x128xf32>
    %456 = arith.mulf %330, %440 : vector<8x128xf32>
    %457 = arith.subf %455, %456 : vector<8x128xf32>
    %458 = arith.mulf %337, %419 : vector<8x128xf32>
    %459 = arith.addf %457, %458 : vector<8x128xf32>
    %460 = arith.mulf %344, %426 : vector<8x128xf32>
    %461 = arith.addf %459, %460 : vector<8x128xf32>
    %462 = arith.mulf %323, %440 : vector<8x128xf32>
    %463 = arith.mulf %330, %433 : vector<8x128xf32>
    %464 = arith.addf %462, %463 : vector<8x128xf32>
    %465 = arith.mulf %337, %426 : vector<8x128xf32>
    %466 = arith.subf %464, %465 : vector<8x128xf32>
    %467 = arith.mulf %344, %419 : vector<8x128xf32>
    %468 = arith.addf %466, %467 : vector<8x128xf32>
    %c0_136 = arith.constant 0 : index
    %c24 = arith.constant 24 : index
    %c0_137 = arith.constant 0 : index
    %c0_138 = arith.constant 0 : index
    %469 = vector.load %arg1[%c0_136, %c24, %c0_137, %c0_138] : memref<1x96x8x128xf32, #tpu.memory_space<vmem>>, vector<1x1x8x128xf32>
    %470 = vector.shape_cast %469 : vector<1x1x8x128xf32> to vector<8x128xf32>
    %c0_139 = arith.constant 0 : index
    %c25 = arith.constant 25 : index
    %c0_140 = arith.constant 0 : index
    %c0_141 = arith.constant 0 : index
    %471 = vector.load %arg1[%c0_139, %c25, %c0_140, %c0_141] : memref<1x96x8x128xf32, #tpu.memory_space<vmem>>, vector<1x1x8x128xf32>
    %472 = vector.shape_cast %471 : vector<1x1x8x128xf32> to vector<8x128xf32>
    %c0_142 = arith.constant 0 : index
    %c26 = arith.constant 26 : index
    %c0_143 = arith.constant 0 : index
    %c0_144 = arith.constant 0 : index
    %473 = vector.load %arg1[%c0_142, %c26, %c0_143, %c0_144] : memref<1x96x8x128xf32, #tpu.memory_space<vmem>>, vector<1x1x8x128xf32>
    %474 = vector.shape_cast %473 : vector<1x1x8x128xf32> to vector<8x128xf32>
    %475 = arith.mulf %470, %470 : vector<8x128xf32>
    %476 = arith.mulf %472, %472 : vector<8x128xf32>
    %477 = arith.addf %475, %476 : vector<8x128xf32>
    %478 = arith.mulf %474, %474 : vector<8x128xf32>
    %479 = arith.addf %477, %478 : vector<8x128xf32>
    %cst_145 = arith.constant -3.3908421E-19 : f32
    %480 = vector.broadcast %cst_145 : f32 to vector<8x128xf32>
    %481 = arith.mulf %479, %480 : vector<8x128xf32>
    %cst_146 = arith.constant 1.62760419E-12 : f32
    %482 = vector.broadcast %cst_146 : f32 to vector<8x128xf32>
    %483 = arith.addf %482, %481 : vector<8x128xf32>
    %484 = arith.mulf %479, %483 : vector<8x128xf32>
    %cst_147 = arith.constant -3.125000e-06 : f32
    %485 = vector.broadcast %cst_147 : f32 to vector<8x128xf32>
    %486 = arith.addf %485, %484 : vector<8x128xf32>
    %487 = arith.mulf %479, %486 : vector<8x128xf32>
    %cst_148 = arith.constant 1.000000e+00 : f32
    %488 = vector.broadcast %cst_148 : f32 to vector<8x128xf32>
    %489 = arith.addf %488, %487 : vector<8x128xf32>
    %cst_149 = arith.constant -1.21101496E-22 : f32
    %490 = vector.broadcast %cst_149 : f32 to vector<8x128xf32>
    %491 = arith.mulf %479, %490 : vector<8x128xf32>
    %cst_150 = arith.constant 8.13802098E-16 : f32
    %492 = vector.broadcast %cst_150 : f32 to vector<8x128xf32>
    %493 = arith.addf %492, %491 : vector<8x128xf32>
    %494 = arith.mulf %479, %493 : vector<8x128xf32>
    %cst_151 = arith.constant -2.60416666E-9 : f32
    %495 = vector.broadcast %cst_151 : f32 to vector<8x128xf32>
    %496 = arith.addf %495, %494 : vector<8x128xf32>
    %497 = arith.mulf %479, %496 : vector<8x128xf32>
    %cst_152 = arith.constant 2.500000e-03 : f32
    %498 = vector.broadcast %cst_152 : f32 to vector<8x128xf32>
    %499 = arith.addf %498, %497 : vector<8x128xf32>
    %500 = arith.mulf %499, %470 : vector<8x128xf32>
    %501 = arith.mulf %499, %472 : vector<8x128xf32>
    %502 = arith.mulf %499, %474 : vector<8x128xf32>
    %c0_153 = arith.constant 0 : index
    %c27 = arith.constant 27 : index
    %c0_154 = arith.constant 0 : index
    %c0_155 = arith.constant 0 : index
    %503 = vector.load %arg1[%c0_153, %c27, %c0_154, %c0_155] : memref<1x96x8x128xf32, #tpu.memory_space<vmem>>, vector<1x1x8x128xf32>
    %504 = vector.shape_cast %503 : vector<1x1x8x128xf32> to vector<8x128xf32>
    %c0_156 = arith.constant 0 : index
    %c28 = arith.constant 28 : index
    %c0_157 = arith.constant 0 : index
    %c0_158 = arith.constant 0 : index
    %505 = vector.load %arg1[%c0_156, %c28, %c0_157, %c0_158] : memref<1x96x8x128xf32, #tpu.memory_space<vmem>>, vector<1x1x8x128xf32>
    %506 = vector.shape_cast %505 : vector<1x1x8x128xf32> to vector<8x128xf32>
    %c0_159 = arith.constant 0 : index
    %c29 = arith.constant 29 : index
    %c0_160 = arith.constant 0 : index
    %c0_161 = arith.constant 0 : index
    %507 = vector.load %arg1[%c0_159, %c29, %c0_160, %c0_161] : memref<1x96x8x128xf32, #tpu.memory_space<vmem>>, vector<1x1x8x128xf32>
    %508 = vector.shape_cast %507 : vector<1x1x8x128xf32> to vector<8x128xf32>
    %509 = arith.mulf %504, %504 : vector<8x128xf32>
    %510 = arith.mulf %506, %506 : vector<8x128xf32>
    %511 = arith.addf %509, %510 : vector<8x128xf32>
    %512 = arith.mulf %508, %508 : vector<8x128xf32>
    %513 = arith.addf %511, %512 : vector<8x128xf32>
    %cst_162 = arith.constant -3.3908421E-19 : f32
    %514 = vector.broadcast %cst_162 : f32 to vector<8x128xf32>
    %515 = arith.mulf %513, %514 : vector<8x128xf32>
    %cst_163 = arith.constant 1.62760419E-12 : f32
    %516 = vector.broadcast %cst_163 : f32 to vector<8x128xf32>
    %517 = arith.addf %516, %515 : vector<8x128xf32>
    %518 = arith.mulf %513, %517 : vector<8x128xf32>
    %cst_164 = arith.constant -3.125000e-06 : f32
    %519 = vector.broadcast %cst_164 : f32 to vector<8x128xf32>
    %520 = arith.addf %519, %518 : vector<8x128xf32>
    %521 = arith.mulf %513, %520 : vector<8x128xf32>
    %cst_165 = arith.constant 1.000000e+00 : f32
    %522 = vector.broadcast %cst_165 : f32 to vector<8x128xf32>
    %523 = arith.addf %522, %521 : vector<8x128xf32>
    %cst_166 = arith.constant -1.21101496E-22 : f32
    %524 = vector.broadcast %cst_166 : f32 to vector<8x128xf32>
    %525 = arith.mulf %513, %524 : vector<8x128xf32>
    %cst_167 = arith.constant 8.13802098E-16 : f32
    %526 = vector.broadcast %cst_167 : f32 to vector<8x128xf32>
    %527 = arith.addf %526, %525 : vector<8x128xf32>
    %528 = arith.mulf %513, %527 : vector<8x128xf32>
    %cst_168 = arith.constant -2.60416666E-9 : f32
    %529 = vector.broadcast %cst_168 : f32 to vector<8x128xf32>
    %530 = arith.addf %529, %528 : vector<8x128xf32>
    %531 = arith.mulf %513, %530 : vector<8x128xf32>
    %cst_169 = arith.constant 2.500000e-03 : f32
    %532 = vector.broadcast %cst_169 : f32 to vector<8x128xf32>
    %533 = arith.addf %532, %531 : vector<8x128xf32>
    %534 = arith.mulf %533, %504 : vector<8x128xf32>
    %535 = arith.mulf %533, %506 : vector<8x128xf32>
    %536 = arith.mulf %533, %508 : vector<8x128xf32>
    %537 = arith.mulf %489, %523 : vector<8x128xf32>
    %538 = arith.mulf %500, %534 : vector<8x128xf32>
    %539 = arith.subf %537, %538 : vector<8x128xf32>
    %540 = arith.mulf %501, %535 : vector<8x128xf32>
    %541 = arith.subf %539, %540 : vector<8x128xf32>
    %542 = arith.mulf %502, %536 : vector<8x128xf32>
    %543 = arith.subf %541, %542 : vector<8x128xf32>
    %544 = arith.mulf %489, %534 : vector<8x128xf32>
    %545 = arith.mulf %500, %523 : vector<8x128xf32>
    %546 = arith.addf %544, %545 : vector<8x128xf32>
    %547 = arith.mulf %501, %536 : vector<8x128xf32>
    %548 = arith.addf %546, %547 : vector<8x128xf32>
    %549 = arith.mulf %502, %535 : vector<8x128xf32>
    %550 = arith.subf %548, %549 : vector<8x128xf32>
    %551 = arith.mulf %489, %535 : vector<8x128xf32>
    %552 = arith.mulf %500, %536 : vector<8x128xf32>
    %553 = arith.subf %551, %552 : vector<8x128xf32>
    %554 = arith.mulf %501, %523 : vector<8x128xf32>
    %555 = arith.addf %553, %554 : vector<8x128xf32>
    %556 = arith.mulf %502, %534 : vector<8x128xf32>
    %557 = arith.addf %555, %556 : vector<8x128xf32>
    %558 = arith.mulf %489, %536 : vector<8x128xf32>
    %559 = arith.mulf %500, %535 : vector<8x128xf32>
    %560 = arith.addf %558, %559 : vector<8x128xf32>
    %561 = arith.mulf %501, %534 : vector<8x128xf32>
    %562 = arith.subf %560, %561 : vector<8x128xf32>
    %563 = arith.mulf %502, %523 : vector<8x128xf32>
    %564 = arith.addf %562, %563 : vector<8x128xf32>
    %565 = arith.mulf %447, %543 : vector<8x128xf32>
    %566 = arith.mulf %454, %550 : vector<8x128xf32>
    %567 = arith.subf %565, %566 : vector<8x128xf32>
    %568 = arith.mulf %461, %557 : vector<8x128xf32>
    %569 = arith.subf %567, %568 : vector<8x128xf32>
    %570 = arith.mulf %468, %564 : vector<8x128xf32>
    %571 = arith.subf %569, %570 : vector<8x128xf32>
    %572 = arith.mulf %447, %550 : vector<8x128xf32>
    %573 = arith.mulf %454, %543 : vector<8x128xf32>
    %574 = arith.addf %572, %573 : vector<8x128xf32>
    %575 = arith.mulf %461, %564 : vector<8x128xf32>
    %576 = arith.addf %574, %575 : vector<8x128xf32>
    %577 = arith.mulf %468, %557 : vector<8x128xf32>
    %578 = arith.subf %576, %577 : vector<8x128xf32>
    %579 = arith.mulf %447, %557 : vector<8x128xf32>
    %580 = arith.mulf %454, %564 : vector<8x128xf32>
    %581 = arith.subf %579, %580 : vector<8x128xf32>
    %582 = arith.mulf %461, %543 : vector<8x128xf32>
    %583 = arith.addf %581, %582 : vector<8x128xf32>
    %584 = arith.mulf %468, %550 : vector<8x128xf32>
    %585 = arith.addf %583, %584 : vector<8x128xf32>
    %586 = arith.mulf %447, %564 : vector<8x128xf32>
    %587 = arith.mulf %454, %557 : vector<8x128xf32>
    %588 = arith.addf %586, %587 : vector<8x128xf32>
    %589 = arith.mulf %461, %550 : vector<8x128xf32>
    %590 = arith.subf %588, %589 : vector<8x128xf32>
    %591 = arith.mulf %468, %543 : vector<8x128xf32>
    %592 = arith.addf %590, %591 : vector<8x128xf32>
    %c0_170 = arith.constant 0 : index
    %c30 = arith.constant 30 : index
    %c0_171 = arith.constant 0 : index
    %c0_172 = arith.constant 0 : index
    %593 = vector.load %arg1[%c0_170, %c30, %c0_171, %c0_172] : memref<1x96x8x128xf32, #tpu.memory_space<vmem>>, vector<1x1x8x128xf32>
    %594 = vector.shape_cast %593 : vector<1x1x8x128xf32> to vector<8x128xf32>
    %c0_173 = arith.constant 0 : index
    %c31 = arith.constant 31 : index
    %c0_174 = arith.constant 0 : index
    %c0_175 = arith.constant 0 : index
    %595 = vector.load %arg1[%c0_173, %c31, %c0_174, %c0_175] : memref<1x96x8x128xf32, #tpu.memory_space<vmem>>, vector<1x1x8x128xf32>
    %596 = vector.shape_cast %595 : vector<1x1x8x128xf32> to vector<8x128xf32>
    %c0_176 = arith.constant 0 : index
    %c32 = arith.constant 32 : index
    %c0_177 = arith.constant 0 : index
    %c0_178 = arith.constant 0 : index
    %597 = vector.load %arg1[%c0_176, %c32, %c0_177, %c0_178] : memref<1x96x8x128xf32, #tpu.memory_space<vmem>>, vector<1x1x8x128xf32>
    %598 = vector.shape_cast %597 : vector<1x1x8x128xf32> to vector<8x128xf32>
    %599 = arith.mulf %594, %594 : vector<8x128xf32>
    %600 = arith.mulf %596, %596 : vector<8x128xf32>
    %601 = arith.addf %599, %600 : vector<8x128xf32>
    %602 = arith.mulf %598, %598 : vector<8x128xf32>
    %603 = arith.addf %601, %602 : vector<8x128xf32>
    %cst_179 = arith.constant -3.3908421E-19 : f32
    %604 = vector.broadcast %cst_179 : f32 to vector<8x128xf32>
    %605 = arith.mulf %603, %604 : vector<8x128xf32>
    %cst_180 = arith.constant 1.62760419E-12 : f32
    %606 = vector.broadcast %cst_180 : f32 to vector<8x128xf32>
    %607 = arith.addf %606, %605 : vector<8x128xf32>
    %608 = arith.mulf %603, %607 : vector<8x128xf32>
    %cst_181 = arith.constant -3.125000e-06 : f32
    %609 = vector.broadcast %cst_181 : f32 to vector<8x128xf32>
    %610 = arith.addf %609, %608 : vector<8x128xf32>
    %611 = arith.mulf %603, %610 : vector<8x128xf32>
    %cst_182 = arith.constant 1.000000e+00 : f32
    %612 = vector.broadcast %cst_182 : f32 to vector<8x128xf32>
    %613 = arith.addf %612, %611 : vector<8x128xf32>
    %cst_183 = arith.constant -1.21101496E-22 : f32
    %614 = vector.broadcast %cst_183 : f32 to vector<8x128xf32>
    %615 = arith.mulf %603, %614 : vector<8x128xf32>
    %cst_184 = arith.constant 8.13802098E-16 : f32
    %616 = vector.broadcast %cst_184 : f32 to vector<8x128xf32>
    %617 = arith.addf %616, %615 : vector<8x128xf32>
    %618 = arith.mulf %603, %617 : vector<8x128xf32>
    %cst_185 = arith.constant -2.60416666E-9 : f32
    %619 = vector.broadcast %cst_185 : f32 to vector<8x128xf32>
    %620 = arith.addf %619, %618 : vector<8x128xf32>
    %621 = arith.mulf %603, %620 : vector<8x128xf32>
    %cst_186 = arith.constant 2.500000e-03 : f32
    %622 = vector.broadcast %cst_186 : f32 to vector<8x128xf32>
    %623 = arith.addf %622, %621 : vector<8x128xf32>
    %624 = arith.mulf %623, %594 : vector<8x128xf32>
    %625 = arith.mulf %623, %596 : vector<8x128xf32>
    %626 = arith.mulf %623, %598 : vector<8x128xf32>
    %c0_187 = arith.constant 0 : index
    %c33 = arith.constant 33 : index
    %c0_188 = arith.constant 0 : index
    %c0_189 = arith.constant 0 : index
    %627 = vector.load %arg1[%c0_187, %c33, %c0_188, %c0_189] : memref<1x96x8x128xf32, #tpu.memory_space<vmem>>, vector<1x1x8x128xf32>
    %628 = vector.shape_cast %627 : vector<1x1x8x128xf32> to vector<8x128xf32>
    %c0_190 = arith.constant 0 : index
    %c34 = arith.constant 34 : index
    %c0_191 = arith.constant 0 : index
    %c0_192 = arith.constant 0 : index
    %629 = vector.load %arg1[%c0_190, %c34, %c0_191, %c0_192] : memref<1x96x8x128xf32, #tpu.memory_space<vmem>>, vector<1x1x8x128xf32>
    %630 = vector.shape_cast %629 : vector<1x1x8x128xf32> to vector<8x128xf32>
    %c0_193 = arith.constant 0 : index
    %c35 = arith.constant 35 : index
    %c0_194 = arith.constant 0 : index
    %c0_195 = arith.constant 0 : index
    %631 = vector.load %arg1[%c0_193, %c35, %c0_194, %c0_195] : memref<1x96x8x128xf32, #tpu.memory_space<vmem>>, vector<1x1x8x128xf32>
    %632 = vector.shape_cast %631 : vector<1x1x8x128xf32> to vector<8x128xf32>
    %633 = arith.mulf %628, %628 : vector<8x128xf32>
    %634 = arith.mulf %630, %630 : vector<8x128xf32>
    %635 = arith.addf %633, %634 : vector<8x128xf32>
    %636 = arith.mulf %632, %632 : vector<8x128xf32>
    %637 = arith.addf %635, %636 : vector<8x128xf32>
    %cst_196 = arith.constant -3.3908421E-19 : f32
    %638 = vector.broadcast %cst_196 : f32 to vector<8x128xf32>
    %639 = arith.mulf %637, %638 : vector<8x128xf32>
    %cst_197 = arith.constant 1.62760419E-12 : f32
    %640 = vector.broadcast %cst_197 : f32 to vector<8x128xf32>
    %641 = arith.addf %640, %639 : vector<8x128xf32>
    %642 = arith.mulf %637, %641 : vector<8x128xf32>
    %cst_198 = arith.constant -3.125000e-06 : f32
    %643 = vector.broadcast %cst_198 : f32 to vector<8x128xf32>
    %644 = arith.addf %643, %642 : vector<8x128xf32>
    %645 = arith.mulf %637, %644 : vector<8x128xf32>
    %cst_199 = arith.constant 1.000000e+00 : f32
    %646 = vector.broadcast %cst_199 : f32 to vector<8x128xf32>
    %647 = arith.addf %646, %645 : vector<8x128xf32>
    %cst_200 = arith.constant -1.21101496E-22 : f32
    %648 = vector.broadcast %cst_200 : f32 to vector<8x128xf32>
    %649 = arith.mulf %637, %648 : vector<8x128xf32>
    %cst_201 = arith.constant 8.13802098E-16 : f32
    %650 = vector.broadcast %cst_201 : f32 to vector<8x128xf32>
    %651 = arith.addf %650, %649 : vector<8x128xf32>
    %652 = arith.mulf %637, %651 : vector<8x128xf32>
    %cst_202 = arith.constant -2.60416666E-9 : f32
    %653 = vector.broadcast %cst_202 : f32 to vector<8x128xf32>
    %654 = arith.addf %653, %652 : vector<8x128xf32>
    %655 = arith.mulf %637, %654 : vector<8x128xf32>
    %cst_203 = arith.constant 2.500000e-03 : f32
    %656 = vector.broadcast %cst_203 : f32 to vector<8x128xf32>
    %657 = arith.addf %656, %655 : vector<8x128xf32>
    %658 = arith.mulf %657, %628 : vector<8x128xf32>
    %659 = arith.mulf %657, %630 : vector<8x128xf32>
    %660 = arith.mulf %657, %632 : vector<8x128xf32>
    %661 = arith.mulf %613, %647 : vector<8x128xf32>
    %662 = arith.mulf %624, %658 : vector<8x128xf32>
    %663 = arith.subf %661, %662 : vector<8x128xf32>
    %664 = arith.mulf %625, %659 : vector<8x128xf32>
    %665 = arith.subf %663, %664 : vector<8x128xf32>
    %666 = arith.mulf %626, %660 : vector<8x128xf32>
    %667 = arith.subf %665, %666 : vector<8x128xf32>
    %668 = arith.mulf %613, %658 : vector<8x128xf32>
    %669 = arith.mulf %624, %647 : vector<8x128xf32>
    %670 = arith.addf %668, %669 : vector<8x128xf32>
    %671 = arith.mulf %625, %660 : vector<8x128xf32>
    %672 = arith.addf %670, %671 : vector<8x128xf32>
    %673 = arith.mulf %626, %659 : vector<8x128xf32>
    %674 = arith.subf %672, %673 : vector<8x128xf32>
    %675 = arith.mulf %613, %659 : vector<8x128xf32>
    %676 = arith.mulf %624, %660 : vector<8x128xf32>
    %677 = arith.subf %675, %676 : vector<8x128xf32>
    %678 = arith.mulf %625, %647 : vector<8x128xf32>
    %679 = arith.addf %677, %678 : vector<8x128xf32>
    %680 = arith.mulf %626, %658 : vector<8x128xf32>
    %681 = arith.addf %679, %680 : vector<8x128xf32>
    %682 = arith.mulf %613, %660 : vector<8x128xf32>
    %683 = arith.mulf %624, %659 : vector<8x128xf32>
    %684 = arith.addf %682, %683 : vector<8x128xf32>
    %685 = arith.mulf %625, %658 : vector<8x128xf32>
    %686 = arith.subf %684, %685 : vector<8x128xf32>
    %687 = arith.mulf %626, %647 : vector<8x128xf32>
    %688 = arith.addf %686, %687 : vector<8x128xf32>
    %689 = arith.mulf %571, %667 : vector<8x128xf32>
    %690 = arith.mulf %578, %674 : vector<8x128xf32>
    %691 = arith.subf %689, %690 : vector<8x128xf32>
    %692 = arith.mulf %585, %681 : vector<8x128xf32>
    %693 = arith.subf %691, %692 : vector<8x128xf32>
    %694 = arith.mulf %592, %688 : vector<8x128xf32>
    %695 = arith.subf %693, %694 : vector<8x128xf32>
    %696 = arith.mulf %571, %674 : vector<8x128xf32>
    %697 = arith.mulf %578, %667 : vector<8x128xf32>
    %698 = arith.addf %696, %697 : vector<8x128xf32>
    %699 = arith.mulf %585, %688 : vector<8x128xf32>
    %700 = arith.addf %698, %699 : vector<8x128xf32>
    %701 = arith.mulf %592, %681 : vector<8x128xf32>
    %702 = arith.subf %700, %701 : vector<8x128xf32>
    %703 = arith.mulf %571, %681 : vector<8x128xf32>
    %704 = arith.mulf %578, %688 : vector<8x128xf32>
    %705 = arith.subf %703, %704 : vector<8x128xf32>
    %706 = arith.mulf %585, %667 : vector<8x128xf32>
    %707 = arith.addf %705, %706 : vector<8x128xf32>
    %708 = arith.mulf %592, %674 : vector<8x128xf32>
    %709 = arith.addf %707, %708 : vector<8x128xf32>
    %710 = arith.mulf %571, %688 : vector<8x128xf32>
    %711 = arith.mulf %578, %681 : vector<8x128xf32>
    %712 = arith.addf %710, %711 : vector<8x128xf32>
    %713 = arith.mulf %585, %674 : vector<8x128xf32>
    %714 = arith.subf %712, %713 : vector<8x128xf32>
    %715 = arith.mulf %592, %667 : vector<8x128xf32>
    %716 = arith.addf %714, %715 : vector<8x128xf32>
    %c0_204 = arith.constant 0 : index
    %c36 = arith.constant 36 : index
    %c0_205 = arith.constant 0 : index
    %c0_206 = arith.constant 0 : index
    %717 = vector.load %arg1[%c0_204, %c36, %c0_205, %c0_206] : memref<1x96x8x128xf32, #tpu.memory_space<vmem>>, vector<1x1x8x128xf32>
    %718 = vector.shape_cast %717 : vector<1x1x8x128xf32> to vector<8x128xf32>
    %c0_207 = arith.constant 0 : index
    %c37 = arith.constant 37 : index
    %c0_208 = arith.constant 0 : index
    %c0_209 = arith.constant 0 : index
    %719 = vector.load %arg1[%c0_207, %c37, %c0_208, %c0_209] : memref<1x96x8x128xf32, #tpu.memory_space<vmem>>, vector<1x1x8x128xf32>
    %720 = vector.shape_cast %719 : vector<1x1x8x128xf32> to vector<8x128xf32>
    %c0_210 = arith.constant 0 : index
    %c38 = arith.constant 38 : index
    %c0_211 = arith.constant 0 : index
    %c0_212 = arith.constant 0 : index
    %721 = vector.load %arg1[%c0_210, %c38, %c0_211, %c0_212] : memref<1x96x8x128xf32, #tpu.memory_space<vmem>>, vector<1x1x8x128xf32>
    %722 = vector.shape_cast %721 : vector<1x1x8x128xf32> to vector<8x128xf32>
    %723 = arith.mulf %718, %718 : vector<8x128xf32>
    %724 = arith.mulf %720, %720 : vector<8x128xf32>
    %725 = arith.addf %723, %724 : vector<8x128xf32>
    %726 = arith.mulf %722, %722 : vector<8x128xf32>
    %727 = arith.addf %725, %726 : vector<8x128xf32>
    %cst_213 = arith.constant -3.3908421E-19 : f32
    %728 = vector.broadcast %cst_213 : f32 to vector<8x128xf32>
    %729 = arith.mulf %727, %728 : vector<8x128xf32>
    %cst_214 = arith.constant 1.62760419E-12 : f32
    %730 = vector.broadcast %cst_214 : f32 to vector<8x128xf32>
    %731 = arith.addf %730, %729 : vector<8x128xf32>
    %732 = arith.mulf %727, %731 : vector<8x128xf32>
    %cst_215 = arith.constant -3.125000e-06 : f32
    %733 = vector.broadcast %cst_215 : f32 to vector<8x128xf32>
    %734 = arith.addf %733, %732 : vector<8x128xf32>
    %735 = arith.mulf %727, %734 : vector<8x128xf32>
    %cst_216 = arith.constant 1.000000e+00 : f32
    %736 = vector.broadcast %cst_216 : f32 to vector<8x128xf32>
    %737 = arith.addf %736, %735 : vector<8x128xf32>
    %cst_217 = arith.constant -1.21101496E-22 : f32
    %738 = vector.broadcast %cst_217 : f32 to vector<8x128xf32>
    %739 = arith.mulf %727, %738 : vector<8x128xf32>
    %cst_218 = arith.constant 8.13802098E-16 : f32
    %740 = vector.broadcast %cst_218 : f32 to vector<8x128xf32>
    %741 = arith.addf %740, %739 : vector<8x128xf32>
    %742 = arith.mulf %727, %741 : vector<8x128xf32>
    %cst_219 = arith.constant -2.60416666E-9 : f32
    %743 = vector.broadcast %cst_219 : f32 to vector<8x128xf32>
    %744 = arith.addf %743, %742 : vector<8x128xf32>
    %745 = arith.mulf %727, %744 : vector<8x128xf32>
    %cst_220 = arith.constant 2.500000e-03 : f32
    %746 = vector.broadcast %cst_220 : f32 to vector<8x128xf32>
    %747 = arith.addf %746, %745 : vector<8x128xf32>
    %748 = arith.mulf %747, %718 : vector<8x128xf32>
    %749 = arith.mulf %747, %720 : vector<8x128xf32>
    %750 = arith.mulf %747, %722 : vector<8x128xf32>
    %c0_221 = arith.constant 0 : index
    %c39 = arith.constant 39 : index
    %c0_222 = arith.constant 0 : index
    %c0_223 = arith.constant 0 : index
    %751 = vector.load %arg1[%c0_221, %c39, %c0_222, %c0_223] : memref<1x96x8x128xf32, #tpu.memory_space<vmem>>, vector<1x1x8x128xf32>
    %752 = vector.shape_cast %751 : vector<1x1x8x128xf32> to vector<8x128xf32>
    %c0_224 = arith.constant 0 : index
    %c40 = arith.constant 40 : index
    %c0_225 = arith.constant 0 : index
    %c0_226 = arith.constant 0 : index
    %753 = vector.load %arg1[%c0_224, %c40, %c0_225, %c0_226] : memref<1x96x8x128xf32, #tpu.memory_space<vmem>>, vector<1x1x8x128xf32>
    %754 = vector.shape_cast %753 : vector<1x1x8x128xf32> to vector<8x128xf32>
    %c0_227 = arith.constant 0 : index
    %c41 = arith.constant 41 : index
    %c0_228 = arith.constant 0 : index
    %c0_229 = arith.constant 0 : index
    %755 = vector.load %arg1[%c0_227, %c41, %c0_228, %c0_229] : memref<1x96x8x128xf32, #tpu.memory_space<vmem>>, vector<1x1x8x128xf32>
    %756 = vector.shape_cast %755 : vector<1x1x8x128xf32> to vector<8x128xf32>
    %757 = arith.mulf %752, %752 : vector<8x128xf32>
    %758 = arith.mulf %754, %754 : vector<8x128xf32>
    %759 = arith.addf %757, %758 : vector<8x128xf32>
    %760 = arith.mulf %756, %756 : vector<8x128xf32>
    %761 = arith.addf %759, %760 : vector<8x128xf32>
    %cst_230 = arith.constant -3.3908421E-19 : f32
    %762 = vector.broadcast %cst_230 : f32 to vector<8x128xf32>
    %763 = arith.mulf %761, %762 : vector<8x128xf32>
    %cst_231 = arith.constant 1.62760419E-12 : f32
    %764 = vector.broadcast %cst_231 : f32 to vector<8x128xf32>
    %765 = arith.addf %764, %763 : vector<8x128xf32>
    %766 = arith.mulf %761, %765 : vector<8x128xf32>
    %cst_232 = arith.constant -3.125000e-06 : f32
    %767 = vector.broadcast %cst_232 : f32 to vector<8x128xf32>
    %768 = arith.addf %767, %766 : vector<8x128xf32>
    %769 = arith.mulf %761, %768 : vector<8x128xf32>
    %cst_233 = arith.constant 1.000000e+00 : f32
    %770 = vector.broadcast %cst_233 : f32 to vector<8x128xf32>
    %771 = arith.addf %770, %769 : vector<8x128xf32>
    %cst_234 = arith.constant -1.21101496E-22 : f32
    %772 = vector.broadcast %cst_234 : f32 to vector<8x128xf32>
    %773 = arith.mulf %761, %772 : vector<8x128xf32>
    %cst_235 = arith.constant 8.13802098E-16 : f32
    %774 = vector.broadcast %cst_235 : f32 to vector<8x128xf32>
    %775 = arith.addf %774, %773 : vector<8x128xf32>
    %776 = arith.mulf %761, %775 : vector<8x128xf32>
    %cst_236 = arith.constant -2.60416666E-9 : f32
    %777 = vector.broadcast %cst_236 : f32 to vector<8x128xf32>
    %778 = arith.addf %777, %776 : vector<8x128xf32>
    %779 = arith.mulf %761, %778 : vector<8x128xf32>
    %cst_237 = arith.constant 2.500000e-03 : f32
    %780 = vector.broadcast %cst_237 : f32 to vector<8x128xf32>
    %781 = arith.addf %780, %779 : vector<8x128xf32>
    %782 = arith.mulf %781, %752 : vector<8x128xf32>
    %783 = arith.mulf %781, %754 : vector<8x128xf32>
    %784 = arith.mulf %781, %756 : vector<8x128xf32>
    %785 = arith.mulf %737, %771 : vector<8x128xf32>
    %786 = arith.mulf %748, %782 : vector<8x128xf32>
    %787 = arith.subf %785, %786 : vector<8x128xf32>
    %788 = arith.mulf %749, %783 : vector<8x128xf32>
    %789 = arith.subf %787, %788 : vector<8x128xf32>
    %790 = arith.mulf %750, %784 : vector<8x128xf32>
    %791 = arith.subf %789, %790 : vector<8x128xf32>
    %792 = arith.mulf %737, %782 : vector<8x128xf32>
    %793 = arith.mulf %748, %771 : vector<8x128xf32>
    %794 = arith.addf %792, %793 : vector<8x128xf32>
    %795 = arith.mulf %749, %784 : vector<8x128xf32>
    %796 = arith.addf %794, %795 : vector<8x128xf32>
    %797 = arith.mulf %750, %783 : vector<8x128xf32>
    %798 = arith.subf %796, %797 : vector<8x128xf32>
    %799 = arith.mulf %737, %783 : vector<8x128xf32>
    %800 = arith.mulf %748, %784 : vector<8x128xf32>
    %801 = arith.subf %799, %800 : vector<8x128xf32>
    %802 = arith.mulf %749, %771 : vector<8x128xf32>
    %803 = arith.addf %801, %802 : vector<8x128xf32>
    %804 = arith.mulf %750, %782 : vector<8x128xf32>
    %805 = arith.addf %803, %804 : vector<8x128xf32>
    %806 = arith.mulf %737, %784 : vector<8x128xf32>
    %807 = arith.mulf %748, %783 : vector<8x128xf32>
    %808 = arith.addf %806, %807 : vector<8x128xf32>
    %809 = arith.mulf %749, %782 : vector<8x128xf32>
    %810 = arith.subf %808, %809 : vector<8x128xf32>
    %811 = arith.mulf %750, %771 : vector<8x128xf32>
    %812 = arith.addf %810, %811 : vector<8x128xf32>
    %813 = arith.mulf %695, %791 : vector<8x128xf32>
    %814 = arith.mulf %702, %798 : vector<8x128xf32>
    %815 = arith.subf %813, %814 : vector<8x128xf32>
    %816 = arith.mulf %709, %805 : vector<8x128xf32>
    %817 = arith.subf %815, %816 : vector<8x128xf32>
    %818 = arith.mulf %716, %812 : vector<8x128xf32>
    %819 = arith.subf %817, %818 : vector<8x128xf32>
    %820 = arith.mulf %695, %798 : vector<8x128xf32>
    %821 = arith.mulf %702, %791 : vector<8x128xf32>
    %822 = arith.addf %820, %821 : vector<8x128xf32>
    %823 = arith.mulf %709, %812 : vector<8x128xf32>
    %824 = arith.addf %822, %823 : vector<8x128xf32>
    %825 = arith.mulf %716, %805 : vector<8x128xf32>
    %826 = arith.subf %824, %825 : vector<8x128xf32>
    %827 = arith.mulf %695, %805 : vector<8x128xf32>
    %828 = arith.mulf %702, %812 : vector<8x128xf32>
    %829 = arith.subf %827, %828 : vector<8x128xf32>
    %830 = arith.mulf %709, %791 : vector<8x128xf32>
    %831 = arith.addf %829, %830 : vector<8x128xf32>
    %832 = arith.mulf %716, %798 : vector<8x128xf32>
    %833 = arith.addf %831, %832 : vector<8x128xf32>
    %834 = arith.mulf %695, %812 : vector<8x128xf32>
    %835 = arith.mulf %702, %805 : vector<8x128xf32>
    %836 = arith.addf %834, %835 : vector<8x128xf32>
    %837 = arith.mulf %709, %798 : vector<8x128xf32>
    %838 = arith.subf %836, %837 : vector<8x128xf32>
    %839 = arith.mulf %716, %791 : vector<8x128xf32>
    %840 = arith.addf %838, %839 : vector<8x128xf32>
    %c0_238 = arith.constant 0 : index
    %c42 = arith.constant 42 : index
    %c0_239 = arith.constant 0 : index
    %c0_240 = arith.constant 0 : index
    %841 = vector.load %arg1[%c0_238, %c42, %c0_239, %c0_240] : memref<1x96x8x128xf32, #tpu.memory_space<vmem>>, vector<1x1x8x128xf32>
    %842 = vector.shape_cast %841 : vector<1x1x8x128xf32> to vector<8x128xf32>
    %c0_241 = arith.constant 0 : index
    %c43 = arith.constant 43 : index
    %c0_242 = arith.constant 0 : index
    %c0_243 = arith.constant 0 : index
    %843 = vector.load %arg1[%c0_241, %c43, %c0_242, %c0_243] : memref<1x96x8x128xf32, #tpu.memory_space<vmem>>, vector<1x1x8x128xf32>
    %844 = vector.shape_cast %843 : vector<1x1x8x128xf32> to vector<8x128xf32>
    %c0_244 = arith.constant 0 : index
    %c44 = arith.constant 44 : index
    %c0_245 = arith.constant 0 : index
    %c0_246 = arith.constant 0 : index
    %845 = vector.load %arg1[%c0_244, %c44, %c0_245, %c0_246] : memref<1x96x8x128xf32, #tpu.memory_space<vmem>>, vector<1x1x8x128xf32>
    %846 = vector.shape_cast %845 : vector<1x1x8x128xf32> to vector<8x128xf32>
    %847 = arith.mulf %842, %842 : vector<8x128xf32>
    %848 = arith.mulf %844, %844 : vector<8x128xf32>
    %849 = arith.addf %847, %848 : vector<8x128xf32>
    %850 = arith.mulf %846, %846 : vector<8x128xf32>
    %851 = arith.addf %849, %850 : vector<8x128xf32>
    %cst_247 = arith.constant -3.3908421E-19 : f32
    %852 = vector.broadcast %cst_247 : f32 to vector<8x128xf32>
    %853 = arith.mulf %851, %852 : vector<8x128xf32>
    %cst_248 = arith.constant 1.62760419E-12 : f32
    %854 = vector.broadcast %cst_248 : f32 to vector<8x128xf32>
    %855 = arith.addf %854, %853 : vector<8x128xf32>
    %856 = arith.mulf %851, %855 : vector<8x128xf32>
    %cst_249 = arith.constant -3.125000e-06 : f32
    %857 = vector.broadcast %cst_249 : f32 to vector<8x128xf32>
    %858 = arith.addf %857, %856 : vector<8x128xf32>
    %859 = arith.mulf %851, %858 : vector<8x128xf32>
    %cst_250 = arith.constant 1.000000e+00 : f32
    %860 = vector.broadcast %cst_250 : f32 to vector<8x128xf32>
    %861 = arith.addf %860, %859 : vector<8x128xf32>
    %cst_251 = arith.constant -1.21101496E-22 : f32
    %862 = vector.broadcast %cst_251 : f32 to vector<8x128xf32>
    %863 = arith.mulf %851, %862 : vector<8x128xf32>
    %cst_252 = arith.constant 8.13802098E-16 : f32
    %864 = vector.broadcast %cst_252 : f32 to vector<8x128xf32>
    %865 = arith.addf %864, %863 : vector<8x128xf32>
    %866 = arith.mulf %851, %865 : vector<8x128xf32>
    %cst_253 = arith.constant -2.60416666E-9 : f32
    %867 = vector.broadcast %cst_253 : f32 to vector<8x128xf32>
    %868 = arith.addf %867, %866 : vector<8x128xf32>
    %869 = arith.mulf %851, %868 : vector<8x128xf32>
    %cst_254 = arith.constant 2.500000e-03 : f32
    %870 = vector.broadcast %cst_254 : f32 to vector<8x128xf32>
    %871 = arith.addf %870, %869 : vector<8x128xf32>
    %872 = arith.mulf %871, %842 : vector<8x128xf32>
    %873 = arith.mulf %871, %844 : vector<8x128xf32>
    %874 = arith.mulf %871, %846 : vector<8x128xf32>
    %c0_255 = arith.constant 0 : index
    %c45 = arith.constant 45 : index
    %c0_256 = arith.constant 0 : index
    %c0_257 = arith.constant 0 : index
    %875 = vector.load %arg1[%c0_255, %c45, %c0_256, %c0_257] : memref<1x96x8x128xf32, #tpu.memory_space<vmem>>, vector<1x1x8x128xf32>
    %876 = vector.shape_cast %875 : vector<1x1x8x128xf32> to vector<8x128xf32>
    %c0_258 = arith.constant 0 : index
    %c46 = arith.constant 46 : index
    %c0_259 = arith.constant 0 : index
    %c0_260 = arith.constant 0 : index
    %877 = vector.load %arg1[%c0_258, %c46, %c0_259, %c0_260] : memref<1x96x8x128xf32, #tpu.memory_space<vmem>>, vector<1x1x8x128xf32>
    %878 = vector.shape_cast %877 : vector<1x1x8x128xf32> to vector<8x128xf32>
    %c0_261 = arith.constant 0 : index
    %c47 = arith.constant 47 : index
    %c0_262 = arith.constant 0 : index
    %c0_263 = arith.constant 0 : index
    %879 = vector.load %arg1[%c0_261, %c47, %c0_262, %c0_263] : memref<1x96x8x128xf32, #tpu.memory_space<vmem>>, vector<1x1x8x128xf32>
    %880 = vector.shape_cast %879 : vector<1x1x8x128xf32> to vector<8x128xf32>
    %881 = arith.mulf %876, %876 : vector<8x128xf32>
    %882 = arith.mulf %878, %878 : vector<8x128xf32>
    %883 = arith.addf %881, %882 : vector<8x128xf32>
    %884 = arith.mulf %880, %880 : vector<8x128xf32>
    %885 = arith.addf %883, %884 : vector<8x128xf32>
    %cst_264 = arith.constant -3.3908421E-19 : f32
    %886 = vector.broadcast %cst_264 : f32 to vector<8x128xf32>
    %887 = arith.mulf %885, %886 : vector<8x128xf32>
    %cst_265 = arith.constant 1.62760419E-12 : f32
    %888 = vector.broadcast %cst_265 : f32 to vector<8x128xf32>
    %889 = arith.addf %888, %887 : vector<8x128xf32>
    %890 = arith.mulf %885, %889 : vector<8x128xf32>
    %cst_266 = arith.constant -3.125000e-06 : f32
    %891 = vector.broadcast %cst_266 : f32 to vector<8x128xf32>
    %892 = arith.addf %891, %890 : vector<8x128xf32>
    %893 = arith.mulf %885, %892 : vector<8x128xf32>
    %cst_267 = arith.constant 1.000000e+00 : f32
    %894 = vector.broadcast %cst_267 : f32 to vector<8x128xf32>
    %895 = arith.addf %894, %893 : vector<8x128xf32>
    %cst_268 = arith.constant -1.21101496E-22 : f32
    %896 = vector.broadcast %cst_268 : f32 to vector<8x128xf32>
    %897 = arith.mulf %885, %896 : vector<8x128xf32>
    %cst_269 = arith.constant 8.13802098E-16 : f32
    %898 = vector.broadcast %cst_269 : f32 to vector<8x128xf32>
    %899 = arith.addf %898, %897 : vector<8x128xf32>
    %900 = arith.mulf %885, %899 : vector<8x128xf32>
    %cst_270 = arith.constant -2.60416666E-9 : f32
    %901 = vector.broadcast %cst_270 : f32 to vector<8x128xf32>
    %902 = arith.addf %901, %900 : vector<8x128xf32>
    %903 = arith.mulf %885, %902 : vector<8x128xf32>
    %cst_271 = arith.constant 2.500000e-03 : f32
    %904 = vector.broadcast %cst_271 : f32 to vector<8x128xf32>
    %905 = arith.addf %904, %903 : vector<8x128xf32>
    %906 = arith.mulf %905, %876 : vector<8x128xf32>
    %907 = arith.mulf %905, %878 : vector<8x128xf32>
    %908 = arith.mulf %905, %880 : vector<8x128xf32>
    %909 = arith.mulf %861, %895 : vector<8x128xf32>
    %910 = arith.mulf %872, %906 : vector<8x128xf32>
    %911 = arith.subf %909, %910 : vector<8x128xf32>
    %912 = arith.mulf %873, %907 : vector<8x128xf32>
    %913 = arith.subf %911, %912 : vector<8x128xf32>
    %914 = arith.mulf %874, %908 : vector<8x128xf32>
    %915 = arith.subf %913, %914 : vector<8x128xf32>
    %916 = arith.mulf %861, %906 : vector<8x128xf32>
    %917 = arith.mulf %872, %895 : vector<8x128xf32>
    %918 = arith.addf %916, %917 : vector<8x128xf32>
    %919 = arith.mulf %873, %908 : vector<8x128xf32>
    %920 = arith.addf %918, %919 : vector<8x128xf32>
    %921 = arith.mulf %874, %907 : vector<8x128xf32>
    %922 = arith.subf %920, %921 : vector<8x128xf32>
    %923 = arith.mulf %861, %907 : vector<8x128xf32>
    %924 = arith.mulf %872, %908 : vector<8x128xf32>
    %925 = arith.subf %923, %924 : vector<8x128xf32>
    %926 = arith.mulf %873, %895 : vector<8x128xf32>
    %927 = arith.addf %925, %926 : vector<8x128xf32>
    %928 = arith.mulf %874, %906 : vector<8x128xf32>
    %929 = arith.addf %927, %928 : vector<8x128xf32>
    %930 = arith.mulf %861, %908 : vector<8x128xf32>
    %931 = arith.mulf %872, %907 : vector<8x128xf32>
    %932 = arith.addf %930, %931 : vector<8x128xf32>
    %933 = arith.mulf %873, %906 : vector<8x128xf32>
    %934 = arith.subf %932, %933 : vector<8x128xf32>
    %935 = arith.mulf %874, %895 : vector<8x128xf32>
    %936 = arith.addf %934, %935 : vector<8x128xf32>
    %937 = arith.mulf %819, %915 : vector<8x128xf32>
    %938 = arith.mulf %826, %922 : vector<8x128xf32>
    %939 = arith.subf %937, %938 : vector<8x128xf32>
    %940 = arith.mulf %833, %929 : vector<8x128xf32>
    %941 = arith.subf %939, %940 : vector<8x128xf32>
    %942 = arith.mulf %840, %936 : vector<8x128xf32>
    %943 = arith.subf %941, %942 : vector<8x128xf32>
    %944 = arith.mulf %819, %922 : vector<8x128xf32>
    %945 = arith.mulf %826, %915 : vector<8x128xf32>
    %946 = arith.addf %944, %945 : vector<8x128xf32>
    %947 = arith.mulf %833, %936 : vector<8x128xf32>
    %948 = arith.addf %946, %947 : vector<8x128xf32>
    %949 = arith.mulf %840, %929 : vector<8x128xf32>
    %950 = arith.subf %948, %949 : vector<8x128xf32>
    %951 = arith.mulf %819, %929 : vector<8x128xf32>
    %952 = arith.mulf %826, %936 : vector<8x128xf32>
    %953 = arith.subf %951, %952 : vector<8x128xf32>
    %954 = arith.mulf %833, %915 : vector<8x128xf32>
    %955 = arith.addf %953, %954 : vector<8x128xf32>
    %956 = arith.mulf %840, %922 : vector<8x128xf32>
    %957 = arith.addf %955, %956 : vector<8x128xf32>
    %958 = arith.mulf %819, %936 : vector<8x128xf32>
    %959 = arith.mulf %826, %929 : vector<8x128xf32>
    %960 = arith.addf %958, %959 : vector<8x128xf32>
    %961 = arith.mulf %833, %922 : vector<8x128xf32>
    %962 = arith.subf %960, %961 : vector<8x128xf32>
    %963 = arith.mulf %840, %915 : vector<8x128xf32>
    %964 = arith.addf %962, %963 : vector<8x128xf32>
    %c0_272 = arith.constant 0 : index
    %c0_273 = arith.constant 0 : index
    %c0_274 = arith.constant 0 : index
    %c0_275 = arith.constant 0 : index
    %965 = vector.load %arg2[%c0_272, %c0_273, %c0_274, %c0_275] : memref<1x6x8x128xf32, #tpu.memory_space<vmem>>, vector<1x1x8x128xf32>
    %966 = vector.shape_cast %965 : vector<1x1x8x128xf32> to vector<8x128xf32>
    %c0_276 = arith.constant 0 : index
    %c1_277 = arith.constant 1 : index
    %c0_278 = arith.constant 0 : index
    %c0_279 = arith.constant 0 : index
    %967 = vector.load %arg2[%c0_276, %c1_277, %c0_278, %c0_279] : memref<1x6x8x128xf32, #tpu.memory_space<vmem>>, vector<1x1x8x128xf32>
    %968 = vector.shape_cast %967 : vector<1x1x8x128xf32> to vector<8x128xf32>
    %c0_280 = arith.constant 0 : index
    %c2_281 = arith.constant 2 : index
    %c0_282 = arith.constant 0 : index
    %c0_283 = arith.constant 0 : index
    %969 = vector.load %arg2[%c0_280, %c2_281, %c0_282, %c0_283] : memref<1x6x8x128xf32, #tpu.memory_space<vmem>>, vector<1x1x8x128xf32>
    %970 = vector.shape_cast %969 : vector<1x1x8x128xf32> to vector<8x128xf32>
    %971 = arith.mulf %966, %966 : vector<8x128xf32>
    %972 = arith.mulf %968, %968 : vector<8x128xf32>
    %973 = arith.addf %971, %972 : vector<8x128xf32>
    %974 = arith.mulf %970, %970 : vector<8x128xf32>
    %975 = arith.addf %973, %974 : vector<8x128xf32>
    %cst_284 = arith.constant 0.00260416674 : f32
    %976 = vector.broadcast %cst_284 : f32 to vector<8x128xf32>
    %977 = arith.mulf %975, %976 : vector<8x128xf32>
    %cst_285 = arith.constant -1.250000e-01 : f32
    %978 = vector.broadcast %cst_285 : f32 to vector<8x128xf32>
    %979 = arith.addf %978, %977 : vector<8x128xf32>
    %980 = arith.mulf %975, %979 : vector<8x128xf32>
    %cst_286 = arith.constant 1.000000e+00 : f32
    %981 = vector.broadcast %cst_286 : f32 to vector<8x128xf32>
    %982 = arith.addf %981, %980 : vector<8x128xf32>
    %cst_287 = arith.constant 2.6041668E-4 : f32
    %983 = vector.broadcast %cst_287 : f32 to vector<8x128xf32>
    %984 = arith.mulf %975, %983 : vector<8x128xf32>
    %cst_288 = arith.constant -0.020833334 : f32
    %985 = vector.broadcast %cst_288 : f32 to vector<8x128xf32>
    %986 = arith.addf %985, %984 : vector<8x128xf32>
    %987 = arith.mulf %975, %986 : vector<8x128xf32>
    %cst_289 = arith.constant 5.000000e-01 : f32
    %988 = vector.broadcast %cst_289 : f32 to vector<8x128xf32>
    %989 = arith.addf %988, %987 : vector<8x128xf32>
    %cst_290 = arith.constant 9.99999996E-13 : f32
    %990 = vector.broadcast %cst_290 : f32 to vector<8x128xf32>
    %991 = arith.maximumf %975, %990 : vector<8x128xf32>
    %992 = math.rsqrt %991 : vector<8x128xf32>
    %993 = arith.mulf %975, %992 : vector<8x128xf32>
    %cst_291 = arith.constant 5.000000e-01 : f32
    %994 = vector.broadcast %cst_291 : f32 to vector<8x128xf32>
    %995 = arith.mulf %994, %993 : vector<8x128xf32>
    %996 = math.cos %995 : vector<8x128xf32>
    %997 = math.sin %995 : vector<8x128xf32>
    %998 = arith.mulf %997, %992 : vector<8x128xf32>
    %cst_292 = arith.constant 9.99999997E-7 : f32
    %999 = vector.broadcast %cst_292 : f32 to vector<8x128xf32>
    %1000 = arith.cmpf olt, %975, %999 : vector<8x128xf32>
    %1001 = arith.select %1000, %982, %996 : vector<8x128xi1>, vector<8x128xf32>
    %1002 = arith.select %1000, %989, %998 : vector<8x128xi1>, vector<8x128xf32>
    %1003 = arith.mulf %1002, %966 : vector<8x128xf32>
    %1004 = arith.mulf %1002, %968 : vector<8x128xf32>
    %1005 = arith.mulf %1002, %970 : vector<8x128xf32>
    %1006 = arith.mulf %943, %1001 : vector<8x128xf32>
    %1007 = arith.mulf %950, %1003 : vector<8x128xf32>
    %1008 = arith.addf %1006, %1007 : vector<8x128xf32>
    %1009 = arith.mulf %957, %1004 : vector<8x128xf32>
    %1010 = arith.addf %1008, %1009 : vector<8x128xf32>
    %1011 = arith.mulf %964, %1005 : vector<8x128xf32>
    %1012 = arith.addf %1010, %1011 : vector<8x128xf32>
    %1013 = arith.mulf %943, %1003 : vector<8x128xf32>
    %1014 = arith.mulf %950, %1001 : vector<8x128xf32>
    %1015 = arith.subf %1013, %1014 : vector<8x128xf32>
    %1016 = arith.mulf %957, %1005 : vector<8x128xf32>
    %1017 = arith.subf %1015, %1016 : vector<8x128xf32>
    %1018 = arith.mulf %964, %1004 : vector<8x128xf32>
    %1019 = arith.addf %1017, %1018 : vector<8x128xf32>
    %1020 = arith.mulf %943, %1004 : vector<8x128xf32>
    %1021 = arith.mulf %950, %1005 : vector<8x128xf32>
    %1022 = arith.addf %1020, %1021 : vector<8x128xf32>
    %1023 = arith.mulf %957, %1001 : vector<8x128xf32>
    %1024 = arith.subf %1022, %1023 : vector<8x128xf32>
    %1025 = arith.mulf %964, %1003 : vector<8x128xf32>
    %1026 = arith.subf %1024, %1025 : vector<8x128xf32>
    %1027 = arith.mulf %943, %1005 : vector<8x128xf32>
    %1028 = arith.mulf %950, %1004 : vector<8x128xf32>
    %1029 = arith.subf %1027, %1028 : vector<8x128xf32>
    %1030 = arith.mulf %957, %1003 : vector<8x128xf32>
    %1031 = arith.addf %1029, %1030 : vector<8x128xf32>
    %1032 = arith.mulf %964, %1001 : vector<8x128xf32>
    %1033 = arith.subf %1031, %1032 : vector<8x128xf32>
    %1034 = arith.mulf %1012, %1012 : vector<8x128xf32>
    %1035 = arith.mulf %1019, %1019 : vector<8x128xf32>
    %1036 = arith.addf %1034, %1035 : vector<8x128xf32>
    %1037 = arith.mulf %1026, %1026 : vector<8x128xf32>
    %1038 = arith.addf %1036, %1037 : vector<8x128xf32>
    %1039 = arith.mulf %1033, %1033 : vector<8x128xf32>
    %1040 = arith.addf %1038, %1039 : vector<8x128xf32>
    %1041 = math.rsqrt %1040 : vector<8x128xf32>
    %1042 = arith.mulf %1012, %1041 : vector<8x128xf32>
    %cst_293 = arith.constant 2.000000e+00 : f32
    %1043 = vector.broadcast %cst_293 : f32 to vector<8x128xf32>
    %1044 = arith.mulf %1043, %1042 : vector<8x128xf32>
    %1045 = arith.mulf %1044, %1042 : vector<8x128xf32>
    %cst_294 = arith.constant 1.000000e+00 : f32
    %1046 = vector.broadcast %cst_294 : f32 to vector<8x128xf32>
    %1047 = arith.subf %1045, %1046 : vector<8x128xf32>
    %cst_295 = arith.constant -1.000000e+00 : f32
    %cst_296 = arith.constant 1.000000e+00 : f32
    %1048 = vector.broadcast %cst_295 : f32 to vector<8x128xf32>
    %1049 = arith.maximumf %1048, %1047 : vector<8x128xf32>
    %1050 = vector.broadcast %cst_296 : f32 to vector<8x128xf32>
    %1051 = arith.minimumf %1050, %1049 : vector<8x128xf32>
    %1052 = math.absf %1051 : vector<8x128xf32>
    %cst_297 = arith.constant -0.0012624911 : f32
    %1053 = vector.broadcast %cst_297 : f32 to vector<8x128xf32>
    %1054 = arith.mulf %1053, %1052 : vector<8x128xf32>
    %cst_298 = arith.constant 6.670090e-03 : f32
    %1055 = vector.broadcast %cst_298 : f32 to vector<8x128xf32>
    %1056 = arith.addf %1054, %1055 : vector<8x128xf32>
    %1057 = arith.mulf %1056, %1052 : vector<8x128xf32>
    %cst_299 = arith.constant -0.0170881264 : f32
    %1058 = vector.broadcast %cst_299 : f32 to vector<8x128xf32>
    %1059 = arith.addf %1057, %1058 : vector<8x128xf32>
    %1060 = arith.mulf %1059, %1052 : vector<8x128xf32>
    %cst_300 = arith.constant 0.0308918804 : f32
    %1061 = vector.broadcast %cst_300 : f32 to vector<8x128xf32>
    %1062 = arith.addf %1060, %1061 : vector<8x128xf32>
    %1063 = arith.mulf %1062, %1052 : vector<8x128xf32>
    %cst_301 = arith.constant -0.0501743034 : f32
    %1064 = vector.broadcast %cst_301 : f32 to vector<8x128xf32>
    %1065 = arith.addf %1063, %1064 : vector<8x128xf32>
    %1066 = arith.mulf %1065, %1052 : vector<8x128xf32>
    %cst_302 = arith.constant 0.0889789909 : f32
    %1067 = vector.broadcast %cst_302 : f32 to vector<8x128xf32>
    %1068 = arith.addf %1066, %1067 : vector<8x128xf32>
    %1069 = arith.mulf %1068, %1052 : vector<8x128xf32>
    %cst_303 = arith.constant -0.214598805 : f32
    %1070 = vector.broadcast %cst_303 : f32 to vector<8x128xf32>
    %1071 = arith.addf %1069, %1070 : vector<8x128xf32>
    %1072 = arith.mulf %1071, %1052 : vector<8x128xf32>
    %cst_304 = arith.constant 1.57079625 : f32
    %1073 = vector.broadcast %cst_304 : f32 to vector<8x128xf32>
    %1074 = arith.addf %1072, %1073 : vector<8x128xf32>
    %cst_305 = arith.constant 1.000000e+00 : f32
    %1075 = vector.broadcast %cst_305 : f32 to vector<8x128xf32>
    %1076 = arith.subf %1075, %1052 : vector<8x128xf32>
    %cst_306 = arith.constant 0.000000e+00 : f32
    %1077 = vector.broadcast %cst_306 : f32 to vector<8x128xf32>
    %1078 = arith.maximumf %1076, %1077 : vector<8x128xf32>
    %1079 = math.sqrt %1078 : vector<8x128xf32>
    %1080 = arith.mulf %1079, %1074 : vector<8x128xf32>
    %cst_307 = arith.constant 0.000000e+00 : f32
    %1081 = vector.broadcast %cst_307 : f32 to vector<8x128xf32>
    %1082 = arith.cmpf oge, %1051, %1081 : vector<8x128xf32>
    %cst_308 = arith.constant 3.14159274 : f32
    %1083 = vector.broadcast %cst_308 : f32 to vector<8x128xf32>
    %1084 = arith.subf %1083, %1080 : vector<8x128xf32>
    %1085 = arith.select %1082, %1080, %1084 : vector<8x128xi1>, vector<8x128xf32>
    %cst_309 = arith.constant 2.000000e+00 : f32
    %1086 = vector.broadcast %cst_309 : f32 to vector<8x128xf32>
    %1087 = arith.mulf %1086, %1085 : vector<8x128xf32>
    %1088 = arith.mulf %1087, %1042 : vector<8x128xf32>
    %1089 = arith.mulf %1051, %1051 : vector<8x128xf32>
    %cst_310 = arith.constant 1.000000e+00 : f32
    %1090 = vector.broadcast %cst_310 : f32 to vector<8x128xf32>
    %1091 = arith.subf %1090, %1089 : vector<8x128xf32>
    %cst_311 = arith.constant 0.000000e+00 : f32
    %1092 = vector.broadcast %cst_311 : f32 to vector<8x128xf32>
    %1093 = arith.maximumf %1091, %1092 : vector<8x128xf32>
    %cst_312 = arith.constant 9.99999968E-21 : f32
    %1094 = vector.broadcast %cst_312 : f32 to vector<8x128xf32>
    %1095 = arith.addf %1093, %1094 : vector<8x128xf32>
    %1096 = math.rsqrt %1095 : vector<8x128xf32>
    %1097 = arith.mulf %1088, %1096 : vector<8x128xf32>
    %1098 = arith.mulf %1097, %1041 : vector<8x128xf32>
    %1099 = arith.mulf %1098, %1019 : vector<8x128xf32>
    %1100 = arith.mulf %1098, %1026 : vector<8x128xf32>
    %1101 = arith.mulf %1098, %1033 : vector<8x128xf32>
    %cst_313 = arith.constant 2.000000e+02 : f32
    %1102 = vector.broadcast %cst_313 : f32 to vector<8x128xf32>
    %1103 = arith.mulf %1099, %1102 : vector<8x128xf32>
    %1104 = math.absf %1103 : vector<8x128xf32>
    %cst_314 = arith.constant 1.000000e+00 : f32
    %1105 = vector.broadcast %cst_314 : f32 to vector<8x128xf32>
    %1106 = arith.cmpf olt, %1104, %1105 : vector<8x128xf32>
    %cst_315 = arith.constant 5.000000e-01 : f32
    %1107 = vector.broadcast %cst_315 : f32 to vector<8x128xf32>
    %1108 = arith.mulf %1107, %1103 : vector<8x128xf32>
    %1109 = arith.mulf %1108, %1103 : vector<8x128xf32>
    %cst_316 = arith.constant 5.000000e-01 : f32
    %1110 = vector.broadcast %cst_316 : f32 to vector<8x128xf32>
    %1111 = arith.subf %1104, %1110 : vector<8x128xf32>
    %1112 = arith.select %1106, %1109, %1111 : vector<8x128xi1>, vector<8x128xf32>
    %cst_317 = arith.constant 2.000000e+02 : f32
    %1113 = vector.broadcast %cst_317 : f32 to vector<8x128xf32>
    %1114 = arith.mulf %1100, %1113 : vector<8x128xf32>
    %1115 = math.absf %1114 : vector<8x128xf32>
    %cst_318 = arith.constant 1.000000e+00 : f32
    %1116 = vector.broadcast %cst_318 : f32 to vector<8x128xf32>
    %1117 = arith.cmpf olt, %1115, %1116 : vector<8x128xf32>
    %cst_319 = arith.constant 5.000000e-01 : f32
    %1118 = vector.broadcast %cst_319 : f32 to vector<8x128xf32>
    %1119 = arith.mulf %1118, %1114 : vector<8x128xf32>
    %1120 = arith.mulf %1119, %1114 : vector<8x128xf32>
    %cst_320 = arith.constant 5.000000e-01 : f32
    %1121 = vector.broadcast %cst_320 : f32 to vector<8x128xf32>
    %1122 = arith.subf %1115, %1121 : vector<8x128xf32>
    %1123 = arith.select %1117, %1120, %1122 : vector<8x128xi1>, vector<8x128xf32>
    %1124 = arith.addf %1112, %1123 : vector<8x128xf32>
    %cst_321 = arith.constant 2.000000e+02 : f32
    %1125 = vector.broadcast %cst_321 : f32 to vector<8x128xf32>
    %1126 = arith.mulf %1101, %1125 : vector<8x128xf32>
    %1127 = math.absf %1126 : vector<8x128xf32>
    %cst_322 = arith.constant 1.000000e+00 : f32
    %1128 = vector.broadcast %cst_322 : f32 to vector<8x128xf32>
    %1129 = arith.cmpf olt, %1127, %1128 : vector<8x128xf32>
    %cst_323 = arith.constant 5.000000e-01 : f32
    %1130 = vector.broadcast %cst_323 : f32 to vector<8x128xf32>
    %1131 = arith.mulf %1130, %1126 : vector<8x128xf32>
    %1132 = arith.mulf %1131, %1126 : vector<8x128xf32>
    %cst_324 = arith.constant 5.000000e-01 : f32
    %1133 = vector.broadcast %cst_324 : f32 to vector<8x128xf32>
    %1134 = arith.subf %1127, %1133 : vector<8x128xf32>
    %1135 = arith.select %1129, %1132, %1134 : vector<8x128xi1>, vector<8x128xf32>
    %1136 = arith.addf %1124, %1135 : vector<8x128xf32>
    %c0_325 = arith.constant 0 : index
    %c0_326 = arith.constant 0 : index
    %c0_327 = arith.constant 0 : index
    %c0_328 = arith.constant 0 : index
    %1137 = vector.load %arg4[%c0_325, %c0_326, %c0_327, %c0_328] : memref<1x3x8x128xf32, #tpu.memory_space<vmem>>, vector<1x1x8x128xf32>
    %1138 = vector.shape_cast %1137 : vector<1x1x8x128xf32> to vector<8x128xf32>
    %1139 = arith.mulf %1136, %1138 : vector<8x128xf32>
    %c0_329 = arith.constant 0 : index
    %c48 = arith.constant 48 : index
    %c0_330 = arith.constant 0 : index
    %c0_331 = arith.constant 0 : index
    %1140 = vector.load %arg1[%c0_329, %c48, %c0_330, %c0_331] : memref<1x96x8x128xf32, #tpu.memory_space<vmem>>, vector<1x1x8x128xf32>
    %1141 = vector.shape_cast %1140 : vector<1x1x8x128xf32> to vector<8x128xf32>
    %c0_332 = arith.constant 0 : index
    %c49 = arith.constant 49 : index
    %c0_333 = arith.constant 0 : index
    %c0_334 = arith.constant 0 : index
    %1142 = vector.load %arg1[%c0_332, %c49, %c0_333, %c0_334] : memref<1x96x8x128xf32, #tpu.memory_space<vmem>>, vector<1x1x8x128xf32>
    %1143 = vector.shape_cast %1142 : vector<1x1x8x128xf32> to vector<8x128xf32>
    %c0_335 = arith.constant 0 : index
    %c50 = arith.constant 50 : index
    %c0_336 = arith.constant 0 : index
    %c0_337 = arith.constant 0 : index
    %1144 = vector.load %arg1[%c0_335, %c50, %c0_336, %c0_337] : memref<1x96x8x128xf32, #tpu.memory_space<vmem>>, vector<1x1x8x128xf32>
    %1145 = vector.shape_cast %1144 : vector<1x1x8x128xf32> to vector<8x128xf32>
    %1146 = arith.mulf %1141, %1141 : vector<8x128xf32>
    %1147 = arith.mulf %1143, %1143 : vector<8x128xf32>
    %1148 = arith.addf %1146, %1147 : vector<8x128xf32>
    %1149 = arith.mulf %1145, %1145 : vector<8x128xf32>
    %1150 = arith.addf %1148, %1149 : vector<8x128xf32>
    %cst_338 = arith.constant -3.3908421E-19 : f32
    %1151 = vector.broadcast %cst_338 : f32 to vector<8x128xf32>
    %1152 = arith.mulf %1150, %1151 : vector<8x128xf32>
    %cst_339 = arith.constant 1.62760419E-12 : f32
    %1153 = vector.broadcast %cst_339 : f32 to vector<8x128xf32>
    %1154 = arith.addf %1153, %1152 : vector<8x128xf32>
    %1155 = arith.mulf %1150, %1154 : vector<8x128xf32>
    %cst_340 = arith.constant -3.125000e-06 : f32
    %1156 = vector.broadcast %cst_340 : f32 to vector<8x128xf32>
    %1157 = arith.addf %1156, %1155 : vector<8x128xf32>
    %1158 = arith.mulf %1150, %1157 : vector<8x128xf32>
    %cst_341 = arith.constant 1.000000e+00 : f32
    %1159 = vector.broadcast %cst_341 : f32 to vector<8x128xf32>
    %1160 = arith.addf %1159, %1158 : vector<8x128xf32>
    %cst_342 = arith.constant -1.21101496E-22 : f32
    %1161 = vector.broadcast %cst_342 : f32 to vector<8x128xf32>
    %1162 = arith.mulf %1150, %1161 : vector<8x128xf32>
    %cst_343 = arith.constant 8.13802098E-16 : f32
    %1163 = vector.broadcast %cst_343 : f32 to vector<8x128xf32>
    %1164 = arith.addf %1163, %1162 : vector<8x128xf32>
    %1165 = arith.mulf %1150, %1164 : vector<8x128xf32>
    %cst_344 = arith.constant -2.60416666E-9 : f32
    %1166 = vector.broadcast %cst_344 : f32 to vector<8x128xf32>
    %1167 = arith.addf %1166, %1165 : vector<8x128xf32>
    %1168 = arith.mulf %1150, %1167 : vector<8x128xf32>
    %cst_345 = arith.constant 2.500000e-03 : f32
    %1169 = vector.broadcast %cst_345 : f32 to vector<8x128xf32>
    %1170 = arith.addf %1169, %1168 : vector<8x128xf32>
    %1171 = arith.mulf %1170, %1141 : vector<8x128xf32>
    %1172 = arith.mulf %1170, %1143 : vector<8x128xf32>
    %1173 = arith.mulf %1170, %1145 : vector<8x128xf32>
    %c0_346 = arith.constant 0 : index
    %c51 = arith.constant 51 : index
    %c0_347 = arith.constant 0 : index
    %c0_348 = arith.constant 0 : index
    %1174 = vector.load %arg1[%c0_346, %c51, %c0_347, %c0_348] : memref<1x96x8x128xf32, #tpu.memory_space<vmem>>, vector<1x1x8x128xf32>
    %1175 = vector.shape_cast %1174 : vector<1x1x8x128xf32> to vector<8x128xf32>
    %c0_349 = arith.constant 0 : index
    %c52 = arith.constant 52 : index
    %c0_350 = arith.constant 0 : index
    %c0_351 = arith.constant 0 : index
    %1176 = vector.load %arg1[%c0_349, %c52, %c0_350, %c0_351] : memref<1x96x8x128xf32, #tpu.memory_space<vmem>>, vector<1x1x8x128xf32>
    %1177 = vector.shape_cast %1176 : vector<1x1x8x128xf32> to vector<8x128xf32>
    %c0_352 = arith.constant 0 : index
    %c53 = arith.constant 53 : index
    %c0_353 = arith.constant 0 : index
    %c0_354 = arith.constant 0 : index
    %1178 = vector.load %arg1[%c0_352, %c53, %c0_353, %c0_354] : memref<1x96x8x128xf32, #tpu.memory_space<vmem>>, vector<1x1x8x128xf32>
    %1179 = vector.shape_cast %1178 : vector<1x1x8x128xf32> to vector<8x128xf32>
    %1180 = arith.mulf %1175, %1175 : vector<8x128xf32>
    %1181 = arith.mulf %1177, %1177 : vector<8x128xf32>
    %1182 = arith.addf %1180, %1181 : vector<8x128xf32>
    %1183 = arith.mulf %1179, %1179 : vector<8x128xf32>
    %1184 = arith.addf %1182, %1183 : vector<8x128xf32>
    %cst_355 = arith.constant -3.3908421E-19 : f32
    %1185 = vector.broadcast %cst_355 : f32 to vector<8x128xf32>
    %1186 = arith.mulf %1184, %1185 : vector<8x128xf32>
    %cst_356 = arith.constant 1.62760419E-12 : f32
    %1187 = vector.broadcast %cst_356 : f32 to vector<8x128xf32>
    %1188 = arith.addf %1187, %1186 : vector<8x128xf32>
    %1189 = arith.mulf %1184, %1188 : vector<8x128xf32>
    %cst_357 = arith.constant -3.125000e-06 : f32
    %1190 = vector.broadcast %cst_357 : f32 to vector<8x128xf32>
    %1191 = arith.addf %1190, %1189 : vector<8x128xf32>
    %1192 = arith.mulf %1184, %1191 : vector<8x128xf32>
    %cst_358 = arith.constant 1.000000e+00 : f32
    %1193 = vector.broadcast %cst_358 : f32 to vector<8x128xf32>
    %1194 = arith.addf %1193, %1192 : vector<8x128xf32>
    %cst_359 = arith.constant -1.21101496E-22 : f32
    %1195 = vector.broadcast %cst_359 : f32 to vector<8x128xf32>
    %1196 = arith.mulf %1184, %1195 : vector<8x128xf32>
    %cst_360 = arith.constant 8.13802098E-16 : f32
    %1197 = vector.broadcast %cst_360 : f32 to vector<8x128xf32>
    %1198 = arith.addf %1197, %1196 : vector<8x128xf32>
    %1199 = arith.mulf %1184, %1198 : vector<8x128xf32>
    %cst_361 = arith.constant -2.60416666E-9 : f32
    %1200 = vector.broadcast %cst_361 : f32 to vector<8x128xf32>
    %1201 = arith.addf %1200, %1199 : vector<8x128xf32>
    %1202 = arith.mulf %1184, %1201 : vector<8x128xf32>
    %cst_362 = arith.constant 2.500000e-03 : f32
    %1203 = vector.broadcast %cst_362 : f32 to vector<8x128xf32>
    %1204 = arith.addf %1203, %1202 : vector<8x128xf32>
    %1205 = arith.mulf %1204, %1175 : vector<8x128xf32>
    %1206 = arith.mulf %1204, %1177 : vector<8x128xf32>
    %1207 = arith.mulf %1204, %1179 : vector<8x128xf32>
    %1208 = arith.mulf %1160, %1194 : vector<8x128xf32>
    %1209 = arith.mulf %1171, %1205 : vector<8x128xf32>
    %1210 = arith.subf %1208, %1209 : vector<8x128xf32>
    %1211 = arith.mulf %1172, %1206 : vector<8x128xf32>
    %1212 = arith.subf %1210, %1211 : vector<8x128xf32>
    %1213 = arith.mulf %1173, %1207 : vector<8x128xf32>
    %1214 = arith.subf %1212, %1213 : vector<8x128xf32>
    %1215 = arith.mulf %1160, %1205 : vector<8x128xf32>
    %1216 = arith.mulf %1171, %1194 : vector<8x128xf32>
    %1217 = arith.addf %1215, %1216 : vector<8x128xf32>
    %1218 = arith.mulf %1172, %1207 : vector<8x128xf32>
    %1219 = arith.addf %1217, %1218 : vector<8x128xf32>
    %1220 = arith.mulf %1173, %1206 : vector<8x128xf32>
    %1221 = arith.subf %1219, %1220 : vector<8x128xf32>
    %1222 = arith.mulf %1160, %1206 : vector<8x128xf32>
    %1223 = arith.mulf %1171, %1207 : vector<8x128xf32>
    %1224 = arith.subf %1222, %1223 : vector<8x128xf32>
    %1225 = arith.mulf %1172, %1194 : vector<8x128xf32>
    %1226 = arith.addf %1224, %1225 : vector<8x128xf32>
    %1227 = arith.mulf %1173, %1205 : vector<8x128xf32>
    %1228 = arith.addf %1226, %1227 : vector<8x128xf32>
    %1229 = arith.mulf %1160, %1207 : vector<8x128xf32>
    %1230 = arith.mulf %1171, %1206 : vector<8x128xf32>
    %1231 = arith.addf %1229, %1230 : vector<8x128xf32>
    %1232 = arith.mulf %1172, %1205 : vector<8x128xf32>
    %1233 = arith.subf %1231, %1232 : vector<8x128xf32>
    %1234 = arith.mulf %1173, %1194 : vector<8x128xf32>
    %1235 = arith.addf %1233, %1234 : vector<8x128xf32>
    %c0_363 = arith.constant 0 : index
    %c54 = arith.constant 54 : index
    %c0_364 = arith.constant 0 : index
    %c0_365 = arith.constant 0 : index
    %1236 = vector.load %arg1[%c0_363, %c54, %c0_364, %c0_365] : memref<1x96x8x128xf32, #tpu.memory_space<vmem>>, vector<1x1x8x128xf32>
    %1237 = vector.shape_cast %1236 : vector<1x1x8x128xf32> to vector<8x128xf32>
    %c0_366 = arith.constant 0 : index
    %c55 = arith.constant 55 : index
    %c0_367 = arith.constant 0 : index
    %c0_368 = arith.constant 0 : index
    %1238 = vector.load %arg1[%c0_366, %c55, %c0_367, %c0_368] : memref<1x96x8x128xf32, #tpu.memory_space<vmem>>, vector<1x1x8x128xf32>
    %1239 = vector.shape_cast %1238 : vector<1x1x8x128xf32> to vector<8x128xf32>
    %c0_369 = arith.constant 0 : index
    %c56 = arith.constant 56 : index
    %c0_370 = arith.constant 0 : index
    %c0_371 = arith.constant 0 : index
    %1240 = vector.load %arg1[%c0_369, %c56, %c0_370, %c0_371] : memref<1x96x8x128xf32, #tpu.memory_space<vmem>>, vector<1x1x8x128xf32>
    %1241 = vector.shape_cast %1240 : vector<1x1x8x128xf32> to vector<8x128xf32>
    %1242 = arith.mulf %1237, %1237 : vector<8x128xf32>
    %1243 = arith.mulf %1239, %1239 : vector<8x128xf32>
    %1244 = arith.addf %1242, %1243 : vector<8x128xf32>
    %1245 = arith.mulf %1241, %1241 : vector<8x128xf32>
    %1246 = arith.addf %1244, %1245 : vector<8x128xf32>
    %cst_372 = arith.constant -3.3908421E-19 : f32
    %1247 = vector.broadcast %cst_372 : f32 to vector<8x128xf32>
    %1248 = arith.mulf %1246, %1247 : vector<8x128xf32>
    %cst_373 = arith.constant 1.62760419E-12 : f32
    %1249 = vector.broadcast %cst_373 : f32 to vector<8x128xf32>
    %1250 = arith.addf %1249, %1248 : vector<8x128xf32>
    %1251 = arith.mulf %1246, %1250 : vector<8x128xf32>
    %cst_374 = arith.constant -3.125000e-06 : f32
    %1252 = vector.broadcast %cst_374 : f32 to vector<8x128xf32>
    %1253 = arith.addf %1252, %1251 : vector<8x128xf32>
    %1254 = arith.mulf %1246, %1253 : vector<8x128xf32>
    %cst_375 = arith.constant 1.000000e+00 : f32
    %1255 = vector.broadcast %cst_375 : f32 to vector<8x128xf32>
    %1256 = arith.addf %1255, %1254 : vector<8x128xf32>
    %cst_376 = arith.constant -1.21101496E-22 : f32
    %1257 = vector.broadcast %cst_376 : f32 to vector<8x128xf32>
    %1258 = arith.mulf %1246, %1257 : vector<8x128xf32>
    %cst_377 = arith.constant 8.13802098E-16 : f32
    %1259 = vector.broadcast %cst_377 : f32 to vector<8x128xf32>
    %1260 = arith.addf %1259, %1258 : vector<8x128xf32>
    %1261 = arith.mulf %1246, %1260 : vector<8x128xf32>
    %cst_378 = arith.constant -2.60416666E-9 : f32
    %1262 = vector.broadcast %cst_378 : f32 to vector<8x128xf32>
    %1263 = arith.addf %1262, %1261 : vector<8x128xf32>
    %1264 = arith.mulf %1246, %1263 : vector<8x128xf32>
    %cst_379 = arith.constant 2.500000e-03 : f32
    %1265 = vector.broadcast %cst_379 : f32 to vector<8x128xf32>
    %1266 = arith.addf %1265, %1264 : vector<8x128xf32>
    %1267 = arith.mulf %1266, %1237 : vector<8x128xf32>
    %1268 = arith.mulf %1266, %1239 : vector<8x128xf32>
    %1269 = arith.mulf %1266, %1241 : vector<8x128xf32>
    %c0_380 = arith.constant 0 : index
    %c57 = arith.constant 57 : index
    %c0_381 = arith.constant 0 : index
    %c0_382 = arith.constant 0 : index
    %1270 = vector.load %arg1[%c0_380, %c57, %c0_381, %c0_382] : memref<1x96x8x128xf32, #tpu.memory_space<vmem>>, vector<1x1x8x128xf32>
    %1271 = vector.shape_cast %1270 : vector<1x1x8x128xf32> to vector<8x128xf32>
    %c0_383 = arith.constant 0 : index
    %c58 = arith.constant 58 : index
    %c0_384 = arith.constant 0 : index
    %c0_385 = arith.constant 0 : index
    %1272 = vector.load %arg1[%c0_383, %c58, %c0_384, %c0_385] : memref<1x96x8x128xf32, #tpu.memory_space<vmem>>, vector<1x1x8x128xf32>
    %1273 = vector.shape_cast %1272 : vector<1x1x8x128xf32> to vector<8x128xf32>
    %c0_386 = arith.constant 0 : index
    %c59 = arith.constant 59 : index
    %c0_387 = arith.constant 0 : index
    %c0_388 = arith.constant 0 : index
    %1274 = vector.load %arg1[%c0_386, %c59, %c0_387, %c0_388] : memref<1x96x8x128xf32, #tpu.memory_space<vmem>>, vector<1x1x8x128xf32>
    %1275 = vector.shape_cast %1274 : vector<1x1x8x128xf32> to vector<8x128xf32>
    %1276 = arith.mulf %1271, %1271 : vector<8x128xf32>
    %1277 = arith.mulf %1273, %1273 : vector<8x128xf32>
    %1278 = arith.addf %1276, %1277 : vector<8x128xf32>
    %1279 = arith.mulf %1275, %1275 : vector<8x128xf32>
    %1280 = arith.addf %1278, %1279 : vector<8x128xf32>
    %cst_389 = arith.constant -3.3908421E-19 : f32
    %1281 = vector.broadcast %cst_389 : f32 to vector<8x128xf32>
    %1282 = arith.mulf %1280, %1281 : vector<8x128xf32>
    %cst_390 = arith.constant 1.62760419E-12 : f32
    %1283 = vector.broadcast %cst_390 : f32 to vector<8x128xf32>
    %1284 = arith.addf %1283, %1282 : vector<8x128xf32>
    %1285 = arith.mulf %1280, %1284 : vector<8x128xf32>
    %cst_391 = arith.constant -3.125000e-06 : f32
    %1286 = vector.broadcast %cst_391 : f32 to vector<8x128xf32>
    %1287 = arith.addf %1286, %1285 : vector<8x128xf32>
    %1288 = arith.mulf %1280, %1287 : vector<8x128xf32>
    %cst_392 = arith.constant 1.000000e+00 : f32
    %1289 = vector.broadcast %cst_392 : f32 to vector<8x128xf32>
    %1290 = arith.addf %1289, %1288 : vector<8x128xf32>
    %cst_393 = arith.constant -1.21101496E-22 : f32
    %1291 = vector.broadcast %cst_393 : f32 to vector<8x128xf32>
    %1292 = arith.mulf %1280, %1291 : vector<8x128xf32>
    %cst_394 = arith.constant 8.13802098E-16 : f32
    %1293 = vector.broadcast %cst_394 : f32 to vector<8x128xf32>
    %1294 = arith.addf %1293, %1292 : vector<8x128xf32>
    %1295 = arith.mulf %1280, %1294 : vector<8x128xf32>
    %cst_395 = arith.constant -2.60416666E-9 : f32
    %1296 = vector.broadcast %cst_395 : f32 to vector<8x128xf32>
    %1297 = arith.addf %1296, %1295 : vector<8x128xf32>
    %1298 = arith.mulf %1280, %1297 : vector<8x128xf32>
    %cst_396 = arith.constant 2.500000e-03 : f32
    %1299 = vector.broadcast %cst_396 : f32 to vector<8x128xf32>
    %1300 = arith.addf %1299, %1298 : vector<8x128xf32>
    %1301 = arith.mulf %1300, %1271 : vector<8x128xf32>
    %1302 = arith.mulf %1300, %1273 : vector<8x128xf32>
    %1303 = arith.mulf %1300, %1275 : vector<8x128xf32>
    %1304 = arith.mulf %1256, %1290 : vector<8x128xf32>
    %1305 = arith.mulf %1267, %1301 : vector<8x128xf32>
    %1306 = arith.subf %1304, %1305 : vector<8x128xf32>
    %1307 = arith.mulf %1268, %1302 : vector<8x128xf32>
    %1308 = arith.subf %1306, %1307 : vector<8x128xf32>
    %1309 = arith.mulf %1269, %1303 : vector<8x128xf32>
    %1310 = arith.subf %1308, %1309 : vector<8x128xf32>
    %1311 = arith.mulf %1256, %1301 : vector<8x128xf32>
    %1312 = arith.mulf %1267, %1290 : vector<8x128xf32>
    %1313 = arith.addf %1311, %1312 : vector<8x128xf32>
    %1314 = arith.mulf %1268, %1303 : vector<8x128xf32>
    %1315 = arith.addf %1313, %1314 : vector<8x128xf32>
    %1316 = arith.mulf %1269, %1302 : vector<8x128xf32>
    %1317 = arith.subf %1315, %1316 : vector<8x128xf32>
    %1318 = arith.mulf %1256, %1302 : vector<8x128xf32>
    %1319 = arith.mulf %1267, %1303 : vector<8x128xf32>
    %1320 = arith.subf %1318, %1319 : vector<8x128xf32>
    %1321 = arith.mulf %1268, %1290 : vector<8x128xf32>
    %1322 = arith.addf %1320, %1321 : vector<8x128xf32>
    %1323 = arith.mulf %1269, %1301 : vector<8x128xf32>
    %1324 = arith.addf %1322, %1323 : vector<8x128xf32>
    %1325 = arith.mulf %1256, %1303 : vector<8x128xf32>
    %1326 = arith.mulf %1267, %1302 : vector<8x128xf32>
    %1327 = arith.addf %1325, %1326 : vector<8x128xf32>
    %1328 = arith.mulf %1268, %1301 : vector<8x128xf32>
    %1329 = arith.subf %1327, %1328 : vector<8x128xf32>
    %1330 = arith.mulf %1269, %1290 : vector<8x128xf32>
    %1331 = arith.addf %1329, %1330 : vector<8x128xf32>
    %1332 = arith.mulf %1214, %1310 : vector<8x128xf32>
    %1333 = arith.mulf %1221, %1317 : vector<8x128xf32>
    %1334 = arith.subf %1332, %1333 : vector<8x128xf32>
    %1335 = arith.mulf %1228, %1324 : vector<8x128xf32>
    %1336 = arith.subf %1334, %1335 : vector<8x128xf32>
    %1337 = arith.mulf %1235, %1331 : vector<8x128xf32>
    %1338 = arith.subf %1336, %1337 : vector<8x128xf32>
    %1339 = arith.mulf %1214, %1317 : vector<8x128xf32>
    %1340 = arith.mulf %1221, %1310 : vector<8x128xf32>
    %1341 = arith.addf %1339, %1340 : vector<8x128xf32>
    %1342 = arith.mulf %1228, %1331 : vector<8x128xf32>
    %1343 = arith.addf %1341, %1342 : vector<8x128xf32>
    %1344 = arith.mulf %1235, %1324 : vector<8x128xf32>
    %1345 = arith.subf %1343, %1344 : vector<8x128xf32>
    %1346 = arith.mulf %1214, %1324 : vector<8x128xf32>
    %1347 = arith.mulf %1221, %1331 : vector<8x128xf32>
    %1348 = arith.subf %1346, %1347 : vector<8x128xf32>
    %1349 = arith.mulf %1228, %1310 : vector<8x128xf32>
    %1350 = arith.addf %1348, %1349 : vector<8x128xf32>
    %1351 = arith.mulf %1235, %1317 : vector<8x128xf32>
    %1352 = arith.addf %1350, %1351 : vector<8x128xf32>
    %1353 = arith.mulf %1214, %1331 : vector<8x128xf32>
    %1354 = arith.mulf %1221, %1324 : vector<8x128xf32>
    %1355 = arith.addf %1353, %1354 : vector<8x128xf32>
    %1356 = arith.mulf %1228, %1317 : vector<8x128xf32>
    %1357 = arith.subf %1355, %1356 : vector<8x128xf32>
    %1358 = arith.mulf %1235, %1310 : vector<8x128xf32>
    %1359 = arith.addf %1357, %1358 : vector<8x128xf32>
    %c0_397 = arith.constant 0 : index
    %c60 = arith.constant 60 : index
    %c0_398 = arith.constant 0 : index
    %c0_399 = arith.constant 0 : index
    %1360 = vector.load %arg1[%c0_397, %c60, %c0_398, %c0_399] : memref<1x96x8x128xf32, #tpu.memory_space<vmem>>, vector<1x1x8x128xf32>
    %1361 = vector.shape_cast %1360 : vector<1x1x8x128xf32> to vector<8x128xf32>
    %c0_400 = arith.constant 0 : index
    %c61 = arith.constant 61 : index
    %c0_401 = arith.constant 0 : index
    %c0_402 = arith.constant 0 : index
    %1362 = vector.load %arg1[%c0_400, %c61, %c0_401, %c0_402] : memref<1x96x8x128xf32, #tpu.memory_space<vmem>>, vector<1x1x8x128xf32>
    %1363 = vector.shape_cast %1362 : vector<1x1x8x128xf32> to vector<8x128xf32>
    %c0_403 = arith.constant 0 : index
    %c62 = arith.constant 62 : index
    %c0_404 = arith.constant 0 : index
    %c0_405 = arith.constant 0 : index
    %1364 = vector.load %arg1[%c0_403, %c62, %c0_404, %c0_405] : memref<1x96x8x128xf32, #tpu.memory_space<vmem>>, vector<1x1x8x128xf32>
    %1365 = vector.shape_cast %1364 : vector<1x1x8x128xf32> to vector<8x128xf32>
    %1366 = arith.mulf %1361, %1361 : vector<8x128xf32>
    %1367 = arith.mulf %1363, %1363 : vector<8x128xf32>
    %1368 = arith.addf %1366, %1367 : vector<8x128xf32>
    %1369 = arith.mulf %1365, %1365 : vector<8x128xf32>
    %1370 = arith.addf %1368, %1369 : vector<8x128xf32>
    %cst_406 = arith.constant -3.3908421E-19 : f32
    %1371 = vector.broadcast %cst_406 : f32 to vector<8x128xf32>
    %1372 = arith.mulf %1370, %1371 : vector<8x128xf32>
    %cst_407 = arith.constant 1.62760419E-12 : f32
    %1373 = vector.broadcast %cst_407 : f32 to vector<8x128xf32>
    %1374 = arith.addf %1373, %1372 : vector<8x128xf32>
    %1375 = arith.mulf %1370, %1374 : vector<8x128xf32>
    %cst_408 = arith.constant -3.125000e-06 : f32
    %1376 = vector.broadcast %cst_408 : f32 to vector<8x128xf32>
    %1377 = arith.addf %1376, %1375 : vector<8x128xf32>
    %1378 = arith.mulf %1370, %1377 : vector<8x128xf32>
    %cst_409 = arith.constant 1.000000e+00 : f32
    %1379 = vector.broadcast %cst_409 : f32 to vector<8x128xf32>
    %1380 = arith.addf %1379, %1378 : vector<8x128xf32>
    %cst_410 = arith.constant -1.21101496E-22 : f32
    %1381 = vector.broadcast %cst_410 : f32 to vector<8x128xf32>
    %1382 = arith.mulf %1370, %1381 : vector<8x128xf32>
    %cst_411 = arith.constant 8.13802098E-16 : f32
    %1383 = vector.broadcast %cst_411 : f32 to vector<8x128xf32>
    %1384 = arith.addf %1383, %1382 : vector<8x128xf32>
    %1385 = arith.mulf %1370, %1384 : vector<8x128xf32>
    %cst_412 = arith.constant -2.60416666E-9 : f32
    %1386 = vector.broadcast %cst_412 : f32 to vector<8x128xf32>
    %1387 = arith.addf %1386, %1385 : vector<8x128xf32>
    %1388 = arith.mulf %1370, %1387 : vector<8x128xf32>
    %cst_413 = arith.constant 2.500000e-03 : f32
    %1389 = vector.broadcast %cst_413 : f32 to vector<8x128xf32>
    %1390 = arith.addf %1389, %1388 : vector<8x128xf32>
    %1391 = arith.mulf %1390, %1361 : vector<8x128xf32>
    %1392 = arith.mulf %1390, %1363 : vector<8x128xf32>
    %1393 = arith.mulf %1390, %1365 : vector<8x128xf32>
    %c0_414 = arith.constant 0 : index
    %c63 = arith.constant 63 : index
    %c0_415 = arith.constant 0 : index
    %c0_416 = arith.constant 0 : index
    %1394 = vector.load %arg1[%c0_414, %c63, %c0_415, %c0_416] : memref<1x96x8x128xf32, #tpu.memory_space<vmem>>, vector<1x1x8x128xf32>
    %1395 = vector.shape_cast %1394 : vector<1x1x8x128xf32> to vector<8x128xf32>
    %c0_417 = arith.constant 0 : index
    %c64 = arith.constant 64 : index
    %c0_418 = arith.constant 0 : index
    %c0_419 = arith.constant 0 : index
    %1396 = vector.load %arg1[%c0_417, %c64, %c0_418, %c0_419] : memref<1x96x8x128xf32, #tpu.memory_space<vmem>>, vector<1x1x8x128xf32>
    %1397 = vector.shape_cast %1396 : vector<1x1x8x128xf32> to vector<8x128xf32>
    %c0_420 = arith.constant 0 : index
    %c65 = arith.constant 65 : index
    %c0_421 = arith.constant 0 : index
    %c0_422 = arith.constant 0 : index
    %1398 = vector.load %arg1[%c0_420, %c65, %c0_421, %c0_422] : memref<1x96x8x128xf32, #tpu.memory_space<vmem>>, vector<1x1x8x128xf32>
    %1399 = vector.shape_cast %1398 : vector<1x1x8x128xf32> to vector<8x128xf32>
    %1400 = arith.mulf %1395, %1395 : vector<8x128xf32>
    %1401 = arith.mulf %1397, %1397 : vector<8x128xf32>
    %1402 = arith.addf %1400, %1401 : vector<8x128xf32>
    %1403 = arith.mulf %1399, %1399 : vector<8x128xf32>
    %1404 = arith.addf %1402, %1403 : vector<8x128xf32>
    %cst_423 = arith.constant -3.3908421E-19 : f32
    %1405 = vector.broadcast %cst_423 : f32 to vector<8x128xf32>
    %1406 = arith.mulf %1404, %1405 : vector<8x128xf32>
    %cst_424 = arith.constant 1.62760419E-12 : f32
    %1407 = vector.broadcast %cst_424 : f32 to vector<8x128xf32>
    %1408 = arith.addf %1407, %1406 : vector<8x128xf32>
    %1409 = arith.mulf %1404, %1408 : vector<8x128xf32>
    %cst_425 = arith.constant -3.125000e-06 : f32
    %1410 = vector.broadcast %cst_425 : f32 to vector<8x128xf32>
    %1411 = arith.addf %1410, %1409 : vector<8x128xf32>
    %1412 = arith.mulf %1404, %1411 : vector<8x128xf32>
    %cst_426 = arith.constant 1.000000e+00 : f32
    %1413 = vector.broadcast %cst_426 : f32 to vector<8x128xf32>
    %1414 = arith.addf %1413, %1412 : vector<8x128xf32>
    %cst_427 = arith.constant -1.21101496E-22 : f32
    %1415 = vector.broadcast %cst_427 : f32 to vector<8x128xf32>
    %1416 = arith.mulf %1404, %1415 : vector<8x128xf32>
    %cst_428 = arith.constant 8.13802098E-16 : f32
    %1417 = vector.broadcast %cst_428 : f32 to vector<8x128xf32>
    %1418 = arith.addf %1417, %1416 : vector<8x128xf32>
    %1419 = arith.mulf %1404, %1418 : vector<8x128xf32>
    %cst_429 = arith.constant -2.60416666E-9 : f32
    %1420 = vector.broadcast %cst_429 : f32 to vector<8x128xf32>
    %1421 = arith.addf %1420, %1419 : vector<8x128xf32>
    %1422 = arith.mulf %1404, %1421 : vector<8x128xf32>
    %cst_430 = arith.constant 2.500000e-03 : f32
    %1423 = vector.broadcast %cst_430 : f32 to vector<8x128xf32>
    %1424 = arith.addf %1423, %1422 : vector<8x128xf32>
    %1425 = arith.mulf %1424, %1395 : vector<8x128xf32>
    %1426 = arith.mulf %1424, %1397 : vector<8x128xf32>
    %1427 = arith.mulf %1424, %1399 : vector<8x128xf32>
    %1428 = arith.mulf %1380, %1414 : vector<8x128xf32>
    %1429 = arith.mulf %1391, %1425 : vector<8x128xf32>
    %1430 = arith.subf %1428, %1429 : vector<8x128xf32>
    %1431 = arith.mulf %1392, %1426 : vector<8x128xf32>
    %1432 = arith.subf %1430, %1431 : vector<8x128xf32>
    %1433 = arith.mulf %1393, %1427 : vector<8x128xf32>
    %1434 = arith.subf %1432, %1433 : vector<8x128xf32>
    %1435 = arith.mulf %1380, %1425 : vector<8x128xf32>
    %1436 = arith.mulf %1391, %1414 : vector<8x128xf32>
    %1437 = arith.addf %1435, %1436 : vector<8x128xf32>
    %1438 = arith.mulf %1392, %1427 : vector<8x128xf32>
    %1439 = arith.addf %1437, %1438 : vector<8x128xf32>
    %1440 = arith.mulf %1393, %1426 : vector<8x128xf32>
    %1441 = arith.subf %1439, %1440 : vector<8x128xf32>
    %1442 = arith.mulf %1380, %1426 : vector<8x128xf32>
    %1443 = arith.mulf %1391, %1427 : vector<8x128xf32>
    %1444 = arith.subf %1442, %1443 : vector<8x128xf32>
    %1445 = arith.mulf %1392, %1414 : vector<8x128xf32>
    %1446 = arith.addf %1444, %1445 : vector<8x128xf32>
    %1447 = arith.mulf %1393, %1425 : vector<8x128xf32>
    %1448 = arith.addf %1446, %1447 : vector<8x128xf32>
    %1449 = arith.mulf %1380, %1427 : vector<8x128xf32>
    %1450 = arith.mulf %1391, %1426 : vector<8x128xf32>
    %1451 = arith.addf %1449, %1450 : vector<8x128xf32>
    %1452 = arith.mulf %1392, %1425 : vector<8x128xf32>
    %1453 = arith.subf %1451, %1452 : vector<8x128xf32>
    %1454 = arith.mulf %1393, %1414 : vector<8x128xf32>
    %1455 = arith.addf %1453, %1454 : vector<8x128xf32>
    %1456 = arith.mulf %1338, %1434 : vector<8x128xf32>
    %1457 = arith.mulf %1345, %1441 : vector<8x128xf32>
    %1458 = arith.subf %1456, %1457 : vector<8x128xf32>
    %1459 = arith.mulf %1352, %1448 : vector<8x128xf32>
    %1460 = arith.subf %1458, %1459 : vector<8x128xf32>
    %1461 = arith.mulf %1359, %1455 : vector<8x128xf32>
    %1462 = arith.subf %1460, %1461 : vector<8x128xf32>
    %1463 = arith.mulf %1338, %1441 : vector<8x128xf32>
    %1464 = arith.mulf %1345, %1434 : vector<8x128xf32>
    %1465 = arith.addf %1463, %1464 : vector<8x128xf32>
    %1466 = arith.mulf %1352, %1455 : vector<8x128xf32>
    %1467 = arith.addf %1465, %1466 : vector<8x128xf32>
    %1468 = arith.mulf %1359, %1448 : vector<8x128xf32>
    %1469 = arith.subf %1467, %1468 : vector<8x128xf32>
    %1470 = arith.mulf %1338, %1448 : vector<8x128xf32>
    %1471 = arith.mulf %1345, %1455 : vector<8x128xf32>
    %1472 = arith.subf %1470, %1471 : vector<8x128xf32>
    %1473 = arith.mulf %1352, %1434 : vector<8x128xf32>
    %1474 = arith.addf %1472, %1473 : vector<8x128xf32>
    %1475 = arith.mulf %1359, %1441 : vector<8x128xf32>
    %1476 = arith.addf %1474, %1475 : vector<8x128xf32>
    %1477 = arith.mulf %1338, %1455 : vector<8x128xf32>
    %1478 = arith.mulf %1345, %1448 : vector<8x128xf32>
    %1479 = arith.addf %1477, %1478 : vector<8x128xf32>
    %1480 = arith.mulf %1352, %1441 : vector<8x128xf32>
    %1481 = arith.subf %1479, %1480 : vector<8x128xf32>
    %1482 = arith.mulf %1359, %1434 : vector<8x128xf32>
    %1483 = arith.addf %1481, %1482 : vector<8x128xf32>
    %c0_431 = arith.constant 0 : index
    %c66 = arith.constant 66 : index
    %c0_432 = arith.constant 0 : index
    %c0_433 = arith.constant 0 : index
    %1484 = vector.load %arg1[%c0_431, %c66, %c0_432, %c0_433] : memref<1x96x8x128xf32, #tpu.memory_space<vmem>>, vector<1x1x8x128xf32>
    %1485 = vector.shape_cast %1484 : vector<1x1x8x128xf32> to vector<8x128xf32>
    %c0_434 = arith.constant 0 : index
    %c67 = arith.constant 67 : index
    %c0_435 = arith.constant 0 : index
    %c0_436 = arith.constant 0 : index
    %1486 = vector.load %arg1[%c0_434, %c67, %c0_435, %c0_436] : memref<1x96x8x128xf32, #tpu.memory_space<vmem>>, vector<1x1x8x128xf32>
    %1487 = vector.shape_cast %1486 : vector<1x1x8x128xf32> to vector<8x128xf32>
    %c0_437 = arith.constant 0 : index
    %c68 = arith.constant 68 : index
    %c0_438 = arith.constant 0 : index
    %c0_439 = arith.constant 0 : index
    %1488 = vector.load %arg1[%c0_437, %c68, %c0_438, %c0_439] : memref<1x96x8x128xf32, #tpu.memory_space<vmem>>, vector<1x1x8x128xf32>
    %1489 = vector.shape_cast %1488 : vector<1x1x8x128xf32> to vector<8x128xf32>
    %1490 = arith.mulf %1485, %1485 : vector<8x128xf32>
    %1491 = arith.mulf %1487, %1487 : vector<8x128xf32>
    %1492 = arith.addf %1490, %1491 : vector<8x128xf32>
    %1493 = arith.mulf %1489, %1489 : vector<8x128xf32>
    %1494 = arith.addf %1492, %1493 : vector<8x128xf32>
    %cst_440 = arith.constant -3.3908421E-19 : f32
    %1495 = vector.broadcast %cst_440 : f32 to vector<8x128xf32>
    %1496 = arith.mulf %1494, %1495 : vector<8x128xf32>
    %cst_441 = arith.constant 1.62760419E-12 : f32
    %1497 = vector.broadcast %cst_441 : f32 to vector<8x128xf32>
    %1498 = arith.addf %1497, %1496 : vector<8x128xf32>
    %1499 = arith.mulf %1494, %1498 : vector<8x128xf32>
    %cst_442 = arith.constant -3.125000e-06 : f32
    %1500 = vector.broadcast %cst_442 : f32 to vector<8x128xf32>
    %1501 = arith.addf %1500, %1499 : vector<8x128xf32>
    %1502 = arith.mulf %1494, %1501 : vector<8x128xf32>
    %cst_443 = arith.constant 1.000000e+00 : f32
    %1503 = vector.broadcast %cst_443 : f32 to vector<8x128xf32>
    %1504 = arith.addf %1503, %1502 : vector<8x128xf32>
    %cst_444 = arith.constant -1.21101496E-22 : f32
    %1505 = vector.broadcast %cst_444 : f32 to vector<8x128xf32>
    %1506 = arith.mulf %1494, %1505 : vector<8x128xf32>
    %cst_445 = arith.constant 8.13802098E-16 : f32
    %1507 = vector.broadcast %cst_445 : f32 to vector<8x128xf32>
    %1508 = arith.addf %1507, %1506 : vector<8x128xf32>
    %1509 = arith.mulf %1494, %1508 : vector<8x128xf32>
    %cst_446 = arith.constant -2.60416666E-9 : f32
    %1510 = vector.broadcast %cst_446 : f32 to vector<8x128xf32>
    %1511 = arith.addf %1510, %1509 : vector<8x128xf32>
    %1512 = arith.mulf %1494, %1511 : vector<8x128xf32>
    %cst_447 = arith.constant 2.500000e-03 : f32
    %1513 = vector.broadcast %cst_447 : f32 to vector<8x128xf32>
    %1514 = arith.addf %1513, %1512 : vector<8x128xf32>
    %1515 = arith.mulf %1514, %1485 : vector<8x128xf32>
    %1516 = arith.mulf %1514, %1487 : vector<8x128xf32>
    %1517 = arith.mulf %1514, %1489 : vector<8x128xf32>
    %c0_448 = arith.constant 0 : index
    %c69 = arith.constant 69 : index
    %c0_449 = arith.constant 0 : index
    %c0_450 = arith.constant 0 : index
    %1518 = vector.load %arg1[%c0_448, %c69, %c0_449, %c0_450] : memref<1x96x8x128xf32, #tpu.memory_space<vmem>>, vector<1x1x8x128xf32>
    %1519 = vector.shape_cast %1518 : vector<1x1x8x128xf32> to vector<8x128xf32>
    %c0_451 = arith.constant 0 : index
    %c70 = arith.constant 70 : index
    %c0_452 = arith.constant 0 : index
    %c0_453 = arith.constant 0 : index
    %1520 = vector.load %arg1[%c0_451, %c70, %c0_452, %c0_453] : memref<1x96x8x128xf32, #tpu.memory_space<vmem>>, vector<1x1x8x128xf32>
    %1521 = vector.shape_cast %1520 : vector<1x1x8x128xf32> to vector<8x128xf32>
    %c0_454 = arith.constant 0 : index
    %c71 = arith.constant 71 : index
    %c0_455 = arith.constant 0 : index
    %c0_456 = arith.constant 0 : index
    %1522 = vector.load %arg1[%c0_454, %c71, %c0_455, %c0_456] : memref<1x96x8x128xf32, #tpu.memory_space<vmem>>, vector<1x1x8x128xf32>
    %1523 = vector.shape_cast %1522 : vector<1x1x8x128xf32> to vector<8x128xf32>
    %1524 = arith.mulf %1519, %1519 : vector<8x128xf32>
    %1525 = arith.mulf %1521, %1521 : vector<8x128xf32>
    %1526 = arith.addf %1524, %1525 : vector<8x128xf32>
    %1527 = arith.mulf %1523, %1523 : vector<8x128xf32>
    %1528 = arith.addf %1526, %1527 : vector<8x128xf32>
    %cst_457 = arith.constant -3.3908421E-19 : f32
    %1529 = vector.broadcast %cst_457 : f32 to vector<8x128xf32>
    %1530 = arith.mulf %1528, %1529 : vector<8x128xf32>
    %cst_458 = arith.constant 1.62760419E-12 : f32
    %1531 = vector.broadcast %cst_458 : f32 to vector<8x128xf32>
    %1532 = arith.addf %1531, %1530 : vector<8x128xf32>
    %1533 = arith.mulf %1528, %1532 : vector<8x128xf32>
    %cst_459 = arith.constant -3.125000e-06 : f32
    %1534 = vector.broadcast %cst_459 : f32 to vector<8x128xf32>
    %1535 = arith.addf %1534, %1533 : vector<8x128xf32>
    %1536 = arith.mulf %1528, %1535 : vector<8x128xf32>
    %cst_460 = arith.constant 1.000000e+00 : f32
    %1537 = vector.broadcast %cst_460 : f32 to vector<8x128xf32>
    %1538 = arith.addf %1537, %1536 : vector<8x128xf32>
    %cst_461 = arith.constant -1.21101496E-22 : f32
    %1539 = vector.broadcast %cst_461 : f32 to vector<8x128xf32>
    %1540 = arith.mulf %1528, %1539 : vector<8x128xf32>
    %cst_462 = arith.constant 8.13802098E-16 : f32
    %1541 = vector.broadcast %cst_462 : f32 to vector<8x128xf32>
    %1542 = arith.addf %1541, %1540 : vector<8x128xf32>
    %1543 = arith.mulf %1528, %1542 : vector<8x128xf32>
    %cst_463 = arith.constant -2.60416666E-9 : f32
    %1544 = vector.broadcast %cst_463 : f32 to vector<8x128xf32>
    %1545 = arith.addf %1544, %1543 : vector<8x128xf32>
    %1546 = arith.mulf %1528, %1545 : vector<8x128xf32>
    %cst_464 = arith.constant 2.500000e-03 : f32
    %1547 = vector.broadcast %cst_464 : f32 to vector<8x128xf32>
    %1548 = arith.addf %1547, %1546 : vector<8x128xf32>
    %1549 = arith.mulf %1548, %1519 : vector<8x128xf32>
    %1550 = arith.mulf %1548, %1521 : vector<8x128xf32>
    %1551 = arith.mulf %1548, %1523 : vector<8x128xf32>
    %1552 = arith.mulf %1504, %1538 : vector<8x128xf32>
    %1553 = arith.mulf %1515, %1549 : vector<8x128xf32>
    %1554 = arith.subf %1552, %1553 : vector<8x128xf32>
    %1555 = arith.mulf %1516, %1550 : vector<8x128xf32>
    %1556 = arith.subf %1554, %1555 : vector<8x128xf32>
    %1557 = arith.mulf %1517, %1551 : vector<8x128xf32>
    %1558 = arith.subf %1556, %1557 : vector<8x128xf32>
    %1559 = arith.mulf %1504, %1549 : vector<8x128xf32>
    %1560 = arith.mulf %1515, %1538 : vector<8x128xf32>
    %1561 = arith.addf %1559, %1560 : vector<8x128xf32>
    %1562 = arith.mulf %1516, %1551 : vector<8x128xf32>
    %1563 = arith.addf %1561, %1562 : vector<8x128xf32>
    %1564 = arith.mulf %1517, %1550 : vector<8x128xf32>
    %1565 = arith.subf %1563, %1564 : vector<8x128xf32>
    %1566 = arith.mulf %1504, %1550 : vector<8x128xf32>
    %1567 = arith.mulf %1515, %1551 : vector<8x128xf32>
    %1568 = arith.subf %1566, %1567 : vector<8x128xf32>
    %1569 = arith.mulf %1516, %1538 : vector<8x128xf32>
    %1570 = arith.addf %1568, %1569 : vector<8x128xf32>
    %1571 = arith.mulf %1517, %1549 : vector<8x128xf32>
    %1572 = arith.addf %1570, %1571 : vector<8x128xf32>
    %1573 = arith.mulf %1504, %1551 : vector<8x128xf32>
    %1574 = arith.mulf %1515, %1550 : vector<8x128xf32>
    %1575 = arith.addf %1573, %1574 : vector<8x128xf32>
    %1576 = arith.mulf %1516, %1549 : vector<8x128xf32>
    %1577 = arith.subf %1575, %1576 : vector<8x128xf32>
    %1578 = arith.mulf %1517, %1538 : vector<8x128xf32>
    %1579 = arith.addf %1577, %1578 : vector<8x128xf32>
    %1580 = arith.mulf %1462, %1558 : vector<8x128xf32>
    %1581 = arith.mulf %1469, %1565 : vector<8x128xf32>
    %1582 = arith.subf %1580, %1581 : vector<8x128xf32>
    %1583 = arith.mulf %1476, %1572 : vector<8x128xf32>
    %1584 = arith.subf %1582, %1583 : vector<8x128xf32>
    %1585 = arith.mulf %1483, %1579 : vector<8x128xf32>
    %1586 = arith.subf %1584, %1585 : vector<8x128xf32>
    %1587 = arith.mulf %1462, %1565 : vector<8x128xf32>
    %1588 = arith.mulf %1469, %1558 : vector<8x128xf32>
    %1589 = arith.addf %1587, %1588 : vector<8x128xf32>
    %1590 = arith.mulf %1476, %1579 : vector<8x128xf32>
    %1591 = arith.addf %1589, %1590 : vector<8x128xf32>
    %1592 = arith.mulf %1483, %1572 : vector<8x128xf32>
    %1593 = arith.subf %1591, %1592 : vector<8x128xf32>
    %1594 = arith.mulf %1462, %1572 : vector<8x128xf32>
    %1595 = arith.mulf %1469, %1579 : vector<8x128xf32>
    %1596 = arith.subf %1594, %1595 : vector<8x128xf32>
    %1597 = arith.mulf %1476, %1558 : vector<8x128xf32>
    %1598 = arith.addf %1596, %1597 : vector<8x128xf32>
    %1599 = arith.mulf %1483, %1565 : vector<8x128xf32>
    %1600 = arith.addf %1598, %1599 : vector<8x128xf32>
    %1601 = arith.mulf %1462, %1579 : vector<8x128xf32>
    %1602 = arith.mulf %1469, %1572 : vector<8x128xf32>
    %1603 = arith.addf %1601, %1602 : vector<8x128xf32>
    %1604 = arith.mulf %1476, %1565 : vector<8x128xf32>
    %1605 = arith.subf %1603, %1604 : vector<8x128xf32>
    %1606 = arith.mulf %1483, %1558 : vector<8x128xf32>
    %1607 = arith.addf %1605, %1606 : vector<8x128xf32>
    %c0_465 = arith.constant 0 : index
    %c72 = arith.constant 72 : index
    %c0_466 = arith.constant 0 : index
    %c0_467 = arith.constant 0 : index
    %1608 = vector.load %arg1[%c0_465, %c72, %c0_466, %c0_467] : memref<1x96x8x128xf32, #tpu.memory_space<vmem>>, vector<1x1x8x128xf32>
    %1609 = vector.shape_cast %1608 : vector<1x1x8x128xf32> to vector<8x128xf32>
    %c0_468 = arith.constant 0 : index
    %c73 = arith.constant 73 : index
    %c0_469 = arith.constant 0 : index
    %c0_470 = arith.constant 0 : index
    %1610 = vector.load %arg1[%c0_468, %c73, %c0_469, %c0_470] : memref<1x96x8x128xf32, #tpu.memory_space<vmem>>, vector<1x1x8x128xf32>
    %1611 = vector.shape_cast %1610 : vector<1x1x8x128xf32> to vector<8x128xf32>
    %c0_471 = arith.constant 0 : index
    %c74 = arith.constant 74 : index
    %c0_472 = arith.constant 0 : index
    %c0_473 = arith.constant 0 : index
    %1612 = vector.load %arg1[%c0_471, %c74, %c0_472, %c0_473] : memref<1x96x8x128xf32, #tpu.memory_space<vmem>>, vector<1x1x8x128xf32>
    %1613 = vector.shape_cast %1612 : vector<1x1x8x128xf32> to vector<8x128xf32>
    %1614 = arith.mulf %1609, %1609 : vector<8x128xf32>
    %1615 = arith.mulf %1611, %1611 : vector<8x128xf32>
    %1616 = arith.addf %1614, %1615 : vector<8x128xf32>
    %1617 = arith.mulf %1613, %1613 : vector<8x128xf32>
    %1618 = arith.addf %1616, %1617 : vector<8x128xf32>
    %cst_474 = arith.constant -3.3908421E-19 : f32
    %1619 = vector.broadcast %cst_474 : f32 to vector<8x128xf32>
    %1620 = arith.mulf %1618, %1619 : vector<8x128xf32>
    %cst_475 = arith.constant 1.62760419E-12 : f32
    %1621 = vector.broadcast %cst_475 : f32 to vector<8x128xf32>
    %1622 = arith.addf %1621, %1620 : vector<8x128xf32>
    %1623 = arith.mulf %1618, %1622 : vector<8x128xf32>
    %cst_476 = arith.constant -3.125000e-06 : f32
    %1624 = vector.broadcast %cst_476 : f32 to vector<8x128xf32>
    %1625 = arith.addf %1624, %1623 : vector<8x128xf32>
    %1626 = arith.mulf %1618, %1625 : vector<8x128xf32>
    %cst_477 = arith.constant 1.000000e+00 : f32
    %1627 = vector.broadcast %cst_477 : f32 to vector<8x128xf32>
    %1628 = arith.addf %1627, %1626 : vector<8x128xf32>
    %cst_478 = arith.constant -1.21101496E-22 : f32
    %1629 = vector.broadcast %cst_478 : f32 to vector<8x128xf32>
    %1630 = arith.mulf %1618, %1629 : vector<8x128xf32>
    %cst_479 = arith.constant 8.13802098E-16 : f32
    %1631 = vector.broadcast %cst_479 : f32 to vector<8x128xf32>
    %1632 = arith.addf %1631, %1630 : vector<8x128xf32>
    %1633 = arith.mulf %1618, %1632 : vector<8x128xf32>
    %cst_480 = arith.constant -2.60416666E-9 : f32
    %1634 = vector.broadcast %cst_480 : f32 to vector<8x128xf32>
    %1635 = arith.addf %1634, %1633 : vector<8x128xf32>
    %1636 = arith.mulf %1618, %1635 : vector<8x128xf32>
    %cst_481 = arith.constant 2.500000e-03 : f32
    %1637 = vector.broadcast %cst_481 : f32 to vector<8x128xf32>
    %1638 = arith.addf %1637, %1636 : vector<8x128xf32>
    %1639 = arith.mulf %1638, %1609 : vector<8x128xf32>
    %1640 = arith.mulf %1638, %1611 : vector<8x128xf32>
    %1641 = arith.mulf %1638, %1613 : vector<8x128xf32>
    %c0_482 = arith.constant 0 : index
    %c75 = arith.constant 75 : index
    %c0_483 = arith.constant 0 : index
    %c0_484 = arith.constant 0 : index
    %1642 = vector.load %arg1[%c0_482, %c75, %c0_483, %c0_484] : memref<1x96x8x128xf32, #tpu.memory_space<vmem>>, vector<1x1x8x128xf32>
    %1643 = vector.shape_cast %1642 : vector<1x1x8x128xf32> to vector<8x128xf32>
    %c0_485 = arith.constant 0 : index
    %c76 = arith.constant 76 : index
    %c0_486 = arith.constant 0 : index
    %c0_487 = arith.constant 0 : index
    %1644 = vector.load %arg1[%c0_485, %c76, %c0_486, %c0_487] : memref<1x96x8x128xf32, #tpu.memory_space<vmem>>, vector<1x1x8x128xf32>
    %1645 = vector.shape_cast %1644 : vector<1x1x8x128xf32> to vector<8x128xf32>
    %c0_488 = arith.constant 0 : index
    %c77 = arith.constant 77 : index
    %c0_489 = arith.constant 0 : index
    %c0_490 = arith.constant 0 : index
    %1646 = vector.load %arg1[%c0_488, %c77, %c0_489, %c0_490] : memref<1x96x8x128xf32, #tpu.memory_space<vmem>>, vector<1x1x8x128xf32>
    %1647 = vector.shape_cast %1646 : vector<1x1x8x128xf32> to vector<8x128xf32>
    %1648 = arith.mulf %1643, %1643 : vector<8x128xf32>
    %1649 = arith.mulf %1645, %1645 : vector<8x128xf32>
    %1650 = arith.addf %1648, %1649 : vector<8x128xf32>
    %1651 = arith.mulf %1647, %1647 : vector<8x128xf32>
    %1652 = arith.addf %1650, %1651 : vector<8x128xf32>
    %cst_491 = arith.constant -3.3908421E-19 : f32
    %1653 = vector.broadcast %cst_491 : f32 to vector<8x128xf32>
    %1654 = arith.mulf %1652, %1653 : vector<8x128xf32>
    %cst_492 = arith.constant 1.62760419E-12 : f32
    %1655 = vector.broadcast %cst_492 : f32 to vector<8x128xf32>
    %1656 = arith.addf %1655, %1654 : vector<8x128xf32>
    %1657 = arith.mulf %1652, %1656 : vector<8x128xf32>
    %cst_493 = arith.constant -3.125000e-06 : f32
    %1658 = vector.broadcast %cst_493 : f32 to vector<8x128xf32>
    %1659 = arith.addf %1658, %1657 : vector<8x128xf32>
    %1660 = arith.mulf %1652, %1659 : vector<8x128xf32>
    %cst_494 = arith.constant 1.000000e+00 : f32
    %1661 = vector.broadcast %cst_494 : f32 to vector<8x128xf32>
    %1662 = arith.addf %1661, %1660 : vector<8x128xf32>
    %cst_495 = arith.constant -1.21101496E-22 : f32
    %1663 = vector.broadcast %cst_495 : f32 to vector<8x128xf32>
    %1664 = arith.mulf %1652, %1663 : vector<8x128xf32>
    %cst_496 = arith.constant 8.13802098E-16 : f32
    %1665 = vector.broadcast %cst_496 : f32 to vector<8x128xf32>
    %1666 = arith.addf %1665, %1664 : vector<8x128xf32>
    %1667 = arith.mulf %1652, %1666 : vector<8x128xf32>
    %cst_497 = arith.constant -2.60416666E-9 : f32
    %1668 = vector.broadcast %cst_497 : f32 to vector<8x128xf32>
    %1669 = arith.addf %1668, %1667 : vector<8x128xf32>
    %1670 = arith.mulf %1652, %1669 : vector<8x128xf32>
    %cst_498 = arith.constant 2.500000e-03 : f32
    %1671 = vector.broadcast %cst_498 : f32 to vector<8x128xf32>
    %1672 = arith.addf %1671, %1670 : vector<8x128xf32>
    %1673 = arith.mulf %1672, %1643 : vector<8x128xf32>
    %1674 = arith.mulf %1672, %1645 : vector<8x128xf32>
    %1675 = arith.mulf %1672, %1647 : vector<8x128xf32>
    %1676 = arith.mulf %1628, %1662 : vector<8x128xf32>
    %1677 = arith.mulf %1639, %1673 : vector<8x128xf32>
    %1678 = arith.subf %1676, %1677 : vector<8x128xf32>
    %1679 = arith.mulf %1640, %1674 : vector<8x128xf32>
    %1680 = arith.subf %1678, %1679 : vector<8x128xf32>
    %1681 = arith.mulf %1641, %1675 : vector<8x128xf32>
    %1682 = arith.subf %1680, %1681 : vector<8x128xf32>
    %1683 = arith.mulf %1628, %1673 : vector<8x128xf32>
    %1684 = arith.mulf %1639, %1662 : vector<8x128xf32>
    %1685 = arith.addf %1683, %1684 : vector<8x128xf32>
    %1686 = arith.mulf %1640, %1675 : vector<8x128xf32>
    %1687 = arith.addf %1685, %1686 : vector<8x128xf32>
    %1688 = arith.mulf %1641, %1674 : vector<8x128xf32>
    %1689 = arith.subf %1687, %1688 : vector<8x128xf32>
    %1690 = arith.mulf %1628, %1674 : vector<8x128xf32>
    %1691 = arith.mulf %1639, %1675 : vector<8x128xf32>
    %1692 = arith.subf %1690, %1691 : vector<8x128xf32>
    %1693 = arith.mulf %1640, %1662 : vector<8x128xf32>
    %1694 = arith.addf %1692, %1693 : vector<8x128xf32>
    %1695 = arith.mulf %1641, %1673 : vector<8x128xf32>
    %1696 = arith.addf %1694, %1695 : vector<8x128xf32>
    %1697 = arith.mulf %1628, %1675 : vector<8x128xf32>
    %1698 = arith.mulf %1639, %1674 : vector<8x128xf32>
    %1699 = arith.addf %1697, %1698 : vector<8x128xf32>
    %1700 = arith.mulf %1640, %1673 : vector<8x128xf32>
    %1701 = arith.subf %1699, %1700 : vector<8x128xf32>
    %1702 = arith.mulf %1641, %1662 : vector<8x128xf32>
    %1703 = arith.addf %1701, %1702 : vector<8x128xf32>
    %1704 = arith.mulf %1586, %1682 : vector<8x128xf32>
    %1705 = arith.mulf %1593, %1689 : vector<8x128xf32>
    %1706 = arith.subf %1704, %1705 : vector<8x128xf32>
    %1707 = arith.mulf %1600, %1696 : vector<8x128xf32>
    %1708 = arith.subf %1706, %1707 : vector<8x128xf32>
    %1709 = arith.mulf %1607, %1703 : vector<8x128xf32>
    %1710 = arith.subf %1708, %1709 : vector<8x128xf32>
    %1711 = arith.mulf %1586, %1689 : vector<8x128xf32>
    %1712 = arith.mulf %1593, %1682 : vector<8x128xf32>
    %1713 = arith.addf %1711, %1712 : vector<8x128xf32>
    %1714 = arith.mulf %1600, %1703 : vector<8x128xf32>
    %1715 = arith.addf %1713, %1714 : vector<8x128xf32>
    %1716 = arith.mulf %1607, %1696 : vector<8x128xf32>
    %1717 = arith.subf %1715, %1716 : vector<8x128xf32>
    %1718 = arith.mulf %1586, %1696 : vector<8x128xf32>
    %1719 = arith.mulf %1593, %1703 : vector<8x128xf32>
    %1720 = arith.subf %1718, %1719 : vector<8x128xf32>
    %1721 = arith.mulf %1600, %1682 : vector<8x128xf32>
    %1722 = arith.addf %1720, %1721 : vector<8x128xf32>
    %1723 = arith.mulf %1607, %1689 : vector<8x128xf32>
    %1724 = arith.addf %1722, %1723 : vector<8x128xf32>
    %1725 = arith.mulf %1586, %1703 : vector<8x128xf32>
    %1726 = arith.mulf %1593, %1696 : vector<8x128xf32>
    %1727 = arith.addf %1725, %1726 : vector<8x128xf32>
    %1728 = arith.mulf %1600, %1689 : vector<8x128xf32>
    %1729 = arith.subf %1727, %1728 : vector<8x128xf32>
    %1730 = arith.mulf %1607, %1682 : vector<8x128xf32>
    %1731 = arith.addf %1729, %1730 : vector<8x128xf32>
    %c0_499 = arith.constant 0 : index
    %c78 = arith.constant 78 : index
    %c0_500 = arith.constant 0 : index
    %c0_501 = arith.constant 0 : index
    %1732 = vector.load %arg1[%c0_499, %c78, %c0_500, %c0_501] : memref<1x96x8x128xf32, #tpu.memory_space<vmem>>, vector<1x1x8x128xf32>
    %1733 = vector.shape_cast %1732 : vector<1x1x8x128xf32> to vector<8x128xf32>
    %c0_502 = arith.constant 0 : index
    %c79 = arith.constant 79 : index
    %c0_503 = arith.constant 0 : index
    %c0_504 = arith.constant 0 : index
    %1734 = vector.load %arg1[%c0_502, %c79, %c0_503, %c0_504] : memref<1x96x8x128xf32, #tpu.memory_space<vmem>>, vector<1x1x8x128xf32>
    %1735 = vector.shape_cast %1734 : vector<1x1x8x128xf32> to vector<8x128xf32>
    %c0_505 = arith.constant 0 : index
    %c80 = arith.constant 80 : index
    %c0_506 = arith.constant 0 : index
    %c0_507 = arith.constant 0 : index
    %1736 = vector.load %arg1[%c0_505, %c80, %c0_506, %c0_507] : memref<1x96x8x128xf32, #tpu.memory_space<vmem>>, vector<1x1x8x128xf32>
    %1737 = vector.shape_cast %1736 : vector<1x1x8x128xf32> to vector<8x128xf32>
    %1738 = arith.mulf %1733, %1733 : vector<8x128xf32>
    %1739 = arith.mulf %1735, %1735 : vector<8x128xf32>
    %1740 = arith.addf %1738, %1739 : vector<8x128xf32>
    %1741 = arith.mulf %1737, %1737 : vector<8x128xf32>
    %1742 = arith.addf %1740, %1741 : vector<8x128xf32>
    %cst_508 = arith.constant -3.3908421E-19 : f32
    %1743 = vector.broadcast %cst_508 : f32 to vector<8x128xf32>
    %1744 = arith.mulf %1742, %1743 : vector<8x128xf32>
    %cst_509 = arith.constant 1.62760419E-12 : f32
    %1745 = vector.broadcast %cst_509 : f32 to vector<8x128xf32>
    %1746 = arith.addf %1745, %1744 : vector<8x128xf32>
    %1747 = arith.mulf %1742, %1746 : vector<8x128xf32>
    %cst_510 = arith.constant -3.125000e-06 : f32
    %1748 = vector.broadcast %cst_510 : f32 to vector<8x128xf32>
    %1749 = arith.addf %1748, %1747 : vector<8x128xf32>
    %1750 = arith.mulf %1742, %1749 : vector<8x128xf32>
    %cst_511 = arith.constant 1.000000e+00 : f32
    %1751 = vector.broadcast %cst_511 : f32 to vector<8x128xf32>
    %1752 = arith.addf %1751, %1750 : vector<8x128xf32>
    %cst_512 = arith.constant -1.21101496E-22 : f32
    %1753 = vector.broadcast %cst_512 : f32 to vector<8x128xf32>
    %1754 = arith.mulf %1742, %1753 : vector<8x128xf32>
    %cst_513 = arith.constant 8.13802098E-16 : f32
    %1755 = vector.broadcast %cst_513 : f32 to vector<8x128xf32>
    %1756 = arith.addf %1755, %1754 : vector<8x128xf32>
    %1757 = arith.mulf %1742, %1756 : vector<8x128xf32>
    %cst_514 = arith.constant -2.60416666E-9 : f32
    %1758 = vector.broadcast %cst_514 : f32 to vector<8x128xf32>
    %1759 = arith.addf %1758, %1757 : vector<8x128xf32>
    %1760 = arith.mulf %1742, %1759 : vector<8x128xf32>
    %cst_515 = arith.constant 2.500000e-03 : f32
    %1761 = vector.broadcast %cst_515 : f32 to vector<8x128xf32>
    %1762 = arith.addf %1761, %1760 : vector<8x128xf32>
    %1763 = arith.mulf %1762, %1733 : vector<8x128xf32>
    %1764 = arith.mulf %1762, %1735 : vector<8x128xf32>
    %1765 = arith.mulf %1762, %1737 : vector<8x128xf32>
    %c0_516 = arith.constant 0 : index
    %c81 = arith.constant 81 : index
    %c0_517 = arith.constant 0 : index
    %c0_518 = arith.constant 0 : index
    %1766 = vector.load %arg1[%c0_516, %c81, %c0_517, %c0_518] : memref<1x96x8x128xf32, #tpu.memory_space<vmem>>, vector<1x1x8x128xf32>
    %1767 = vector.shape_cast %1766 : vector<1x1x8x128xf32> to vector<8x128xf32>
    %c0_519 = arith.constant 0 : index
    %c82 = arith.constant 82 : index
    %c0_520 = arith.constant 0 : index
    %c0_521 = arith.constant 0 : index
    %1768 = vector.load %arg1[%c0_519, %c82, %c0_520, %c0_521] : memref<1x96x8x128xf32, #tpu.memory_space<vmem>>, vector<1x1x8x128xf32>
    %1769 = vector.shape_cast %1768 : vector<1x1x8x128xf32> to vector<8x128xf32>
    %c0_522 = arith.constant 0 : index
    %c83 = arith.constant 83 : index
    %c0_523 = arith.constant 0 : index
    %c0_524 = arith.constant 0 : index
    %1770 = vector.load %arg1[%c0_522, %c83, %c0_523, %c0_524] : memref<1x96x8x128xf32, #tpu.memory_space<vmem>>, vector<1x1x8x128xf32>
    %1771 = vector.shape_cast %1770 : vector<1x1x8x128xf32> to vector<8x128xf32>
    %1772 = arith.mulf %1767, %1767 : vector<8x128xf32>
    %1773 = arith.mulf %1769, %1769 : vector<8x128xf32>
    %1774 = arith.addf %1772, %1773 : vector<8x128xf32>
    %1775 = arith.mulf %1771, %1771 : vector<8x128xf32>
    %1776 = arith.addf %1774, %1775 : vector<8x128xf32>
    %cst_525 = arith.constant -3.3908421E-19 : f32
    %1777 = vector.broadcast %cst_525 : f32 to vector<8x128xf32>
    %1778 = arith.mulf %1776, %1777 : vector<8x128xf32>
    %cst_526 = arith.constant 1.62760419E-12 : f32
    %1779 = vector.broadcast %cst_526 : f32 to vector<8x128xf32>
    %1780 = arith.addf %1779, %1778 : vector<8x128xf32>
    %1781 = arith.mulf %1776, %1780 : vector<8x128xf32>
    %cst_527 = arith.constant -3.125000e-06 : f32
    %1782 = vector.broadcast %cst_527 : f32 to vector<8x128xf32>
    %1783 = arith.addf %1782, %1781 : vector<8x128xf32>
    %1784 = arith.mulf %1776, %1783 : vector<8x128xf32>
    %cst_528 = arith.constant 1.000000e+00 : f32
    %1785 = vector.broadcast %cst_528 : f32 to vector<8x128xf32>
    %1786 = arith.addf %1785, %1784 : vector<8x128xf32>
    %cst_529 = arith.constant -1.21101496E-22 : f32
    %1787 = vector.broadcast %cst_529 : f32 to vector<8x128xf32>
    %1788 = arith.mulf %1776, %1787 : vector<8x128xf32>
    %cst_530 = arith.constant 8.13802098E-16 : f32
    %1789 = vector.broadcast %cst_530 : f32 to vector<8x128xf32>
    %1790 = arith.addf %1789, %1788 : vector<8x128xf32>
    %1791 = arith.mulf %1776, %1790 : vector<8x128xf32>
    %cst_531 = arith.constant -2.60416666E-9 : f32
    %1792 = vector.broadcast %cst_531 : f32 to vector<8x128xf32>
    %1793 = arith.addf %1792, %1791 : vector<8x128xf32>
    %1794 = arith.mulf %1776, %1793 : vector<8x128xf32>
    %cst_532 = arith.constant 2.500000e-03 : f32
    %1795 = vector.broadcast %cst_532 : f32 to vector<8x128xf32>
    %1796 = arith.addf %1795, %1794 : vector<8x128xf32>
    %1797 = arith.mulf %1796, %1767 : vector<8x128xf32>
    %1798 = arith.mulf %1796, %1769 : vector<8x128xf32>
    %1799 = arith.mulf %1796, %1771 : vector<8x128xf32>
    %1800 = arith.mulf %1752, %1786 : vector<8x128xf32>
    %1801 = arith.mulf %1763, %1797 : vector<8x128xf32>
    %1802 = arith.subf %1800, %1801 : vector<8x128xf32>
    %1803 = arith.mulf %1764, %1798 : vector<8x128xf32>
    %1804 = arith.subf %1802, %1803 : vector<8x128xf32>
    %1805 = arith.mulf %1765, %1799 : vector<8x128xf32>
    %1806 = arith.subf %1804, %1805 : vector<8x128xf32>
    %1807 = arith.mulf %1752, %1797 : vector<8x128xf32>
    %1808 = arith.mulf %1763, %1786 : vector<8x128xf32>
    %1809 = arith.addf %1807, %1808 : vector<8x128xf32>
    %1810 = arith.mulf %1764, %1799 : vector<8x128xf32>
    %1811 = arith.addf %1809, %1810 : vector<8x128xf32>
    %1812 = arith.mulf %1765, %1798 : vector<8x128xf32>
    %1813 = arith.subf %1811, %1812 : vector<8x128xf32>
    %1814 = arith.mulf %1752, %1798 : vector<8x128xf32>
    %1815 = arith.mulf %1763, %1799 : vector<8x128xf32>
    %1816 = arith.subf %1814, %1815 : vector<8x128xf32>
    %1817 = arith.mulf %1764, %1786 : vector<8x128xf32>
    %1818 = arith.addf %1816, %1817 : vector<8x128xf32>
    %1819 = arith.mulf %1765, %1797 : vector<8x128xf32>
    %1820 = arith.addf %1818, %1819 : vector<8x128xf32>
    %1821 = arith.mulf %1752, %1799 : vector<8x128xf32>
    %1822 = arith.mulf %1763, %1798 : vector<8x128xf32>
    %1823 = arith.addf %1821, %1822 : vector<8x128xf32>
    %1824 = arith.mulf %1764, %1797 : vector<8x128xf32>
    %1825 = arith.subf %1823, %1824 : vector<8x128xf32>
    %1826 = arith.mulf %1765, %1786 : vector<8x128xf32>
    %1827 = arith.addf %1825, %1826 : vector<8x128xf32>
    %1828 = arith.mulf %1710, %1806 : vector<8x128xf32>
    %1829 = arith.mulf %1717, %1813 : vector<8x128xf32>
    %1830 = arith.subf %1828, %1829 : vector<8x128xf32>
    %1831 = arith.mulf %1724, %1820 : vector<8x128xf32>
    %1832 = arith.subf %1830, %1831 : vector<8x128xf32>
    %1833 = arith.mulf %1731, %1827 : vector<8x128xf32>
    %1834 = arith.subf %1832, %1833 : vector<8x128xf32>
    %1835 = arith.mulf %1710, %1813 : vector<8x128xf32>
    %1836 = arith.mulf %1717, %1806 : vector<8x128xf32>
    %1837 = arith.addf %1835, %1836 : vector<8x128xf32>
    %1838 = arith.mulf %1724, %1827 : vector<8x128xf32>
    %1839 = arith.addf %1837, %1838 : vector<8x128xf32>
    %1840 = arith.mulf %1731, %1820 : vector<8x128xf32>
    %1841 = arith.subf %1839, %1840 : vector<8x128xf32>
    %1842 = arith.mulf %1710, %1820 : vector<8x128xf32>
    %1843 = arith.mulf %1717, %1827 : vector<8x128xf32>
    %1844 = arith.subf %1842, %1843 : vector<8x128xf32>
    %1845 = arith.mulf %1724, %1806 : vector<8x128xf32>
    %1846 = arith.addf %1844, %1845 : vector<8x128xf32>
    %1847 = arith.mulf %1731, %1813 : vector<8x128xf32>
    %1848 = arith.addf %1846, %1847 : vector<8x128xf32>
    %1849 = arith.mulf %1710, %1827 : vector<8x128xf32>
    %1850 = arith.mulf %1717, %1820 : vector<8x128xf32>
    %1851 = arith.addf %1849, %1850 : vector<8x128xf32>
    %1852 = arith.mulf %1724, %1813 : vector<8x128xf32>
    %1853 = arith.subf %1851, %1852 : vector<8x128xf32>
    %1854 = arith.mulf %1731, %1806 : vector<8x128xf32>
    %1855 = arith.addf %1853, %1854 : vector<8x128xf32>
    %c0_533 = arith.constant 0 : index
    %c84 = arith.constant 84 : index
    %c0_534 = arith.constant 0 : index
    %c0_535 = arith.constant 0 : index
    %1856 = vector.load %arg1[%c0_533, %c84, %c0_534, %c0_535] : memref<1x96x8x128xf32, #tpu.memory_space<vmem>>, vector<1x1x8x128xf32>
    %1857 = vector.shape_cast %1856 : vector<1x1x8x128xf32> to vector<8x128xf32>
    %c0_536 = arith.constant 0 : index
    %c85 = arith.constant 85 : index
    %c0_537 = arith.constant 0 : index
    %c0_538 = arith.constant 0 : index
    %1858 = vector.load %arg1[%c0_536, %c85, %c0_537, %c0_538] : memref<1x96x8x128xf32, #tpu.memory_space<vmem>>, vector<1x1x8x128xf32>
    %1859 = vector.shape_cast %1858 : vector<1x1x8x128xf32> to vector<8x128xf32>
    %c0_539 = arith.constant 0 : index
    %c86 = arith.constant 86 : index
    %c0_540 = arith.constant 0 : index
    %c0_541 = arith.constant 0 : index
    %1860 = vector.load %arg1[%c0_539, %c86, %c0_540, %c0_541] : memref<1x96x8x128xf32, #tpu.memory_space<vmem>>, vector<1x1x8x128xf32>
    %1861 = vector.shape_cast %1860 : vector<1x1x8x128xf32> to vector<8x128xf32>
    %1862 = arith.mulf %1857, %1857 : vector<8x128xf32>
    %1863 = arith.mulf %1859, %1859 : vector<8x128xf32>
    %1864 = arith.addf %1862, %1863 : vector<8x128xf32>
    %1865 = arith.mulf %1861, %1861 : vector<8x128xf32>
    %1866 = arith.addf %1864, %1865 : vector<8x128xf32>
    %cst_542 = arith.constant -3.3908421E-19 : f32
    %1867 = vector.broadcast %cst_542 : f32 to vector<8x128xf32>
    %1868 = arith.mulf %1866, %1867 : vector<8x128xf32>
    %cst_543 = arith.constant 1.62760419E-12 : f32
    %1869 = vector.broadcast %cst_543 : f32 to vector<8x128xf32>
    %1870 = arith.addf %1869, %1868 : vector<8x128xf32>
    %1871 = arith.mulf %1866, %1870 : vector<8x128xf32>
    %cst_544 = arith.constant -3.125000e-06 : f32
    %1872 = vector.broadcast %cst_544 : f32 to vector<8x128xf32>
    %1873 = arith.addf %1872, %1871 : vector<8x128xf32>
    %1874 = arith.mulf %1866, %1873 : vector<8x128xf32>
    %cst_545 = arith.constant 1.000000e+00 : f32
    %1875 = vector.broadcast %cst_545 : f32 to vector<8x128xf32>
    %1876 = arith.addf %1875, %1874 : vector<8x128xf32>
    %cst_546 = arith.constant -1.21101496E-22 : f32
    %1877 = vector.broadcast %cst_546 : f32 to vector<8x128xf32>
    %1878 = arith.mulf %1866, %1877 : vector<8x128xf32>
    %cst_547 = arith.constant 8.13802098E-16 : f32
    %1879 = vector.broadcast %cst_547 : f32 to vector<8x128xf32>
    %1880 = arith.addf %1879, %1878 : vector<8x128xf32>
    %1881 = arith.mulf %1866, %1880 : vector<8x128xf32>
    %cst_548 = arith.constant -2.60416666E-9 : f32
    %1882 = vector.broadcast %cst_548 : f32 to vector<8x128xf32>
    %1883 = arith.addf %1882, %1881 : vector<8x128xf32>
    %1884 = arith.mulf %1866, %1883 : vector<8x128xf32>
    %cst_549 = arith.constant 2.500000e-03 : f32
    %1885 = vector.broadcast %cst_549 : f32 to vector<8x128xf32>
    %1886 = arith.addf %1885, %1884 : vector<8x128xf32>
    %1887 = arith.mulf %1886, %1857 : vector<8x128xf32>
    %1888 = arith.mulf %1886, %1859 : vector<8x128xf32>
    %1889 = arith.mulf %1886, %1861 : vector<8x128xf32>
    %c0_550 = arith.constant 0 : index
    %c87 = arith.constant 87 : index
    %c0_551 = arith.constant 0 : index
    %c0_552 = arith.constant 0 : index
    %1890 = vector.load %arg1[%c0_550, %c87, %c0_551, %c0_552] : memref<1x96x8x128xf32, #tpu.memory_space<vmem>>, vector<1x1x8x128xf32>
    %1891 = vector.shape_cast %1890 : vector<1x1x8x128xf32> to vector<8x128xf32>
    %c0_553 = arith.constant 0 : index
    %c88 = arith.constant 88 : index
    %c0_554 = arith.constant 0 : index
    %c0_555 = arith.constant 0 : index
    %1892 = vector.load %arg1[%c0_553, %c88, %c0_554, %c0_555] : memref<1x96x8x128xf32, #tpu.memory_space<vmem>>, vector<1x1x8x128xf32>
    %1893 = vector.shape_cast %1892 : vector<1x1x8x128xf32> to vector<8x128xf32>
    %c0_556 = arith.constant 0 : index
    %c89 = arith.constant 89 : index
    %c0_557 = arith.constant 0 : index
    %c0_558 = arith.constant 0 : index
    %1894 = vector.load %arg1[%c0_556, %c89, %c0_557, %c0_558] : memref<1x96x8x128xf32, #tpu.memory_space<vmem>>, vector<1x1x8x128xf32>
    %1895 = vector.shape_cast %1894 : vector<1x1x8x128xf32> to vector<8x128xf32>
    %1896 = arith.mulf %1891, %1891 : vector<8x128xf32>
    %1897 = arith.mulf %1893, %1893 : vector<8x128xf32>
    %1898 = arith.addf %1896, %1897 : vector<8x128xf32>
    %1899 = arith.mulf %1895, %1895 : vector<8x128xf32>
    %1900 = arith.addf %1898, %1899 : vector<8x128xf32>
    %cst_559 = arith.constant -3.3908421E-19 : f32
    %1901 = vector.broadcast %cst_559 : f32 to vector<8x128xf32>
    %1902 = arith.mulf %1900, %1901 : vector<8x128xf32>
    %cst_560 = arith.constant 1.62760419E-12 : f32
    %1903 = vector.broadcast %cst_560 : f32 to vector<8x128xf32>
    %1904 = arith.addf %1903, %1902 : vector<8x128xf32>
    %1905 = arith.mulf %1900, %1904 : vector<8x128xf32>
    %cst_561 = arith.constant -3.125000e-06 : f32
    %1906 = vector.broadcast %cst_561 : f32 to vector<8x128xf32>
    %1907 = arith.addf %1906, %1905 : vector<8x128xf32>
    %1908 = arith.mulf %1900, %1907 : vector<8x128xf32>
    %cst_562 = arith.constant 1.000000e+00 : f32
    %1909 = vector.broadcast %cst_562 : f32 to vector<8x128xf32>
    %1910 = arith.addf %1909, %1908 : vector<8x128xf32>
    %cst_563 = arith.constant -1.21101496E-22 : f32
    %1911 = vector.broadcast %cst_563 : f32 to vector<8x128xf32>
    %1912 = arith.mulf %1900, %1911 : vector<8x128xf32>
    %cst_564 = arith.constant 8.13802098E-16 : f32
    %1913 = vector.broadcast %cst_564 : f32 to vector<8x128xf32>
    %1914 = arith.addf %1913, %1912 : vector<8x128xf32>
    %1915 = arith.mulf %1900, %1914 : vector<8x128xf32>
    %cst_565 = arith.constant -2.60416666E-9 : f32
    %1916 = vector.broadcast %cst_565 : f32 to vector<8x128xf32>
    %1917 = arith.addf %1916, %1915 : vector<8x128xf32>
    %1918 = arith.mulf %1900, %1917 : vector<8x128xf32>
    %cst_566 = arith.constant 2.500000e-03 : f32
    %1919 = vector.broadcast %cst_566 : f32 to vector<8x128xf32>
    %1920 = arith.addf %1919, %1918 : vector<8x128xf32>
    %1921 = arith.mulf %1920, %1891 : vector<8x128xf32>
    %1922 = arith.mulf %1920, %1893 : vector<8x128xf32>
    %1923 = arith.mulf %1920, %1895 : vector<8x128xf32>
    %1924 = arith.mulf %1876, %1910 : vector<8x128xf32>
    %1925 = arith.mulf %1887, %1921 : vector<8x128xf32>
    %1926 = arith.subf %1924, %1925 : vector<8x128xf32>
    %1927 = arith.mulf %1888, %1922 : vector<8x128xf32>
    %1928 = arith.subf %1926, %1927 : vector<8x128xf32>
    %1929 = arith.mulf %1889, %1923 : vector<8x128xf32>
    %1930 = arith.subf %1928, %1929 : vector<8x128xf32>
    %1931 = arith.mulf %1876, %1921 : vector<8x128xf32>
    %1932 = arith.mulf %1887, %1910 : vector<8x128xf32>
    %1933 = arith.addf %1931, %1932 : vector<8x128xf32>
    %1934 = arith.mulf %1888, %1923 : vector<8x128xf32>
    %1935 = arith.addf %1933, %1934 : vector<8x128xf32>
    %1936 = arith.mulf %1889, %1922 : vector<8x128xf32>
    %1937 = arith.subf %1935, %1936 : vector<8x128xf32>
    %1938 = arith.mulf %1876, %1922 : vector<8x128xf32>
    %1939 = arith.mulf %1887, %1923 : vector<8x128xf32>
    %1940 = arith.subf %1938, %1939 : vector<8x128xf32>
    %1941 = arith.mulf %1888, %1910 : vector<8x128xf32>
    %1942 = arith.addf %1940, %1941 : vector<8x128xf32>
    %1943 = arith.mulf %1889, %1921 : vector<8x128xf32>
    %1944 = arith.addf %1942, %1943 : vector<8x128xf32>
    %1945 = arith.mulf %1876, %1923 : vector<8x128xf32>
    %1946 = arith.mulf %1887, %1922 : vector<8x128xf32>
    %1947 = arith.addf %1945, %1946 : vector<8x128xf32>
    %1948 = arith.mulf %1888, %1921 : vector<8x128xf32>
    %1949 = arith.subf %1947, %1948 : vector<8x128xf32>
    %1950 = arith.mulf %1889, %1910 : vector<8x128xf32>
    %1951 = arith.addf %1949, %1950 : vector<8x128xf32>
    %1952 = arith.mulf %1834, %1930 : vector<8x128xf32>
    %1953 = arith.mulf %1841, %1937 : vector<8x128xf32>
    %1954 = arith.subf %1952, %1953 : vector<8x128xf32>
    %1955 = arith.mulf %1848, %1944 : vector<8x128xf32>
    %1956 = arith.subf %1954, %1955 : vector<8x128xf32>
    %1957 = arith.mulf %1855, %1951 : vector<8x128xf32>
    %1958 = arith.subf %1956, %1957 : vector<8x128xf32>
    %1959 = arith.mulf %1834, %1937 : vector<8x128xf32>
    %1960 = arith.mulf %1841, %1930 : vector<8x128xf32>
    %1961 = arith.addf %1959, %1960 : vector<8x128xf32>
    %1962 = arith.mulf %1848, %1951 : vector<8x128xf32>
    %1963 = arith.addf %1961, %1962 : vector<8x128xf32>
    %1964 = arith.mulf %1855, %1944 : vector<8x128xf32>
    %1965 = arith.subf %1963, %1964 : vector<8x128xf32>
    %1966 = arith.mulf %1834, %1944 : vector<8x128xf32>
    %1967 = arith.mulf %1841, %1951 : vector<8x128xf32>
    %1968 = arith.subf %1966, %1967 : vector<8x128xf32>
    %1969 = arith.mulf %1848, %1930 : vector<8x128xf32>
    %1970 = arith.addf %1968, %1969 : vector<8x128xf32>
    %1971 = arith.mulf %1855, %1937 : vector<8x128xf32>
    %1972 = arith.addf %1970, %1971 : vector<8x128xf32>
    %1973 = arith.mulf %1834, %1951 : vector<8x128xf32>
    %1974 = arith.mulf %1841, %1944 : vector<8x128xf32>
    %1975 = arith.addf %1973, %1974 : vector<8x128xf32>
    %1976 = arith.mulf %1848, %1937 : vector<8x128xf32>
    %1977 = arith.subf %1975, %1976 : vector<8x128xf32>
    %1978 = arith.mulf %1855, %1930 : vector<8x128xf32>
    %1979 = arith.addf %1977, %1978 : vector<8x128xf32>
    %c0_567 = arith.constant 0 : index
    %c90 = arith.constant 90 : index
    %c0_568 = arith.constant 0 : index
    %c0_569 = arith.constant 0 : index
    %1980 = vector.load %arg1[%c0_567, %c90, %c0_568, %c0_569] : memref<1x96x8x128xf32, #tpu.memory_space<vmem>>, vector<1x1x8x128xf32>
    %1981 = vector.shape_cast %1980 : vector<1x1x8x128xf32> to vector<8x128xf32>
    %c0_570 = arith.constant 0 : index
    %c91 = arith.constant 91 : index
    %c0_571 = arith.constant 0 : index
    %c0_572 = arith.constant 0 : index
    %1982 = vector.load %arg1[%c0_570, %c91, %c0_571, %c0_572] : memref<1x96x8x128xf32, #tpu.memory_space<vmem>>, vector<1x1x8x128xf32>
    %1983 = vector.shape_cast %1982 : vector<1x1x8x128xf32> to vector<8x128xf32>
    %c0_573 = arith.constant 0 : index
    %c92 = arith.constant 92 : index
    %c0_574 = arith.constant 0 : index
    %c0_575 = arith.constant 0 : index
    %1984 = vector.load %arg1[%c0_573, %c92, %c0_574, %c0_575] : memref<1x96x8x128xf32, #tpu.memory_space<vmem>>, vector<1x1x8x128xf32>
    %1985 = vector.shape_cast %1984 : vector<1x1x8x128xf32> to vector<8x128xf32>
    %1986 = arith.mulf %1981, %1981 : vector<8x128xf32>
    %1987 = arith.mulf %1983, %1983 : vector<8x128xf32>
    %1988 = arith.addf %1986, %1987 : vector<8x128xf32>
    %1989 = arith.mulf %1985, %1985 : vector<8x128xf32>
    %1990 = arith.addf %1988, %1989 : vector<8x128xf32>
    %cst_576 = arith.constant -3.3908421E-19 : f32
    %1991 = vector.broadcast %cst_576 : f32 to vector<8x128xf32>
    %1992 = arith.mulf %1990, %1991 : vector<8x128xf32>
    %cst_577 = arith.constant 1.62760419E-12 : f32
    %1993 = vector.broadcast %cst_577 : f32 to vector<8x128xf32>
    %1994 = arith.addf %1993, %1992 : vector<8x128xf32>
    %1995 = arith.mulf %1990, %1994 : vector<8x128xf32>
    %cst_578 = arith.constant -3.125000e-06 : f32
    %1996 = vector.broadcast %cst_578 : f32 to vector<8x128xf32>
    %1997 = arith.addf %1996, %1995 : vector<8x128xf32>
    %1998 = arith.mulf %1990, %1997 : vector<8x128xf32>
    %cst_579 = arith.constant 1.000000e+00 : f32
    %1999 = vector.broadcast %cst_579 : f32 to vector<8x128xf32>
    %2000 = arith.addf %1999, %1998 : vector<8x128xf32>
    %cst_580 = arith.constant -1.21101496E-22 : f32
    %2001 = vector.broadcast %cst_580 : f32 to vector<8x128xf32>
    %2002 = arith.mulf %1990, %2001 : vector<8x128xf32>
    %cst_581 = arith.constant 8.13802098E-16 : f32
    %2003 = vector.broadcast %cst_581 : f32 to vector<8x128xf32>
    %2004 = arith.addf %2003, %2002 : vector<8x128xf32>
    %2005 = arith.mulf %1990, %2004 : vector<8x128xf32>
    %cst_582 = arith.constant -2.60416666E-9 : f32
    %2006 = vector.broadcast %cst_582 : f32 to vector<8x128xf32>
    %2007 = arith.addf %2006, %2005 : vector<8x128xf32>
    %2008 = arith.mulf %1990, %2007 : vector<8x128xf32>
    %cst_583 = arith.constant 2.500000e-03 : f32
    %2009 = vector.broadcast %cst_583 : f32 to vector<8x128xf32>
    %2010 = arith.addf %2009, %2008 : vector<8x128xf32>
    %2011 = arith.mulf %2010, %1981 : vector<8x128xf32>
    %2012 = arith.mulf %2010, %1983 : vector<8x128xf32>
    %2013 = arith.mulf %2010, %1985 : vector<8x128xf32>
    %c0_584 = arith.constant 0 : index
    %c93 = arith.constant 93 : index
    %c0_585 = arith.constant 0 : index
    %c0_586 = arith.constant 0 : index
    %2014 = vector.load %arg1[%c0_584, %c93, %c0_585, %c0_586] : memref<1x96x8x128xf32, #tpu.memory_space<vmem>>, vector<1x1x8x128xf32>
    %2015 = vector.shape_cast %2014 : vector<1x1x8x128xf32> to vector<8x128xf32>
    %c0_587 = arith.constant 0 : index
    %c94 = arith.constant 94 : index
    %c0_588 = arith.constant 0 : index
    %c0_589 = arith.constant 0 : index
    %2016 = vector.load %arg1[%c0_587, %c94, %c0_588, %c0_589] : memref<1x96x8x128xf32, #tpu.memory_space<vmem>>, vector<1x1x8x128xf32>
    %2017 = vector.shape_cast %2016 : vector<1x1x8x128xf32> to vector<8x128xf32>
    %c0_590 = arith.constant 0 : index
    %c95 = arith.constant 95 : index
    %c0_591 = arith.constant 0 : index
    %c0_592 = arith.constant 0 : index
    %2018 = vector.load %arg1[%c0_590, %c95, %c0_591, %c0_592] : memref<1x96x8x128xf32, #tpu.memory_space<vmem>>, vector<1x1x8x128xf32>
    %2019 = vector.shape_cast %2018 : vector<1x1x8x128xf32> to vector<8x128xf32>
    %2020 = arith.mulf %2015, %2015 : vector<8x128xf32>
    %2021 = arith.mulf %2017, %2017 : vector<8x128xf32>
    %2022 = arith.addf %2020, %2021 : vector<8x128xf32>
    %2023 = arith.mulf %2019, %2019 : vector<8x128xf32>
    %2024 = arith.addf %2022, %2023 : vector<8x128xf32>
    %cst_593 = arith.constant -3.3908421E-19 : f32
    %2025 = vector.broadcast %cst_593 : f32 to vector<8x128xf32>
    %2026 = arith.mulf %2024, %2025 : vector<8x128xf32>
    %cst_594 = arith.constant 1.62760419E-12 : f32
    %2027 = vector.broadcast %cst_594 : f32 to vector<8x128xf32>
    %2028 = arith.addf %2027, %2026 : vector<8x128xf32>
    %2029 = arith.mulf %2024, %2028 : vector<8x128xf32>
    %cst_595 = arith.constant -3.125000e-06 : f32
    %2030 = vector.broadcast %cst_595 : f32 to vector<8x128xf32>
    %2031 = arith.addf %2030, %2029 : vector<8x128xf32>
    %2032 = arith.mulf %2024, %2031 : vector<8x128xf32>
    %cst_596 = arith.constant 1.000000e+00 : f32
    %2033 = vector.broadcast %cst_596 : f32 to vector<8x128xf32>
    %2034 = arith.addf %2033, %2032 : vector<8x128xf32>
    %cst_597 = arith.constant -1.21101496E-22 : f32
    %2035 = vector.broadcast %cst_597 : f32 to vector<8x128xf32>
    %2036 = arith.mulf %2024, %2035 : vector<8x128xf32>
    %cst_598 = arith.constant 8.13802098E-16 : f32
    %2037 = vector.broadcast %cst_598 : f32 to vector<8x128xf32>
    %2038 = arith.addf %2037, %2036 : vector<8x128xf32>
    %2039 = arith.mulf %2024, %2038 : vector<8x128xf32>
    %cst_599 = arith.constant -2.60416666E-9 : f32
    %2040 = vector.broadcast %cst_599 : f32 to vector<8x128xf32>
    %2041 = arith.addf %2040, %2039 : vector<8x128xf32>
    %2042 = arith.mulf %2024, %2041 : vector<8x128xf32>
    %cst_600 = arith.constant 2.500000e-03 : f32
    %2043 = vector.broadcast %cst_600 : f32 to vector<8x128xf32>
    %2044 = arith.addf %2043, %2042 : vector<8x128xf32>
    %2045 = arith.mulf %2044, %2015 : vector<8x128xf32>
    %2046 = arith.mulf %2044, %2017 : vector<8x128xf32>
    %2047 = arith.mulf %2044, %2019 : vector<8x128xf32>
    %2048 = arith.mulf %2000, %2034 : vector<8x128xf32>
    %2049 = arith.mulf %2011, %2045 : vector<8x128xf32>
    %2050 = arith.subf %2048, %2049 : vector<8x128xf32>
    %2051 = arith.mulf %2012, %2046 : vector<8x128xf32>
    %2052 = arith.subf %2050, %2051 : vector<8x128xf32>
    %2053 = arith.mulf %2013, %2047 : vector<8x128xf32>
    %2054 = arith.subf %2052, %2053 : vector<8x128xf32>
    %2055 = arith.mulf %2000, %2045 : vector<8x128xf32>
    %2056 = arith.mulf %2011, %2034 : vector<8x128xf32>
    %2057 = arith.addf %2055, %2056 : vector<8x128xf32>
    %2058 = arith.mulf %2012, %2047 : vector<8x128xf32>
    %2059 = arith.addf %2057, %2058 : vector<8x128xf32>
    %2060 = arith.mulf %2013, %2046 : vector<8x128xf32>
    %2061 = arith.subf %2059, %2060 : vector<8x128xf32>
    %2062 = arith.mulf %2000, %2046 : vector<8x128xf32>
    %2063 = arith.mulf %2011, %2047 : vector<8x128xf32>
    %2064 = arith.subf %2062, %2063 : vector<8x128xf32>
    %2065 = arith.mulf %2012, %2034 : vector<8x128xf32>
    %2066 = arith.addf %2064, %2065 : vector<8x128xf32>
    %2067 = arith.mulf %2013, %2045 : vector<8x128xf32>
    %2068 = arith.addf %2066, %2067 : vector<8x128xf32>
    %2069 = arith.mulf %2000, %2047 : vector<8x128xf32>
    %2070 = arith.mulf %2011, %2046 : vector<8x128xf32>
    %2071 = arith.addf %2069, %2070 : vector<8x128xf32>
    %2072 = arith.mulf %2012, %2045 : vector<8x128xf32>
    %2073 = arith.subf %2071, %2072 : vector<8x128xf32>
    %2074 = arith.mulf %2013, %2034 : vector<8x128xf32>
    %2075 = arith.addf %2073, %2074 : vector<8x128xf32>
    %2076 = arith.mulf %1958, %2054 : vector<8x128xf32>
    %2077 = arith.mulf %1965, %2061 : vector<8x128xf32>
    %2078 = arith.subf %2076, %2077 : vector<8x128xf32>
    %2079 = arith.mulf %1972, %2068 : vector<8x128xf32>
    %2080 = arith.subf %2078, %2079 : vector<8x128xf32>
    %2081 = arith.mulf %1979, %2075 : vector<8x128xf32>
    %2082 = arith.subf %2080, %2081 : vector<8x128xf32>
    %2083 = arith.mulf %1958, %2061 : vector<8x128xf32>
    %2084 = arith.mulf %1965, %2054 : vector<8x128xf32>
    %2085 = arith.addf %2083, %2084 : vector<8x128xf32>
    %2086 = arith.mulf %1972, %2075 : vector<8x128xf32>
    %2087 = arith.addf %2085, %2086 : vector<8x128xf32>
    %2088 = arith.mulf %1979, %2068 : vector<8x128xf32>
    %2089 = arith.subf %2087, %2088 : vector<8x128xf32>
    %2090 = arith.mulf %1958, %2068 : vector<8x128xf32>
    %2091 = arith.mulf %1965, %2075 : vector<8x128xf32>
    %2092 = arith.subf %2090, %2091 : vector<8x128xf32>
    %2093 = arith.mulf %1972, %2054 : vector<8x128xf32>
    %2094 = arith.addf %2092, %2093 : vector<8x128xf32>
    %2095 = arith.mulf %1979, %2061 : vector<8x128xf32>
    %2096 = arith.addf %2094, %2095 : vector<8x128xf32>
    %2097 = arith.mulf %1958, %2075 : vector<8x128xf32>
    %2098 = arith.mulf %1965, %2068 : vector<8x128xf32>
    %2099 = arith.addf %2097, %2098 : vector<8x128xf32>
    %2100 = arith.mulf %1972, %2061 : vector<8x128xf32>
    %2101 = arith.subf %2099, %2100 : vector<8x128xf32>
    %2102 = arith.mulf %1979, %2054 : vector<8x128xf32>
    %2103 = arith.addf %2101, %2102 : vector<8x128xf32>
    %c0_601 = arith.constant 0 : index
    %c3_602 = arith.constant 3 : index
    %c0_603 = arith.constant 0 : index
    %c0_604 = arith.constant 0 : index
    %2104 = vector.load %arg2[%c0_601, %c3_602, %c0_603, %c0_604] : memref<1x6x8x128xf32, #tpu.memory_space<vmem>>, vector<1x1x8x128xf32>
    %2105 = vector.shape_cast %2104 : vector<1x1x8x128xf32> to vector<8x128xf32>
    %c0_605 = arith.constant 0 : index
    %c4_606 = arith.constant 4 : index
    %c0_607 = arith.constant 0 : index
    %c0_608 = arith.constant 0 : index
    %2106 = vector.load %arg2[%c0_605, %c4_606, %c0_607, %c0_608] : memref<1x6x8x128xf32, #tpu.memory_space<vmem>>, vector<1x1x8x128xf32>
    %2107 = vector.shape_cast %2106 : vector<1x1x8x128xf32> to vector<8x128xf32>
    %c0_609 = arith.constant 0 : index
    %c5_610 = arith.constant 5 : index
    %c0_611 = arith.constant 0 : index
    %c0_612 = arith.constant 0 : index
    %2108 = vector.load %arg2[%c0_609, %c5_610, %c0_611, %c0_612] : memref<1x6x8x128xf32, #tpu.memory_space<vmem>>, vector<1x1x8x128xf32>
    %2109 = vector.shape_cast %2108 : vector<1x1x8x128xf32> to vector<8x128xf32>
    %2110 = arith.mulf %2105, %2105 : vector<8x128xf32>
    %2111 = arith.mulf %2107, %2107 : vector<8x128xf32>
    %2112 = arith.addf %2110, %2111 : vector<8x128xf32>
    %2113 = arith.mulf %2109, %2109 : vector<8x128xf32>
    %2114 = arith.addf %2112, %2113 : vector<8x128xf32>
    %cst_613 = arith.constant 0.00260416674 : f32
    %2115 = vector.broadcast %cst_613 : f32 to vector<8x128xf32>
    %2116 = arith.mulf %2114, %2115 : vector<8x128xf32>
    %cst_614 = arith.constant -1.250000e-01 : f32
    %2117 = vector.broadcast %cst_614 : f32 to vector<8x128xf32>
    %2118 = arith.addf %2117, %2116 : vector<8x128xf32>
    %2119 = arith.mulf %2114, %2118 : vector<8x128xf32>
    %cst_615 = arith.constant 1.000000e+00 : f32
    %2120 = vector.broadcast %cst_615 : f32 to vector<8x128xf32>
    %2121 = arith.addf %2120, %2119 : vector<8x128xf32>
    %cst_616 = arith.constant 2.6041668E-4 : f32
    %2122 = vector.broadcast %cst_616 : f32 to vector<8x128xf32>
    %2123 = arith.mulf %2114, %2122 : vector<8x128xf32>
    %cst_617 = arith.constant -0.020833334 : f32
    %2124 = vector.broadcast %cst_617 : f32 to vector<8x128xf32>
    %2125 = arith.addf %2124, %2123 : vector<8x128xf32>
    %2126 = arith.mulf %2114, %2125 : vector<8x128xf32>
    %cst_618 = arith.constant 5.000000e-01 : f32
    %2127 = vector.broadcast %cst_618 : f32 to vector<8x128xf32>
    %2128 = arith.addf %2127, %2126 : vector<8x128xf32>
    %cst_619 = arith.constant 9.99999996E-13 : f32
    %2129 = vector.broadcast %cst_619 : f32 to vector<8x128xf32>
    %2130 = arith.maximumf %2114, %2129 : vector<8x128xf32>
    %2131 = math.rsqrt %2130 : vector<8x128xf32>
    %2132 = arith.mulf %2114, %2131 : vector<8x128xf32>
    %cst_620 = arith.constant 5.000000e-01 : f32
    %2133 = vector.broadcast %cst_620 : f32 to vector<8x128xf32>
    %2134 = arith.mulf %2133, %2132 : vector<8x128xf32>
    %2135 = math.cos %2134 : vector<8x128xf32>
    %2136 = math.sin %2134 : vector<8x128xf32>
    %2137 = arith.mulf %2136, %2131 : vector<8x128xf32>
    %cst_621 = arith.constant 9.99999997E-7 : f32
    %2138 = vector.broadcast %cst_621 : f32 to vector<8x128xf32>
    %2139 = arith.cmpf olt, %2114, %2138 : vector<8x128xf32>
    %2140 = arith.select %2139, %2121, %2135 : vector<8x128xi1>, vector<8x128xf32>
    %2141 = arith.select %2139, %2128, %2137 : vector<8x128xi1>, vector<8x128xf32>
    %2142 = arith.mulf %2141, %2105 : vector<8x128xf32>
    %2143 = arith.mulf %2141, %2107 : vector<8x128xf32>
    %2144 = arith.mulf %2141, %2109 : vector<8x128xf32>
    %2145 = arith.mulf %2082, %2140 : vector<8x128xf32>
    %2146 = arith.mulf %2089, %2142 : vector<8x128xf32>
    %2147 = arith.addf %2145, %2146 : vector<8x128xf32>
    %2148 = arith.mulf %2096, %2143 : vector<8x128xf32>
    %2149 = arith.addf %2147, %2148 : vector<8x128xf32>
    %2150 = arith.mulf %2103, %2144 : vector<8x128xf32>
    %2151 = arith.addf %2149, %2150 : vector<8x128xf32>
    %2152 = arith.mulf %2082, %2142 : vector<8x128xf32>
    %2153 = arith.mulf %2089, %2140 : vector<8x128xf32>
    %2154 = arith.subf %2152, %2153 : vector<8x128xf32>
    %2155 = arith.mulf %2096, %2144 : vector<8x128xf32>
    %2156 = arith.subf %2154, %2155 : vector<8x128xf32>
    %2157 = arith.mulf %2103, %2143 : vector<8x128xf32>
    %2158 = arith.addf %2156, %2157 : vector<8x128xf32>
    %2159 = arith.mulf %2082, %2143 : vector<8x128xf32>
    %2160 = arith.mulf %2089, %2144 : vector<8x128xf32>
    %2161 = arith.addf %2159, %2160 : vector<8x128xf32>
    %2162 = arith.mulf %2096, %2140 : vector<8x128xf32>
    %2163 = arith.subf %2161, %2162 : vector<8x128xf32>
    %2164 = arith.mulf %2103, %2142 : vector<8x128xf32>
    %2165 = arith.subf %2163, %2164 : vector<8x128xf32>
    %2166 = arith.mulf %2082, %2144 : vector<8x128xf32>
    %2167 = arith.mulf %2089, %2143 : vector<8x128xf32>
    %2168 = arith.subf %2166, %2167 : vector<8x128xf32>
    %2169 = arith.mulf %2096, %2142 : vector<8x128xf32>
    %2170 = arith.addf %2168, %2169 : vector<8x128xf32>
    %2171 = arith.mulf %2103, %2140 : vector<8x128xf32>
    %2172 = arith.subf %2170, %2171 : vector<8x128xf32>
    %2173 = arith.mulf %2151, %2151 : vector<8x128xf32>
    %2174 = arith.mulf %2158, %2158 : vector<8x128xf32>
    %2175 = arith.addf %2173, %2174 : vector<8x128xf32>
    %2176 = arith.mulf %2165, %2165 : vector<8x128xf32>
    %2177 = arith.addf %2175, %2176 : vector<8x128xf32>
    %2178 = arith.mulf %2172, %2172 : vector<8x128xf32>
    %2179 = arith.addf %2177, %2178 : vector<8x128xf32>
    %2180 = math.rsqrt %2179 : vector<8x128xf32>
    %2181 = arith.mulf %2151, %2180 : vector<8x128xf32>
    %cst_622 = arith.constant 2.000000e+00 : f32
    %2182 = vector.broadcast %cst_622 : f32 to vector<8x128xf32>
    %2183 = arith.mulf %2182, %2181 : vector<8x128xf32>
    %2184 = arith.mulf %2183, %2181 : vector<8x128xf32>
    %cst_623 = arith.constant 1.000000e+00 : f32
    %2185 = vector.broadcast %cst_623 : f32 to vector<8x128xf32>
    %2186 = arith.subf %2184, %2185 : vector<8x128xf32>
    %cst_624 = arith.constant -1.000000e+00 : f32
    %cst_625 = arith.constant 1.000000e+00 : f32
    %2187 = vector.broadcast %cst_624 : f32 to vector<8x128xf32>
    %2188 = arith.maximumf %2187, %2186 : vector<8x128xf32>
    %2189 = vector.broadcast %cst_625 : f32 to vector<8x128xf32>
    %2190 = arith.minimumf %2189, %2188 : vector<8x128xf32>
    %2191 = math.absf %2190 : vector<8x128xf32>
    %cst_626 = arith.constant -0.0012624911 : f32
    %2192 = vector.broadcast %cst_626 : f32 to vector<8x128xf32>
    %2193 = arith.mulf %2192, %2191 : vector<8x128xf32>
    %cst_627 = arith.constant 6.670090e-03 : f32
    %2194 = vector.broadcast %cst_627 : f32 to vector<8x128xf32>
    %2195 = arith.addf %2193, %2194 : vector<8x128xf32>
    %2196 = arith.mulf %2195, %2191 : vector<8x128xf32>
    %cst_628 = arith.constant -0.0170881264 : f32
    %2197 = vector.broadcast %cst_628 : f32 to vector<8x128xf32>
    %2198 = arith.addf %2196, %2197 : vector<8x128xf32>
    %2199 = arith.mulf %2198, %2191 : vector<8x128xf32>
    %cst_629 = arith.constant 0.0308918804 : f32
    %2200 = vector.broadcast %cst_629 : f32 to vector<8x128xf32>
    %2201 = arith.addf %2199, %2200 : vector<8x128xf32>
    %2202 = arith.mulf %2201, %2191 : vector<8x128xf32>
    %cst_630 = arith.constant -0.0501743034 : f32
    %2203 = vector.broadcast %cst_630 : f32 to vector<8x128xf32>
    %2204 = arith.addf %2202, %2203 : vector<8x128xf32>
    %2205 = arith.mulf %2204, %2191 : vector<8x128xf32>
    %cst_631 = arith.constant 0.0889789909 : f32
    %2206 = vector.broadcast %cst_631 : f32 to vector<8x128xf32>
    %2207 = arith.addf %2205, %2206 : vector<8x128xf32>
    %2208 = arith.mulf %2207, %2191 : vector<8x128xf32>
    %cst_632 = arith.constant -0.214598805 : f32
    %2209 = vector.broadcast %cst_632 : f32 to vector<8x128xf32>
    %2210 = arith.addf %2208, %2209 : vector<8x128xf32>
    %2211 = arith.mulf %2210, %2191 : vector<8x128xf32>
    %cst_633 = arith.constant 1.57079625 : f32
    %2212 = vector.broadcast %cst_633 : f32 to vector<8x128xf32>
    %2213 = arith.addf %2211, %2212 : vector<8x128xf32>
    %cst_634 = arith.constant 1.000000e+00 : f32
    %2214 = vector.broadcast %cst_634 : f32 to vector<8x128xf32>
    %2215 = arith.subf %2214, %2191 : vector<8x128xf32>
    %cst_635 = arith.constant 0.000000e+00 : f32
    %2216 = vector.broadcast %cst_635 : f32 to vector<8x128xf32>
    %2217 = arith.maximumf %2215, %2216 : vector<8x128xf32>
    %2218 = math.sqrt %2217 : vector<8x128xf32>
    %2219 = arith.mulf %2218, %2213 : vector<8x128xf32>
    %cst_636 = arith.constant 0.000000e+00 : f32
    %2220 = vector.broadcast %cst_636 : f32 to vector<8x128xf32>
    %2221 = arith.cmpf oge, %2190, %2220 : vector<8x128xf32>
    %cst_637 = arith.constant 3.14159274 : f32
    %2222 = vector.broadcast %cst_637 : f32 to vector<8x128xf32>
    %2223 = arith.subf %2222, %2219 : vector<8x128xf32>
    %2224 = arith.select %2221, %2219, %2223 : vector<8x128xi1>, vector<8x128xf32>
    %cst_638 = arith.constant 2.000000e+00 : f32
    %2225 = vector.broadcast %cst_638 : f32 to vector<8x128xf32>
    %2226 = arith.mulf %2225, %2224 : vector<8x128xf32>
    %2227 = arith.mulf %2226, %2181 : vector<8x128xf32>
    %2228 = arith.mulf %2190, %2190 : vector<8x128xf32>
    %cst_639 = arith.constant 1.000000e+00 : f32
    %2229 = vector.broadcast %cst_639 : f32 to vector<8x128xf32>
    %2230 = arith.subf %2229, %2228 : vector<8x128xf32>
    %cst_640 = arith.constant 0.000000e+00 : f32
    %2231 = vector.broadcast %cst_640 : f32 to vector<8x128xf32>
    %2232 = arith.maximumf %2230, %2231 : vector<8x128xf32>
    %cst_641 = arith.constant 9.99999968E-21 : f32
    %2233 = vector.broadcast %cst_641 : f32 to vector<8x128xf32>
    %2234 = arith.addf %2232, %2233 : vector<8x128xf32>
    %2235 = math.rsqrt %2234 : vector<8x128xf32>
    %2236 = arith.mulf %2227, %2235 : vector<8x128xf32>
    %2237 = arith.mulf %2236, %2180 : vector<8x128xf32>
    %2238 = arith.mulf %2237, %2158 : vector<8x128xf32>
    %2239 = arith.mulf %2237, %2165 : vector<8x128xf32>
    %2240 = arith.mulf %2237, %2172 : vector<8x128xf32>
    %cst_642 = arith.constant 2.000000e+02 : f32
    %2241 = vector.broadcast %cst_642 : f32 to vector<8x128xf32>
    %2242 = arith.mulf %2238, %2241 : vector<8x128xf32>
    %2243 = math.absf %2242 : vector<8x128xf32>
    %cst_643 = arith.constant 1.000000e+00 : f32
    %2244 = vector.broadcast %cst_643 : f32 to vector<8x128xf32>
    %2245 = arith.cmpf olt, %2243, %2244 : vector<8x128xf32>
    %cst_644 = arith.constant 5.000000e-01 : f32
    %2246 = vector.broadcast %cst_644 : f32 to vector<8x128xf32>
    %2247 = arith.mulf %2246, %2242 : vector<8x128xf32>
    %2248 = arith.mulf %2247, %2242 : vector<8x128xf32>
    %cst_645 = arith.constant 5.000000e-01 : f32
    %2249 = vector.broadcast %cst_645 : f32 to vector<8x128xf32>
    %2250 = arith.subf %2243, %2249 : vector<8x128xf32>
    %2251 = arith.select %2245, %2248, %2250 : vector<8x128xi1>, vector<8x128xf32>
    %cst_646 = arith.constant 2.000000e+02 : f32
    %2252 = vector.broadcast %cst_646 : f32 to vector<8x128xf32>
    %2253 = arith.mulf %2239, %2252 : vector<8x128xf32>
    %2254 = math.absf %2253 : vector<8x128xf32>
    %cst_647 = arith.constant 1.000000e+00 : f32
    %2255 = vector.broadcast %cst_647 : f32 to vector<8x128xf32>
    %2256 = arith.cmpf olt, %2254, %2255 : vector<8x128xf32>
    %cst_648 = arith.constant 5.000000e-01 : f32
    %2257 = vector.broadcast %cst_648 : f32 to vector<8x128xf32>
    %2258 = arith.mulf %2257, %2253 : vector<8x128xf32>
    %2259 = arith.mulf %2258, %2253 : vector<8x128xf32>
    %cst_649 = arith.constant 5.000000e-01 : f32
    %2260 = vector.broadcast %cst_649 : f32 to vector<8x128xf32>
    %2261 = arith.subf %2254, %2260 : vector<8x128xf32>
    %2262 = arith.select %2256, %2259, %2261 : vector<8x128xi1>, vector<8x128xf32>
    %2263 = arith.addf %2251, %2262 : vector<8x128xf32>
    %cst_650 = arith.constant 2.000000e+02 : f32
    %2264 = vector.broadcast %cst_650 : f32 to vector<8x128xf32>
    %2265 = arith.mulf %2240, %2264 : vector<8x128xf32>
    %2266 = math.absf %2265 : vector<8x128xf32>
    %cst_651 = arith.constant 1.000000e+00 : f32
    %2267 = vector.broadcast %cst_651 : f32 to vector<8x128xf32>
    %2268 = arith.cmpf olt, %2266, %2267 : vector<8x128xf32>
    %cst_652 = arith.constant 5.000000e-01 : f32
    %2269 = vector.broadcast %cst_652 : f32 to vector<8x128xf32>
    %2270 = arith.mulf %2269, %2265 : vector<8x128xf32>
    %2271 = arith.mulf %2270, %2265 : vector<8x128xf32>
    %cst_653 = arith.constant 5.000000e-01 : f32
    %2272 = vector.broadcast %cst_653 : f32 to vector<8x128xf32>
    %2273 = arith.subf %2266, %2272 : vector<8x128xf32>
    %2274 = arith.select %2268, %2271, %2273 : vector<8x128xi1>, vector<8x128xf32>
    %2275 = arith.addf %2263, %2274 : vector<8x128xf32>
    %c0_654 = arith.constant 0 : index
    %c1_655 = arith.constant 1 : index
    %c0_656 = arith.constant 0 : index
    %c0_657 = arith.constant 0 : index
    %2276 = vector.load %arg4[%c0_654, %c1_655, %c0_656, %c0_657] : memref<1x3x8x128xf32, #tpu.memory_space<vmem>>, vector<1x1x8x128xf32>
    %2277 = vector.shape_cast %2276 : vector<1x1x8x128xf32> to vector<8x128xf32>
    %2278 = arith.mulf %2275, %2277 : vector<8x128xf32>
    %2279 = arith.addf %1139, %2278 : vector<8x128xf32>
    %2280 = arith.mulf %943, %2082 : vector<8x128xf32>
    %2281 = arith.mulf %950, %2089 : vector<8x128xf32>
    %2282 = arith.subf %2280, %2281 : vector<8x128xf32>
    %2283 = arith.mulf %957, %2096 : vector<8x128xf32>
    %2284 = arith.subf %2282, %2283 : vector<8x128xf32>
    %2285 = arith.mulf %964, %2103 : vector<8x128xf32>
    %2286 = arith.subf %2284, %2285 : vector<8x128xf32>
    %2287 = arith.mulf %943, %2089 : vector<8x128xf32>
    %2288 = arith.mulf %950, %2082 : vector<8x128xf32>
    %2289 = arith.addf %2287, %2288 : vector<8x128xf32>
    %2290 = arith.mulf %957, %2103 : vector<8x128xf32>
    %2291 = arith.addf %2289, %2290 : vector<8x128xf32>
    %2292 = arith.mulf %964, %2096 : vector<8x128xf32>
    %2293 = arith.subf %2291, %2292 : vector<8x128xf32>
    %2294 = arith.mulf %943, %2096 : vector<8x128xf32>
    %2295 = arith.mulf %950, %2103 : vector<8x128xf32>
    %2296 = arith.subf %2294, %2295 : vector<8x128xf32>
    %2297 = arith.mulf %957, %2082 : vector<8x128xf32>
    %2298 = arith.addf %2296, %2297 : vector<8x128xf32>
    %2299 = arith.mulf %964, %2089 : vector<8x128xf32>
    %2300 = arith.addf %2298, %2299 : vector<8x128xf32>
    %2301 = arith.mulf %943, %2103 : vector<8x128xf32>
    %2302 = arith.mulf %950, %2096 : vector<8x128xf32>
    %2303 = arith.addf %2301, %2302 : vector<8x128xf32>
    %2304 = arith.mulf %957, %2089 : vector<8x128xf32>
    %2305 = arith.subf %2303, %2304 : vector<8x128xf32>
    %2306 = arith.mulf %964, %2082 : vector<8x128xf32>
    %2307 = arith.addf %2305, %2306 : vector<8x128xf32>
    %c0_658 = arith.constant 0 : index
    %c0_659 = arith.constant 0 : index
    %c0_660 = arith.constant 0 : index
    %c0_661 = arith.constant 0 : index
    %2308 = vector.load %arg3[%c0_658, %c0_659, %c0_660, %c0_661] : memref<1x3x8x128xf32, #tpu.memory_space<vmem>>, vector<1x1x8x128xf32>
    %2309 = vector.shape_cast %2308 : vector<1x1x8x128xf32> to vector<8x128xf32>
    %c0_662 = arith.constant 0 : index
    %c1_663 = arith.constant 1 : index
    %c0_664 = arith.constant 0 : index
    %c0_665 = arith.constant 0 : index
    %2310 = vector.load %arg3[%c0_662, %c1_663, %c0_664, %c0_665] : memref<1x3x8x128xf32, #tpu.memory_space<vmem>>, vector<1x1x8x128xf32>
    %2311 = vector.shape_cast %2310 : vector<1x1x8x128xf32> to vector<8x128xf32>
    %c0_666 = arith.constant 0 : index
    %c2_667 = arith.constant 2 : index
    %c0_668 = arith.constant 0 : index
    %c0_669 = arith.constant 0 : index
    %2312 = vector.load %arg3[%c0_666, %c2_667, %c0_668, %c0_669] : memref<1x3x8x128xf32, #tpu.memory_space<vmem>>, vector<1x1x8x128xf32>
    %2313 = vector.shape_cast %2312 : vector<1x1x8x128xf32> to vector<8x128xf32>
    %2314 = arith.mulf %2309, %2309 : vector<8x128xf32>
    %2315 = arith.mulf %2311, %2311 : vector<8x128xf32>
    %2316 = arith.addf %2314, %2315 : vector<8x128xf32>
    %2317 = arith.mulf %2313, %2313 : vector<8x128xf32>
    %2318 = arith.addf %2316, %2317 : vector<8x128xf32>
    %cst_670 = arith.constant 0.00260416674 : f32
    %2319 = vector.broadcast %cst_670 : f32 to vector<8x128xf32>
    %2320 = arith.mulf %2318, %2319 : vector<8x128xf32>
    %cst_671 = arith.constant -1.250000e-01 : f32
    %2321 = vector.broadcast %cst_671 : f32 to vector<8x128xf32>
    %2322 = arith.addf %2321, %2320 : vector<8x128xf32>
    %2323 = arith.mulf %2318, %2322 : vector<8x128xf32>
    %cst_672 = arith.constant 1.000000e+00 : f32
    %2324 = vector.broadcast %cst_672 : f32 to vector<8x128xf32>
    %2325 = arith.addf %2324, %2323 : vector<8x128xf32>
    %cst_673 = arith.constant 2.6041668E-4 : f32
    %2326 = vector.broadcast %cst_673 : f32 to vector<8x128xf32>
    %2327 = arith.mulf %2318, %2326 : vector<8x128xf32>
    %cst_674 = arith.constant -0.020833334 : f32
    %2328 = vector.broadcast %cst_674 : f32 to vector<8x128xf32>
    %2329 = arith.addf %2328, %2327 : vector<8x128xf32>
    %2330 = arith.mulf %2318, %2329 : vector<8x128xf32>
    %cst_675 = arith.constant 5.000000e-01 : f32
    %2331 = vector.broadcast %cst_675 : f32 to vector<8x128xf32>
    %2332 = arith.addf %2331, %2330 : vector<8x128xf32>
    %cst_676 = arith.constant 9.99999996E-13 : f32
    %2333 = vector.broadcast %cst_676 : f32 to vector<8x128xf32>
    %2334 = arith.maximumf %2318, %2333 : vector<8x128xf32>
    %2335 = math.rsqrt %2334 : vector<8x128xf32>
    %2336 = arith.mulf %2318, %2335 : vector<8x128xf32>
    %cst_677 = arith.constant 5.000000e-01 : f32
    %2337 = vector.broadcast %cst_677 : f32 to vector<8x128xf32>
    %2338 = arith.mulf %2337, %2336 : vector<8x128xf32>
    %2339 = math.cos %2338 : vector<8x128xf32>
    %2340 = math.sin %2338 : vector<8x128xf32>
    %2341 = arith.mulf %2340, %2335 : vector<8x128xf32>
    %cst_678 = arith.constant 9.99999997E-7 : f32
    %2342 = vector.broadcast %cst_678 : f32 to vector<8x128xf32>
    %2343 = arith.cmpf olt, %2318, %2342 : vector<8x128xf32>
    %2344 = arith.select %2343, %2325, %2339 : vector<8x128xi1>, vector<8x128xf32>
    %2345 = arith.select %2343, %2332, %2341 : vector<8x128xi1>, vector<8x128xf32>
    %2346 = arith.mulf %2345, %2309 : vector<8x128xf32>
    %2347 = arith.mulf %2345, %2311 : vector<8x128xf32>
    %2348 = arith.mulf %2345, %2313 : vector<8x128xf32>
    %2349 = arith.mulf %2286, %2344 : vector<8x128xf32>
    %2350 = arith.mulf %2293, %2346 : vector<8x128xf32>
    %2351 = arith.addf %2349, %2350 : vector<8x128xf32>
    %2352 = arith.mulf %2300, %2347 : vector<8x128xf32>
    %2353 = arith.addf %2351, %2352 : vector<8x128xf32>
    %2354 = arith.mulf %2307, %2348 : vector<8x128xf32>
    %2355 = arith.addf %2353, %2354 : vector<8x128xf32>
    %2356 = arith.mulf %2286, %2346 : vector<8x128xf32>
    %2357 = arith.mulf %2293, %2344 : vector<8x128xf32>
    %2358 = arith.subf %2356, %2357 : vector<8x128xf32>
    %2359 = arith.mulf %2300, %2348 : vector<8x128xf32>
    %2360 = arith.subf %2358, %2359 : vector<8x128xf32>
    %2361 = arith.mulf %2307, %2347 : vector<8x128xf32>
    %2362 = arith.addf %2360, %2361 : vector<8x128xf32>
    %2363 = arith.mulf %2286, %2347 : vector<8x128xf32>
    %2364 = arith.mulf %2293, %2348 : vector<8x128xf32>
    %2365 = arith.addf %2363, %2364 : vector<8x128xf32>
    %2366 = arith.mulf %2300, %2344 : vector<8x128xf32>
    %2367 = arith.subf %2365, %2366 : vector<8x128xf32>
    %2368 = arith.mulf %2307, %2346 : vector<8x128xf32>
    %2369 = arith.subf %2367, %2368 : vector<8x128xf32>
    %2370 = arith.mulf %2286, %2348 : vector<8x128xf32>
    %2371 = arith.mulf %2293, %2347 : vector<8x128xf32>
    %2372 = arith.subf %2370, %2371 : vector<8x128xf32>
    %2373 = arith.mulf %2300, %2346 : vector<8x128xf32>
    %2374 = arith.addf %2372, %2373 : vector<8x128xf32>
    %2375 = arith.mulf %2307, %2344 : vector<8x128xf32>
    %2376 = arith.subf %2374, %2375 : vector<8x128xf32>
    %2377 = arith.mulf %2355, %2355 : vector<8x128xf32>
    %2378 = arith.mulf %2362, %2362 : vector<8x128xf32>
    %2379 = arith.addf %2377, %2378 : vector<8x128xf32>
    %2380 = arith.mulf %2369, %2369 : vector<8x128xf32>
    %2381 = arith.addf %2379, %2380 : vector<8x128xf32>
    %2382 = arith.mulf %2376, %2376 : vector<8x128xf32>
    %2383 = arith.addf %2381, %2382 : vector<8x128xf32>
    %2384 = math.rsqrt %2383 : vector<8x128xf32>
    %2385 = arith.mulf %2355, %2384 : vector<8x128xf32>
    %cst_679 = arith.constant 2.000000e+00 : f32
    %2386 = vector.broadcast %cst_679 : f32 to vector<8x128xf32>
    %2387 = arith.mulf %2386, %2385 : vector<8x128xf32>
    %2388 = arith.mulf %2387, %2385 : vector<8x128xf32>
    %cst_680 = arith.constant 1.000000e+00 : f32
    %2389 = vector.broadcast %cst_680 : f32 to vector<8x128xf32>
    %2390 = arith.subf %2388, %2389 : vector<8x128xf32>
    %cst_681 = arith.constant -1.000000e+00 : f32
    %cst_682 = arith.constant 1.000000e+00 : f32
    %2391 = vector.broadcast %cst_681 : f32 to vector<8x128xf32>
    %2392 = arith.maximumf %2391, %2390 : vector<8x128xf32>
    %2393 = vector.broadcast %cst_682 : f32 to vector<8x128xf32>
    %2394 = arith.minimumf %2393, %2392 : vector<8x128xf32>
    %2395 = math.absf %2394 : vector<8x128xf32>
    %cst_683 = arith.constant -0.0012624911 : f32
    %2396 = vector.broadcast %cst_683 : f32 to vector<8x128xf32>
    %2397 = arith.mulf %2396, %2395 : vector<8x128xf32>
    %cst_684 = arith.constant 6.670090e-03 : f32
    %2398 = vector.broadcast %cst_684 : f32 to vector<8x128xf32>
    %2399 = arith.addf %2397, %2398 : vector<8x128xf32>
    %2400 = arith.mulf %2399, %2395 : vector<8x128xf32>
    %cst_685 = arith.constant -0.0170881264 : f32
    %2401 = vector.broadcast %cst_685 : f32 to vector<8x128xf32>
    %2402 = arith.addf %2400, %2401 : vector<8x128xf32>
    %2403 = arith.mulf %2402, %2395 : vector<8x128xf32>
    %cst_686 = arith.constant 0.0308918804 : f32
    %2404 = vector.broadcast %cst_686 : f32 to vector<8x128xf32>
    %2405 = arith.addf %2403, %2404 : vector<8x128xf32>
    %2406 = arith.mulf %2405, %2395 : vector<8x128xf32>
    %cst_687 = arith.constant -0.0501743034 : f32
    %2407 = vector.broadcast %cst_687 : f32 to vector<8x128xf32>
    %2408 = arith.addf %2406, %2407 : vector<8x128xf32>
    %2409 = arith.mulf %2408, %2395 : vector<8x128xf32>
    %cst_688 = arith.constant 0.0889789909 : f32
    %2410 = vector.broadcast %cst_688 : f32 to vector<8x128xf32>
    %2411 = arith.addf %2409, %2410 : vector<8x128xf32>
    %2412 = arith.mulf %2411, %2395 : vector<8x128xf32>
    %cst_689 = arith.constant -0.214598805 : f32
    %2413 = vector.broadcast %cst_689 : f32 to vector<8x128xf32>
    %2414 = arith.addf %2412, %2413 : vector<8x128xf32>
    %2415 = arith.mulf %2414, %2395 : vector<8x128xf32>
    %cst_690 = arith.constant 1.57079625 : f32
    %2416 = vector.broadcast %cst_690 : f32 to vector<8x128xf32>
    %2417 = arith.addf %2415, %2416 : vector<8x128xf32>
    %cst_691 = arith.constant 1.000000e+00 : f32
    %2418 = vector.broadcast %cst_691 : f32 to vector<8x128xf32>
    %2419 = arith.subf %2418, %2395 : vector<8x128xf32>
    %cst_692 = arith.constant 0.000000e+00 : f32
    %2420 = vector.broadcast %cst_692 : f32 to vector<8x128xf32>
    %2421 = arith.maximumf %2419, %2420 : vector<8x128xf32>
    %2422 = math.sqrt %2421 : vector<8x128xf32>
    %2423 = arith.mulf %2422, %2417 : vector<8x128xf32>
    %cst_693 = arith.constant 0.000000e+00 : f32
    %2424 = vector.broadcast %cst_693 : f32 to vector<8x128xf32>
    %2425 = arith.cmpf oge, %2394, %2424 : vector<8x128xf32>
    %cst_694 = arith.constant 3.14159274 : f32
    %2426 = vector.broadcast %cst_694 : f32 to vector<8x128xf32>
    %2427 = arith.subf %2426, %2423 : vector<8x128xf32>
    %2428 = arith.select %2425, %2423, %2427 : vector<8x128xi1>, vector<8x128xf32>
    %cst_695 = arith.constant 2.000000e+00 : f32
    %2429 = vector.broadcast %cst_695 : f32 to vector<8x128xf32>
    %2430 = arith.mulf %2429, %2428 : vector<8x128xf32>
    %2431 = arith.mulf %2430, %2385 : vector<8x128xf32>
    %2432 = arith.mulf %2394, %2394 : vector<8x128xf32>
    %cst_696 = arith.constant 1.000000e+00 : f32
    %2433 = vector.broadcast %cst_696 : f32 to vector<8x128xf32>
    %2434 = arith.subf %2433, %2432 : vector<8x128xf32>
    %cst_697 = arith.constant 0.000000e+00 : f32
    %2435 = vector.broadcast %cst_697 : f32 to vector<8x128xf32>
    %2436 = arith.maximumf %2434, %2435 : vector<8x128xf32>
    %cst_698 = arith.constant 9.99999968E-21 : f32
    %2437 = vector.broadcast %cst_698 : f32 to vector<8x128xf32>
    %2438 = arith.addf %2436, %2437 : vector<8x128xf32>
    %2439 = math.rsqrt %2438 : vector<8x128xf32>
    %2440 = arith.mulf %2431, %2439 : vector<8x128xf32>
    %2441 = arith.mulf %2440, %2384 : vector<8x128xf32>
    %2442 = arith.mulf %2441, %2362 : vector<8x128xf32>
    %2443 = arith.mulf %2441, %2369 : vector<8x128xf32>
    %2444 = arith.mulf %2441, %2376 : vector<8x128xf32>
    %cst_699 = arith.constant 2.000000e+02 : f32
    %2445 = vector.broadcast %cst_699 : f32 to vector<8x128xf32>
    %2446 = arith.mulf %2442, %2445 : vector<8x128xf32>
    %2447 = math.absf %2446 : vector<8x128xf32>
    %cst_700 = arith.constant 1.000000e+00 : f32
    %2448 = vector.broadcast %cst_700 : f32 to vector<8x128xf32>
    %2449 = arith.cmpf olt, %2447, %2448 : vector<8x128xf32>
    %cst_701 = arith.constant 5.000000e-01 : f32
    %2450 = vector.broadcast %cst_701 : f32 to vector<8x128xf32>
    %2451 = arith.mulf %2450, %2446 : vector<8x128xf32>
    %2452 = arith.mulf %2451, %2446 : vector<8x128xf32>
    %cst_702 = arith.constant 5.000000e-01 : f32
    %2453 = vector.broadcast %cst_702 : f32 to vector<8x128xf32>
    %2454 = arith.subf %2447, %2453 : vector<8x128xf32>
    %2455 = arith.select %2449, %2452, %2454 : vector<8x128xi1>, vector<8x128xf32>
    %cst_703 = arith.constant 2.000000e+02 : f32
    %2456 = vector.broadcast %cst_703 : f32 to vector<8x128xf32>
    %2457 = arith.mulf %2443, %2456 : vector<8x128xf32>
    %2458 = math.absf %2457 : vector<8x128xf32>
    %cst_704 = arith.constant 1.000000e+00 : f32
    %2459 = vector.broadcast %cst_704 : f32 to vector<8x128xf32>
    %2460 = arith.cmpf olt, %2458, %2459 : vector<8x128xf32>
    %cst_705 = arith.constant 5.000000e-01 : f32
    %2461 = vector.broadcast %cst_705 : f32 to vector<8x128xf32>
    %2462 = arith.mulf %2461, %2457 : vector<8x128xf32>
    %2463 = arith.mulf %2462, %2457 : vector<8x128xf32>
    %cst_706 = arith.constant 5.000000e-01 : f32
    %2464 = vector.broadcast %cst_706 : f32 to vector<8x128xf32>
    %2465 = arith.subf %2458, %2464 : vector<8x128xf32>
    %2466 = arith.select %2460, %2463, %2465 : vector<8x128xi1>, vector<8x128xf32>
    %2467 = arith.addf %2455, %2466 : vector<8x128xf32>
    %cst_707 = arith.constant 2.000000e+02 : f32
    %2468 = vector.broadcast %cst_707 : f32 to vector<8x128xf32>
    %2469 = arith.mulf %2444, %2468 : vector<8x128xf32>
    %2470 = math.absf %2469 : vector<8x128xf32>
    %cst_708 = arith.constant 1.000000e+00 : f32
    %2471 = vector.broadcast %cst_708 : f32 to vector<8x128xf32>
    %2472 = arith.cmpf olt, %2470, %2471 : vector<8x128xf32>
    %cst_709 = arith.constant 5.000000e-01 : f32
    %2473 = vector.broadcast %cst_709 : f32 to vector<8x128xf32>
    %2474 = arith.mulf %2473, %2469 : vector<8x128xf32>
    %2475 = arith.mulf %2474, %2469 : vector<8x128xf32>
    %cst_710 = arith.constant 5.000000e-01 : f32
    %2476 = vector.broadcast %cst_710 : f32 to vector<8x128xf32>
    %2477 = arith.subf %2470, %2476 : vector<8x128xf32>
    %2478 = arith.select %2472, %2475, %2477 : vector<8x128xi1>, vector<8x128xf32>
    %2479 = arith.addf %2467, %2478 : vector<8x128xf32>
    %c0_711 = arith.constant 0 : index
    %c2_712 = arith.constant 2 : index
    %c0_713 = arith.constant 0 : index
    %c0_714 = arith.constant 0 : index
    %2480 = vector.load %arg4[%c0_711, %c2_712, %c0_713, %c0_714] : memref<1x3x8x128xf32, #tpu.memory_space<vmem>>, vector<1x1x8x128xf32>
    %2481 = vector.shape_cast %2480 : vector<1x1x8x128xf32> to vector<8x128xf32>
    %2482 = arith.mulf %2479, %2481 : vector<8x128xf32>
    %2483 = arith.addf %0, %2279 : vector<8x128xf32>
    %2484 = arith.addf %0, %2482 : vector<8x128xf32>
    %c0_715 = arith.constant 0 : index
    %c0_716 = arith.constant 0 : index
    %c0_717 = arith.constant 0 : index
    %2485 = vector.load %arg5[%c0_715, %c0_716, %c0_717] : memref<1x8x128xf32, #tpu.memory_space<vmem>>, vector<1x8x128xf32>
    %2486 = vector.shape_cast %2485 : vector<1x8x128xf32> to vector<8x128xf32>
    %2487 = vector.shape_cast %2483 : vector<8x128xf32> to vector<1x8x128xf32>
    tpu.vector_store %arg5[%c0_715, %c0_716, %c0_717], %2487 {strides = array<i32>} : memref<1x8x128xf32, #tpu.memory_space<vmem>>, vector<1x8x128xf32>,
    %c0_718 = arith.constant 0 : index
    %c0_719 = arith.constant 0 : index
    %c0_720 = arith.constant 0 : index
    %2488 = vector.load %arg6[%c0_718, %c0_719, %c0_720] : memref<1x8x128xf32, #tpu.memory_space<vmem>>, vector<1x8x128xf32>
    %2489 = vector.shape_cast %2488 : vector<1x8x128xf32> to vector<8x128xf32>
    %2490 = vector.shape_cast %2484 : vector<8x128xf32> to vector<1x8x128xf32>
    tpu.vector_store %arg6[%c0_718, %c0_719, %c0_720], %2490 {strides = array<i32>} : memref<1x8x128xf32, #tpu.memory_space<vmem>>, vector<1x8x128xf32>,
    return
  }
  func.func @transform_0(%arg0: i32) -> (i32, i32, i32, i32) {
    %c0_i32 = arith.constant 0 : i32
    %c0_i32_0 = arith.constant 0 : i32
    %c0_i32_1 = arith.constant 0 : i32
    %c0_i32_2 = arith.constant 0 : i32
    return %arg0, %c0_i32, %c0_i32_0, %c0_i32_1 : i32, i32, i32, i32
  }
  func.func @transform_1(%arg0: i32) -> (i32, i32, i32, i32) {
    %c0_i32 = arith.constant 0 : i32
    %c0_i32_0 = arith.constant 0 : i32
    %c0_i32_1 = arith.constant 0 : i32
    %c0_i32_2 = arith.constant 0 : i32
    return %arg0, %c0_i32, %c0_i32_0, %c0_i32_1 : i32, i32, i32, i32
  }
  func.func @transform_2(%arg0: i32) -> (i32, i32, i32, i32) {
    %c0_i32 = arith.constant 0 : i32
    %c0_i32_0 = arith.constant 0 : i32
    %c0_i32_1 = arith.constant 0 : i32
    %c0_i32_2 = arith.constant 0 : i32
    return %arg0, %c0_i32, %c0_i32_0, %c0_i32_1 : i32, i32, i32, i32
  }
  func.func @transform_3(%arg0: i32) -> (i32, i32, i32, i32) {
    %c0_i32 = arith.constant 0 : i32
    %c0_i32_0 = arith.constant 0 : i32
    %c0_i32_1 = arith.constant 0 : i32
    %c0_i32_2 = arith.constant 0 : i32
    return %arg0, %c0_i32, %c0_i32_0, %c0_i32_1 : i32, i32, i32, i32
  }
  func.func @transform_4(%arg0: i32) -> (i32, i32, i32) {
    %c0_i32 = arith.constant 0 : i32
    %c0_i32_0 = arith.constant 0 : i32
    %c0_i32_1 = arith.constant 0 : i32
    return %arg0, %c0_i32, %c0_i32_0 : i32, i32, i32
  }
  func.func @transform_5(%arg0: i32) -> (i32, i32, i32) {
    %c0_i32 = arith.constant 0 : i32
    %c0_i32_0 = arith.constant 0 : i32
    %c0_i32_1 = arith.constant 0 : i32
    return %arg0, %c0_i32, %c0_i32_0 : i32, i32, i32
  }
}

</mosaic_0001>

<bundles_post_ra>
// kernel: dga_loss.1
= control target key start
LH: loop header
LB: loop body
LE: loop exit
PB: predicated region body
PF: predicated region fallthrough
CT: control target
= control target key end

     0   :  { %s5950_s0 = inlined_call_operand.vmem [shape: f32[1,96,8,128], index: 0, kind: input, shape index: {}]   ;;  %s5951_s1 = inlined_call_operand.vmem [shape: f32[1,6,8,128], index: 1, kind: input, shape index: {}]   ;;  %s5952_s2 = inlined_call_operand.vmem [shape: f32[1,3,8,128], index: 2, kind: input, shape index: {}]   ;;  %s5953_s3 = inlined_call_operand.vmem [shape: f32[1,3,8,128], index: 3, kind: input, shape index: {}]   ;;  %s5954_s4 = inlined_call_operand.vmem [shape: f32[1,8,128], index: 4, kind: output, shape index: {0}]   ;;  %s5955_s5 = inlined_call_operand.vmem [shape: f32[1,8,128], index: 5, kind: output, shape index: {1}]  }
   0x1   :  { %v3382_v0 = vld [vmem:[%s5950_s0] sm:$0xff]  ;;  %v3387_v1 = vld [vmem:[%s5950_s0 + $0x8] sm:$0xff]  ;;  %v3392_v2 = vld [vmem:[%s5950_s0 + $0x18] sm:$0xff] }
   0x2   :  { %v3397_v3 = vld [vmem:[%s5950_s0 + $0x20] sm:$0xff]  ;;  %v24_v4 = vmul.f32 %v3382_v0, %v3382_v0  ;;  %v25_v5 = vmul.f32 %v3387_v1, %v3387_v1  ;;  %v50_v6 = vmul.f32 %v3392_v2, %v3392_v2  ;;  %v3410_v8 = vld [vmem:[%s5950_s0 + $0x10] sm:$0xff]  ;;  %v3415_v9 = vld [vmem:[%s5950_s0 + $0x28] sm:$0xff] }
   0x3   :  { %v51_v7 = vmul.f32 %v3397_v3, %v3397_v3  ;;  %v3420_v10 = vld [vmem:[%s5950_s0 + $0x30] sm:$0xff]  ;;  %v3425_v11 = vld [vmem:[%s5950_s0 + $0x38] sm:$0xff]  ;;  %v3430_v12 = vld [vmem:[%s5950_s0 + $0x48] sm:$0xff]  ;;  %v27_v15 = vmul.f32 %v3410_v8, %v3410_v8  ;;  %v53_v17 = vmul.f32 %v3415_v9, %v3415_v9 }
   0x4   :  { %v3435_v13 = vld [vmem:[%s5950_s0 + $0x50] sm:$0xff]  ;;  %v26_v14 = vadd.f32 %v25_v5, %v24_v4  ;;  %v104_v18 = vmul.f32 %v3420_v10, %v3420_v10  ;;  %v105_v19 = vmul.f32 %v3425_v11, %v3425_v11  ;;  %v3448_v20 = vld [vmem:[%s5950_s0 + $0x40] sm:$0xff]  ;;  %v130_v21 = vmul.f32 %v3430_v12, %v3430_v12  ;;  %v3457_v23 = vld [vmem:[%s5950_s0 + $0x58] sm:$0xff] }
   0x5   :  { %v52_v16 = vadd.f32 %v51_v7, %v50_v6  ;;  %v131_v22 = vmul.f32 %v3435_v13, %v3435_v13  ;;  %v107_v27 = vmul.f32 %v3448_v20, %v3448_v20  ;;  %v133_v29 = vmul.f32 %v3457_v23, %v3457_v23  ;;  %v3466_v62 = vld [vmem:[%s5950_s0 + $0x60] sm:$0xff]  ;;  %v3471_v5 = vld [vmem:[%s5950_s0 + $0x68] sm:$0xff]  ;;  %v3476_v6 = vld [vmem:[%s5950_s0 + $0x78] sm:$0xff] }
   0x6   :  { %v28_v24 = vadd.f32 %v27_v15, %v26_v14  ;;  %v106_v26 = vadd.f32 %v105_v19, %v104_v18  ;;  %v3481_v7 = vld [vmem:[%s5950_s0 + $0x80] sm:$0xff]  ;;  %v212_v19 = vmul.f32 %v3466_v62, %v3466_v62 }
   0x7   :  { %v54_v25 = vadd.f32 %v53_v17, %v52_v16  ;;  %v132_v28 = vadd.f32 %v131_v22, %v130_v21  ;;  %v213_v21 = vmul.f32 %v3471_v5, %v3471_v5  ;;  %v238_v22 = vmul.f32 %v3476_v6, %v3476_v6 }
   0x8   :  { %v35_v30 = vmul.f32 -1.211015e-22, %v28_v24  ;;  %v108_v32 = vadd.f32 %v107_v27, %v106_v26  ;;  %v29_v34 = vmul.f32 -3.390842e-19, %v28_v24  ;;  %v239_v26 = vmul.f32 %v3481_v7, %v3481_v7 }
   0x9   :  { %v61_v31 = vmul.f32 -1.211015e-22, %v54_v25  ;;  %v134_v33 = vadd.f32 %v133_v29, %v132_v28  ;;  %v55_v36 = vmul.f32 -3.390842e-19, %v54_v25 }
   0xa   :  { %v36_v35 = vadd.f32 8.138021e-16, %v35_v30  ;;  %v115_v38 = vmul.f32 -1.211015e-22, %v108_v32  ;;  %v30_v40 = vadd.f32 1.6276042e-12, %v29_v34 }
   0xb   :  { %v62_v37 = vadd.f32 8.138021e-16, %v61_v31  ;;  %v141_v39 = vmul.f32 -1.211015e-22, %v134_v33  ;;  %v109_v41 = vmul.f32 -3.390842e-19, %v108_v32 }
   0xc   :  { %v37_v42 = vmul.f32 %v36_v35, %v28_v24  ;;  %v56_v43 = vadd.f32 1.6276042e-12, %v55_v36  ;;  %v116_v45 = vadd.f32 8.138021e-16, %v115_v38  ;;  %v135_v46 = vmul.f32 -3.390842e-19, %v134_v33 }
   0xd   :  { %v63_v44 = vmul.f32 %v62_v37, %v54_v25  ;;  %v142_v47 = vadd.f32 8.138021e-16, %v141_v39  ;;  %v31_v48 = vmul.f32 %v30_v40, %v28_v24  ;;  %v110_v49 = vadd.f32 1.6276042e-12, %v109_v41 }
   0xe   :  { %v38_v50 = vadd.f32 -2.6041667e-09, %v37_v42  ;;  %v57_v51 = vmul.f32 %v56_v43, %v54_v25  ;;  %v117_v53 = vmul.f32 %v116_v45, %v108_v32  ;;  %v136_v54 = vadd.f32 1.6276042e-12, %v135_v46 }
   0xf   :  { %v64_v52 = vadd.f32 -2.6041667e-09, %v63_v44  ;;  %v143_v55 = vmul.f32 %v142_v47, %v134_v33  ;;  %v32_v56 = vadd.f32 -3.125e-06, %v31_v48  ;;  %v111_v57 = vmul.f32 %v110_v49, %v108_v32 }
  0x10   :  { %v39_v58 = vmul.f32 %v38_v50, %v28_v24  ;;  %v58_v59 = vadd.f32 -3.125e-06, %v57_v51  ;;  %v118_v61 = vadd.f32 -2.6041667e-09, %v117_v53  ;;  %v137_v63 = vmul.f32 %v136_v54, %v134_v33 }
  0x11   :  { %v65_v60 = vmul.f32 %v64_v52, %v54_v25  ;;  %v144_v4 = vadd.f32 -2.6041667e-09, %v143_v55  ;;  %v33_v14 = vmul.f32 %v32_v56, %v28_v24  ;;  %v112_v15 = vadd.f32 -3.125e-06, %v111_v57  ;;  %v3494_v24 = vld [vmem:[%s5950_s0 + $0x70] sm:$0xff] }
  0x12   :  { %v40_v16 = vadd.f32 0.0025, %v39_v58  ;;  %v59_v17 = vmul.f32 %v58_v59, %v54_v25  ;;  %v119_v27 = vmul.f32 %v118_v61, %v108_v32  ;;  %v138_v28 = vadd.f32 -3.125e-06, %v137_v63  ;;  %v3499_v25 = vld [vmem:[%s5950_s0 + $0x88] sm:$0xff] }
  0x13   :  { %v66_v18 = vadd.f32 0.0025, %v65_v60  ;;  %v145_v29 = vmul.f32 %v144_v4, %v134_v33  ;;  %v34_v30 = vadd.f32 1.0, %v33_v14  ;;  %v113_v31 = vmul.f32 %v112_v15, %v108_v32 }
  0x14   :  { %v41_v34 = vmul.f32 %v40_v16, %v3382_v0  ;;  %v42_v35 = vmul.f32 %v3387_v1, %v40_v16  ;;  %v3503_v36 = vadd.f32 1.0, %v59_v17  ;;  %v214_v38 = vadd.f32 %v213_v21, %v212_v19 }
  0x15   :  { %v67_v37 = vmul.f32 %v3392_v2, %v66_v18  ;;  %v215_v39 = vmul.f32 %v3494_v24, %v3494_v24  ;;  %v240_v40 = vadd.f32 %v239_v26, %v238_v22  ;;  %v241_v41 = vmul.f32 %v3499_v25, %v3499_v25 }
  0x16   :  { %v68_v42 = vmul.f32 %v3397_v3, %v66_v18  ;;  %v120_v43 = vadd.f32 0.0025, %v119_v27  ;;  %v139_v32 = vmul.f32 %v138_v28, %v134_v33  ;;  %v146_v44 = vadd.f32 0.0025, %v145_v29 }
  0x17   :  { %v3512_v0 = vmul.f32 %v3410_v8, %v40_v16  ;;  %v69_v1 = vmul.f32 %v3415_v9, %v66_v18  ;;  %v70_v2 = vmul.f32 %v3503_v36, %v34_v30  ;;  %v71_v45 = vmul.f32 %v67_v37, %v41_v34 }
  0x18   :  { %v78_v46 = vmul.f32 %v3503_v36, %v41_v34  ;;  %v114_v47 = vadd.f32 1.0, %v113_v31  ;;  %v77_v48 = vmul.f32 %v67_v37, %v34_v30  ;;  %v87_v49 = vmul.f32 %v3503_v36, %v42_v35 }
  0x19   :  { %v3518_v50 = vadd.f32 %v215_v39, %v214_v38  ;;  %v3520_v3 = vadd.f32 %v241_v41, %v240_v40  ;;  %v73_v33 = vmul.f32 %v68_v42, %v42_v35  ;;  %v121_v51 = vmul.f32 %v3420_v10, %v120_v43 }
  0x1a   :  { %v3523_v8 = vadd.f32 1.0, %v139_v32  ;;  %v147_v9 = vmul.f32 %v3430_v12, %v146_v44  ;;  %v75_v52 = vmul.f32 %v69_v1, %v3512_v0  ;;  %v80_v53 = vmul.f32 %v69_v1, %v42_v35  ;;  %v3550_v32 = vld [vmem:[%s5950_s0 + $0x98] sm:$0xff] }
  0x1b   :  { %v84_v54 = vmul.f32 %v68_v42, %v34_v30  ;;  %v85_v55 = vmul.f32 %v69_v1, %v41_v34  ;;  %v72_v56 = vsub.f32 %v70_v2, %v71_v45  ;;  %v82_v57 = vmul.f32 %v68_v42, %v3512_v0 }
  0x1c   :  { %v122_v58 = vmul.f32 %v3425_v11, %v120_v43  ;;  %v148_v59 = vmul.f32 %v3435_v13, %v146_v44  ;;  %v79_v60 = vadd.f32 %v78_v46, %v77_v48  ;;  %v149_v61 = vmul.f32 %v3457_v23, %v146_v44  ;;  %v3557_v46 = vld [vmem:[%s5950_s0 + $0xa8] sm:$0xff] }
  0x1d   :  { %v223_v10 = vmul.f32 -1.211015e-22, %v3518_v50  ;;  %v249_v63 = vmul.f32 -1.211015e-22, %v3520_v3  ;;  %v150_v12 = vmul.f32 %v3523_v8, %v114_v47  ;;  %v151_v4 = vmul.f32 %v147_v9, %v121_v51 }
  0x1e   :  { %v157_v14 = vmul.f32 %v147_v9, %v114_v47  ;;  %v158_v15 = vmul.f32 %v3523_v8, %v121_v51  ;;  %v86_v16 = vsub.f32 %v84_v54, %v85_v55  ;;  %v89_v17 = vmul.f32 %v67_v37, %v3512_v0 }
  0x1f   :  { %v91_v18 = vmul.f32 %v69_v1, %v34_v30  ;;  %v92_v11 = vmul.f32 %v68_v42, %v41_v34  ;;  %v3536_v19 = vmul.f32 %v67_v37, %v42_v35  ;;  %v123_v13 = vmul.f32 %v3448_v20, %v120_v43  ;;  %v3545_v43 = vld [vmem:[%s5950_s0 + $0x90] sm:$0xff] }
  0x20   :  { %v153_v23 = vmul.f32 %v148_v59, %v122_v58  ;;  %v217_v21 = vmul.f32 -3.390842e-19, %v3518_v50  ;;  %v160_v22 = vmul.f32 %v149_v61, %v122_v58  ;;  %v224_v26 = vadd.f32 8.138021e-16, %v223_v10 }
  0x21   :  { %v243_v27 = vmul.f32 -3.390842e-19, %v3520_v3  ;;  %v250_v28 = vadd.f32 8.138021e-16, %v249_v63  ;;  %v152_v29 = vsub.f32 %v150_v12, %v151_v4  ;;  %v159_v31 = vadd.f32 %v158_v15, %v157_v14 }
  0x22   :  { %v164_v38 = vmul.f32 %v148_v59, %v114_v47  ;;  %v165_v39 = vmul.f32 %v149_v61, %v121_v51  ;;  %v74_v40 = vsub.f32 %v72_v56, %v73_v33  ;;  %v81_v41 = vadd.f32 %v80_v53, %v79_v60 }
  0x23   :  { %v88_v30 = vadd.f32 %v87_v49, %v86_v16  ;;  %v93_v34 = vadd.f32 %v92_v11, %v91_v18  ;;  %v155_v35 = vmul.f32 %v149_v61, %v123_v13  ;;  %v162_v37 = vmul.f32 %v148_v59, %v123_v13 }
  0x24   :  { %v167_v20 = vmul.f32 %v3523_v8, %v122_v58  ;;  %v171_v42 = vmul.f32 %v149_v61, %v114_v47  ;;  %v218_v44 = vadd.f32 1.6276042e-12, %v217_v21  ;;  %v225_v1 = vmul.f32 %v224_v26, %v3518_v50  ;;  %v3562_v47 = vld [vmem:[%s5950_s0 + $0xb0] sm:$0xff] }
  0x25   :  { %v244_v2 = vadd.f32 1.6276042e-12, %v243_v27  ;;  %v251_v45 = vmul.f32 %v250_v28, %v3520_v3  ;;  %v154_v48 = vsub.f32 %v152_v29, %v153_v23  ;;  %v161_v49 = vadd.f32 %v160_v22, %v159_v31 }
  0x26   :  { %v166_v33 = vsub.f32 %v164_v38, %v165_v39  ;;  %v172_v53 = vmul.f32 %v148_v59, %v121_v51  ;;  %v76_v54 = vsub.f32 %v74_v40, %v75_v52  ;;  %v83_v55 = vsub.f32 %v81_v41, %v82_v57  ;;  %v3582_v57 = vld [vmem:[%s5950_s0 + $0xb8] sm:$0xff] }
  0x27   :  { %v169_v56 = vmul.f32 %v147_v9, %v123_v13  ;;  %v174_v60 = vmul.f32 %v147_v9, %v122_v58  ;;  %v320_v61 = vmul.f32 %v3545_v43, %v3545_v43  ;;  %v321_v10 = vmul.f32 %v3550_v32, %v3550_v32  ;;  %v3577_v9 = vld [vmem:[%s5950_s0 + $0xa0] sm:$0xff] }
  0x28   :  { %v346_v63 = vmul.f32 %v3557_v46, %v3557_v46  ;;  %v347_v12 = vmul.f32 %v3562_v47, %v3562_v47  ;;  %v219_v4 = vmul.f32 %v218_v44, %v3518_v50  ;;  %v226_v14 = vadd.f32 -2.6041667e-09, %v225_v1 }
  0x29   :  { %v245_v51 = vmul.f32 %v244_v2, %v3520_v3  ;;  %v252_v52 = vadd.f32 -2.6041667e-09, %v251_v45  ;;  %v3584_v58 = vsub.f32 %v154_v48, %v155_v35  ;;  %v163_v59 = vsub.f32 %v161_v49, %v162_v37 }
  0x2a   :  { %v168_v15 = vadd.f32 %v167_v20, %v166_v33  ;;  %v173_v16 = vadd.f32 %v172_v53, %v171_v42  ;;  %v90_v18 = vadd.f32 %v89_v17, %v88_v30  ;;  %v95_v11 = vsub.f32 %v93_v34, %v3536_v19 }
  0x2b   :  { %v96_v23 = vmul.f32 %v3503_v36, %v3512_v0  ;;  %v176_v21 = vmul.f32 %v3523_v8, %v123_v13  ;;  %v322_v22 = vadd.f32 %v321_v10, %v320_v61  ;;  %v323_v26 = vmul.f32 %v3577_v9, %v3577_v9 }
  0x2c   :  { %v348_v27 = vadd.f32 %v347_v12, %v346_v63  ;;  %v349_v28 = vmul.f32 %v3582_v57, %v3582_v57  ;;  %v220_v29 = vadd.f32 -3.125e-06, %v219_v4  ;;  %v227_v31 = vmul.f32 %v226_v14, %v3518_v50 }
  0x2d   :  { %v246_v38 = vadd.f32 -3.125e-06, %v245_v51  ;;  %v253_v17 = vmul.f32 %v252_v52, %v3520_v3  ;;  %v170_v19 = vadd.f32 %v169_v56, %v168_v15  ;;  %v175_v39 = vsub.f32 %v173_v16, %v174_v60 }
  0x2e   :  { %v178_v36 = vmul.f32 %v3584_v58, %v76_v54  ;;  %v179_v0 = vmul.f32 %v163_v59, %v83_v55  ;;  %v97_v8 = vadd.f32 %v96_v23, %v95_v11  ;;  %v185_v13 = vmul.f32 %v163_v59, %v76_v54 }
  0x2f   :  { %v186_v40 = vmul.f32 %v3584_v58, %v83_v55  ;;  %v3598_v41 = vadd.f32 %v323_v26, %v322_v22  ;;  %v3600_v30 = vadd.f32 %v349_v28, %v348_v27  ;;  %v221_v34 = vmul.f32 %v220_v29, %v3518_v50 }
  0x30   :  { %v228_v35 = vadd.f32 0.0025, %v227_v31  ;;  %v247_v37 = vmul.f32 %v246_v38, %v3520_v3  ;;  %v254_v20 = vadd.f32 0.0025, %v253_v17  ;;  %v177_v42 = vadd.f32 %v176_v21, %v175_v39 }
  0x31   :  { %v180_v44 = vsub.f32 %v178_v36, %v179_v0  ;;  %v181_v1 = vmul.f32 %v170_v19, %v90_v18  ;;  %v187_v2 = vadd.f32 %v186_v40, %v185_v13  ;;  %v3604_v45 = vmul.f32 %v170_v19, %v97_v8 }
  0x32   :  { %v192_v48 = vmul.f32 %v170_v19, %v76_v54  ;;  %v195_v49 = vmul.f32 %v3584_v58, %v90_v18  ;;  %v183_v33 = vmul.f32 %v177_v42, %v97_v8  ;;  %v3607_v53 = vmul.f32 %v163_v59, %v97_v8 }
  0x33   :  { %v331_v56 = vmul.f32 -1.211015e-22, %v3598_v41  ;;  %v357_v50 = vmul.f32 -1.211015e-22, %v3600_v30  ;;  %v222_v60 = vadd.f32 1.0, %v221_v34  ;;  %v229_v3 = vmul.f32 %v3466_v62, %v228_v35 }
  0x34   :  { %v3612_v61 = vadd.f32 1.0, %v247_v37  ;;  %v255_v10 = vmul.f32 %v3476_v6, %v254_v20  ;;  %v182_v63 = vsub.f32 %v180_v44, %v181_v1  ;;  %v188_v12 = vmul.f32 %v177_v42, %v90_v18  ;;  %v3643_v44 = vld [vmem:[%s5950_s0 + $0xd8] sm:$0xff] }
  0x35   :  { %v193_v4 = vmul.f32 %v177_v42, %v83_v55  ;;  %v199_v14 = vmul.f32 %v177_v42, %v76_v54  ;;  %v200_v51 = vmul.f32 %v170_v19, %v83_v55  ;;  %v256_v52 = vmul.f32 %v3481_v7, %v254_v20  ;;  %v3638_v42 = vld [vmem:[%s5950_s0 + $0xc8] sm:$0xff] }
  0x36   :  { %v257_v15 = vmul.f32 %v3499_v25, %v254_v20  ;;  %v325_v16 = vmul.f32 -3.390842e-19, %v3598_v41  ;;  %v230_v11 = vmul.f32 %v3471_v5, %v228_v35  ;;  %v332_v23 = vadd.f32 8.138021e-16, %v331_v56 }
  0x37   :  { %v351_v62 = vmul.f32 -3.390842e-19, %v3600_v30  ;;  %v358_v21 = vadd.f32 8.138021e-16, %v357_v50  ;;  %v258_v22 = vmul.f32 %v3612_v61, %v222_v60  ;;  %v259_v6 = vmul.f32 %v255_v10, %v229_v3 }
  0x38   :  { %v265_v26 = vmul.f32 %v255_v10, %v222_v60  ;;  %v266_v27 = vmul.f32 %v3612_v61, %v229_v3  ;;  %v189_v54 = vadd.f32 %v188_v12, %v187_v2  ;;  %v194_v55 = vsub.f32 %v192_v48, %v193_v4 }
  0x39   :  { %v202_v28 = vmul.f32 %v163_v59, %v90_v18  ;;  %v204_v7 = vmul.f32 %v3584_v58, %v97_v8  ;;  %v201_v25 = vadd.f32 %v200_v51, %v199_v14  ;;  %v272_v29 = vmul.f32 %v256_v52, %v222_v60  ;;  %v3629_v59 = vld [vmem:[%s5950_s0 + $0xc0] sm:$0xff] }
  0x3a   :  { %v273_v31 = vmul.f32 %v257_v15, %v229_v3  ;;  %v326_v38 = vadd.f32 1.6276042e-12, %v325_v16  ;;  %v231_v5 = vmul.f32 %v3494_v24, %v228_v35  ;;  %v333_v17 = vmul.f32 %v332_v23, %v3598_v41 }
  0x3b   :  { %v352_v19 = vadd.f32 1.6276042e-12, %v351_v62  ;;  %v359_v39 = vmul.f32 %v358_v21, %v3600_v30  ;;  %v260_v36 = vsub.f32 %v258_v22, %v259_v6  ;;  %v261_v0 = vmul.f32 %v256_v52, %v230_v11  ;;  %v3660_v62 = vld [vmem:[%s5950_s0 + $0xd0] sm:$0xff] }
  0x3c   :  { %v267_v13 = vadd.f32 %v266_v27, %v265_v26  ;;  %v268_v40 = vmul.f32 %v257_v15, %v230_v11  ;;  %v3631_v58 = vsub.f32 %v182_v63, %v183_v33  ;;  %v196_v18 = vadd.f32 %v195_v49, %v194_v55  ;;  %v3651_v33 = vld [vmem:[%s5950_s0 + $0xe0] sm:$0xff] }
  0x3d   :  { %v279_v8 = vmul.f32 %v257_v15, %v222_v60  ;;  %v280_v34 = vmul.f32 %v256_v52, %v229_v3  ;;  %v203_v24 = vsub.f32 %v201_v25, %v202_v28  ;;  %v274_v35 = vsub.f32 %v272_v29, %v273_v31 }
  0x3e   :  { %v275_v37 = vmul.f32 %v3612_v61, %v230_v11  ;;  %v327_v20 = vmul.f32 %v326_v38, %v3598_v41  ;;  %v334_v1 = vadd.f32 -2.6041667e-09, %v333_v17  ;;  %v353_v2 = vmul.f32 %v352_v19, %v3600_v30 }
  0x3f   :  { %v360_v48 = vadd.f32 -2.6041667e-09, %v359_v39  ;;  %v428_v49 = vmul.f32 %v3629_v59, %v3629_v59  ;;  %v262_v56 = vsub.f32 %v260_v36, %v261_v0  ;;  %v263_v50 = vmul.f32 %v257_v15, %v231_v5 }
  0x40   :  { %v269_v60 = vadd.f32 %v268_v40, %v267_v13  ;;  %v270_v3 = vmul.f32 %v256_v52, %v231_v5  ;;  %v281_v63 = vadd.f32 %v280_v34, %v279_v8  ;;  %v282_v12 = vmul.f32 %v255_v10, %v230_v11 }
  0x41   :  { %v429_v4 = vmul.f32 %v3638_v42, %v3638_v42  ;;  %v454_v14 = vmul.f32 %v3643_v44, %v3643_v44  ;;  %v276_v51 = vadd.f32 %v275_v37, %v274_v35  ;;  %v277_v16 = vmul.f32 %v255_v10, %v231_v5  ;;  %v3670_v10 = vld [vmem:[%s5950_s0 + $0xe8] sm:$0xff] }
  0x42   :  { %v328_v23 = vadd.f32 -3.125e-06, %v327_v20  ;;  %v455_v15 = vmul.f32 %v3651_v33, %v3651_v33  ;;  %v191_v52 = vsub.f32 %v189_v54, %v3604_v45  ;;  %v335_v11 = vmul.f32 %v334_v1, %v3598_v41 }
  0x43   :  { %v354_v21 = vadd.f32 -3.125e-06, %v353_v2  ;;  %v361_v22 = vmul.f32 %v360_v48, %v3600_v30  ;;  %v198_v6 = vadd.f32 %v3607_v53, %v196_v18  ;;  %v3673_v26 = vadd.f32 %v204_v7, %v203_v24 }
  0x44   :  { %v3675_v27 = vsub.f32 %v262_v56, %v263_v50  ;;  %v271_v55 = vsub.f32 %v269_v60, %v270_v3  ;;  %v283_v28 = vsub.f32 %v281_v63, %v282_v12  ;;  %v284_v45 = vmul.f32 %v3612_v61, %v231_v5 }
  0x45   :  { %v430_v54 = vadd.f32 %v429_v4, %v428_v49  ;;  %v431_v25 = vmul.f32 %v3660_v62, %v3660_v62  ;;  %v278_v29 = vadd.f32 %v277_v16, %v276_v51  ;;  %v329_v31 = vmul.f32 %v328_v23, %v3598_v41 }
  0x46   :  { %v456_v38 = vadd.f32 %v455_v15, %v454_v14  ;;  %v457_v17 = vmul.f32 %v3670_v10, %v3670_v10  ;;  %v336_v53 = vadd.f32 0.0025, %v335_v11  ;;  %v355_v7 = vmul.f32 %v354_v21, %v3600_v30 }
  0x47   :  { %v362_v19 = vadd.f32 0.0025, %v361_v22  ;;  %v286_v39 = vmul.f32 %v3675_v27, %v3631_v58  ;;  %v287_v36 = vmul.f32 %v271_v55, %v191_v52  ;;  %v293_v61 = vmul.f32 %v271_v55, %v3631_v58 }
  0x48   :  { %v294_v5 = vmul.f32 %v3675_v27, %v191_v52  ;;  %v285_v0 = vadd.f32 %v284_v45, %v283_v28  ;;  %v3688_v13 = vadd.f32 %v431_v25, %v430_v54  ;;  %v289_v41 = vmul.f32 %v278_v29, %v198_v6 }
  0x49   :  { %v298_v40 = vmul.f32 %v278_v29, %v3673_v26  ;;  %v330_v18 = vadd.f32 1.0, %v329_v31  ;;  %v3691_v8 = vadd.f32 %v457_v17, %v456_v38  ;;  %v300_v30 = vmul.f32 %v278_v29, %v3631_v58 }
  0x4a   :  { %v337_v34 = vmul.f32 %v3545_v43, %v336_v53  ;;  %v3695_v24 = vadd.f32 1.0, %v355_v7  ;;  %v363_v35 = vmul.f32 %v3557_v46, %v362_v19  ;;  %v288_v37 = vsub.f32 %v286_v39, %v287_v36 }
  0x4b   :  { %v295_v20 = vadd.f32 %v294_v5, %v293_v61  ;;  %v303_v1 = vmul.f32 %v3675_v27, %v198_v6  ;;  %v3700_v2 = vmul.f32 %v271_v55, %v3673_v26  ;;  %v291_v48 = vmul.f32 %v285_v0, %v3673_v26 }
  0x4c   :  { %v296_v49 = vmul.f32 %v285_v0, %v198_v6  ;;  %v433_v56 = vmul.f32 -3.390842e-19, %v3688_v13  ;;  %v439_v50 = vmul.f32 -1.211015e-22, %v3688_v13  ;;  %v338_v43 = vmul.f32 %v3550_v32, %v336_v53 }
  0x4d   :  { %v364_v60 = vmul.f32 %v3562_v47, %v362_v19  ;;  %v365_v46 = vmul.f32 %v3582_v57, %v362_v19  ;;  %v465_v3 = vmul.f32 -1.211015e-22, %v3691_v8  ;;  %v366_v63 = vmul.f32 %v3695_v24, %v330_v18  ;;  %v3728_v19 = vld [vmem:[%s5950_s0 + $0xf8] sm:$0xff] }
  0x4e   :  { %v367_v12 = vmul.f32 %v363_v35, %v337_v34  ;;  %v373_v4 = vmul.f32 %v363_v35, %v330_v18  ;;  %v374_v14 = vmul.f32 %v3695_v24, %v337_v34  ;;  %v290_v51 = vsub.f32 %v288_v37, %v289_v41  ;;  %v3740_v41 = vld [vmem:[%s5950_s0 + $0x110] sm:$0xff] }
  0x4f   :  { %v301_v16 = vmul.f32 %v285_v0, %v191_v52  ;;  %v307_v23 = vmul.f32 %v285_v0, %v3631_v58  ;;  %v308_v15 = vmul.f32 %v278_v29, %v191_v52  ;;  %v3712_v11 = vmul.f32 %v271_v55, %v198_v6  ;;  %v3735_v0 = vld [vmem:[%s5950_s0 + $0x108] sm:$0xff] }
  0x50   :  { %v339_v32 = vmul.f32 %v3577_v9, %v336_v53  ;;  %v434_v47 = vadd.f32 1.6276042e-12, %v433_v56  ;;  %v440_v21 = vadd.f32 8.138021e-16, %v439_v50  ;;  %v369_v57 = vmul.f32 %v364_v60, %v338_v43  ;;  %v3723_v53 = vld [vmem:[%s5950_s0 + $0xf0] sm:$0xff] }
  0x51   :  { %v376_v22 = vmul.f32 %v365_v46, %v338_v43  ;;  %v459_v28 = vmul.f32 -3.390842e-19, %v3691_v8  ;;  %v466_v45 = vadd.f32 8.138021e-16, %v465_v3  ;;  %v368_v54 = vsub.f32 %v366_v63, %v367_v12  ;;  %v3751_v3 = vld [vmem:[%s5950_s0 + $0x100] sm:$0xff] }
  0x52   :  { %v375_v25 = vadd.f32 %v374_v14, %v373_v4  ;;  %v380_v31 = vmul.f32 %v364_v60, %v330_v18  ;;  %v381_v38 = vmul.f32 %v365_v46, %v337_v34  ;;  %v3716_v17 = vsub.f32 %v290_v51, %v291_v48 }
  0x53   :  { %v297_v7 = vadd.f32 %v296_v49, %v295_v20  ;;  %v302_v58 = vsub.f32 %v300_v30, %v301_v16  ;;  %v309_v52 = vadd.f32 %v308_v15, %v307_v23  ;;  %v371_v6 = vmul.f32 %v365_v46, %v339_v32 }
  0x54   :  { %v383_v55 = vmul.f32 %v3695_v24, %v338_v43  ;;  %v387_v9 = vmul.f32 %v365_v46, %v330_v18  ;;  %v435_v29 = vmul.f32 %v434_v47, %v3688_v13  ;;  %v388_v39 = vmul.f32 %v364_v60, %v337_v34 }
  0x55   :  { %v441_v36 = vmul.f32 %v440_v21, %v3688_v13  ;;  %v460_v61 = vadd.f32 1.6276042e-12, %v459_v28  ;;  %v467_v5 = vmul.f32 %v466_v45, %v3691_v8  ;;  %v370_v18 = vsub.f32 %v368_v54, %v369_v57 }
  0x56   :  { %v377_v30 = vadd.f32 %v376_v22, %v375_v25  ;;  %v378_v37 = vmul.f32 %v364_v60, %v339_v32  ;;  %v382_v20 = vsub.f32 %v380_v31, %v381_v38  ;;  %v3742_v34 = vsub.f32 %v297_v7, %v298_v40 }
  0x57   :  { %v304_v48 = vadd.f32 %v303_v1, %v302_v58  ;;  %v536_v49 = vmul.f32 %v3723_v53, %v3723_v53  ;;  %v537_v56 = vmul.f32 %v3728_v19, %v3728_v19  ;;  %v385_v50 = vmul.f32 %v363_v35, %v339_v32 }
  0x58   :  { %v390_v46 = vmul.f32 %v363_v35, %v338_v43  ;;  %v562_v60 = vmul.f32 %v3735_v0, %v3735_v0  ;;  %v563_v40 = vmul.f32 %v3740_v41, %v3740_v41  ;;  %v389_v1 = vadd.f32 %v388_v39, %v387_v9  ;;  %v3761_v35 = vld [vmem:[%s5950_s0 + $0x118] sm:$0xff] }
  0x59   :  { %v442_v63 = vadd.f32 -2.6041667e-09, %v441_v36  ;;  %v461_v12 = vmul.f32 %v460_v61, %v3691_v8  ;;  %v468_v4 = vadd.f32 -2.6041667e-09, %v467_v5  ;;  %v3763_v43 = vsub.f32 %v370_v18, %v371_v6 }
  0x5a   :  { %v379_v14 = vsub.f32 %v377_v30, %v378_v37  ;;  %v384_v51 = vadd.f32 %v383_v55, %v382_v20  ;;  %v436_v16 = vadd.f32 -3.125e-06, %v435_v29  ;;  %v311_v23 = vsub.f32 %v309_v52, %v3712_v11 }
  0x5b   :  { %v312_v15 = vmul.f32 %v3675_v27, %v3673_v26  ;;  %v538_v47 = vadd.f32 %v537_v56, %v536_v49  ;;  %v539_v21 = vmul.f32 %v3751_v3, %v3751_v3  ;;  %v306_v57 = vadd.f32 %v3700_v2, %v304_v48 }
  0x5c   :  { %v392_v22 = vmul.f32 %v3695_v24, %v339_v32  ;;  %v564_v28 = vadd.f32 %v563_v40, %v562_v60  ;;  %v565_v45 = vmul.f32 %v3761_v35, %v3761_v35  ;;  %v391_v54 = vsub.f32 %v389_v1, %v390_v46 }
  0x5d   :  { %v443_v25 = vmul.f32 %v442_v63, %v3688_v13  ;;  %v462_v31 = vadd.f32 -3.125e-06, %v461_v12  ;;  %v469_v11 = vmul.f32 %v468_v4, %v3691_v8  ;;  %v386_v38 = vadd.f32 %v385_v50, %v384_v51 }
  0x5e   :  { %v394_v26 = vmul.f32 %v3763_v43, %v3716_v17  ;;  %v395_v27 = vmul.f32 %v379_v14, %v3742_v34  ;;  %v437_v2 = vmul.f32 %v436_v16, %v3688_v13  ;;  %v313_v7 = vadd.f32 %v312_v15, %v311_v23 }
  0x5f   :  { %v401_v24 = vmul.f32 %v379_v14, %v3716_v17  ;;  %v402_v32 = vmul.f32 %v3763_v43, %v3742_v34  ;;  %v3783_v58 = vadd.f32 %v539_v21, %v538_v47  ;;  %v3785_v52 = vadd.f32 %v565_v45, %v564_v28 }
  0x60   :  { %v393_v6 = vadd.f32 %v392_v22, %v391_v54  ;;  %v444_v55 = vadd.f32 0.0025, %v443_v25  ;;  %v463_v9 = vmul.f32 %v462_v31, %v3691_v8  ;;  %v470_v29 = vadd.f32 0.0025, %v469_v11 }
  0x61   :  { %v396_v39 = vsub.f32 %v394_v26, %v395_v27  ;;  %v397_v36 = vmul.f32 %v386_v38, %v306_v57  ;;  %v438_v61 = vadd.f32 1.0, %v437_v2  ;;  %v403_v5 = vadd.f32 %v402_v32, %v401_v24 }
  0x62   :  { %v3788_v13 = vmul.f32 %v386_v38, %v313_v7  ;;  %v408_v18 = vmul.f32 %v386_v38, %v3716_v17  ;;  %v547_v30 = vmul.f32 -1.211015e-22, %v3783_v58  ;;  %v399_v37 = vmul.f32 %v393_v6, %v313_v7 }
  0x63   :  { %v411_v20 = vmul.f32 %v3763_v43, %v306_v57  ;;  %v3793_v48 = vmul.f32 %v379_v14, %v313_v7  ;;  %v573_v49 = vmul.f32 -1.211015e-22, %v3785_v52  ;;  %v404_v56 = vmul.f32 %v393_v6, %v306_v57 }
  0x64   :  { %v445_v8 = vmul.f32 %v3629_v59, %v444_v55  ;;  %v3797_v50 = vadd.f32 1.0, %v463_v9  ;;  %v471_v46 = vmul.f32 %v3643_v44, %v470_v29  ;;  %v398_v60 = vsub.f32 %v396_v39, %v397_v36 }
  0x65   :  { %v409_v40 = vmul.f32 %v393_v6, %v3742_v34  ;;  %v415_v1 = vmul.f32 %v393_v6, %v3716_v17  ;;  %v541_v63 = vmul.f32 -3.390842e-19, %v3783_v58  ;;  %v472_v12 = vmul.f32 %v3651_v33, %v470_v29  ;;  %v3815_v33 = vld [vmem:[%s5950_s0 + $0x120] sm:$0xff] }
  0x66   :  { %v473_v4 = vmul.f32 %v3670_v10, %v470_v29  ;;  %v548_v51 = vadd.f32 8.138021e-16, %v547_v30  ;;  %v567_v16 = vmul.f32 -3.390842e-19, %v3785_v52  ;;  %v416_v59 = vmul.f32 %v386_v38, %v3742_v34  ;;  %v3820_v10 = vld [vmem:[%s5950_s0 + $0x128] sm:$0xff] }
  0x67   :  { %v3807_v23 = vmul.f32 %v379_v14, %v306_v57  ;;  %v446_v44 = vmul.f32 %v3638_v42, %v444_v55  ;;  %v574_v15 = vadd.f32 8.138021e-16, %v573_v49  ;;  %v474_v47 = vmul.f32 %v3797_v50, %v438_v61 }
  0x68   :  { %v475_v21 = vmul.f32 %v471_v46, %v445_v8  ;;  %v481_v17 = vmul.f32 %v471_v46, %v438_v61  ;;  %v482_v22 = vmul.f32 %v3797_v50, %v445_v8  ;;  %v405_v34 = vadd.f32 %v404_v56, %v403_v5 }
  0x69   :  { %v410_v14 = vsub.f32 %v408_v18, %v409_v40  ;;  %v420_v42 = vmul.f32 %v3763_v43, %v313_v7  ;;  %v542_v57 = vadd.f32 1.6276042e-12, %v541_v63  ;;  %v488_v28 = vmul.f32 %v472_v12, %v438_v61  ;;  %v3833_v7 = vld [vmem:[%s5950_s0 + $0x130] sm:$0xff] }
  0x6a   :  { %v489_v45 = vmul.f32 %v473_v4, %v445_v8  ;;  %v549_v54 = vmul.f32 %v548_v51, %v3783_v58  ;;  %v568_v25 = vadd.f32 1.6276042e-12, %v567_v16  ;;  %v447_v31 = vmul.f32 %v3660_v62, %v444_v55 }
  0x6b   :  { %v575_v11 = vmul.f32 %v574_v15, %v3785_v52  ;;  %v644_v38 = vmul.f32 %v3815_v33, %v3815_v33  ;;  %v645_v26 = vmul.f32 %v3820_v10, %v3820_v10  ;;  %v476_v27 = vsub.f32 %v474_v47, %v475_v21 }
  0x6c   :  { %v477_v2 = vmul.f32 %v472_v12, %v446_v44  ;;  %v483_v24 = vadd.f32 %v482_v22, %v481_v17  ;;  %v484_v43 = vmul.f32 %v473_v4, %v446_v44  ;;  %v417_v32 = vadd.f32 %v416_v59, %v415_v1  ;;  %v3845_v59 = vld [vmem:[%s5950_s0 + $0x138] sm:$0xff] }
  0x6d   :  { %v495_v6 = vmul.f32 %v473_v4, %v438_v61  ;;  %v496_v62 = vmul.f32 %v472_v12, %v445_v8  ;;  %v543_v55 = vmul.f32 %v542_v57, %v3783_v58  ;;  %v490_v9 = vsub.f32 %v488_v28, %v489_v45 }
  0x6e   :  { %v491_v29 = vmul.f32 %v3797_v50, %v446_v44  ;;  %v550_v39 = vadd.f32 -2.6041667e-09, %v549_v54  ;;  %v569_v36 = vmul.f32 %v568_v25, %v3785_v52  ;;  %v412_v5 = vadd.f32 %v411_v20, %v410_v14  ;;  %v3874_v25 = vld [vmem:[%s5950_s0 + $0x148] sm:$0xff] }
  0x6f   :  { %v576_v18 = vadd.f32 -2.6041667e-09, %v575_v11  ;;  %v646_v30 = vadd.f32 %v645_v26, %v644_v38  ;;  %v647_v49 = vmul.f32 %v3833_v7, %v3833_v7  ;;  %v478_v56 = vsub.f32 %v476_v27, %v477_v2  ;;  %v854_v26 = vld [vmem:[%s5951_s1] sm:$0xff] }
  0x70   :  { %v479_v40 = vmul.f32 %v473_v4, %v447_v31  ;;  %v485_v63 = vadd.f32 %v484_v43, %v483_v24  ;;  %v486_v1 = vmul.f32 %v472_v12, %v447_v31  ;;  %v3840_v61 = vsub.f32 %v398_v60, %v399_v37  ;;  %v3851_v4 = vld [vmem:[%s5950_s0 + $0x140] sm:$0xff] }
  0x71   :  { %v497_v8 = vadd.f32 %v496_v62, %v495_v6  ;;  %v498_v51 = vmul.f32 %v471_v46, %v446_v44  ;;  %v544_v16 = vadd.f32 -3.125e-06, %v543_v55  ;;  %v492_v20 = vadd.f32 %v491_v29, %v490_v9  ;;  %v3212_v55 = vld [vmem:[%s5951_s1 + $0x8] sm:$0xff] }
  0x72   :  { %v493_v15 = vmul.f32 %v471_v46, %v447_v31  ;;  %v551_v47 = vmul.f32 %v550_v39, %v3783_v58  ;;  %v570_v21 = vadd.f32 -3.125e-06, %v569_v36  ;;  %v407_v37 = vsub.f32 %v405_v34, %v3788_v13 }
  0x73   :  { %v414_v60 = vadd.f32 %v3793_v48, %v412_v5  ;;  %v419_v12 = vsub.f32 %v417_v32, %v3807_v23  ;;  %v577_v44 = vmul.f32 %v576_v18, %v3785_v52  ;;  %v3857_v17 = vsub.f32 %v478_v56, %v479_v40 }
  0x74   :  { %v3859_v22 = vsub.f32 %v485_v63, %v486_v1  ;;  %v3861_v46 = vadd.f32 %v647_v49, %v646_v30  ;;  %v670_v14 = vmul.f32 %v3845_v59, %v3845_v59  ;;  %v499_v57 = vsub.f32 %v497_v8, %v498_v51  ;;  %v3213_v49 = vld [vmem:[%s5951_s1 + $0x10] sm:$0xff] }
  0x75   :  { %v500_v28 = vmul.f32 %v3797_v50, %v447_v31  ;;  %v545_v13 = vmul.f32 %v544_v16, %v3783_v58  ;;  %v671_v48 = vmul.f32 %v3851_v4, %v3851_v4  ;;  %v494_v23 = vadd.f32 %v493_v15, %v492_v20 }
  0x76   :  { %v552_v34 = vadd.f32 0.0025, %v551_v47  ;;  %v571_v45 = vmul.f32 %v570_v21, %v3785_v52  ;;  %v649_v54 = vmul.f32 -3.390842e-19, %v3861_v46  ;;  %v3876_v11 = vadd.f32 %v420_v42, %v419_v12 }
  0x77   :  { %v578_v38 = vadd.f32 0.0025, %v577_v44  ;;  %v502_v58 = vmul.f32 %v3857_v17, %v3840_v61  ;;  %v503_v50 = vmul.f32 %v3859_v22, %v407_v37  ;;  %v509_v31 = vmul.f32 %v3859_v22, %v3840_v61 }
  0x78   :  { %v510_v52 = vmul.f32 %v3857_v17, %v407_v37  ;;  %v501_v27 = vadd.f32 %v500_v28, %v499_v57  ;;  %v546_v2 = vadd.f32 1.0, %v545_v13  ;;  %v672_v24 = vadd.f32 %v671_v48, %v670_v14 }
  0x79   :  { %v673_v42 = vmul.f32 %v3874_v25, %v3874_v25  ;;  %v505_v43 = vmul.f32 %v494_v23, %v414_v60  ;;  %v553_v32 = vmul.f32 %v3723_v53, %v552_v34  ;;  %v3890_v6 = vadd.f32 1.0, %v571_v45 }
  0x7a   :  { %v650_v62 = vadd.f32 1.6276042e-12, %v649_v54  ;;  %v3896_v9 = vmul.f32 %v494_v23, %v3876_v11  ;;  %v3899_v29 = vmul.f32 %v494_v23, %v3840_v61  ;;  %v3902_v39 = vmul.f32 %v3735_v0, %v578_v38 }
  0x7b   :  { %v859_v36 = vmul.f32 %v854_v26, %v854_v26  ;;  %v504_v5 = vsub.f32 %v502_v58, %v503_v50  ;;  %v507_v53 = vmul.f32 %v501_v27, %v3876_v11  ;;  %v511_v18 = vadd.f32 %v510_v52, %v509_v31 }
  0x7c   :  { %v519_v30 = vmul.f32 %v3857_v17, %v414_v60  ;;  %v512_v56 = vmul.f32 %v501_v27, %v414_v60  ;;  %v554_v40 = vmul.f32 %v3728_v19, %v552_v34  ;;  %v3910_v63 = vadd.f32 %v673_v42, %v672_v24 }
  0x7d   :  { %v860_v1 = vmul.f32 %v3212_v55, %v3212_v55  ;;  %v580_v0 = vmul.f32 %v3740_v41, %v578_v38  ;;  %v581_v8 = vmul.f32 %v3761_v35, %v578_v38  ;;  %v582_v51 = vmul.f32 %v3890_v6, %v546_v2 }
  0x7e   :  { %v590_v16 = vmul.f32 %v3890_v6, %v553_v32  ;;  %v583_v20 = vmul.f32 %v3902_v39, %v553_v32  ;;  %v589_v15 = vmul.f32 %v3902_v39, %v546_v2  ;;  %v862_v21 = vmul.f32 %v3213_v49, %v3213_v49 }
  0x7f   :  { %v861_v47 = vadd.f32 %v860_v1, %v859_v36  ;;  %v506_v12 = vsub.f32 %v504_v5, %v505_v43  ;;  %v517_v44 = vmul.f32 %v501_v27, %v407_v37  ;;  %v523_v19 = vmul.f32 %v501_v27, %v3840_v61 }
  0x80   :  { %v655_v14 = vmul.f32 -1.211015e-22, %v3861_v46  ;;  %v524_v57 = vmul.f32 %v494_v23, %v407_v37  ;;  %v526_v41 = vmul.f32 %v3859_v22, %v414_v60  ;;  %v681_v35 = vmul.f32 -1.211015e-22, %v3910_v63 }
  0x81   :  { %v3922_v28 = vadd.f32 %v862_v21, %v861_v47  ;;  %v513_v13 = vadd.f32 %v512_v56, %v511_v18  ;;  %v555_v48 = vmul.f32 %v3751_v3, %v552_v34  ;;  %v585_v45 = vmul.f32 %v580_v0, %v554_v40 }
  0x82   :  { %v592_v54 = vmul.f32 %v581_v8, %v554_v40  ;;  %v584_v38 = vsub.f32 %v582_v51, %v583_v20  ;;  %v591_v58 = vadd.f32 %v590_v16, %v589_v15  ;;  %v596_v50 = vmul.f32 %v580_v0, %v546_v2 }
  0x83   :  { %v597_v31 = vmul.f32 %v581_v8, %v553_v32  ;;  %v518_v61 = vsub.f32 %v3899_v29, %v517_v44  ;;  %v656_v52 = vadd.f32 8.138021e-16, %v655_v14  ;;  %v675_v37 = vmul.f32 -3.390842e-19, %v3910_v63  ;;  %v3963_v14 = vld [vmem:[%s5950_s0 + $0x160] sm:$0xff] }
  0x84   :  { %v3928_v60 = vmax.f32 %v3922_v28, 1e-12  ;;  %v525_v23 = vadd.f32 %v524_v57, %v523_v19  ;;  %v603_v26 = vmul.f32 %v581_v8, %v546_v2  ;;  %v604_v27 = vmul.f32 %v580_v0, %v553_v32 }
  0x85   :  { %v682_v24 = vadd.f32 8.138021e-16, %v681_v35  ;;  %v587_v42 = vmul.f32 %v581_v8, %v555_v48  ;;  %v599_v3 = vmul.f32 %v3890_v6, %v554_v40  ;;  %v651_v34 = vmul.f32 %v650_v62, %v3861_v46 }
  0x86   :  { %3309 = vrsqrt.f32 %v3928_v60  ;;  %v586_v43 = vsub.f32 %v584_v38, %v585_v45  ;;  %v593_v55 = vadd.f32 %v592_v54, %v591_v58  ;;  %v594_v29 = vmul.f32 %v580_v0, %v555_v48  ;;  %v3943_v0 = vld [vmem:[%s5950_s0 + $0x150] sm:$0xff] }
  0x87   :  { %v598_v36 = vsub.f32 %v596_v50, %v597_v31  ;;  %v521_v5 = vmul.f32 %v3859_v22, %v3876_v11  ;;  %v528_v18 = vmul.f32 %v3857_v17, %v3876_v11  ;;  %v657_v2 = vmul.f32 %v656_v52, %v3861_v46  ;;  %v3948_v22 = vld [vmem:[%s5950_s0 + $0x158] sm:$0xff] }
  0x88   :  { %v676_v32 = vadd.f32 1.6276042e-12, %v675_v37  ;;  %v508_v49 = vsub.f32 %v506_v12, %v507_v53  ;;  %v605_v56 = vadd.f32 %v604_v27, %v603_v26  ;;  %v606_v1 = vmul.f32 %v3902_v39, %v554_v40 }
  0x89   :  { %v683_v62 = vmul.f32 %v682_v24, %v3910_v63  ;;  %v515_v17 = vsub.f32 %v513_v13, %v3896_v9  ;;  %v520_v11 = vadd.f32 %v519_v30, %v518_v61  ;;  %v527_v8 = vsub.f32 %v525_v23, %v526_v41 }
  0x8a   :  { %v652_v53 = vadd.f32 -3.125e-06, %v651_v34  ;;  %v588_v51 = vsub.f32 %v586_v43, %v587_v42  ;;  %v595_v16 = vsub.f32 %v593_v55, %v594_v29  ;;  %v600_v40 = vadd.f32 %v599_v3, %v598_v36 }
  0x8b   :  { %v601_v20 = vmul.f32 %v3902_v39, %v555_v48  ;;  %v658_v47 = vadd.f32 -2.6041667e-09, %v657_v2  ;;  %v677_v21 = vmul.f32 %v676_v32, %v3910_v63  ;;  %v752_v12 = vmul.f32 %v3943_v0, %v3943_v0 }
  0x8c   :  { %v3952_v15 = vpop.eup %3309  ;;  %v753_v44 = vmul.f32 %v3948_v22, %v3948_v22  ;;  %v607_v9 = vsub.f32 %v605_v56, %v606_v1  ;;  %v608_v30 = vmul.f32 %v3890_v6, %v555_v48  ;;  %v684_v19 = vadd.f32 -2.6041667e-09, %v683_v62 }
  0x8d   :  { %v522_v39 = vadd.f32 %v521_v5, %v520_v11  ;;  %v529_v57 = vadd.f32 %v528_v18, %v527_v8  ;;  %v874_v41 = vmul.f32 %v3952_v15, %v3928_v60  ;;  %v602_v35 = vadd.f32 %v601_v20, %v600_v40 }
  0x8e   :  { %v610_v13 = vmul.f32 %v588_v51, %v508_v49  ;;  %v611_v45 = vmul.f32 %v595_v16, %v515_v17  ;;  %v653_v54 = vmul.f32 %v652_v53, %v3861_v46  ;;  %v659_v38 = vmul.f32 %v658_v47, %v3861_v46 }
  0x8f   :  { %v678_v58 = vadd.f32 -3.125e-06, %v677_v21  ;;  %v754_v6 = vadd.f32 %v753_v44, %v752_v12  ;;  %v755_v48 = vmul.f32 %v3963_v14, %v3963_v14  ;;  %v609_v50 = vadd.f32 %v608_v30, %v607_v9 }
  0x90   :  { %v617_v31 = vmul.f32 %v595_v16, %v508_v49  ;;  %v618_v61 = vmul.f32 %v588_v51, %v515_v17  ;;  %v685_v52 = vmul.f32 %v684_v19, %v3910_v63  ;;  %v875_v37 = vmul.f32 %v3952_v15, %v874_v41 }
  0x91   :  { %v612_v23 = vsub.f32 %v610_v13, %v611_v45  ;;  %v613_v26 = vmul.f32 %v602_v35, %v522_v39  ;;  %v3973_v27 = vadd.f32 1.0, %v653_v54  ;;  %v622_v24 = vmul.f32 %v602_v35, %v529_v57 }
  0x92   :  { %v624_v42 = vmul.f32 %v602_v35, %v508_v49  ;;  %v660_v3 = vadd.f32 0.0025, %v659_v38  ;;  %v3975_v46 = vadd.f32 %v755_v48, %v754_v6  ;;  %v619_v34 = vadd.f32 %v618_v61, %v617_v31  ;;  %v4021_v31 = vld [vmem:[%s5950_s0 + $0x178] sm:$0xff] }
  0x93   :  { %v625_v43 = vmul.f32 %v609_v50, %v515_v17  ;;  %v679_v55 = vmul.f32 %v678_v58, %v3910_v63  ;;  %v686_v29 = vadd.f32 0.0025, %v685_v52  ;;  %v620_v36 = vmul.f32 %v609_v50, %v522_v39 }
  0x94   :  { %v876_v5 = vmul.f32 0.5, %v875_v37  ;;  %vm879_vm0 = vweird.f32 %v3928_v60  ;;  %vm880_vm1 = vweird.f32 %v3952_v15  ;;  %v614_v18 = vsub.f32 %v612_v23, %v613_v26 }
  0x95   :  { %v615_v2 = vmul.f32 %v609_v50, %v529_v57  ;;  %v627_v32 = vmul.f32 %v588_v51, %v522_v39  ;;  %v629_v56 = vmul.f32 %v595_v16, %v529_v57  ;;  %v631_v1 = vmul.f32 %v609_v50, %v508_v49  ;;  %vm881_vm2 = vmor %vm879_vm0, %vm880_vm1 }
  0x96   :  { %v632_v62 = vmul.f32 %v602_v35, %v515_v17  ;;  %v757_v11 = vmul.f32 -3.390842e-19, %v3975_v46  ;;  %v877_v8 = vsub.f32 1.5, %v876_v5  ;;  %v626_v53 = vsub.f32 %v624_v42, %v625_v43 }
  0x97   :  { %v661_v40 = vmul.f32 %v3815_v33, %v660_v3  ;;  %v680_v63 = vadd.f32 1.0, %v679_v55  ;;  %v687_v20 = vmul.f32 %v3845_v59, %v686_v29  ;;  %v621_v47 = vadd.f32 %v620_v36, %v619_v34  ;;  %v3992_v33 = vld [vmem:[%s5950_s0 + $0x168] sm:$0xff]  ;;  %v3997_v59 = vld [vmem:[%s5950_s0 + $0x170] sm:$0xff] }
  0x98   :  { %v634_v60 = vmul.f32 %v595_v16, %v522_v39  ;;  %v636_v21 = vmul.f32 %v588_v51, %v529_v57  ;;  %v878_v12 = vmul.f32 %v3952_v15, %v877_v8  ;;  %v3984_v44 = vsub.f32 %v614_v18, %v615_v2 }
  0x99   :  { %v662_v49 = vmul.f32 %v3820_v10, %v660_v3  ;;  %v688_v17 = vmul.f32 %v3851_v4, %v686_v29  ;;  %v689_v9 = vmul.f32 %v3874_v25, %v686_v29  ;;  %v633_v51 = vadd.f32 %v632_v62, %v631_v1 }
  0x9a   :  { %v758_v16 = vadd.f32 1.6276042e-12, %v757_v11  ;;  %v763_v30 = vmul.f32 -1.211015e-22, %v3975_v46  ;;  %v4001_v10 = vsel %vm881_vm2, %v3952_v15, %v878_v12  ;;  %v628_v4 = vadd.f32 %v627_v32, %v626_v53 }
  0x9b   :  { %v690_v25 = vmul.f32 %v680_v63, %v3973_v27  ;;  %v691_v19 = vmul.f32 %v687_v20, %v661_v40  ;;  %v883_v39 = vmul.f32 %v4001_v10, %v3922_v28  ;;  %v697_v57 = vmul.f32 %v687_v20, %v3973_v27 }
  0x9c   :  { %v698_v41 = vmul.f32 %v680_v63, %v661_v40  ;;  %v778_v35 = vmul.f32 %v3992_v33, %v3992_v33  ;;  %v779_v13 = vmul.f32 %v3997_v59, %v3997_v59  ;;  %v663_v45 = vmul.f32 %v3833_v7, %v660_v3 }
  0x9d   :  { %v704_v15 = vmul.f32 %v688_v17, %v3973_v27  ;;  %v705_v54 = vmul.f32 %v689_v9, %v661_v40  ;;  %v4013_v38 = vmul.f32 0.5, %v883_v39  ;;  %v4015_v58 = vsub.f32 %v621_v47, %v622_v24 }
  0x9e   :  { %v635_v6 = vsub.f32 %v633_v51, %v634_v60  ;;  %v759_v48 = vmul.f32 %v758_v16, %v3975_v46  ;;  %v764_v50 = vadd.f32 8.138021e-16, %v763_v30  ;;  %v4023_v61 = vadd.f32 %v629_v56, %v628_v4 }
  0x9f   :  { %v692_v52 = vsub.f32 %v690_v25, %v691_v19  ;;  %v693_v7 = vmul.f32 %v688_v17, %v662_v49  ;;  %v888_v37 = vand.u32 2139095040, %v4013_v38  ;;  %v699_v23 = vadd.f32 %v698_v41, %v697_v57 }
  0xa0   :  { %v700_v26 = vmul.f32 %v689_v9, %v662_v49  ;;  %v707_v42 = vmul.f32 %v680_v63, %v662_v49  ;;  %v780_v24 = vadd.f32 %v779_v13, %v778_v35  ;;  %v706_v3 = vsub.f32 %v704_v15, %v705_v54 }
  0xa1   :  { %v711_v34 = vmul.f32 %v689_v9, %v3973_v27  ;;  %v781_v43 = vmul.f32 %v4021_v31, %v4021_v31  ;;  %v889_v55 = vshrl.u32 %v888_v37, 23  ;;  %v712_v29 = vmul.f32 %v688_v17, %v661_v40 }
  0xa2   :  { %v760_v36 = vadd.f32 -3.125e-06, %v759_v48  ;;  %v765_v5 = vmul.f32 %v764_v50, %v3975_v46  ;;  %v885_v18 = vand.u32 2147483647, %v4013_v38  ;;  %v4031_v2 = vadd.f32 %v636_v21, %v635_v6 }
  0xa3   :  { %v694_v32 = vsub.f32 %v692_v52, %v693_v7  ;;  %v695_v56 = vmul.f32 %v689_v9, %v663_v45  ;;  %v3214_v1 = vadd.s32 4294967169, %v889_v55  ;;  %v701_v62 = vadd.f32 %v700_v26, %v699_v23 }
  0xa4   :  { %v702_v11 = vmul.f32 %v688_v17, %v663_v45  ;;  %v709_v8 = vmul.f32 %v687_v20, %v663_v45  ;;  %v716_v53 = vmul.f32 %v680_v63, %v663_v45  ;;  %v708_v27 = vadd.f32 %v707_v42, %v706_v3 }
  0xa5   :  { %v714_v47 = vmul.f32 %v687_v20, %v662_v49  ;;  %v4033_v60 = vadd.f32 %v781_v43, %v780_v24  ;;  %v895_v12 = vadd.s32 1, %v3214_v1  ;;  %v713_v40 = vadd.f32 %v712_v29, %v711_v34 }
  0xa6   :  { %v761_v51 = vmul.f32 %v760_v36, %v3975_v46  ;;  %v4036_v16 = vadd.f32 -2.6041667e-09, %v765_v5  ;;  %v892_v21 = vand.u32 8388607, %v885_v18  ;;  %v4040_v30 = vsub.f32 %v694_v32, %v695_v56 }
  0xa7   :  { %v783_v9 = vmul.f32 -3.390842e-19, %v4033_v60  ;;  %vm896_vm3 = vcmp.gt.s32.totalorder %v895_v12, 0  ;;  %v4043_v17 = vsub.f32 %v701_v62, %v702_v11  ;;  %v4045_v20 = vadd.f32 %v709_v8, %v708_v27 }
  0xa8   :  { %v897_v63 = vsel %vm896_vm3, %v895_v12, 0  ;;  %v715_v4 = vsub.f32 %v713_v40, %v714_v47  ;;  %v893_v25 = vor.u32 8388608, %v892_v21  ;;  %v5968_v57 = vmov 683565275  }
  0xa9   :  { %v899_v49 = vand.u32 31, %v897_v63  ;;  %v4047_v19 = vshrl.u32 %v897_v63, 5  ;;  %v5966_v35 = vmov 2475754826   ;;  %v5964_v45 = vmov 2131351028  }
  0xaa   :  { %v4052_v54 = vadd.f32 1.0, %v761_v51  ;;  %v789_v6 = vmul.f32 -1.211015e-22, %v4033_v60  ;;  %v5962_v48 = vmov 2102212464   ;;  %v4059_v37 = vmul.f32 %v4040_v30, %v3984_v44 }
  0xab   :  { %v900_v39 = vsub.s32 32, %v899_v49  ;;  %v902_v41 = vshll.u32 %v5968_v57, %v899_v49  ;;  %v905_v13 = vshll.u32 %v5966_v35, %v899_v49  ;;  %v908_v15 = vshll.u32 %v5964_v45, %v899_v49 }
  0xac   :  { %v911_v50 = vshll.u32 %v5962_v48, %v899_v49  ;;  %v5958_v52 = vmov 920167782   ;;  %v5956_v3 = vmov 1326507024   ;;  %vm917_vm4 = vcmp.lt.s32.totalorder %v4047_v19, 1 }
  0xad   :  { %v914_v7 = vshll.u32 %v5958_v52, %v899_v49  ;;  %v903_v23 = vshrl.u32 %v5966_v35, %v900_v39  ;;  %v906_v26 = vshrl.u32 %v5964_v45, %v900_v39  ;;  %v909_v42 = vshrl.u32 %v5962_v48, %v900_v39 }
  0xae   :  { %v912_v24 = vshrl.u32 %v5958_v52, %v900_v39  ;;  %v915_v34 = vshrl.u32 %v5956_v3, %v900_v39  ;;  %v4067_v43 = vshll.u32 %v893_v25, 8  ;;  %vm920_vm5 = vcmp.lt.s32.totalorder %v4047_v19, 4 }
  0xaf   :  { %v904_v55 = vor.u32 %v903_v23, %v902_v41  ;;  %v4069_v29 = vor.u32 %v906_v26, %v905_v13  ;;  %v910_v36 = vor.u32 %v909_v42, %v908_v15  ;;  %v4074_v5 = vmul.f32 %v4043_v17, %v4015_v58 }
  0xb0   :  { %v913_v32 = vor.u32 %v912_v24, %v911_v50  ;;  %v916_v56 = vor.u32 %v915_v34, %v914_v7  ;;  %vm919_vm6 = vcmp.lt.s32.totalorder %v4047_v19, 3  ;;  %v725_v1 = vmul.f32 %v4043_v17, %v3984_v44 }
  0xb1   :  { %vm918_vm7 = vcmp.lt.s32.totalorder %v4047_v19, 2  ;;  %v925_v62 = vsel %vm917_vm4, %v904_v55, %v4069_v29  ;;  %v929_v11 = vsel %vm917_vm4, %v4069_v29, %v910_v36  ;;  %v726_v8 = vmul.f32 %v4040_v30, %v4015_v58 }
  0xb2   :  { %v790_v27 = vadd.f32 8.138021e-16, %v789_v6  ;;  %v926_v47 = vsel %vm920_vm5, %v913_v32, 920167782  ;;  %v930_v12 = vsel %vm920_vm5, %v916_v56, 1326507024  ;;  %v4098_v49 = vadd.f32 %v716_v53, %v715_v4 }
  0xb3   :  { %v927_v40 = vsel %vm919_vm6, %v910_v36, %v926_v47  ;;  %v931_v51 = vsel %vm919_vm6, %v913_v32, %v930_v12  ;;  %v934_v21 = vand.u32 65535, %v4067_v43  ;;  %v935_v63 = vshrl.u32 %v4067_v43, 16 }
  0xb4   :  { %v4102_v25 = vmul.f32 %v4045_v20, %v4023_v61  ;;  %v928_v41 = vsel %vm918_vm7, %v925_v62, %v927_v40  ;;  %v932_v13 = vsel %vm918_vm7, %v929_v11, %v931_v51  ;;  %v4110_v23 = vmul.f32 %v4045_v20, %v4031_v2 }
  0xb5   :  { %v936_v15 = vand.u32 65535, %v932_v13  ;;  %v937_v6 = vshrl.u32 %v932_v13, 16  ;;  %v958_v50 = vand.u32 65535, %v928_v41  ;;  %v959_v7 = vshrl.u32 %v928_v41, 16 }
  0xb6   :  { %v4114_v53 = vmul.f32 %v4045_v20, %v3984_v44  ;;  %v784_v4 = vadd.f32 1.6276042e-12, %v783_v9  ;;  %v791_v26 = vmul.f32 %v790_v27, %v4033_v60  ;;  %v901_v42 = vshrl.u32 %v5968_v57, %v900_v39 }
  0xb7   :  { %v938_v24 = vmul.u32 %v936_v15, %v934_v21  ;;  %v939_v34 = vmul.u32 %v937_v6, %v934_v21  ;;  %v940_v32 = vmul.u32 %v936_v15, %v935_v63  ;;  %v720_v56 = vsub.f32 %v4059_v37, %v4074_v5 }
  0xb8   :  { %v960_v62 = vmul.u32 %v958_v50, %v934_v21  ;;  %v961_v11 = vmul.u32 %v959_v7, %v934_v21  ;;  %v962_v47 = vmul.u32 %v958_v50, %v935_v63  ;;  %v941_v12 = vmul.u32 %v937_v6, %v935_v63 }
  0xb9   :  { %v942_v40 = vshll.u32 %v939_v34, 16  ;;  %v944_v51 = vshll.u32 %v940_v32, 16  ;;  %v785_v41 = vmul.f32 %v784_v4, %v4033_v60  ;;  %v963_v13 = vmul.u32 %v959_v7, %v935_v63 }
  0xba   :  { %v964_v9 = vshll.u32 %v961_v11, 16  ;;  %v966_v3 = vshll.u32 %v962_v47, 16  ;;  %v792_v27 = vadd.f32 -2.6041667e-09, %v791_v26  ;;  %v921_v39 = vsel %vm917_vm4, %v901_v42, %v904_v55 }
  0xbb   :  { %vm946_vm8 = vc.u32 %v938_v24, %v942_v40  ;;  %v948_v15 = vadd.s32 %v942_v40, %v938_v24  ;;  %v922_v37 = vsel %vm920_vm5, %v910_v36, 2102212464  ;;  %v5960_v5 = vmov 0  }
  0xbc   :  { %v947_v21 = vsel %vm946_vm8, 1, %v5960_v5  ;;  %vm968_vm9 = vc.u32 %v960_v62, %v964_v9  ;;  %v970_v6 = vadd.s32 %v964_v9, %v960_v62  ;;  %v943_v50 = vshrl.u32 %v939_v34, 16 }
  0xbd   :  { %v949_v52 = vadd.s32 %v947_v21, %v941_v12  ;;  %vm950_vm10 = vc.u32 %v948_v15, %v944_v51  ;;  %v969_v63 = vsel %vm968_vm9, 1, %v5960_v5  ;;  %v965_v4 = vshrl.u32 %v961_v11, 16 }
  0xbe   :  { %v951_v7 = vsel %vm950_vm10, 1, %v5960_v5  ;;  %v971_v26 = vadd.s32 %v969_v63, %v963_v13  ;;  %vm972_vm11 = vc.u32 %v970_v6, %v966_v3  ;;  %v923_v55 = vsel %vm919_vm6, %v4069_v29, %v922_v37  ;;  %v4170_v37 = vld [vmem:[%s5950_s0 + $0x198] sm:$0xff]  ;;  %v4193_v63 = vld [vmem:[%s5950_s0 + $0x190] sm:$0xff] }
  0xbf   :  { %v945_v36 = vshrl.u32 %v940_v32, 16  ;;  %v953_v42 = vadd.s32 %v951_v7, %v949_v52  ;;  %v973_v24 = vsel %vm972_vm11, 1, %v5960_v5  ;;  %v727_v40 = vadd.f32 %v726_v8, %v725_v1  ;;  %v4156_v32 = vld [vmem:[%s5950_s0 + $0x180] sm:$0xff] }
  0xc0   :  { %v786_v62 = vadd.f32 -3.125e-06, %v785_v41  ;;  %v967_v34 = vshrl.u32 %v962_v47, 16  ;;  %v975_v12 = vadd.s32 %v973_v24, %v971_v26  ;;  %v767_v51 = vmul.f32 %v4036_v16, %v3975_v46 }
  0xc1   :  { %v793_v9 = vmul.f32 %v792_v27, %v4033_v60  ;;  %v954_v11 = vadd.s32 %v953_v42, %v943_v50  ;;  %v4135_v13 = vadd.s32 %v970_v6, %v966_v3  ;;  %v735_v15 = vmul.f32 %v4040_v30, %v4023_v61 }
  0xc2   :  { %v4141_v52 = vmul.f32 %v4043_v17, %v4031_v2  ;;  %v924_v29 = vsel %vm918_vm7, %v921_v39, %v923_v55  ;;  %v976_v1 = vadd.s32 %v975_v12, %v965_v4  ;;  %v723_v8 = vmul.f32 %v4098_v49, %v4031_v2  ;;  %v4165_v39 = vld [vmem:[%s5950_s0 + $0x188] sm:$0xff] }
  0xc3   :  { %v728_v46 = vmul.f32 %v4098_v49, %v4023_v61  ;;  %v733_v16 = vmul.f32 %v4098_v49, %v4015_v58  ;;  %v4151_v3 = vadd.s32 %v954_v11, %v945_v36  ;;  %v722_v19 = vsub.f32 %v720_v56, %v4102_v25  ;;  %v4175_v25 = vld [vmem:[%s5950_s0 + $0x1a0] sm:$0xff]  ;;  %v4209_v4 = vld [vmem:[%s5950_s0 + $0x1a8] sm:$0xff] }
  0xc4   :  { %v739_v47 = vmul.f32 %v4098_v49, %v3984_v44  ;;  %v787_v41 = vmul.f32 %v786_v62, %v4033_v60  ;;  %v977_v27 = vadd.s32 %v976_v1, %v967_v34  ;;  %v768_v56 = vadd.f32 0.0025, %v767_v51 }
  0xc5   :  { %v794_v44 = vadd.f32 0.0025, %v793_v9  ;;  %v978_v60 = vmul.u32 %v4067_v43, %v924_v29  ;;  %vm980_vm12 = vc.u32 %v4151_v3, %v4135_v13  ;;  %v740_v49 = vmul.f32 %v4045_v20, %v4015_v58 }
  0xc6   :  { %v4184_v21 = vmul.f32 %v4043_v17, %v4023_v61  ;;  %v4188_v6 = vmul.f32 %v4040_v30, %v4031_v2  ;;  %v981_v50 = vadd.s32 1, %v977_v27  ;;  %v1337_v43 = vmul.f32 %v4156_v32, %v4156_v32 }
  0xc7   :  { %v1338_v58 = vmul.f32 %v4165_v39, %v4165_v39  ;;  %v1363_v61 = vmul.f32 %v4170_v37, %v4170_v37  ;;  %v1364_v17 = vmul.f32 %v4175_v25, %v4175_v25  ;;  %v729_v2 = vadd.f32 %v728_v46, %v727_v40 }
  0xc8   :  { %v734_v30 = vsub.f32 %v4114_v53, %v733_v16  ;;  %v4204_v20 = vadd.f32 1.0, %v787_v41  ;;  %v982_v7 = vsel %vm980_vm12, %v981_v50, %v977_v27  ;;  %v4211_v26 = vsub.f32 %v722_v19, %v723_v8 }
  0xc9   :  { %v769_v55 = vmul.f32 %v3943_v0, %v768_v56  ;;  %v795_v36 = vmul.f32 %v3992_v33, %v794_v44  ;;  %v983_v42 = vadd.s32 %v982_v7, %v978_v60  ;;  %v796_v24 = vmul.f32 %v3997_v59, %v794_v44 }
  0xca   :  { %v797_v40 = vmul.f32 %v4021_v31, %v794_v44  ;;  %v864_v53 = vmul.f32 0.0026041667, %v3922_v28  ;;  %v1340_v62 = vmul.f32 %v4193_v63, %v4193_v63  ;;  %v1339_v12 = vadd.f32 %v1338_v58, %v1337_v43 }
  0xcb   :  { %v984_v34 = vadd.s32 536870912, %v983_v42  ;;  %v1365_v51 = vadd.f32 %v1364_v17, %v1363_v61  ;;  %v1366_v9 = vmul.f32 %v4209_v4, %v4209_v4  ;;  %v741_v11 = vadd.f32 %v740_v49, %v739_v47 }
  0xcc   :  { %v770_v0 = vmul.f32 %v3948_v22, %v768_v56  ;;  %v798_v33 = vmul.f32 %v4204_v20, %v4052_v54  ;;  %v868_v59 = vmul.f32 0.00026041668, %v3922_v28  ;;  %v799_v31 = vmul.f32 %v795_v36, %v769_v55 }
  0xcd   :  { %v805_v29 = vmul.f32 %v795_v36, %v4052_v54  ;;  %v806_v1 = vmul.f32 %v4204_v20, %v769_v55  ;;  %v4228_v8 = vshrl.u32 %v984_v34, 30  ;;  %v736_v46 = vadd.f32 %v735_v15, %v734_v30 }
  0xce   :  { %v812_v16 = vmul.f32 %v796_v24, %v4052_v54  ;;  %v813_v19 = vmul.f32 %v797_v40, %v769_v55  ;;  %v865_v41 = vadd.f32 -0.125, %v864_v53  ;;  %v4232_v47 = vsub.f32 %v729_v2, %v4110_v23 }
  0xcf   :  { %v986_v22 = vshll.u32 %v4228_v8, 30  ;;  %v4235_v27 = vadd.f32 %v1340_v62, %v1339_v12  ;;  %v4237_v44 = vadd.f32 %v1366_v9, %v1365_v51  ;;  %v743_v60 = vsub.f32 %v741_v11, %v4184_v21 }
  0xd0   :  { %v771_v49 = vmul.f32 %v3963_v14, %v768_v56  ;;  %v801_v50 = vmul.f32 %v796_v24, %v770_v0  ;;  %v869_v43 = vadd.f32 -0.020833334, %v868_v59  ;;  %v800_v15 = vsub.f32 %v798_v33, %v799_v31 }
  0xd1   :  { %v807_v58 = vadd.f32 %v806_v1, %v805_v29  ;;  %v808_v61 = vmul.f32 %v797_v40, %v770_v0  ;;  %v4241_v17 = vsub.s32 %v983_v42, %v986_v22  ;;  %v4244_v23 = vadd.f32 %v4141_v52, %v736_v46 }
  0xd2   :  { %v814_v2 = vsub.f32 %v812_v16, %v813_v19  ;;  %v815_v30 = vmul.f32 %v4204_v20, %v770_v0  ;;  %v866_v7 = vmul.f32 %v865_v41, %v3922_v28  ;;  %v1348_v14 = vmul.f32 -1.211015e-22, %v4235_v27 }
  0xd3   :  { %vm988_vm13 = vcmp.lt.s32.totalorder %v4241_v17, 0  ;;  %v989_v21 = vsub.s32 0, %v4241_v17  ;;  %v1374_v56 = vmul.f32 -1.211015e-22, %v4237_v44  ;;  %v803_v53 = vmul.f32 %v797_v40, %v771_v49 }
  0xd4   :  { %v810_v62 = vmul.f32 %v796_v24, %v771_v49  ;;  %v819_v42 = vmul.f32 %v797_v40, %v4052_v54  ;;  %v820_v34 = vmul.f32 %v796_v24, %v769_v55  ;;  %v802_v52 = vsub.f32 %v800_v15, %v801_v50 }
  0xd5   :  { %v809_v12 = vadd.f32 %v808_v61, %v807_v58  ;;  %v870_v51 = vmul.f32 %v869_v43, %v3922_v28  ;;  %v990_v9 = vsel %vm988_vm13, %v989_v21, %v4241_v17  ;;  %v4256_v11 = vadd.f32 %v4188_v6, %v743_v60  ;;  %v4272_v60 = vld [vmem:[%s5950_s0 + $0x1b0] sm:$0xff] }
  0xd6   :  { %v991_v33 = vclz %v990_v9  ;;  %v1342_v59 = vmul.f32 -3.390842e-19, %v4235_v27  ;;  %v1368_v31 = vmul.f32 -3.390842e-19, %v4237_v44  ;;  %v816_v29 = vadd.f32 %v815_v30, %v814_v2 }
  0xd7   :  { %v817_v1 = vmul.f32 %v795_v36, %v771_v49  ;;  %v1349_v46 = vadd.f32 8.138021e-16, %v1348_v14  ;;  %v1375_v16 = vadd.f32 8.138021e-16, %v1374_v56  ;;  %v821_v54 = vadd.f32 %v820_v34, %v819_v42 }
  0xd8   :  { %v822_v55 = vmul.f32 %v795_v36, %v770_v0  ;;  %v824_v24 = vmul.f32 %v4204_v20, %v771_v49  ;;  %v3215_v40 = vadd.s32 4294967294, %v991_v33  ;;  %v4261_v19 = vsub.f32 %v802_v52, %v803_v53  ;;  %v4279_v0 = vld [vmem:[%s5950_s0 + $0x1b8] sm:$0xff] }
  0xd9   :  { %v4263_v41 = vsub.f32 %v809_v12, %v810_v62  ;;  %v4265_v6 = vadd.f32 1.0, %v866_v7  ;;  %v4267_v22 = vadd.f32 0.5, %v870_v51  ;;  %v979_v50 = vadd.s32 %v4135_v13, %v4151_v3 }
  0xda   :  { %vm3216_vm14 = vcmp.lt.s32.totalorder %v3215_v40, 0  ;;  %v1343_v36 = vadd.f32 1.6276042e-12, %v1342_v59  ;;  %v1369_v20 = vadd.f32 1.6276042e-12, %v1368_v31  ;;  %v818_v49 = vadd.f32 %v817_v1, %v816_v29 }
  0xdb   :  { %v994_v43 = vsel %vm3216_vm14, 0, %v3215_v40  ;;  %v1350_v15 = vmul.f32 %v1349_v46, %v4235_v27  ;;  %v1376_v58 = vmul.f32 %v1375_v16, %v4237_v44  ;;  %v823_v61 = vsub.f32 %v821_v54, %v822_v55  ;;  %v4315_v54 = vld [vmem:[%s5950_s0 + $0x1c8] sm:$0xff]  ;;  %v4320_v55 = vld [vmem:[%s5950_s0 + $0x1d0] sm:$0xff] }
  0xdc   :  { %v995_v2 = vsub.s32 32, %v994_v43  ;;  %v996_v30 = vshll.u32 %v4241_v17, %v994_v43  ;;  %v999_v7 = vsub.s32 4294967266, %v994_v43  ;;  %v826_v13 = vmul.f32 %v4261_v19, %v4211_v26  ;;  %v4297_v17 = vld [vmem:[%s5950_s0 + $0x1c0] sm:$0xff] }
  0xdd   :  { %v827_v3 = vmul.f32 %v4263_v41, %v4232_v47  ;;  %v1417_v21 = vmul.f32 %v4272_v60, %v4272_v60  ;;  %v1418_v14 = vmul.f32 %v4279_v0, %v4279_v0  ;;  %v1344_v62 = vmul.f32 %v1343_v36, %v4235_v27 }
  0xde   :  { %v997_v56 = vshrl.u32 %v979_v50, %v995_v2  ;;  %v1000_v53 = vadd.s32 127, %v999_v7  ;;  %v1370_v42 = vmul.f32 %v1369_v20, %v4237_v44  ;;  %v833_v34 = vmul.f32 %v4263_v41, %v4211_v26 }
  0xdf   :  { %v834_v52 = vmul.f32 %v4261_v19, %v4232_v47  ;;  %v1351_v12 = vadd.f32 -2.6041667e-09, %v1350_v15  ;;  %v1377_v51 = vadd.f32 -2.6041667e-09, %v1376_v58  ;;  %v825_v9 = vadd.f32 %v824_v24, %v823_v61 }
  0xe0   :  { %v829_v33 = vmul.f32 %v818_v49, %v4244_v23  ;;  %v998_v59 = vor.u32 %v997_v56, %v996_v30  ;;  %v1001_v31 = vshll.u32 %v1000_v53, 23  ;;  %v4305_v29 = vmul.f32 %v818_v49, %v4256_v11 }
  0xe1   :  { %v4308_v1 = vmul.f32 %v818_v49, %v4211_v26  ;;  %v1419_v46 = vadd.f32 %v1418_v14, %v1417_v21  ;;  %v1420_v16 = vmul.f32 %v4297_v17, %v4297_v17  ;;  %v1345_v50 = vadd.f32 -3.125e-06, %v1344_v62 }
  0xe2   :  { %v1002_v24 = vor.u32 4788187, %v1001_v31  ;;  %v1005_v40 = vcvt.s32.f32 %v998_v59  ;;  %v1371_v36 = vadd.f32 -3.125e-06, %v1370_v42  ;;  %v828_v20 = vsub.f32 %v826_v13, %v827_v3 }
  0xe3   :  { %v835_v43 = vadd.f32 %v834_v52, %v833_v34  ;;  %v1352_v15 = vmul.f32 %v1351_v12, %v4235_v27  ;;  %v1378_v58 = vmul.f32 %v1377_v51, %v4237_v44  ;;  %v831_v61 = vmul.f32 %v825_v9, %v4256_v11  ;;  %v4344_v34 = vld [vmem:[%s5950_s0 + $0x1d8] sm:$0xff] }
  0xe4   :  { %v843_v2 = vmul.f32 %v4261_v19, %v4244_v23  ;;  %v4329_v30 = vmul.f32 %v4263_v41, %v4256_v11  ;;  %v1003_v7 = vand.u32 2147483647, %v1002_v24  ;;  %v836_v21 = vmul.f32 %v825_v9, %v4244_v23 }
  0xe5   :  { %v841_v14 = vmul.f32 %v825_v9, %v4232_v47  ;;  %v1443_v13 = vmul.f32 %v4315_v54, %v4315_v54  ;;  %v1444_v3 = vmul.f32 %v4320_v55, %v4320_v55  ;;  %v1346_v53 = vmul.f32 %v1345_v50, %v4235_v27 }
  0xe6   :  { %v1006_v56 = vmul.f32 %v1005_v40, %v1003_v7  ;;  %v1372_v62 = vmul.f32 %v1371_v36, %v4237_v44  ;;  %v4339_v42 = vadd.f32 %v1420_v16, %v1419_v46  ;;  %vm887_vm15 = vcmp.lt.s32.totalorder %v4013_v38, 0 }
  0xe7   :  { %v1009_v52 = vsub.s32 4, %v4228_v8  ;;  %v1353_v12 = vadd.f32 0.0025, %v1352_v15  ;;  %v1379_v51 = vadd.f32 0.0025, %v1378_v58  ;;  %v830_v59 = vsub.f32 %v828_v20, %v829_v33 }
  0xe8   :  { %v847_v31 = vmul.f32 %v825_v9, %v4211_v26  ;;  %vm4351_vm0 = vcmp.le.f32.partialorder %v885_v18, 0.7853982  ;;  %v1007_v44 = vxor.u32 2147483648, %v1006_v56  ;;  %v848_v46 = vmul.f32 %v818_v49, %v4232_v47 }
  0xe9   :  { %v1422_v16 = vmul.f32 -3.390842e-19, %v4339_v42  ;;  %v1445_v24 = vadd.f32 %v1444_v3, %v1443_v13  ;;  %v1446_v40 = vmul.f32 %v4344_v34, %v4344_v34  ;;  %v4361_v33 = vmul.f32 %v4263_v41, %v4244_v23 }
  0xea   :  { %v1008_v26 = vsel %vm887_vm15, %v1007_v44, %v1006_v56  ;;  %v4365_v18 = vadd.f32 1.0, %v1346_v53  ;;  %v4367_v9 = vadd.f32 1.0, %v1372_v62  ;;  %v1010_v47 = vsel %vm887_vm15, %v1009_v52, %v4228_v8 }
  0xeb   :  { %v1011_v49 = vsel %vm4351_vm0, %v4013_v38, %v1008_v26  ;;  %v4376_v50 = vmul.f32 %v4156_v32, %v1353_v12  ;;  %v4379_v23 = vmul.f32 %v4170_v37, %v1379_v51  ;;  %v837_v41 = vadd.f32 %v836_v21, %v835_v43 }
  0xec   :  { %v4383_v36 = vmul.f32 %v4261_v19, %v4256_v11  ;;  %v1013_v20 = vmul.f32 %v1011_v49, %v1011_v49  ;;  %v1428_v15 = vmul.f32 -1.211015e-22, %v4339_v42  ;;  %v4386_v58 = vsub.f32 %v830_v59, %v831_v61 }
  0xed   :  { %v842_v8 = vsub.f32 %v4308_v1, %v841_v14  ;;  %v1423_v7 = vadd.f32 1.6276042e-12, %v1422_v16  ;;  %v4389_v13 = vadd.f32 %v1446_v40, %v1445_v24  ;;  %v4391_v32 = vadd.f32 %v848_v46, %v847_v31 }
  0xee   :  { %6005 = vst [vmem:[#allocation2_spill] sm:$0xff] %v4386_v58  ;;  %v1012_v37 = vsel %vm4351_vm0, 0, %v1010_v47  ;;  %v1014_v43 = vmul.f32 -0.001358992, %v1013_v20  ;;  %v1021_v21 = vmul.f32 -0.00019511016, %v1013_v20  ;;  %v4396_v11 = vmul.f32 %v4165_v39, %v1353_v12 }
  0xef   :  { %v4399_v19 = vmul.f32 %v4175_v25, %v1379_v51  ;;  %v1383_v61 = vmul.f32 %v4367_v9, %v4365_v18  ;;  %v1384_v1 = vmul.f32 %v4379_v23, %v4376_v50  ;;  %v4406_v14 = vsub.f32 %v837_v41, %v4305_v29 }
  0xf0   :  { %v1015_v3 = vadd.f32 0.041655596, %v1014_v43  ;;  %v1022_v56 = vadd.f32 0.008332121, %v1021_v21  ;;  %v1429_v53 = vadd.f32 8.138021e-16, %v1428_v15  ;;  %v844_v62 = vadd.f32 %v843_v2, %v842_v8 }
  0xf1   :  { %6006 = vst [vmem:[#allocation3_spill] sm:$0xff] %v4406_v14  ;;  %v1183_v52 = vadd.s32 3, %v1012_v37  ;;  %v1424_v39 = vmul.f32 %v1423_v7, %v4339_v42  ;;  %v1454_v59 = vmul.f32 -1.211015e-22, %v4389_v13  ;;  %v4411_v27 = vmul.f32 %v4193_v63, %v1353_v12 }
  0xf2   :  { %v1016_v25 = vmul.f32 %v1015_v3, %v1013_v20  ;;  %v1023_v31 = vmul.f32 %v1022_v56, %v1013_v20  ;;  %v1448_v44 = vmul.f32 -3.390842e-19, %v4389_v13  ;;  %v1385_v46 = vsub.f32 %v1383_v61, %v1384_v1 }
  0xf3   :  { %v1386_v29 = vmul.f32 %v4399_v19, %v4396_v11  ;;  %v1390_v16 = vmul.f32 %v4379_v23, %v4365_v18  ;;  %v1391_v2 = vmul.f32 %v4367_v9, %v4376_v50  ;;  %v4421_v26 = vmul.f32 %v4209_v4, %v1379_v51 }
  0xf4   :  { %v1017_v24 = vadd.f32 -0.4999988, %v1016_v25  ;;  %v1024_v40 = vadd.f32 -0.16666654, %v1023_v31  ;;  %v1430_v63 = vmul.f32 %v1429_v53, %v4339_v42  ;;  %v1029_v12 = vand.u32 3, %v1012_v37  ;;  %v4434_v37 = vld [vmem:[%s5950_s0 + $0x1e0] sm:$0xff] }
  0xf5   :  { %v1184_v47 = vand.u32 3, %v1183_v52  ;;  %v1425_v41 = vadd.f32 -3.125e-06, %v1424_v39  ;;  %v1455_v15 = vadd.f32 8.138021e-16, %v1454_v59  ;;  %v851_v8 = vsub.f32 %v4391_v32, %v4361_v33  ;;  %v4451_v25 = vld [vmem:[%s5950_s0 + $0x1f8] sm:$0xff] }
  0xf6   :  { %v1018_v7 = vmul.f32 %v1017_v24, %v1013_v20  ;;  %v1025_v43 = vmul.f32 %v1024_v40, %v1013_v20  ;;  %v1449_v21 = vadd.f32 1.6276042e-12, %v1448_v44  ;;  %v4427_v61 = vadd.f32 %v4329_v30, %v844_v62  ;;  %v4441_v30 = vld [vmem:[%s5950_s0 + $0x1e8] sm:$0xff]  ;;  %v4456_v31 = vld [vmem:[%s5950_s0 + $0x200] sm:$0xff] }
  0xf7   :  { %v1387_v1 = vsub.f32 %v1385_v46, %v1386_v29  ;;  %v1388_v4 = vmul.f32 %v4421_v26, %v4411_v27  ;;  %v1392_v51 = vadd.f32 %v1391_v2, %v1390_v16  ;;  %v1393_v33 = vmul.f32 %v4421_v26, %v4396_v11  ;;  %v4471_v24 = vld [vmem:[%s5950_s0 + $0x208] sm:$0xff] }
  0xf8   :  { %6007 = vst [vmem:[#allocation4_spill] sm:$0xff] %v4427_v61  ;;  %v1019_v3 = vadd.f32 1.0, %v1018_v7  ;;  %v1026_v56 = vadd.f32 1.0, %v1025_v43  ;;  %v1431_v20 = vadd.f32 -2.6041667e-09, %v1430_v63  ;;  %vm1034_vm1 = vcmp.eq.s32.totalorder %v1029_v12, 2 }
  0xf9   :  { %vm1189_vm2 = vcmp.eq.s32.totalorder %v1184_v47, 2  ;;  %v1426_v32 = vmul.f32 %v1425_v41, %v4339_v42  ;;  %v1456_v53 = vmul.f32 %v1455_v15, %v4389_v13  ;;  %v1450_v39 = vmul.f32 %v1449_v21, %v4389_v13 }
  0xfa   :  { %v1027_v62 = vmul.f32 %v1026_v56, %v1011_v49  ;;  %v1035_v52 = vxor.u32 2147483648, %v1019_v3  ;;  %v1525_v59 = vmul.f32 %v4434_v37, %v4434_v37  ;;  %vm1030_vm3 = vcmp.lt.s32.totalorder %v1029_v12, 2  ;;  %v4461_v49 = vld [vmem:[%s5950_s0 + $0x1f0] sm:$0xff] }
  0xfb   :  { %vm1031_vm4 = vcmp.eq.s32.totalorder %v1029_v12, 0  ;;  %vm1186_vm5 = vcmp.eq.s32.totalorder %v1184_v47, 0  ;;  %v1526_v44 = vmul.f32 %v4441_v30, %v4441_v30  ;;  %vm1185_vm6 = vcmp.lt.s32.totalorder %v1184_v47, 2 }
  0xfc   :  { %v1032_v46 = vxor.u32 2147483648, %v1027_v62  ;;  %v1036_v29 = vsel %vm1034_vm1, %v1035_v52, %v1027_v62  ;;  %v1191_v16 = vsel %vm1189_vm2, %v1035_v52, %v1027_v62  ;;  %vm1028_vm7 = vweird.f32 %v4013_v38 }
  0xfd   :  { %v1457_v2 = vadd.f32 -2.6041667e-09, %v1456_v53  ;;  %v1551_v40 = vmul.f32 %v4451_v25, %v4451_v25  ;;  %v1552_v63 = vmul.f32 %v4456_v31, %v4456_v31  ;;  %v1432_v7 = vmul.f32 %v1431_v20, %v4339_v42 }
  0xfe   :  { %v1033_v41 = vsel %vm1031_vm4, %v1019_v3, %v1032_v46  ;;  %v1188_v15 = vsel %vm1186_vm5, %v1019_v3, %v1032_v46  ;;  %v1528_v47 = vmul.f32 %v4461_v49, %v4461_v49  ;;  %v1451_v21 = vadd.f32 -3.125e-06, %v1450_v39 }
  0xff   :  { %v1037_v38 = vsel %vm1030_vm3, %v1033_v41, %v1036_v29  ;;  %v1192_v43 = vsel %vm1185_vm6, %v1188_v15, %v1191_v16  ;;  %v1527_v56 = vadd.f32 %v1526_v44, %v1525_v59  ;;  %vm1195_vm8 = vcmp.lt.f32.partialorder %v3922_v28, 1e-06 }
 0x100   :  { %v1038_v53 = vsel %vm1028_vm7, nan, %v1037_v38  ;;  %v1193_v62 = vsel %vm1028_vm7, nan, %v1192_v43  ;;  %v1554_v52 = vmul.f32 %v4471_v24, %v4471_v24  ;;  %v1458_v42 = vmul.f32 %v1457_v2, %v4389_v13 }
 0x101   :  { %v1194_v5 = vmul.f32 %v1193_v62, %v4001_v10  ;;  %v1196_v3 = vsel %vm1195_vm8, %v4265_v6, %v1038_v53  ;;  %v1553_v20 = vadd.f32 %v1552_v63, %v1551_v40  ;;  %v4488_v12 = vadd.f32 %v4383_v36, %v851_v8  ;;  %v3333_v36 = vld [vmem:[%s5951_s1] sm:$0xff] }
 0x102   :  { %v4490_v46 = vsub.f32 %v1387_v1, %v1388_v4  ;;  %v4492_v39 = vadd.f32 %v1393_v33, %v1392_v51  ;;  %v4496_v28 = vmul.f32 %v4399_v19, %v4411_v27  ;;  %v1201_v10 = vmul.f32 %v1196_v3, %v4386_v58  ;;  %v3334_v1 = vld [vmem:[%s5951_s1 + $0x8] sm:$0xff]  ;;  %v3335_v51 = vld [vmem:[%s5951_s1 + $0x10] sm:$0xff] }
 0x103   :  { %6008 = vst [vmem:[#allocation5_spill] sm:$0xff] %v4488_v12  ;;  %v1197_v59 = vsel %vm1195_vm8, %v4267_v22, %v1194_v5  ;;  %v4500_v44 = vadd.f32 1.0, %v1426_v32  ;;  %v1433_v6 = vadd.f32 0.0025, %v1432_v7  ;;  %v1209_v22 = vmul.f32 %v1196_v3, %v4406_v14 }
 0x104   :  { %v1198_v8 = vmul.f32 %v3333_v36, %v1197_v59  ;;  %v1199_v4 = vmul.f32 %v3334_v1, %v1197_v59  ;;  %v1200_v5 = vmul.f32 %v3335_v51, %v1197_v59  ;;  %v1452_v33 = vmul.f32 %v1451_v21, %v4389_v13 }
 0x105   :  { %v1459_v32 = vadd.f32 0.0025, %v1458_v42  ;;  %v4513_v29 = vadd.f32 %v1528_v47, %v1527_v56  ;;  %v4515_v16 = vadd.f32 %v1554_v52, %v1553_v20  ;;  %v1218_v41 = vmul.f32 %v1196_v3, %v4427_v61 }
 0x106   :  { %v1202_v2 = vmul.f32 %v1198_v8, %v4406_v14  ;;  %v1204_v40 = vmul.f32 %v1199_v4, %v4427_v61  ;;  %v1208_v63 = vmul.f32 %v1198_v8, %v4386_v58  ;;  %v1206_v15 = vmul.f32 %v1200_v5, %v4488_v12 }
 0x107   :  { %v1211_v7 = vmul.f32 %v1200_v5, %v4427_v61  ;;  %v1215_v38 = vmul.f32 %v1199_v4, %v4386_v58  ;;  %v1216_v13 = vmul.f32 %v1200_v5, %v4406_v14  ;;  %v1213_v21 = vmul.f32 %v1199_v4, %v4488_v12 }
 0x108   :  { %v1203_v47 = vadd.f32 %v1202_v2, %v1201_v10  ;;  %v1210_v43 = vsub.f32 %v1208_v63, %v1209_v22  ;;  %v1222_v56 = vmul.f32 %v1200_v5, %v4386_v58  ;;  %v1220_v62 = vmul.f32 %v1198_v8, %v4488_v12 }
 0x109   :  { %v1217_v53 = vadd.f32 %v1216_v13, %v1215_v38  ;;  %v1223_v52 = vmul.f32 %v1199_v4, %v4406_v14  ;;  %v1225_v42 = vmul.f32 %v1198_v8, %v4427_v61  ;;  %v1434_v36 = vmul.f32 %v4272_v60, %v1433_v6 }
 0x10a   :  { %v1205_v20 = vadd.f32 %v1204_v40, %v1203_v47  ;;  %v1212_v59 = vsub.f32 %v1210_v43, %v1211_v7  ;;  %v4531_v1 = vadd.f32 1.0, %v1452_v33  ;;  %v4534_v22 = vmul.f32 %v4315_v54, %v1459_v32 }
 0x10b   :  { %v1219_v51 = vsub.f32 %v1217_v53, %v1218_v41  ;;  %v1224_v10 = vsub.f32 %v1222_v56, %v1223_v52  ;;  %v1536_v5 = vmul.f32 -1.211015e-22, %v4513_v29  ;;  %v1435_v4 = vmul.f32 %v4279_v0, %v1433_v6 }
 0x10c   :  { %v4537_v2 = vadd.f32 %v1206_v15, %v1205_v20  ;;  %v4539_v63 = vadd.f32 %v1213_v21, %v1212_v59  ;;  %v1562_v8 = vmul.f32 -1.211015e-22, %v4515_v16  ;;  %v1227_v33 = vmul.f32 %v1196_v3, %v4488_v12 }
 0x10d   :  { %v4543_v40 = vsub.f32 %v1219_v51, %v1220_v62  ;;  %v1226_v60 = vadd.f32 %v1225_v42, %v1224_v10  ;;  %v1530_v41 = vmul.f32 -3.390842e-19, %v4513_v29  ;;  %v1461_v7 = vmul.f32 %v4320_v55, %v1459_v32 }
 0x10e   :  { %6009 = vst [vmem:[#allocation6_spill] sm:$0xff] %v4539_v63  ;;  %v1229_v54 = vmul.f32 %v4537_v2, %v4537_v2  ;;  %v1230_v15 = vmul.f32 %v4539_v63, %v4539_v63  ;;  %v1463_v0 = vmul.f32 %v4531_v1, %v4500_v44  ;;  %v1462_v38 = vmul.f32 %v4344_v34, %v1459_v32 }
 0x10f   :  { %6010 = vst [vmem:[#allocation7_spill] sm:$0xff] %v4543_v40  ;;  %v1464_v13 = vmul.f32 %v4534_v22, %v1434_v36  ;;  %v1537_v47 = vadd.f32 8.138021e-16, %v1536_v5  ;;  %v1556_v3 = vmul.f32 -3.390842e-19, %v4515_v16  ;;  %v1397_v43 = vmul.f32 %v4399_v19, %v4365_v18 }
 0x110   :  { %v1470_v21 = vmul.f32 %v4534_v22, %v4500_v44  ;;  %v1471_v56 = vmul.f32 %v4531_v1, %v1434_v36  ;;  %v1563_v53 = vadd.f32 8.138021e-16, %v1562_v8  ;;  %v4562_v55 = vsub.f32 %v1226_v60, %v1227_v33 }
 0x111   :  { %v1231_v62 = vadd.f32 %v1230_v15, %v1229_v54  ;;  %v1232_v34 = vmul.f32 %v4543_v40, %v4543_v40  ;;  %v1398_v32 = vmul.f32 %v4421_v26, %v4376_v50  ;;  %v1400_v52 = vmul.f32 %v4367_v9, %v4396_v11 }
 0x112   :  { %6011 = vst [vmem:[#allocation8_spill] sm:$0xff] %v4562_v55  ;;  %v1436_v42 = vmul.f32 %v4297_v17, %v1433_v6  ;;  %v1466_v20 = vmul.f32 %v1461_v7, %v1435_v4  ;;  %v1531_v59 = vadd.f32 1.6276042e-12, %v1530_v41  ;;  %v1465_v51 = vsub.f32 %v1463_v0, %v1464_v13 }
 0x113   :  { %v1473_v10 = vmul.f32 %v1462_v38, %v1435_v4  ;;  %v1538_v5 = vmul.f32 %v1537_v47, %v4513_v29  ;;  %v1557_v8 = vadd.f32 1.6276042e-12, %v1556_v3  ;;  %v1472_v60 = vadd.f32 %v1471_v56, %v1470_v21 }
 0x114   :  { %v1477_v33 = vmul.f32 %v1461_v7, %v4500_v44  ;;  %v1478_v54 = vmul.f32 %v1462_v38, %v1434_v36  ;;  %v1564_v15 = vmul.f32 %v1563_v53, %v4515_v16  ;;  %v1233_v48 = vadd.f32 %v1232_v34, %v1231_v62 }
 0x115   :  { %v1234_v45 = vmul.f32 %v4562_v55, %v4562_v55  ;;  %v1484_v35 = vmul.f32 %v1462_v38, %v4500_v44  ;;  %v1485_v17 = vmul.f32 %v1461_v7, %v1434_v36  ;;  %v1399_v6 = vsub.f32 %v1397_v43, %v1398_v32 }
 0x116   :  { %v1404_v41 = vmul.f32 %v4421_v26, %v4365_v18  ;;  %v1405_v0 = vmul.f32 %v4399_v19, %v4376_v50  ;;  %v1532_v13 = vmul.f32 %v1531_v59, %v4513_v29  ;;  %v1468_v47 = vmul.f32 %v1462_v38, %v1436_v42  ;;  %v4617_v59 = vld [vmem:[%s5950_s0 + $0x230] sm:$0xff] }
 0x117   :  { %v1480_v3 = vmul.f32 %v4531_v1, %v1435_v4  ;;  %v1539_v21 = vadd.f32 -2.6041667e-09, %v1538_v5  ;;  %v1558_v56 = vmul.f32 %v1557_v8, %v4515_v16  ;;  %v1467_v53 = vsub.f32 %v1465_v51, %v1466_v20 }
 0x118   :  { %v1475_v62 = vmul.f32 %v1461_v7, %v1436_v42  ;;  %v1479_v34 = vsub.f32 %v1477_v33, %v1478_v54  ;;  %v1565_v44 = vadd.f32 -2.6041667e-09, %v1564_v15  ;;  %v4584_v36 = vadd.f32 %v1234_v45, %v1233_v48  ;;  %v4635_v54 = vld [vmem:[%s5950_s0 + $0x220] sm:$0xff] }
 0x119   :  { %v1474_v43 = vadd.f32 %v1473_v10, %v1472_v60  ;;  %v1486_v32 = vadd.f32 %v1485_v17, %v1484_v35  ;;  %v1487_v18 = vmul.f32 %v4534_v22, %v1435_v4  ;;  %v4589_v50 = vsub.f32 %v4492_v39, %v4496_v28  ;;  %v4599_v35 = vld [vmem:[%s5950_s0 + $0x210] sm:$0xff]  ;;  %v4604_v39 = vld [vmem:[%s5950_s0 + $0x218] sm:$0xff] }
 0x11a   :  { %v1402_v19 = vmul.f32 %v4379_v23, %v4411_v27  ;;  %v1407_v26 = vmul.f32 %v4379_v23, %v4396_v11  ;;  %v1533_v38 = vadd.f32 -3.125e-06, %v1532_v13  ;;  %v1401_v7 = vadd.f32 %v1400_v52, %v1399_v6  ;;  %v4612_v52 = vld [vmem:[%s5950_s0 + $0x228] sm:$0xff] }
 0x11b   :  { %v1406_v20 = vadd.f32 %v1405_v0, %v1404_v41  ;;  %v1540_v45 = vmul.f32 %v1539_v21, %v4513_v29  ;;  %v1559_v48 = vadd.f32 -3.125e-06, %v1558_v56  ;;  %v1481_v28 = vadd.f32 %v1480_v3, %v1479_v34  ;;  %v4644_v41 = vld [vmem:[%s5950_s0 + $0x238] sm:$0xff] }
 0x11c   :  { %v1482_v4 = vmul.f32 %v4534_v22, %v1436_v42  ;;  %v1489_v23 = vmul.f32 %v4531_v1, %v1436_v42  ;;  %v1566_v11 = vmul.f32 %v1565_v44, %v4515_v16  ;;  %3311 = vrsqrt.f32 %v4584_v36 }
 0x11d   :  { %v4620_v51 = vsub.f32 %v1467_v53, %v1468_v47  ;;  %v4622_v10 = vsub.f32 %v1474_v43, %v1475_v62  ;;  %v1488_v22 = vsub.f32 %v1486_v32, %v1487_v18  ;;  %v1409_v1 = vmul.f32 %v4367_v9, %v4411_v27 }
 0x11e   :  { %v1534_v42 = vmul.f32 %v1533_v38, %v4513_v29  ;;  %v1633_v5 = vmul.f32 %v4599_v35, %v4599_v35  ;;  %v1634_v8 = vmul.f32 %v4604_v39, %v4604_v39  ;;  %v1541_v60 = vadd.f32 0.0025, %v1540_v45 }
 0x11f   :  { %v1560_v33 = vmul.f32 %v1559_v48, %v4515_v16  ;;  %v1659_v15 = vmul.f32 %v4612_v52, %v4612_v52  ;;  %v1660_v9 = vmul.f32 %v4617_v59, %v4617_v59  ;;  %v1403_v27 = vadd.f32 %v1402_v19, %v1401_v7 }
 0x120   :  { %v1408_v29 = vsub.f32 %v1406_v20, %v1407_v26  ;;  %v1483_v17 = vadd.f32 %v1482_v4, %v1481_v28  ;;  %v1567_v6 = vadd.f32 0.0025, %v1566_v11  ;;  %v1490_v16 = vadd.f32 %v1489_v23, %v1488_v22 }
 0x121   :  { %v1491_v0 = vmul.f32 %v4620_v51, %v4490_v46  ;;  %v1492_v13 = vmul.f32 %v4622_v10, %v4589_v50  ;;  %v1498_v47 = vmul.f32 %v4622_v10, %v4490_v46  ;;  %v1499_v3 = vmul.f32 %v4620_v51, %v4589_v50 }
 0x122   :  { %v1535_v21 = vadd.f32 1.0, %v1534_v42  ;;  %v1635_v56 = vadd.f32 %v1634_v8, %v1633_v5  ;;  %v1636_v53 = vmul.f32 %v4635_v54, %v4635_v54  ;;  %v4656_v62 = vpop.eup %3311  ;;  %v1542_v34 = vmul.f32 %v4434_v37, %v1541_v60 }
 0x123   :  { %v4659_v44 = vadd.f32 1.0, %v1560_v33  ;;  %v1661_v43 = vadd.f32 %v1660_v9, %v1659_v15  ;;  %v1662_v32 = vmul.f32 %v4644_v41, %v4644_v41  ;;  %v4664_v18 = vmul.f32 %v4451_v25, %v1567_v6 }
 0x124   :  { %v4666_v19 = vadd.f32 %v1409_v1, %v1408_v29  ;;  %v1493_v26 = vsub.f32 %v1491_v0, %v1492_v13  ;;  %v1494_v38 = vmul.f32 %v1483_v17, %v1403_v27  ;;  %v1237_v7 = vmul.f32 %v4656_v62, %v4584_v36 }
 0x125   :  { %v1500_v20 = vadd.f32 %v1499_v3, %v1498_v47  ;;  %v1501_v45 = vmul.f32 %v1490_v16, %v1403_v27  ;;  %v4670_v48 = vadd.f32 %v1636_v53, %v1635_v56  ;;  %v1543_v37 = vmul.f32 %v4441_v30, %v1541_v60 }
 0x126   :  { %v1571_v28 = vmul.f32 %v4659_v44, %v1535_v21  ;;  %v1579_v4 = vmul.f32 %v4659_v44, %v1542_v34  ;;  %v4675_v23 = vadd.f32 %v1662_v32, %v1661_v43  ;;  %v1569_v25 = vmul.f32 %v4456_v31, %v1567_v6 }
 0x127   :  { %v1570_v11 = vmul.f32 %v4471_v24, %v1567_v6  ;;  %v1572_v22 = vmul.f32 %v4664_v18, %v1542_v34  ;;  %v1578_v1 = vmul.f32 %v4664_v18, %v1535_v21  ;;  %v1495_v42 = vsub.f32 %v1493_v26, %v1494_v38 }
 0x128   :  { %v1496_v5 = vmul.f32 %v1490_v16, %v4666_v19  ;;  %v1503_v8 = vmul.f32 %v1483_v17, %v4666_v19  ;;  %v1505_v30 = vmul.f32 %v1483_v17, %v4490_v46  ;;  %v1238_v33 = vmul.f32 %v4656_v62, %v1237_v7 }
 0x129   :  { %v1506_v15 = vmul.f32 %v1490_v16, %v4589_v50  ;;  %v1508_v9 = vmul.f32 %v4620_v51, %v1403_v27  ;;  %v1510_v31 = vmul.f32 %v4622_v10, %v4666_v19  ;;  %v1502_v24 = vadd.f32 %v1501_v45, %v1500_v20 }
 0x12a   :  { %v1544_v29 = vmul.f32 %v4461_v49, %v1541_v60  ;;  %v1644_v6 = vmul.f32 -1.211015e-22, %v4670_v48  ;;  %v1670_v0 = vmul.f32 -1.211015e-22, %v4675_v23  ;;  %v1573_v13 = vsub.f32 %v1571_v28, %v1572_v22 }
 0x12b   :  { %v1574_v47 = vmul.f32 %v1569_v25, %v1543_v37  ;;  %v1580_v3 = vadd.f32 %v1579_v4, %v1578_v1  ;;  %v1581_v56 = vmul.f32 %v1570_v11, %v1543_v37  ;;  %v1512_v53 = vmul.f32 %v1490_v16, %v4490_v46 }
 0x12c   :  { %v1513_v43 = vmul.f32 %v1483_v17, %v4589_v50  ;;  %v1585_v32 = vmul.f32 %v1569_v25, %v1535_v21  ;;  %v1586_v26 = vmul.f32 %v1570_v11, %v1542_v34  ;;  %v1239_v38 = vmul.f32 0.5, %v1238_v33 }
 0x12d   :  { %v4694_v7 = vsub.f32 %v1495_v42, %v1496_v5  ;;  %v1507_v20 = vsub.f32 %v1505_v30, %v1506_v15  ;;  %v1638_v49 = vmul.f32 -3.390842e-19, %v4670_v48  ;;  %v1515_v60 = vmul.f32 %v4622_v10, %v1403_v27 }
 0x12e   :  { %v1645_v45 = vadd.f32 8.138021e-16, %v1644_v6  ;;  %v1664_v28 = vmul.f32 -3.390842e-19, %v4675_v23  ;;  %v1671_v22 = vadd.f32 8.138021e-16, %v1670_v0  ;;  %v1575_v4 = vsub.f32 %v1573_v13, %v1574_v47 }
 0x12f   :  { %v1576_v1 = vmul.f32 %v1570_v11, %v1544_v29  ;;  %v1582_v57 = vadd.f32 %v1581_v56, %v1580_v3  ;;  %v1583_v46 = vmul.f32 %v1569_v25, %v1544_v29  ;;  %v4699_v16 = vsub.f32 %v1502_v24, %v1503_v8 }
 0x130   :  { %v1514_v50 = vadd.f32 %v1513_v43, %v1512_v53  ;;  %v1587_v17 = vsub.f32 %v1585_v32, %v1586_v26  ;;  %v1588_v42 = vmul.f32 %v4659_v44, %v1543_v37  ;;  %v1240_v5 = vsub.f32 1.5, %v1239_v38 }
 0x131   :  { %v1509_v30 = vadd.f32 %v1508_v9, %v1507_v20  ;;  %v1592_v33 = vmul.f32 %v1570_v11, %v1535_v21  ;;  %v1593_v15 = vmul.f32 %v1569_v25, %v1542_v34  ;;  %v1639_v55 = vadd.f32 1.6276042e-12, %v1638_v49  ;;  %v4756_v49 = vld [vmem:[%s5950_s0 + $0x250] sm:$0xff] }
 0x132   :  { %v1646_v10 = vmul.f32 %v1645_v45, %v4670_v48  ;;  %v1665_v27 = vadd.f32 1.6276042e-12, %v1664_v28  ;;  %v1672_v6 = vmul.f32 %v1671_v22, %v4675_v23  ;;  %vm1242_vm9 = vweird.f32 %v4584_v36  ;;  %v4718_v36 = vld [vmem:[%s5950_s0 + $0x240] sm:$0xff] }
 0x133   :  { %vm1243_vm10 = vweird.f32 %v4656_v62  ;;  %v4706_v8 = vsub.f32 %v1575_v4, %v1576_v1  ;;  %v4708_v24 = vsub.f32 %v1582_v57, %v1583_v46  ;;  %v1589_v0 = vadd.f32 %v1588_v42, %v1587_v17  ;;  %v4723_v57 = vld [vmem:[%s5950_s0 + $0x248] sm:$0xff] }
 0x134   :  { %v1590_v13 = vmul.f32 %v4664_v18, %v1544_v29  ;;  %v1241_v21 = vmul.f32 %v4656_v62, %v1240_v5  ;;  %v1517_v34 = vmul.f32 %v4620_v51, %v4666_v19  ;;  %v1594_v25 = vadd.f32 %v1593_v15, %v1592_v33  ;;  %vm1244_vm11 = vmor %vm1242_vm9, %vm1243_vm10  ;;  %v4735_v19 = vld [vmem:[%s5950_s0 + $0x260] sm:$0xff] }
 0x135   :  { %v1595_v11 = vmul.f32 %v4664_v18, %v1543_v37  ;;  %v1640_v9 = vmul.f32 %v1639_v55, %v4670_v48  ;;  %v1647_v47 = vadd.f32 -2.6041667e-09, %v1646_v10  ;;  %v1666_v3 = vmul.f32 %v1665_v27, %v4675_v23  ;;  %v4730_v18 = vld [vmem:[%s5950_s0 + $0x258] sm:$0xff] }
 0x136   :  { %v1673_v51 = vadd.f32 -2.6041667e-09, %v1672_v6  ;;  %v4737_v37 = vadd.f32 %v1510_v31, %v1509_v30  ;;  %v1516_v56 = vsub.f32 %v1514_v50, %v1515_v60  ;;  %v1599_v55 = vmul.f32 %v4706_v8, %v4694_v7 }
 0x137   :  { %v1600_v53 = vmul.f32 %v4708_v24, %v4699_v16  ;;  %v4743_v43 = vadd.f32 %v1590_v13, %v1589_v0  ;;  %v1597_v32 = vmul.f32 %v4659_v44, %v1544_v29  ;;  %v1741_v26 = vmul.f32 %v4718_v36, %v4718_v36 }
 0x138   :  { %v1742_v38 = vmul.f32 %v4723_v57, %v4723_v57  ;;  %v4751_v31 = vsel %vm1244_vm11, %v4656_v62, %v1241_v21  ;;  %v1596_v20 = vsub.f32 %v1594_v25, %v1595_v11  ;;  %v1767_v60 = vmul.f32 %v4730_v18, %v4730_v18  ;;  %v4767_v62 = vld [vmem:[%s5950_s0 + $0x268] sm:$0xff] }
 0x139   :  { %6012 = vst [vmem:[#allocation9_spill] sm:$0xff] %v4751_v31  ;;  %v1768_v44 = vmul.f32 %v4735_v19, %v4735_v19  ;;  %v1641_v29 = vadd.f32 -3.125e-06, %v1640_v9  ;;  %v1648_v45 = vmul.f32 %v1647_v47, %v4670_v48  ;;  %v1667_v28 = vadd.f32 -3.125e-06, %v1666_v3 }
 0x13a   :  { %v1674_v22 = vmul.f32 %v1673_v51, %v4675_v23  ;;  %v4769_v4 = vadd.f32 %v1517_v34, %v1516_v56  ;;  %v1601_v1 = vsub.f32 %v1599_v55, %v1600_v53  ;;  %v4773_v46 = vmul.f32 %v4751_v31, %v4537_v2 }
 0x13b   :  { %v1602_v50 = vmul.f32 %v4743_v43, %v4737_v37  ;;  %v1743_v17 = vadd.f32 %v1742_v38, %v1741_v26  ;;  %v1744_v42 = vmul.f32 %v4756_v49, %v4756_v49  ;;  %v1598_v5 = vadd.f32 %v1597_v32, %v1596_v20 }
 0x13c   :  { %6013 = vst [vmem:[#allocation10_spill] sm:$0xff] %v4773_v46  ;;  %v1769_v30 = vadd.f32 %v1768_v44, %v1767_v60  ;;  %v1770_v33 = vmul.f32 %v4767_v62, %v4767_v62  ;;  %v1642_v15 = vmul.f32 %v1641_v29, %v4670_v48  ;;  %v1649_v10 = vadd.f32 0.0025, %v1648_v45 }
 0x13d   :  { %v1668_v27 = vmul.f32 %v1667_v28, %v4675_v23  ;;  %v1675_v6 = vadd.f32 0.0025, %v1674_v22  ;;  %v1606_v2 = vmul.f32 %v4708_v24, %v4694_v7  ;;  %v1607_v0 = vmul.f32 %v4706_v8, %v4699_v16 }
 0x13e   :  { %v1247_v13 = vmul.f32 2.0, %v4773_v46  ;;  %v1603_v21 = vsub.f32 %v1601_v1, %v1602_v50  ;;  %v1604_v34 = vmul.f32 %v1598_v5, %v4769_v4  ;;  %v4789_v25 = vadd.f32 %v1744_v42, %v1743_v17 }
 0x13f   :  { %v4791_v11 = vadd.f32 %v1770_v33, %v1769_v30  ;;  %v1643_v48 = vadd.f32 1.0, %v1642_v15  ;;  %v1650_v9 = vmul.f32 %v4599_v35, %v1649_v10  ;;  %v4794_v23 = vadd.f32 1.0, %v1668_v27 }
 0x140   :  { %v4797_v47 = vmul.f32 %v4612_v52, %v1675_v6  ;;  %v1608_v3 = vadd.f32 %v1607_v0, %v1606_v2  ;;  %v1609_v51 = vmul.f32 %v1598_v5, %v4737_v37  ;;  %v1611_v56 = vmul.f32 %v4743_v43, %v4769_v4 }
 0x141   :  { %v1248_v55 = vmul.f32 %v1247_v13, %v4773_v46  ;;  %v4803_v53 = vsub.f32 %v1603_v21, %v1604_v34  ;;  %v1613_v32 = vmul.f32 %v4743_v43, %v4694_v7  ;;  %v1752_v35 = vmul.f32 -1.211015e-22, %v4789_v25 }
 0x142   :  { %v1651_v26 = vmul.f32 %v4604_v39, %v1649_v10  ;;  %v1677_v52 = vmul.f32 %v4617_v59, %v1675_v6  ;;  %v1678_v38 = vmul.f32 %v4644_v41, %v1675_v6  ;;  %v1778_v20 = vmul.f32 -1.211015e-22, %v4791_v11 }
 0x143   :  { %v1679_v60 = vmul.f32 %v4794_v23, %v1643_v48  ;;  %v1680_v44 = vmul.f32 %v4797_v47, %v1650_v9  ;;  %v1686_v29 = vmul.f32 %v4797_v47, %v1643_v48  ;;  %v1687_v45 = vmul.f32 %v4794_v23, %v1650_v9 }
 0x144   :  { %v1610_v28 = vadd.f32 %v1609_v51, %v1608_v3  ;;  %v1614_v22 = vmul.f32 %v1598_v5, %v4699_v16  ;;  %v1616_v39 = vmul.f32 %v4706_v8, %v4737_v37  ;;  %v1618_v59 = vmul.f32 %v4708_v24, %v4769_v4 }
 0x145   :  { %v3220_v41 = vadd.f32 -1.0, %v1248_v55  ;;  %v1652_v1 = vmul.f32 %v4635_v54, %v1649_v10  ;;  %v1746_v50 = vmul.f32 -3.390842e-19, %v4789_v25  ;;  %v1753_v17 = vadd.f32 8.138021e-16, %v1752_v35 }
 0x146   :  { %v1682_v42 = vmul.f32 %v1677_v52, %v1651_v26  ;;  %v1689_v30 = vmul.f32 %v1678_v38, %v1651_v26  ;;  %v1772_v33 = vmul.f32 -3.390842e-19, %v4791_v11  ;;  %v1779_v15 = vadd.f32 8.138021e-16, %v1778_v20 }
 0x147   :  { %v1681_v27 = vsub.f32 %v1679_v60, %v1680_v44  ;;  %v1688_v6 = vadd.f32 %v1687_v45, %v1686_v29  ;;  %v1693_v2 = vmul.f32 %v1677_v52, %v1643_v48  ;;  %v1694_v0 = vmul.f32 %v1678_v38, %v1650_v9 }
 0x148   :  { %v1615_v13 = vsub.f32 %v1613_v32, %v1614_v22  ;;  %v1620_v21 = vmul.f32 %v1598_v5, %v4694_v7  ;;  %v1700_v34 = vmul.f32 %v1678_v38, %v1643_v48  ;;  %v1701_v3 = vmul.f32 %v1677_v52, %v1650_v9 }
 0x149   :  { %v4825_v51 = vclamps-f32 %v3220_v41, 1.0  ;;  %v1621_v54 = vmul.f32 %v4743_v43, %v4699_v16  ;;  %v1747_v10 = vadd.f32 1.6276042e-12, %v1746_v50  ;;  %v1754_v55 = vmul.f32 %v1753_v17, %v4789_v25  ;;  %v4852_v50 = vld [vmem:[%s5950_s0 + $0x278] sm:$0xff] }
 0x14a   :  { %v1684_v35 = vmul.f32 %v1678_v38, %v1652_v1  ;;  %v1696_v20 = vmul.f32 %v4794_v23, %v1651_v26  ;;  %v1773_v60 = vadd.f32 1.6276042e-12, %v1772_v33  ;;  %v1780_v44 = vmul.f32 %v1779_v15, %v4791_v11 }
 0x14b   :  { %6014 = vst [vmem:[#allocation11_spill] sm:$0xff] %v4825_v51  ;;  %v1683_v29 = vsub.f32 %v1681_v27, %v1682_v42  ;;  %v1690_v32 = vadd.f32 %v1689_v30, %v1688_v6  ;;  %v1691_v45 = vmul.f32 %v1677_v52, %v1652_v1  ;;  %v1695_v7 = vsub.f32 %v1693_v2, %v1694_v0  ;;  %v4844_v52 = vld [vmem:[%s5950_s0 + $0x270] sm:$0xff]  ;;  %v4862_v30 = vld [vmem:[%s5950_s0 + $0x288] sm:$0xff]  ;;  %v4879_v0 = vld [vmem:[%s5950_s0 + $0x280] sm:$0xff] }
 0x14c   :  { %v4832_v5 = vsub.f32 %v1610_v28, %v1611_v56  ;;  %v1617_v48 = vadd.f32 %v1616_v39, %v1615_v13  ;;  %v1702_v9 = vadd.f32 %v1701_v3, %v1700_v34  ;;  %v1703_v22 = vmul.f32 %v4797_v47, %v1651_v26 }
 0x14d   :  { %v4836_v16 = vand.u32 2147483647, %v4825_v51  ;;  %v1623_v43 = vmul.f32 %v4708_v24, %v4737_v37  ;;  %v1748_v38 = vmul.f32 %v1747_v10, %v4789_v25  ;;  %v1755_v41 = vadd.f32 -2.6041667e-09, %v1754_v55  ;;  %v4895_v55 = vld [vmem:[%s5950_s0 + $0x298] sm:$0xff] }
 0x14e   :  { %v1622_v56 = vadd.f32 %v1621_v54, %v1620_v21  ;;  %v1625_v28 = vmul.f32 %v4706_v8, %v4769_v4  ;;  %v1774_v26 = vmul.f32 %v1773_v60, %v4791_v11  ;;  %v1781_v39 = vadd.f32 -2.6041667e-09, %v1780_v44  ;;  %v4867_v8 = vld [vmem:[%s5950_s0 + $0x290] sm:$0xff] }
 0x14f   :  { %6015 = vst [vmem:[#allocation12_spill] sm:$0xff] %v4836_v16  ;;  %v4854_v24 = vsub.f32 %v1683_v29, %v1684_v35  ;;  %v4856_v37 = vsub.f32 %v1690_v32, %v1691_v45  ;;  %v1697_v17 = vadd.f32 %v1696_v20, %v1695_v7  ;;  %v1698_v42 = vmul.f32 %v4797_v47, %v1652_v1 }
 0x150   :  { %v4869_v4 = vadd.f32 %v1618_v59, %v1617_v48  ;;  %v1704_v33 = vsub.f32 %v1702_v9, %v1703_v22  ;;  %v1705_v15 = vmul.f32 %v4794_v23, %v1652_v1  ;;  %v1849_v27 = vmul.f32 %v4844_v52, %v4844_v52 }
 0x151   :  { %v1253_v47 = vmul.f32 -0.0012624911, %v4836_v16  ;;  %v1749_v6 = vadd.f32 -3.125e-06, %v1748_v38  ;;  %v1756_v2 = vmul.f32 %v1755_v41, %v4789_v25  ;;  %v1850_v59 = vmul.f32 %v4852_v50, %v4852_v50 }
 0x152   :  { %v1775_v13 = vadd.f32 -3.125e-06, %v1774_v26  ;;  %v1782_v21 = vmul.f32 %v1781_v39, %v4791_v11  ;;  %v1875_v23 = vmul.f32 %v4862_v30, %v4862_v30  ;;  %v1876_v1 = vmul.f32 %v4867_v8, %v4867_v8 }
 0x153   :  { %v1624_v34 = vsub.f32 %v1622_v56, %v1623_v43  ;;  %v1699_v3 = vadd.f32 %v1698_v42, %v1697_v17  ;;  %v1707_v54 = vmul.f32 %v4854_v24, %v4803_v53  ;;  %v1708_v10 = vmul.f32 %v4856_v37, %v4832_v5 }
 0x154   :  { %v1706_v35 = vadd.f32 %v1705_v15, %v1704_v33  ;;  %v1714_v20 = vmul.f32 %v4856_v37, %v4803_v53  ;;  %v1715_v60 = vmul.f32 %v4854_v24, %v4832_v5  ;;  %v1852_v44 = vmul.f32 %v4879_v0, %v4879_v0 }
 0x155   :  { %v1254_v29 = vadd.f32 0.00667009, %v1253_v47  ;;  %v1750_v32 = vmul.f32 %v1749_v6, %v4789_v25  ;;  %v1757_v45 = vadd.f32 0.0025, %v1756_v2  ;;  %v1851_v7 = vadd.f32 %v1850_v59, %v1849_v27 }
 0x156   :  { %v1776_v48 = vmul.f32 %v1775_v13, %v4791_v11  ;;  %v1783_v9 = vadd.f32 0.0025, %v1782_v21  ;;  %v1877_v22 = vadd.f32 %v1876_v1, %v1875_v23  ;;  %v1878_v43 = vmul.f32 %v4895_v55, %v4895_v55 }
 0x157   :  { %v1626_v38 = vadd.f32 %v1625_v28, %v1624_v34  ;;  %v1709_v41 = vsub.f32 %v1707_v54, %v1708_v10  ;;  %v1710_v56 = vmul.f32 %v1699_v3, %v4869_v4  ;;  %v1267_v26 = vsub.f32 1.0, %v4836_v16 }
 0x158   :  { %v1716_v39 = vadd.f32 %v1715_v60, %v1714_v20  ;;  %v1717_v17 = vmul.f32 %v1706_v35, %v4869_v4  ;;  %v1255_v25 = vmul.f32 %v1254_v29, %v4836_v16  ;;  %v1724_v42 = vmul.f32 %v4854_v24, %v4869_v4 }
 0x159   :  { %v1751_v11 = vadd.f32 1.0, %v1750_v32  ;;  %v4913_v33 = vadd.f32 %v1852_v44, %v1851_v7  ;;  %v1758_v15 = vmul.f32 %v4718_v36, %v1757_v45  ;;  %v4916_v27 = vadd.f32 1.0, %v1776_v48 }
 0x15a   :  { %v4919_v28 = vmul.f32 %v4730_v18, %v1783_v9  ;;  %v4921_v47 = vadd.f32 %v1878_v43, %v1877_v22  ;;  %v1711_v6 = vsub.f32 %v1709_v41, %v1710_v56  ;;  %v1712_v2 = vmul.f32 %v1706_v35, %v1626_v38 }
 0x15b   :  { %v1719_v59 = vmul.f32 %v1699_v3, %v1626_v38  ;;  %v1721_v13 = vmul.f32 %v1699_v3, %v4803_v53  ;;  %v4924_v21 = vmax.f32 %v1267_v26, 0.0  ;;  %v1718_v23 = vadd.f32 %v1717_v17, %v1716_v39 }
 0x15c   :  { %v1722_v1 = vmul.f32 %v1706_v35, %v4832_v5  ;;  %v4928_v34 = vmul.f32 %v4856_v37, %v1626_v38  ;;  %v1256_v36 = vadd.f32 -0.017088126, %v1255_v25  ;;  %v1728_v54 = vmul.f32 %v1706_v35, %v4803_v53 }
 0x15d   :  { %6016 = vst [vmem:[#allocation13_spill] sm:$0xff] %v4924_v21  ;;  %v1759_v18 = vmul.f32 %v4723_v57, %v1757_v45  ;;  %v1860_v10 = vmul.f32 -1.211015e-22, %v4913_v33  ;;  %v1785_v20 = vmul.f32 %v4735_v19, %v1783_v9  ;;  %v1787_v60 = vmul.f32 %v4916_v27, %v1751_v11 }
 0x15e   :  { %v1788_v44 = vmul.f32 %v4919_v28, %v1758_v15  ;;  %v1886_v29 = vmul.f32 -1.211015e-22, %v4921_v47  ;;  %v1729_v32 = vmul.f32 %v1699_v3, %v4832_v5  ;;  %v1786_v7 = vmul.f32 %v4767_v62, %v1783_v9 }
 0x15f   :  { %v1794_v48 = vmul.f32 %v4919_v28, %v1751_v11  ;;  %v1795_v53 = vmul.f32 %v4916_v27, %v1758_v15  ;;  %3313 = vrsqrt.f32 %v4924_v21  ;;  %v4942_v57 = vsub.f32 %v1711_v6, %v1712_v2 }
 0x160   :  { %v1731_v19 = vmul.f32 %v4856_v37, %v4869_v4  ;;  %v1854_v35 = vmul.f32 -3.390842e-19, %v4913_v33  ;;  %v1257_v22 = vmul.f32 %v1256_v36, %v4836_v16  ;;  %v1723_v43 = vsub.f32 %v1721_v13, %v1722_v1 }
 0x161   :  { %v1861_v41 = vadd.f32 8.138021e-16, %v1860_v10  ;;  %v1880_v5 = vmul.f32 -3.390842e-19, %v4921_v47  ;;  %v1760_v62 = vmul.f32 %v4756_v49, %v1757_v45  ;;  %v1789_v3 = vsub.f32 %v1787_v60, %v1788_v44 }
 0x162   :  { %v1790_v9 = vmul.f32 %v1785_v20, %v1759_v18  ;;  %v1887_v56 = vadd.f32 8.138021e-16, %v1886_v29  ;;  %v1796_v26 = vadd.f32 %v1795_v53, %v1794_v48  ;;  %v1797_v39 = vmul.f32 %v1786_v7, %v1759_v18 }
 0x163   :  { %v1801_v17 = vmul.f32 %v1785_v20, %v1751_v11  ;;  %v1802_v25 = vmul.f32 %v1786_v7, %v1758_v15  ;;  %v1287_v37 = vmul.f32 %v4825_v51, %v4825_v51  ;;  %v1730_v4 = vadd.f32 %v1729_v32, %v1728_v54 }
 0x164   :  { %v1733_v6 = vmul.f32 %v4854_v24, %v1626_v38  ;;  %v1855_v2 = vadd.f32 1.6276042e-12, %v1854_v35  ;;  %v1258_v13 = vadd.f32 0.03089188, %v1257_v22  ;;  %v1804_v1 = vmul.f32 %v4916_v27, %v1759_v18 }
 0x165   :  { %v1862_v36 = vmul.f32 %v1861_v41, %v4913_v33  ;;  %v1881_v49 = vadd.f32 1.6276042e-12, %v1880_v5  ;;  %v4955_v45 = vpop.eup %3313  ;;  %v1791_v10 = vsub.f32 %v1789_v3, %v1790_v9  ;;  %v1792_v60 = vmul.f32 %v1786_v7, %v1760_v62  ;;  %v3273_v9 = vld [vmem:[%s5951_s1 + $0x18] sm:$0xff] }
 0x166   :  { %6017 = vst [vmem:[#allocation14_spill] sm:$0xff] %v4955_v45  ;;  %v1799_v44 = vmul.f32 %v1785_v20, %v1760_v62  ;;  %v1888_v29 = vmul.f32 %v1887_v56, %v4921_v47  ;;  %v1798_v48 = vadd.f32 %v1797_v39, %v1796_v26  ;;  %v1803_v53 = vsub.f32 %v1801_v17, %v1802_v25  ;;  %v4983_v39 = vld [vmem:[%s5950_s0 + $0x2a0] sm:$0xff]  ;;  %v4988_v17 = vld [vmem:[%s5950_s0 + $0x2a8] sm:$0xff] }
 0x167   :  { %v1808_v40 = vmul.f32 %v1786_v7, %v1751_v11  ;;  %v1809_v54 = vmul.f32 %v1785_v20, %v1758_v15  ;;  %v1288_v32 = vsub.f32 1.0, %v1287_v37  ;;  %v4958_v24 = vsub.f32 %v1718_v23, %v1719_v59  ;;  %v3274_v11 = vld [vmem:[%s5951_s1 + $0x20] sm:$0xff] }
 0x168   :  { %v1725_v38 = vadd.f32 %v1724_v42, %v1723_v43  ;;  %v1732_v35 = vsub.f32 %v1730_v4, %v1731_v19  ;;  %v1270_v22 = vmul.f32 %v4955_v45, %v4924_v21  ;;  %v1856_v41 = vmul.f32 %v1855_v2, %v4913_v33  ;;  %v5001_v2 = vld [vmem:[%s5950_s0 + $0x2c0] sm:$0xff] }
 0x169   :  { %v1863_v5 = vadd.f32 -2.6041667e-09, %v1862_v36  ;;  %v1882_v3 = vmul.f32 %v1881_v49, %v4921_v47  ;;  %v1259_v15 = vmul.f32 %v1258_v13, %v4836_v16  ;;  %v4971_v42 = vsub.f32 %v1791_v10, %v1792_v60 }
 0x16a   :  { %v1806_v59 = vmul.f32 %v4919_v28, %v1760_v62  ;;  %v1889_v23 = vadd.f32 -2.6041667e-09, %v1888_v29  ;;  %v4974_v20 = vsub.f32 %v1798_v48, %v1799_v44  ;;  %v1805_v7 = vadd.f32 %v1804_v1, %v1803_v53 }
 0x16b   :  { %v1810_v19 = vadd.f32 %v1809_v54, %v1808_v40  ;;  %v1811_v43 = vmul.f32 %v4919_v28, %v1759_v18  ;;  %v1289_v56 = vmax.f32 %v1288_v32, 0.0  ;;  %v4978_v26 = vadd.f32 %v4928_v34, %v1725_v38  ;;  %v4996_v34 = vld [vmem:[%s5950_s0 + $0x2b8] sm:$0xff] }
 0x16c   :  { %v2173_v25 = vmul.f32 %v3273_v9, %v3273_v9  ;;  %v2174_v37 = vmul.f32 %v3274_v11, %v3274_v11  ;;  %v1271_v40 = vmul.f32 %v4955_v45, %v1270_v22  ;;  %v4991_v4 = vadd.f32 %v1733_v6, %v1732_v35  ;;  %v5026_v35 = vld [vmem:[%s5950_s0 + $0x2b0] sm:$0xff]  ;;  %v5031_v22 = vld [vmem:[%s5950_s0 + $0x2c8] sm:$0xff] }
 0x16d   :  { %v1857_v28 = vadd.f32 -3.125e-06, %v1856_v41  ;;  %v1883_v18 = vadd.f32 -3.125e-06, %v1882_v3  ;;  %v1260_v13 = vadd.f32 -0.050174303, %v1259_v15  ;;  %v1813_v1 = vmul.f32 %v4916_v27, %v1760_v62 }
 0x16e   :  { %v1864_v36 = vmul.f32 %v1863_v5, %v4913_v33  ;;  %v1890_v6 = vmul.f32 %v1889_v23, %v4921_v47  ;;  %v1807_v49 = vadd.f32 %v1806_v59, %v1805_v7  ;;  %v1812_v10 = vsub.f32 %v1810_v19, %v1811_v43  ;;  %v3275_v59 = vld [vmem:[%s5951_s1 + $0x28] sm:$0xff] }
 0x16f   :  { %v1815_v60 = vmul.f32 %v4971_v42, %v4942_v57  ;;  %v1816_v44 = vmul.f32 %v4974_v20, %v4958_v24  ;;  %v1957_v29 = vmul.f32 %v4983_v39, %v4983_v39  ;;  %v1958_v48 = vmul.f32 %v4988_v17, %v4988_v17 }
 0x170   :  { %v1983_v27 = vmul.f32 %v4996_v34, %v4996_v34  ;;  %v1984_v62 = vmul.f32 %v5001_v2, %v5001_v2  ;;  %v5018_v53 = vmul.f32 0.5, %v1271_v40  ;;  %v1858_v32 = vmul.f32 %v1857_v28, %v4913_v33 }
 0x171   :  { %v1884_v38 = vmul.f32 %v1883_v18, %v4921_v47  ;;  %v1261_v41 = vmul.f32 %v1260_v13, %v4836_v16  ;;  %v1822_v5 = vmul.f32 %v4974_v20, %v4942_v57  ;;  %v1865_v3 = vadd.f32 0.0025, %v1864_v36 }
 0x172   :  { %6018 = vst [vmem:[#allocation15_spill] sm:$0xff] %v5018_v53  ;;  %v1891_v9 = vadd.f32 0.0025, %v1890_v6  ;;  %v1814_v33 = vadd.f32 %v1813_v1, %v1812_v10  ;;  %v1817_v11 = vsub.f32 %v1815_v60, %v1816_v44  ;;  %v1818_v47 = vmul.f32 %v1807_v49, %v4978_v26 }
 0x173   :  { %v1823_v15 = vmul.f32 %v4971_v42, %v4958_v24  ;;  %v1959_v23 = vadd.f32 %v1958_v48, %v1957_v29  ;;  %v1960_v7 = vmul.f32 %v5026_v35, %v5026_v35  ;;  %v1985_v19 = vadd.f32 %v1984_v62, %v1983_v27 }
 0x174   :  { %v1986_v43 = vmul.f32 %v5031_v22, %v5031_v22  ;;  %v5047_v28 = vadd.f32 1e-20, %v1289_v56  ;;  %v5049_v18 = vadd.f32 1.0, %v1858_v32  ;;  %v5051_v13 = vadd.f32 1.0, %v1884_v38 }
 0x175   :  { %v5054_v1 = vmul.f32 %v4844_v52, %v1865_v3  ;;  %v5057_v36 = vmul.f32 %v4862_v30, %v1891_v9  ;;  %v2175_v6 = vadd.f32 %v2174_v37, %v2173_v25  ;;  %v2176_v10 = vmul.f32 %v3275_v59, %v3275_v59 }
 0x176   :  { %6019 = vst [vmem:[#allocation16_spill] sm:$0xff] %v5047_v28  ;;  %v5059_v60 = vadd.f32 0.08897899, %v1261_v41  ;;  %v1824_v44 = vadd.f32 %v1823_v15, %v1822_v5  ;;  %v5062_v29 = vmul.f32 %v1807_v49, %v4991_v4  ;;  %v1829_v56 = vmul.f32 %v1807_v49, %v4942_v57 }
 0x177   :  { %v1819_v48 = vsub.f32 %v1817_v11, %v1818_v47  ;;  %v1830_v27 = vmul.f32 %v1814_v33, %v4958_v24  ;;  %v5066_v62 = vadd.f32 %v1960_v7, %v1959_v23  ;;  %v5068_v52 = vadd.f32 %v1986_v43, %v1985_v19 }
 0x178   :  { %6020 = vst [vmem:[#allocation17_spill] sm:$0xff] %v5059_v60  ;;  %v5071_v30 = vmul.f32 %v4852_v50, %v1865_v3  ;;  %v1893_v25 = vmul.f32 %v4867_v8, %v1891_v9  ;;  %v1894_v37 = vmul.f32 %v4895_v55, %v1891_v9  ;;  %v1895_v32 = vmul.f32 %v5051_v13, %v5049_v18 }
 0x179   :  { %v1896_v38 = vmul.f32 %v5057_v36, %v5054_v1  ;;  %v1902_v41 = vmul.f32 %v5057_v36, %v5049_v18  ;;  %v1903_v5 = vmul.f32 %v5051_v13, %v5054_v1  ;;  %v5083_v11 = vadd.f32 %v2176_v10, %v2175_v6  ;;  %v5105_v6 = vld [vmem:[%s5950_s0 + $0x2d0] sm:$0xff]  ;;  %v5110_v10 = vld [vmem:[%s5950_s0 + $0x2d8] sm:$0xff] }
 0x17a   :  { %v1820_v50 = vmul.f32 %v1814_v33, %v4991_v4  ;;  %v1825_v8 = vmul.f32 %v1814_v33, %v4978_v26  ;;  %v1836_v55 = vmul.f32 %v1814_v33, %v4942_v57  ;;  %v1837_v9 = vmul.f32 %v1807_v49, %v4958_v24 }
 0x17b   :  { %v1832_v47 = vmul.f32 %v4971_v42, %v4978_v26  ;;  %v1834_v15 = vmul.f32 %v4974_v20, %v4991_v4  ;;  %v1968_v59 = vmul.f32 -1.211015e-22, %v5066_v62  ;;  %v1994_v23 = vmul.f32 -1.211015e-22, %v5068_v52 }
 0x17c   :  { %v1831_v7 = vsub.f32 %v1829_v56, %v1830_v27  ;;  %v1839_v19 = vmul.f32 %v4974_v20, %v4978_v26  ;;  %v5098_v43 = vmul.f32 %v4879_v0, %v1865_v3  ;;  %v1898_v57 = vmul.f32 %v1893_v25, %v5071_v30 }
 0x17d   :  { %v1897_v24 = vsub.f32 %v1895_v32, %v1896_v38  ;;  %v1904_v49 = vadd.f32 %v1903_v5, %v1902_v41  ;;  %v1905_v33 = vmul.f32 %v1894_v37, %v5071_v30  ;;  %v5113_v20 = vmax.f32 %v5083_v11, 1e-12 }
 0x17e   :  { %v1838_v0 = vadd.f32 %v1837_v9, %v1836_v55  ;;  %v1909_v26 = vmul.f32 %v1893_v25, %v5049_v18  ;;  %v1910_v3 = vmul.f32 %v1894_v37, %v5054_v1  ;;  %v1962_v56 = vmul.f32 -3.390842e-19, %v5066_v62 }
 0x17f   :  { %v1826_v27 = vadd.f32 %v1825_v8, %v1824_v44  ;;  %v1969_v32 = vadd.f32 8.138021e-16, %v1968_v59  ;;  %v1988_v38 = vmul.f32 -3.390842e-19, %v5068_v52  ;;  %v1995_v41 = vadd.f32 8.138021e-16, %v1994_v23 }
 0x180   :  { %v1841_v5 = vmul.f32 %v4971_v42, %v4991_v4  ;;  %v1900_v54 = vmul.f32 %v1894_v37, %v5098_v43  ;;  %v2065_v40 = vmul.f32 %v5105_v6, %v5105_v6  ;;  %v2066_v55 = vmul.f32 %v5110_v10, %v5110_v10  ;;  %v5130_v44 = vld [vmem:[%s5950_s0 + $0x2e0] sm:$0xff] }
 0x181   :  { %v1899_v9 = vsub.f32 %v1897_v24, %v1898_v57  ;;  %v1906_v63 = vadd.f32 %v1905_v33, %v1904_v49  ;;  %v1907_v31 = vmul.f32 %v1893_v25, %v5098_v43  ;;  %3315 = vrsqrt.f32 %v5113_v20 }
 0x182   :  { %v1833_v42 = vadd.f32 %v1832_v47, %v1831_v7  ;;  %v1840_v4 = vsub.f32 %v1838_v0, %v1839_v19  ;;  %v1911_v8 = vsub.f32 %v1909_v26, %v1910_v3  ;;  %v1912_v59 = vmul.f32 %v5051_v13, %v5071_v30  ;;  %v5149_v26 = vld [vmem:[%s5950_s0 + $0x2e8] sm:$0xff] }
 0x183   :  { %v1963_v23 = vadd.f32 1.6276042e-12, %v1962_v56  ;;  %v1970_v46 = vmul.f32 %v1969_v32, %v5066_v62  ;;  %v1989_v57 = vadd.f32 1.6276042e-12, %v1988_v38  ;;  %v1996_v24 = vmul.f32 %v1995_v41, %v5068_v52 }
 0x184   :  { %v1916_v49 = vmul.f32 %v1894_v37, %v5049_v18  ;;  %v1917_v33 = vmul.f32 %v1893_v25, %v5054_v1  ;;  %v2067_v51 = vadd.f32 %v2066_v55, %v2065_v40  ;;  %v2068_v12 = vmul.f32 %v5130_v44, %v5130_v44 }
 0x185   :  { %v5141_v47 = vsub.f32 %v1819_v48, %v1820_v50  ;;  %v5144_v7 = vsub.f32 %v1826_v27, %v5062_v29  ;;  %v1901_v19 = vsub.f32 %v1899_v9, %v1900_v54  ;;  %v1908_v0 = vsub.f32 %v1906_v63, %v1907_v31  ;;  %v2675_v63 = vld [vmem:[%s5952_s2] sm:$0xff]  ;;  %v3288_v31 = vld [vmem:[%s5952_s2 + $0x8] sm:$0xff] }
 0x186   :  { %v1835_v3 = vadd.f32 %v1834_v15, %v1833_v42  ;;  %v1842_v18 = vadd.f32 %v1841_v5, %v1840_v4  ;;  %v1913_v37 = vadd.f32 %v1912_v59, %v1911_v8  ;;  %v1914_v40 = vmul.f32 %v5057_v36, %v5098_v43  ;;  %v3289_v4 = vld [vmem:[%s5952_s2 + $0x10] sm:$0xff] }
 0x187   :  { %v5153_v1 = vpop.eup %3315  ;;  %v1964_v48 = vmul.f32 %v1963_v23, %v5066_v62  ;;  %v1971_v25 = vadd.f32 -2.6041667e-09, %v1970_v46  ;;  %v1990_v29 = vmul.f32 %v1989_v57, %v5068_v52  ;;  %v1997_v54 = vadd.f32 -2.6041667e-09, %v1996_v24 }
 0x188   :  { %v1918_v50 = vadd.f32 %v1917_v33, %v1916_v49  ;;  %v1919_v15 = vmul.f32 %v5057_v36, %v5071_v30  ;;  %v5165_v56 = vadd.f32 %v2068_v12, %v2067_v51  ;;  %v5169_v46 = vmul.f32 %v5149_v26, %v5149_v26 }
 0x189   :  { %v1923_v27 = vmul.f32 %v1901_v19, %v5141_v47  ;;  %v1924_v32 = vmul.f32 %v1908_v0, %v5144_v7  ;;  %v1930_v38 = vmul.f32 %v1908_v0, %v5141_v47  ;;  %v1931_v41 = vmul.f32 %v1901_v19, %v5144_v7 }
 0x18a   :  { %v1915_v5 = vadd.f32 %v1914_v40, %v1913_v37  ;;  %v2188_v55 = vmul.f32 %v5153_v1, %v5113_v20  ;;  %v2680_v9 = vmul.f32 %v2675_v63, %v2675_v63  ;;  %v2681_v36 = vmul.f32 %v3288_v31, %v3288_v31 }
 0x18b   :  { %v1965_v12 = vadd.f32 -3.125e-06, %v1964_v48  ;;  %v1972_v51 = vmul.f32 %v1971_v25, %v5066_v62  ;;  %v1991_v30 = vadd.f32 -3.125e-06, %v1990_v29  ;;  %v1998_v42 = vmul.f32 %v1997_v54, %v5068_v52 }
 0x18c   :  { %v1920_v8 = vsub.f32 %v1918_v50, %v1919_v15  ;;  %v1921_v59 = vmul.f32 %v5051_v13, %v5098_v43  ;;  %v5184_v23 = vmul.f32 %v1901_v19, %v1835_v3  ;;  %v2189_v57 = vmul.f32 %v5153_v1, %v2188_v55 }
 0x18d   :  { %v1925_v24 = vsub.f32 %v1923_v27, %v1924_v32  ;;  %v1932_v49 = vadd.f32 %v1931_v41, %v1930_v38  ;;  %v5187_v33 = vmul.f32 %v1908_v0, %v1842_v18  ;;  %v5189_v37 = vmul.f32 %v1908_v0, %v1835_v3 }
 0x18e   :  { %v1926_v40 = vmul.f32 %v1915_v5, %v1835_v3  ;;  %v2190_v48 = vmul.f32 0.5, %v2189_v57  ;;  %v2682_v25 = vadd.f32 %v2681_v36, %v2680_v9  ;;  %v2683_v29 = vmul.f32 %v3289_v4, %v3289_v4 }
 0x18f   :  { %v1966_v54 = vmul.f32 %v1965_v12, %v5066_v62  ;;  %v1973_v63 = vadd.f32 0.0025, %v1972_v51  ;;  %v1992_v31 = vmul.f32 %v1991_v30, %v5068_v52  ;;  %v1999_v13 = vadd.f32 0.0025, %v1998_v42  ;;  %v5204_v62 = vld [vmem:[%s5950_s0 + $0x2f0] sm:$0xff] }
 0x190   :  { %v1922_v43 = vadd.f32 %v1921_v59, %v1920_v8  ;;  %v1935_v50 = vmul.f32 %v1915_v5, %v1842_v18  ;;  %v5193_v15 = vmul.f32 %v1901_v19, %v1842_v18  ;;  %v2070_v27 = vmul.f32 -3.390842e-19, %v5165_v56 }
 0x191   :  { %v5197_v32 = vmul.f32 %v1915_v5, %v5141_v47  ;;  %v1945_v0 = vmul.f32 %v1915_v5, %v5144_v7  ;;  %v2076_v38 = vmul.f32 -1.211015e-22, %v5165_v56  ;;  %v2191_v41 = vsub.f32 1.5, %v2190_v48 }
 0x192   :  { %v1927_v55 = vsub.f32 %v1925_v24, %v1926_v40  ;;  %vm2193_vm12 = vweird.f32 %v5113_v20  ;;  %vm2194_vm13 = vweird.f32 %v5153_v1  ;;  %v5208_v52 = vadd.f32 %v2683_v29, %v2682_v25 }
 0x193   :  { %v1967_v19 = vadd.f32 1.0, %v1966_v54  ;;  %v1974_v9 = vmul.f32 %v4983_v39, %v1973_v63  ;;  %v5211_v36 = vadd.f32 1.0, %v1992_v31  ;;  %v2000_v5 = vmul.f32 %v4996_v34, %v1999_v13  ;;  %vm2195_vm14 = vmor %vm2193_vm12, %vm2194_vm13 }
 0x194   :  { %6021 = vst [vmem:[#allocation18_spill] sm:$0xff] %v5208_v52  ;;  %v1928_v12 = vmul.f32 %v1922_v43, %v1842_v18  ;;  %v1933_v51 = vmul.f32 %v1922_v43, %v1835_v3  ;;  %v1938_v30 = vmul.f32 %v1922_v43, %v5144_v7  ;;  %v2071_v42 = vadd.f32 1.6276042e-12, %v2070_v27  ;;  %v5227_v7 = vld [vmem:[%s5950_s0 + $0x2f8] sm:$0xff] }
 0x195   :  { %v1944_v4 = vmul.f32 %v1922_v43, %v5141_v47  ;;  %v2077_v8 = vadd.f32 8.138021e-16, %v2076_v38  ;;  %v2092_v59 = vmul.f32 %v5204_v62, %v5204_v62  ;;  %v2192_v57 = vmul.f32 %v5153_v1, %v2191_v41  ;;  %6022 = vst [vmem:[#allocation19_spill] sm:$0xff] %v5227_v7 }
 0x196   :  { %v1975_v39 = vmul.f32 %v4988_v17, %v1973_v63  ;;  %v2001_v34 = vmul.f32 %v5001_v2, %v1999_v13  ;;  %v2002_v3 = vmul.f32 %v5031_v22, %v1999_v13  ;;  %v5230_v47 = vmax.f32 %v5208_v52, 1e-12 }
 0x197   :  { %v2003_v18 = vmul.f32 %v5211_v36, %v1967_v19  ;;  %v2004_v24 = vmul.f32 %v2000_v5, %v1974_v9  ;;  %v2010_v40 = vmul.f32 %v2000_v5, %v1967_v19  ;;  %v2011_v20 = vmul.f32 %v5211_v36, %v1974_v9 }
 0x198   :  { %v1934_v48 = vadd.f32 %v1933_v51, %v1932_v49  ;;  %v2072_v17 = vmul.f32 %v2071_v42, %v5165_v56  ;;  %v5236_v2 = vsel %vm2195_vm14, %v5153_v1, %v2192_v57  ;;  %3317 = vrsqrt.f32 %v5230_v47 }
 0x199   :  { %6023 = vst [vmem:[#allocation20_spill] sm:$0xff] %v5236_v2  ;;  %v1976_v22 = vmul.f32 %v5026_v35, %v1973_v63  ;;  %v2078_v25 = vmul.f32 %v2077_v8, %v5165_v56  ;;  %v2093_v29 = vadd.f32 %v2092_v59, %v5169_v46  ;;  %v2094_v54 = vmul.f32 %v5227_v7, %v5227_v7 }
 0x19a   :  { %v5244_v31 = vsub.f32 %v1927_v55, %v1928_v12  ;;  %v2006_v13 = vmul.f32 %v2001_v34, %v1975_v39  ;;  %v2017_v49 = vmul.f32 %v2001_v34, %v1967_v19  ;;  %v2018_v43 = vmul.f32 %v2002_v3, %v1974_v9 }
 0x19b   :  { %v2005_v27 = vsub.f32 %v2003_v18, %v2004_v24  ;;  %v2012_v38 = vadd.f32 %v2011_v20, %v2010_v40  ;;  %v2013_v1 = vmul.f32 %v2002_v3, %v1975_v39  ;;  %v2197_v41 = vmul.f32 %v5236_v2, %v5083_v11 }
 0x19c   :  { %v5248_v51 = vsub.f32 %v1934_v48, %v1935_v50  ;;  %v1939_v35 = vsub.f32 %v5197_v32, %v1938_v30  ;;  %v1946_v63 = vadd.f32 %v1945_v0, %v1944_v4  ;;  %v2073_v46 = vadd.f32 -3.125e-06, %v2072_v17 }
 0x19d   :  { %v2008_v42 = vmul.f32 %v2002_v3, %v1976_v22  ;;  %v2020_v8 = vmul.f32 %v5211_v36, %v1975_v39  ;;  %v2079_v55 = vadd.f32 -2.6041667e-09, %v2078_v25  ;;  %v5252_v12 = vadd.f32 %v2094_v54, %v2093_v29 }
 0x19e   :  { %v3318_v59 = vpop.eup %3317  ;;  %v2015_v57 = vmul.f32 %v2001_v34, %v1976_v22  ;;  %v2019_v18 = vsub.f32 %v2017_v49, %v2018_v43  ;;  %v2024_v24 = vmul.f32 %v2002_v3, %v1967_v19  ;;  %v2025_v40 = vmul.f32 %v2001_v34, %v1974_v9 }
 0x19f   :  { %v2007_v20 = vsub.f32 %v2005_v27, %v2006_v13  ;;  %v2014_v61 = vadd.f32 %v2013_v1, %v2012_v38  ;;  %v5254_v28 = vmul.f32 0.5, %v2197_v41  ;;  %v2695_v50 = vmul.f32 %v3318_v59, %v5230_v47 }
 0x1a0   :  { %v1941_v32 = vadd.f32 %v5184_v23, %v1939_v35  ;;  %v1948_v0 = vsub.f32 %v1946_v63, %v5189_v37  ;;  %v2022_v30 = vmul.f32 %v2000_v5, %v1976_v22  ;;  %v2074_v4 = vmul.f32 %v2073_v46, %v5165_v56 }
 0x1a1   :  { %6024 = vst [vmem:[#allocation21_spill] sm:$0xff] %v5254_v28  ;;  %v2027_v48 = vmul.f32 %v2000_v5, %v1975_v39  ;;  %v2080_v17 = vmul.f32 %v2079_v55, %v5165_v56  ;;  %v2096_v25 = vmul.f32 -3.390842e-19, %v5252_v12  ;;  %v5981_v19 = vand.u32 2147483647, %v5254_v28 }
 0x1a2   :  { %v2026_v9 = vadd.f32 %v2025_v40, %v2024_v24  ;;  %v2102_v34 = vmul.f32 -1.211015e-22, %v5252_v12  ;;  %v2202_v3 = vand.u32 2139095040, %v5254_v28  ;;  %v2696_v29 = vmul.f32 %v3318_v59, %v2695_v50 }
 0x1a3   :  { %v5265_v54 = vsub.f32 %v2007_v20, %v2008_v42  ;;  %v5267_v23 = vsub.f32 %v2014_v61, %v2015_v57  ;;  %v2021_v37 = vadd.f32 %v2020_v8, %v2019_v18  ;;  %v2206_v5 = vand.u32 8388607, %v5981_v19 }
 0x1a4   :  { %v2203_v39 = vshrl.u32 %v2202_v3, 23  ;;  %v2697_v56 = vmul.f32 0.5, %v2696_v29  ;;  %vm2700_vm15 = vweird.f32 %v5230_v47  ;;  %vm2701_vm0 = vweird.f32 %v3318_v59 }
 0x1a5   :  { %v5273_v13 = vadd.f32 %v5187_v33, %v1941_v32  ;;  %v5276_v49 = vadd.f32 %v5193_v15, %v1948_v0  ;;  %v5278_v43 = vadd.f32 0.0025, %v2080_v17  ;;  %v2207_v27 = vor.u32 8388608, %v2206_v5  ;;  %vm2702_vm1 = vmor %vm2700_vm15, %vm2701_vm0 }
 0x1a6   :  { %v2028_v61 = vsub.f32 %v2026_v9, %v2027_v48  ;;  %v2029_v38 = vmul.f32 %v5211_v36, %v1976_v22  ;;  %v3276_v1 = vadd.s32 4294967169, %v2203_v39  ;;  %v2698_v41 = vsub.f32 1.5, %v2697_v56 }
 0x1a7   :  { %v5281_v35 = vadd.f32 %v2022_v30, %v2021_v37  ;;  %v5283_v63 = vadd.f32 1.0, %v2074_v4  ;;  %v5285_v47 = vadd.f32 1.6276042e-12, %v2096_v25  ;;  %v5287_v46 = vadd.f32 8.138021e-16, %v2102_v34 }
 0x1a8   :  { %v5291_v33 = vmul.f32 %v5265_v54, %v5244_v31  ;;  %v5295_v15 = vmul.f32 %v5267_v23, %v5248_v51  ;;  %v2209_v36 = vadd.s32 1, %v3276_v1  ;;  %v2699_v22 = vmul.f32 %v3318_v59, %v2698_v41 }
 0x1a9   :  { %v2038_v42 = vmul.f32 %v5267_v23, %v5244_v31  ;;  %v2039_v8 = vmul.f32 %v5265_v54, %v5248_v51  ;;  %v5303_v55 = vmul.f32 %v5105_v6, %v5278_v43  ;;  %v5305_v57 = vshll.u32 %v2207_v27, 8 }
 0x1aa   :  { %v5307_v18 = vadd.f32 %v2029_v38, %v2028_v61  ;;  %v5311_v24 = vmul.f32 %v5110_v10, %v5278_v43  ;;  %vm2210_vm2 = vcmp.gt.s32.totalorder %v2209_v36, 0  ;;  %v5313_v40 = vsel %vm2702_vm1, %v3318_v59, %v2699_v22 }
 0x1ab   :  { %6026 = vst [vmem:[#allocation23_spill] sm:$0xff] %v5313_v40  ;;  %v5317_v20 = vmul.f32 %v5281_v35, %v5273_v13  ;;  %v5321_v50 = vmul.f32 %v5281_v35, %v5276_v49  ;;  %v2211_v6 = vsel %vm2210_vm2, %v2209_v36, 0  ;;  %v2704_v32 = vmul.f32 %v5313_v40, %v5208_v52 }
 0x1ac   :  { %6025 = vst [vmem:[#allocation22_spill] sm:$0xff] %v5311_v24  ;;  %v5329_v10 = vmul.f32 %v5281_v35, %v5244_v31  ;;  %v2212_v59 = vshrl.u32 %v2211_v6, 5  ;;  %v2213_v30 = vand.u32 31, %v2211_v6  ;;  %v5331_v4 = vadd.f32 %v2039_v8, %v2038_v42 }
 0x1ad   :  { %v5335_v48 = vmul.f32 %v5265_v54, %v5273_v13  ;;  %v5339_v17 = vmul.f32 %v5267_v23, %v5276_v49  ;;  %v2248_v25 = vand.u32 65535, %v5305_v57  ;;  %v6028_v34 = vmov 683565275  }
 0x1ae   :  { %v2214_v9 = vsub.s32 32, %v2213_v30  ;;  %v2216_v3 = vshll.u32 %v6028_v34, %v2213_v30  ;;  %v6029_v29 = vmov 2475754826   ;;  %v6030_v5 = vmov 2131351028  }
 0x1af   :  { %6027 = vst [vmem:[#allocation24_spill] sm:$0xff] %v5339_v17  ;;  %v2219_v37 = vshll.u32 %v6029_v29, %v2213_v30  ;;  %v2222_v39 = vshll.u32 %v6030_v5, %v2213_v30  ;;  %v6031_v56 = vmov 2102212464   ;;  %v6032_v61 = vmov 920167782  }
 0x1b0   :  { %v2225_v27 = vshll.u32 %v6031_v56, %v2213_v30  ;;  %v2228_v38 = vshll.u32 %v6032_v61, %v2213_v30  ;;  %vm2231_vm3 = vcmp.lt.s32.totalorder %v2212_v59, 1  ;;  %v5347_v1 = vmul.f32 0.5, %v2704_v32 }
 0x1b1   :  { %v2215_v41 = vshrl.u32 %v6028_v34, %v2214_v9  ;;  %v2217_v36 = vshrl.u32 %v6029_v29, %v2214_v9  ;;  %v2220_v22 = vshrl.u32 %v6030_v5, %v2214_v9  ;;  %v2223_v42 = vshrl.u32 %v6031_v56, %v2214_v9 }
 0x1b2   :  { %6033 = vst [vmem:[#allocation25_spill] sm:$0xff] %v5347_v1  ;;  %v2226_v8 = vshrl.u32 %v6032_v61, %v2214_v9  ;;  %v6034_v6 = vmov 1326507024   ;;  %vm2232_vm4 = vcmp.lt.s32.totalorder %v2212_v59, 2  ;;  %vm2233_vm5 = vcmp.lt.s32.totalorder %v2212_v59, 3 }
 0x1b3   :  { %v2229_v19 = vshrl.u32 %v6034_v6, %v2214_v9  ;;  %v2218_v0 = vor.u32 %v2217_v36, %v2216_v3  ;;  %v2221_v40 = vor.u32 %v2220_v22, %v2219_v37  ;;  %v2224_v30 = vor.u32 %v2223_v42, %v2222_v39 }
 0x1b4   :  { %vm2234_vm6 = vcmp.lt.s32.totalorder %v2212_v59, 4  ;;  %v2227_v32 = vor.u32 %v2226_v8, %v2225_v27  ;;  %v5995_v21 = vand.u32 2147483647, %v5347_v1  ;;  %v2709_v14 = vand.u32 2139095040, %v5347_v1 }
 0x1b5   :  { %v2230_v52 = vor.u32 %v2229_v19, %v2228_v38  ;;  %v2235_v58 = vsel %vm2231_vm3, %v2215_v41, %v2218_v0  ;;  %v2236_v60 = vsel %vm2234_vm6, %v2224_v30, 2102212464  ;;  %v2239_v16 = vsel %vm2231_vm3, %v2218_v0, %v2221_v40 }
 0x1b6   :  { %v2243_v2 = vsel %vm2231_vm3, %v2221_v40, %v2224_v30  ;;  %v2237_v9 = vsel %vm2233_vm5, %v2221_v40, %v2236_v60  ;;  %v2240_v45 = vsel %vm2234_vm6, %v2227_v32, 920167782  ;;  %v2710_v37 = vshrl.u32 %v2709_v14, 23 }
 0x1b7   :  { %v2244_v3 = vsel %vm2234_vm6, %v2230_v52, 1326507024  ;;  %v5362_v39 = vsel %vm2232_vm4, %v2235_v58, %v2237_v9  ;;  %v2241_v19 = vsel %vm2233_vm5, %v2224_v30, %v2240_v45  ;;  %v2249_v38 = vshrl.u32 %v5305_v57, 16 }
 0x1b8   :  { %v2245_v27 = vsel %vm2233_vm5, %v2227_v32, %v2244_v3  ;;  %v2242_v41 = vsel %vm2232_vm4, %v2239_v16, %v2241_v19  ;;  %v3290_v36 = vadd.s32 4294967169, %v2710_v37  ;;  %v2713_v60 = vand.u32 8388607, %v5995_v21 }
 0x1b9   :  { %v2246_v0 = vsel %vm2232_vm4, %v2243_v2, %v2245_v27  ;;  %v2272_v14 = vand.u32 65535, %v2242_v41  ;;  %v2273_v22 = vshrl.u32 %v2242_v41, 16  ;;  %v5373_v58 = vmul.f32 %v5307_v18, %v5276_v49 }
 0x1ba   :  { %v2250_v40 = vand.u32 65535, %v2246_v0  ;;  %v2251_v52 = vshrl.u32 %v2246_v0, 16  ;;  %v5377_v45 = vmul.f32 %v5307_v18, %v5273_v13  ;;  %v5381_v16 = vmul.f32 %v5307_v18, %v5248_v51 }
 0x1bb   :  { %v5385_v2 = vmul.f32 %v5287_v46, %v5252_v12  ;;  %v2716_v30 = vadd.s32 1, %v3290_v36  ;;  %v2274_v32 = vmul.u32 %v2272_v14, %v2248_v25  ;;  %v2275_v9 = vmul.u32 %v2273_v22, %v2248_v25 }
 0x1bc   :  { %v2252_v59 = vmul.u32 %v2250_v40, %v2248_v25  ;;  %v2253_v42 = vmul.u32 %v2251_v52, %v2248_v25  ;;  %v2254_v8 = vmul.u32 %v2250_v40, %v2249_v38  ;;  %v2276_v3 = vmul.u32 %v2272_v14, %v2249_v38 }
 0x1bd   :  { %v2255_v19 = vmul.u32 %v2251_v52, %v2249_v38  ;;  %v2714_v0 = vor.u32 8388608, %v2713_v60  ;;  %v2277_v1 = vmul.u32 %v2273_v22, %v2249_v38  ;;  %v2278_v53 = vshll.u32 %v2275_v9, 16 }
 0x1be   :  { %v2256_v27 = vshll.u32 %v2253_v42, 16  ;;  %v2258_v41 = vshll.u32 %v2254_v8, 16  ;;  %v2257_v21 = vshrl.u32 %v2253_v42, 16  ;;  %v2280_v17 = vshll.u32 %v2276_v3, 16 }
 0x1bf   :  { %v2259_v46 = vshrl.u32 %v2254_v8, 16  ;;  %vm2717_vm8 = vcmp.gt.s32.totalorder %v2716_v30, 0  ;;  %v6035_v40 = vmov 0   ;;  %vm2282_vm9 = vc.u32 %v2274_v32, %v2278_v53 }
 0x1c0   :  { %vm2260_vm7 = vc.u32 %v2252_v59, %v2256_v27  ;;  %v2262_v28 = vadd.s32 %v2256_v27, %v2252_v59  ;;  %v2284_v25 = vadd.s32 %v2278_v53, %v2274_v32  ;;  %v2718_v14 = vsel %vm2717_vm8, %v2716_v30, 0 }
 0x1c1   :  { %v2261_v36 = vsel %vm2260_vm7, 1, %v6035_v40  ;;  %v2283_v52 = vsel %vm2282_vm9, 1, %v6035_v40  ;;  %v5391_v37 = vshrl.u32 %v2718_v14, 5  ;;  %v2279_v38 = vshrl.u32 %v2275_v9, 16 }
 0x1c2   :  { %v2263_v24 = vadd.s32 %v2261_v36, %v2255_v19  ;;  %vm2264_vm10 = vc.u32 %v2262_v28, %v2258_v41  ;;  %v2285_v22 = vadd.s32 %v2283_v52, %v2277_v1  ;;  %vm2286_vm11 = vc.u32 %v2284_v25, %v2280_v17 }
 0x1c3   :  { %v2265_v60 = vsel %vm2264_vm10, 1, %v6035_v40  ;;  %v2281_v8 = vshrl.u32 %v2276_v3, 16  ;;  %v2287_v59 = vsel %vm2286_vm11, 1, %v6035_v40  ;;  %v2720_v27 = vand.u32 31, %v2718_v14 }
 0x1c4   :  { %v2267_v42 = vadd.s32 %v2265_v60, %v2263_v24  ;;  %v5395_v7 = vadd.s32 %v2284_v25, %v2280_v17  ;;  %v2289_v53 = vadd.s32 %v2287_v59, %v2285_v22  ;;  %vm2738_vm12 = vcmp.lt.s32.totalorder %v5391_v37, 1 }
 0x1c5   :  { %v5398_v28 = vshll.u32 %v2714_v0, 8  ;;  %v5400_v32 = vsub.s32 32, %v2720_v27  ;;  %v2723_v19 = vshll.u32 %v6028_v34, %v2720_v27  ;;  %v2726_v1 = vshll.u32 %v6029_v29, %v2720_v27 }
 0x1c6   :  { %v2268_v30 = vadd.s32 %v2267_v42, %v2257_v21  ;;  %v2290_v9 = vadd.s32 %v2289_v53, %v2279_v38  ;;  %v2729_v24 = vshll.u32 %v6030_v5, %v2720_v27  ;;  %v2732_v3 = vshll.u32 %v6031_v56, %v2720_v27 }
 0x1c7   :  { %v2735_v17 = vshll.u32 %v6032_v61, %v2720_v27  ;;  %v2724_v0 = vshrl.u32 %v6029_v29, %v5400_v32  ;;  %v2727_v21 = vshrl.u32 %v6030_v5, %v5400_v32  ;;  %vm2740_vm13 = vcmp.lt.s32.totalorder %v5391_v37, 3 }
 0x1c8   :  { %v5407_v41 = vadd.s32 %v2268_v30, %v2259_v46  ;;  %v2291_v36 = vadd.s32 %v2290_v9, %v2281_v8  ;;  %v2730_v25 = vshrl.u32 %v6031_v56, %v5400_v32  ;;  %v2733_v14 = vshrl.u32 %v6032_v61, %v5400_v32 }
 0x1c9   :  { %v2736_v52 = vshrl.u32 %v6034_v6, %v5400_v32  ;;  %v5422_v46 = vor.u32 %v2724_v0, %v2723_v19  ;;  %v5424_v29 = vor.u32 %v2727_v21, %v2726_v1  ;;  %vm2741_vm15 = vcmp.lt.s32.totalorder %v5391_v37, 4 }
 0x1ca   :  { %vm2294_vm14 = vc.u32 %v5407_v41, %v5395_v7  ;;  %v2295_v5 = vadd.s32 1, %v2291_v36  ;;  %v5427_v60 = vor.u32 %v2730_v25, %v2729_v24  ;;  %v2734_v38 = vor.u32 %v2733_v14, %v2732_v3 }
 0x1cb   :  { %v2737_v56 = vor.u32 %v2736_v52, %v2735_v17  ;;  %v2052_v61 = vmul.f32 %v5307_v18, %v5244_v31  ;;  %v2098_v6 = vmul.f32 %v5285_v47, %v5252_v12  ;;  %vm2739_vm0 = vcmp.lt.s32.totalorder %v5391_v37, 2 }
 0x1cc   :  { %v2746_v22 = vsel %vm2738_vm12, %v5422_v46, %v5424_v29  ;;  %v2105_v42 = vadd.f32 -2.6041667e-09, %v5385_v2  ;;  %v2296_v8 = vsel %vm2294_vm14, %v2295_v5, %v2291_v36  ;;  %v2747_v59 = vsel %vm2741_vm15, %v2734_v38, 920167782 }
 0x1cd   :  { %v2750_v31 = vsel %vm2738_vm12, %v5424_v29, %v5427_v60  ;;  %v6036_v47 = vmul.u32 %v5305_v57, %v5362_v39  ;;  %v2748_v27 = vsel %vm2740_vm13, %v5427_v60, %v2747_v59  ;;  %v2751_v2 = vsel %vm2741_vm15, %v2737_v56, 1326507024 }
 0x1ce   :  { %v2755_v53 = vand.u32 65535, %v5398_v28  ;;  %v6037_v30 = vsub.f32 %v5291_v33, %v5295_v15  ;;  %v2749_v1 = vsel %vm2739_vm0, %v2746_v22, %v2748_v27  ;;  %v2752_v57 = vsel %vm2740_vm13, %v2734_v38, %v2751_v2 }
 0x1cf   :  { %v2297_v18 = vadd.s32 %v2296_v8, %v6036_v47  ;;  %v2756_v39 = vshrl.u32 %v5398_v28, 16  ;;  %v2753_v24 = vsel %vm2739_vm0, %v2750_v31, %v2752_v57  ;;  %v2779_v3 = vand.u32 65535, %v2749_v1 }
 0x1d0   :  { %v2035_v19 = vsub.f32 %v6037_v30, %v5317_v20  ;;  %v2780_v17 = vshrl.u32 %v2749_v1, 16  ;;  %v2053_v0 = vmul.f32 %v5281_v35, %v5248_v51  ;;  %v5469_v33 = vmul.f32 %v5267_v23, %v5273_v13 }
 0x1d1   :  { %v2298_v9 = vadd.s32 536870912, %v2297_v18  ;;  %v2757_v15 = vand.u32 65535, %v2753_v24  ;;  %v2758_v20 = vshrl.u32 %v2753_v24, 16  ;;  %v2099_v21 = vadd.f32 -3.125e-06, %v2098_v6 }
 0x1d2   :  { %v2106_v36 = vmul.f32 %v2105_v42, %v5252_v12  ;;  %v5474_v14 = vmul.u32 %v2780_v17, %v2755_v53  ;;  %v5480_v56 = vmul.u32 %v2779_v3, %v2756_v39  ;;  %v5484_v51 = vmul.f32 %v5265_v54, %v5276_v49 }
 0x1d3   :  { %v5472_v25 = vshrl.u32 %v2298_v9, 30  ;;  %v2759_v52 = vmul.u32 %v2757_v15, %v2755_v53  ;;  %v5476_v5 = vmul.u32 %v2758_v20, %v2755_v53  ;;  %v5478_v38 = vmul.u32 %v2757_v15, %v2756_v39 }
 0x1d4   :  { %v2781_v13 = vmul.u32 %v2779_v3, %v2755_v53  ;;  %v2785_v35 = vshll.u32 %v5474_v14, 16  ;;  %v2042_v6 = vadd.f32 %v5377_v45, %v5331_v4  ;;  %v2047_v22 = vsub.f32 %v5329_v10, %v5381_v16 }
 0x1d5   :  { %v2300_v23 = vshll.u32 %v5472_v25, 30  ;;  %v2763_v42 = vshll.u32 %v5476_v5, 16  ;;  %v2765_v8 = vshll.u32 %v5478_v38, 16  ;;  %v2100_v59 = vmul.f32 %v2099_v21, %v5252_v12 }
 0x1d6   :  { %v2107_v31 = vadd.f32 0.0025, %v2106_v36  ;;  %v2762_v49 = vmul.u32 %v2758_v20, %v2756_v39  ;;  %v2784_v27 = vmul.u32 %v2780_v17, %v2756_v39  ;;  %v2787_v2 = vshll.u32 %v5480_v56, 16 }
 0x1d7   :  { %v2301_v54 = vsub.s32 %v2297_v18, %v2300_v23  ;;  %vm2767_vm1 = vc.u32 %v2759_v52, %v2763_v42  ;;  %v2769_v47 = vadd.s32 %v2763_v42, %v2759_v52  ;;  %vm2789_vm3 = vc.u32 %v2781_v13, %v2785_v35  ;;  %v6038_v52 = vld [vmem:[#allocation19_spill] sm:$0xff] }
 0x1d8   :  { %v2768_v4 = vsel %vm2767_vm1, 1, %v6035_v40  ;;  %v5498_v10 = vsub.f32 %v2035_v19, %v5373_v58  ;;  %v5502_v45 = vmul.f32 %v5130_v44, %v5278_v43  ;;  %v2790_v12 = vsel %vm2789_vm3, 1, %v6035_v40 }
 0x1d9   :  { %vm2302_vm2 = vcmp.lt.s32.totalorder %v2301_v54, 0  ;;  %v2303_v53 = vsub.s32 0, %v2301_v54  ;;  %vm2771_vm4 = vc.u32 %v2769_v47, %v2765_v8  ;;  %v5505_v16 = vadd.f32 %v2053_v0, %v2052_v61 }
 0x1da   :  { %v5507_v18 = vadd.f32 1.0, %v2100_v59  ;;  %v2791_v1 = vadd.s32 %v2785_v35, %v2781_v13  ;;  %v2178_v57 = vmul.f32 0.0026041667, %v5083_v11  ;;  %v2770_v9 = vadd.s32 %v2768_v4, %v2762_v49  ;;  %v6039_v49 = vld [vmem:[#allocation22_spill] sm:$0xff] }
 0x1db   :  { %v2304_v30 = vsel %vm2302_vm2, %v2303_v53, %v2301_v54  ;;  %v2792_v24 = vadd.s32 %v2790_v12, %v2784_v27  ;;  %v5511_v58 = vsub.f32 %v2042_v6, %v5321_v50  ;;  %v5514_v44 = vmul.f32 %v5149_v26, %v2107_v31 }
 0x1dc   :  { %v2305_v39 = vclz %v2304_v30  ;;  %v2772_v43 = vsel %vm2771_vm4, 1, %v6035_v40  ;;  %vm2793_vm5 = vc.u32 %v2791_v1, %v2787_v2  ;;  %v5520_v61 = vadd.f32 %v5335_v48, %v2047_v22 }
 0x1dd   :  { %v2182_v19 = vmul.f32 0.00026041668, %v5083_v11  ;;  %v2794_v17 = vsel %vm2793_vm5, 1, %v6035_v40  ;;  %v2111_v50 = vmul.f32 %v5507_v18, %v5283_v63  ;;  %v2119_v26 = vmul.f32 %v5507_v18, %v5303_v55 }
 0x1de   :  { %v3277_v3 = vadd.s32 4294967294, %v2305_v39  ;;  %v2786_v0 = vshrl.u32 %v5474_v14, 16  ;;  %v2796_v15 = vadd.s32 %v2794_v17, %v2792_v24  ;;  %v2293_v20 = vadd.s32 %v5395_v7, %v5407_v41 }
 0x1df   :  { %v2764_v48 = vshrl.u32 %v5476_v5, 16  ;;  %v2774_v21 = vadd.s32 %v2772_v43, %v2770_v9  ;;  %v2109_v36 = vmul.f32 %v5204_v62, %v2107_v31  ;;  %v2110_v40 = vmul.f32 %v6038_v52, %v2107_v31 }
 0x1e0   :  { %vm3278_vm6 = vcmp.lt.s32.totalorder %v3277_v3, 0  ;;  %v2112_v23 = vmul.f32 %v5514_v44, %v5303_v55  ;;  %v2722_v14 = vshrl.u32 %v6028_v34, %v5400_v32  ;;  %v2118_v7 = vmul.f32 %v5514_v44, %v5283_v63 }
 0x1e1   :  { %v2308_v13 = vsel %vm3278_vm6, 0, %v3277_v3  ;;  %v2743_v41 = vsel %vm2741_vm15, %v5427_v60, 2102212464  ;;  %v2788_v62 = vshrl.u32 %v5480_v56, 16  ;;  %v2797_v5 = vadd.s32 %v2796_v15, %v2786_v0 }
 0x1e2   :  { %v2309_v35 = vsub.s32 32, %v2308_v13  ;;  %v2310_v6 = vshll.u32 %v2301_v54, %v2308_v13  ;;  %v2313_v22 = vsub.s32 4294967266, %v2308_v13  ;;  %v2766_v59 = vshrl.u32 %v5478_v38, 16 }
 0x1e3   :  { %v2775_v31 = vadd.s32 %v2774_v21, %v2764_v48  ;;  %v2056_v54 = vsub.f32 %v5505_v16, %v5469_v33  ;;  %v2114_v34 = vmul.f32 %v2109_v36, %v6039_v49  ;;  %v2125_v32 = vmul.f32 %v2109_v36, %v5283_v63  ;;  %v6040_v48 = vld [vmem:[#allocation21_spill] sm:$0xff] }
 0x1e4   :  { %v2311_v42 = vshrl.u32 %v2293_v20, %v2309_v35  ;;  %v2314_v8 = vadd.s32 127, %v2313_v22  ;;  %v2126_v47 = vmul.f32 %v2110_v40, %v5303_v55  ;;  %v2742_v60 = vsel %vm2738_vm12, %v2722_v14, %v5422_v46 }
 0x1e5   :  { %v2744_v38 = vsel %vm2740_vm13, %v5424_v29, %v2743_v41  ;;  %v2113_v4 = vsub.f32 %v2111_v50, %v2112_v23  ;;  %v2120_v12 = vadd.f32 %v2119_v26, %v2118_v7  ;;  %v2121_v33 = vmul.f32 %v2110_v40, %v6039_v49  ;;  %v6044_v23 = vld [vmem:[#allocation24_spill] sm:$0xff] }
 0x1e6   :  { %v2312_v27 = vor.u32 %v2311_v42, %v2310_v6  ;;  %v2315_v53 = vshll.u32 %v2314_v8, 23  ;;  %v2798_v16 = vadd.s32 %v2797_v5, %v2788_v62  ;;  %v5557_v9 = vadd.s32 %v2775_v31, %v2766_v59 }
 0x1e7   :  { %v5561_v24 = vadd.s32 %v2791_v1, %v2787_v2  ;;  %v2132_v43 = vmul.f32 %v2110_v40, %v5283_v63  ;;  %v2133_v46 = vmul.f32 %v2109_v36, %v5303_v55  ;;  %v2179_v3 = vadd.f32 -0.125, %v2178_v57 }
 0x1e8   :  { %v2316_v30 = vor.u32 4788187, %v2315_v53  ;;  %v2319_v39 = vcvt.s32.f32 %v2312_v27  ;;  %v2745_v29 = vsel %vm2739_vm0, %v2742_v60, %v2744_v38  ;;  %v2116_v17 = vmul.f32 %v2110_v40, %v5502_v45  ;;  %v6045_v60 = vld [vmem:[#allocation15_spill] sm:$0xff] }
 0x1e9   :  { %v2127_v50 = vsub.f32 %v2125_v32, %v2126_v47  ;;  %v2128_v26 = vmul.f32 %v5507_v18, %v6039_v49  ;;  %v2115_v15 = vsub.f32 %v2113_v4, %v2114_v34  ;;  %v2122_v20 = vadd.f32 %v2121_v33, %v2120_v12 }
 0x1ea   :  { %v2317_v0 = vand.u32 2147483647, %v2316_v30  ;;  %v2123_v56 = vmul.f32 %v2109_v36, %v5502_v45  ;;  %v2802_v2 = vadd.s32 1, %v2798_v16  ;;  %v2183_v1 = vadd.f32 -0.020833334, %v2182_v19 }
 0x1eb   :  { %v2799_v55 = vmul.u32 %v5398_v28, %v2745_v29  ;;  %vm2801_vm7 = vc.u32 %v5557_v9, %v5561_v24  ;;  %v2134_v37 = vadd.f32 %v2133_v46, %v2132_v43  ;;  %v2135_v57 = vmul.f32 %v5514_v44, %v6039_v49 }
 0x1ec   :  { %v2320_v63 = vmul.f32 %v2319_v39, %v2317_v0  ;;  %vm2201_vm8 = vcmp.lt.s32.totalorder %v6040_v48, 0  ;;  %v2323_v21 = vsub.s32 4, %v5472_v25  ;;  %v2129_v52 = vadd.f32 %v2128_v26, %v2127_v50 }
 0x1ed   :  { %v2130_v36 = vmul.f32 %v5514_v44, %v5502_v45  ;;  %v6041_v19 = vand.u32 2147483647, %v6040_v48  ;;  %v2051_v13 = vadd.f32 %v6044_v23, %v5520_v61  ;;  %v2117_v35 = vsub.f32 %v2115_v15, %v2116_v17 }
 0x1ee   :  { %v2321_v28 = vxor.u32 2147483648, %v2320_v63  ;;  %v2124_v6 = vsub.f32 %v2122_v20, %v2123_v56  ;;  %v2803_v22 = vsel %vm2801_vm7, %v2802_v2, %v2798_v16  ;;  %v2180_v14 = vmul.f32 %v2179_v3, %v5083_v11 }
 0x1ef   :  { %vm5582_vm9 = vcmp.le.f32.partialorder %v6041_v19, 0.7853982  ;;  %v2184_v7 = vmul.f32 %v2183_v1, %v5083_v11  ;;  %v2804_v41 = vadd.s32 %v2803_v22, %v2799_v55  ;;  %v2136_v62 = vsub.f32 %v2134_v37, %v2135_v57 }
 0x1f0   :  { %v2322_v44 = vsel %vm2201_vm8, %v2321_v28, %v2320_v63  ;;  %v2137_v5 = vmul.f32 %v5507_v18, %v5502_v45  ;;  %v2324_v42 = vsel %vm2201_vm8, %v2323_v21, %v5472_v25  ;;  %v2058_v8 = vadd.f32 %v5484_v51, %v2056_v54  ;;  %v6047_v54 = vld [vmem:[#allocation14_spill] sm:$0xff] }
 0x1f1   :  { %v2325_v61 = vsel %vm5582_vm9, %v6040_v48, %v2322_v44  ;;  %v2131_v59 = vadd.f32 %v2130_v36, %v2129_v52  ;;  %v2805_v49 = vadd.s32 536870912, %v2804_v41  ;;  %v2139_v34 = vmul.f32 %v2117_v35, %v5498_v10 }
 0x1f2   :  { %v2327_v31 = vmul.f32 %v2325_v61, %v2325_v61  ;;  %v2140_v32 = vmul.f32 %v2124_v6, %v5511_v58  ;;  %v2146_v47 = vmul.f32 %v2124_v6, %v5498_v10  ;;  %v2147_v45 = vmul.f32 %v2117_v35, %v5511_v58 }
 0x1f3   :  { %v2326_v25 = vsel %vm5582_vm9, 0, %v2324_v42  ;;  %v5607_v53 = vshrl.u32 %v2805_v49, 30  ;;  %v6046_v51 = vsub.f32 1.5, %v6045_v60  ;;  %v2138_v4 = vadd.f32 %v2137_v5, %v2136_v62 }
 0x1f4   :  { %v2328_v18 = vmul.f32 -0.001358992, %v2327_v31  ;;  %v2335_v27 = vmul.f32 -0.00019511016, %v2327_v31  ;;  %v5614_v12 = vadd.f32 1.0, %v2180_v14  ;;  %v5616_v33 = vadd.f32 0.5, %v2184_v7 }
 0x1f5   :  { %v5612_v38 = vmul.f32 %v6047_v54, %v6046_v51  ;;  %v2142_v16 = vmul.f32 %v2131_v59, %v2051_v13  ;;  %v2807_v43 = vshll.u32 %v5607_v53, 30  ;;  %v2141_v46 = vsub.f32 %v2139_v34, %v2140_v32 }
 0x1f6   :  { %v2329_v30 = vadd.f32 0.041655596, %v2328_v18  ;;  %v2336_v39 = vadd.f32 0.008332121, %v2335_v27  ;;  %v5619_v3 = vmul.f32 %v2131_v59, %v2058_v8  ;;  %v2153_v29 = vmul.f32 %v2131_v59, %v5498_v10 }
 0x1f7   :  { %v2497_v17 = vadd.s32 3, %v2326_v25  ;;  %v2148_v50 = vadd.f32 %v2147_v45, %v2146_v47  ;;  %v2808_v15 = vsub.s32 %v2804_v41, %v2807_v43  ;;  %v2149_v20 = vmul.f32 %v2138_v4, %v2051_v13 }
 0x1f8   :  { %v2330_v26 = vmul.f32 %v2329_v30, %v2327_v31  ;;  %v2337_v0 = vmul.f32 %v2336_v39, %v2327_v31  ;;  %v2154_v56 = vmul.f32 %v2138_v4, %v5511_v58  ;;  %v2156_v2 = vmul.f32 %v2117_v35, %v2051_v13 }
 0x1f9   :  { %v2158_v1 = vmul.f32 %v2124_v6, %v2058_v8  ;;  %vm2809_vm10 = vcmp.lt.s32.totalorder %v2808_v15, 0  ;;  %v2810_v37 = vsub.s32 0, %v2808_v15  ;;  %v2160_v57 = vmul.f32 %v2138_v4, %v5498_v10 }
 0x1fa   :  { %v2331_v63 = vadd.f32 -0.4999988, %v2330_v26  ;;  %v2338_v55 = vadd.f32 -0.16666654, %v2337_v0  ;;  %v2161_v21 = vmul.f32 %v2131_v59, %v5511_v58  ;;  %v2343_v52 = vand.u32 3, %v2326_v25 }
 0x1fb   :  { %v2498_v36 = vand.u32 3, %v2497_v17  ;;  %v2144_v19 = vmul.f32 %v2138_v4, %v2058_v8  ;;  %v2811_v23 = vsel %vm2809_vm10, %v2810_v37, %v2808_v15  ;;  %v2143_v22 = vsub.f32 %v2141_v46, %v2142_v16  ;;  %v6049_v46 = vld [vmem:[#allocation12_spill] sm:$0xff] }
 0x1fc   :  { %v2332_v40 = vmul.f32 %v2331_v63, %v2327_v31  ;;  %v2339_v28 = vmul.f32 %v2338_v55, %v2327_v31  ;;  %v2163_v14 = vmul.f32 %v2124_v6, %v2051_v13  ;;  %v2165_v7 = vmul.f32 %v2117_v35, %v2058_v8  ;;  %v3338_v63 = vld [vmem:[%s5951_s1 + $0x28] sm:$0xff] }
 0x1fd   :  { %v2812_v44 = vclz %v2811_v23  ;;  %v2150_v41 = vadd.f32 %v2149_v20, %v2148_v50  ;;  %v2155_v62 = vsub.f32 %v2153_v29, %v2154_v56  ;;  %v2162_v49 = vadd.f32 %v2161_v21, %v2160_v57  ;;  %v6050_v29 = vld [vmem:[#allocation17_spill] sm:$0xff]  ;;  %v6060_v21 = vld [vmem:[#allocation18_spill] sm:$0xff] }
 0x1fe   :  { %v2333_v5 = vadd.f32 1.0, %v2332_v40  ;;  %v2340_v42 = vadd.f32 1.0, %v2339_v28  ;;  %vm2348_vm11 = vcmp.eq.s32.totalorder %v2343_v52, 2  ;;  %vm2503_vm12 = vcmp.eq.s32.totalorder %v2498_v36, 2  ;;  %v6051_v20 = vld [vmem:[#allocation25_spill] sm:$0xff] }
 0x1ff   :  { %v3291_v10 = vadd.s32 4294967294, %v2812_v44  ;;  %vm2344_vm13 = vcmp.lt.s32.totalorder %v2343_v52, 2  ;;  %vm2345_vm14 = vcmp.eq.s32.totalorder %v2343_v52, 0  ;;  %vm2499_vm15 = vcmp.lt.s32.totalorder %v2498_v36, 2  ;;  %v3336_v56 = vld [vmem:[%s5951_s1 + $0x18] sm:$0xff] }
 0x200   :  { %v2341_v34 = vmul.f32 %v2340_v42, %v2325_v61  ;;  %v2349_v58 = vxor.u32 2147483648, %v2333_v5  ;;  %vm2500_vm0 = vcmp.eq.s32.totalorder %v2498_v36, 0  ;;  %v2800_v59 = vadd.s32 %v5561_v24, %v5557_v9 }
 0x201   :  { %vm3292_vm1 = vcmp.lt.s32.totalorder %v3291_v10, 0  ;;  %vm2342_vm2 = vweird.f32 %v6040_v48  ;;  %v2157_v45 = vadd.f32 %v2156_v2, %v2155_v62  ;;  %v2164_v61 = vsub.f32 %v2162_v49, %v2163_v14  ;;  %v6048_v48 = vld [vmem:[#allocation20_spill] sm:$0xff] }
 0x202   :  { %v2346_v13 = vxor.u32 2147483648, %v2341_v34  ;;  %v2350_v35 = vsel %vm2348_vm11, %v2349_v58, %v2341_v34  ;;  %v2505_v6 = vsel %vm2503_vm12, %v2349_v58, %v2341_v34  ;;  %v2815_v8 = vsel %vm3292_vm1, 0, %v3291_v10 }
 0x203   :  { %v2816_v31 = vsub.s32 32, %v2815_v8  ;;  %v2817_v32 = vshll.u32 %v2808_v15, %v2815_v8  ;;  %v2820_v47 = vsub.s32 4294967266, %v2815_v8  ;;  %v5631_v51 = vsub.f32 %v2143_v22, %v2144_v19 }
 0x204   :  { %v2347_v25 = vsel %vm2345_vm14, %v2333_v5, %v2346_v13  ;;  %v2502_v18 = vsel %vm2500_vm0, %v2333_v5, %v2346_v13  ;;  %vm2509_vm3 = vcmp.lt.f32.partialorder %v5083_v11, 1e-06  ;;  %v5638_v17 = vmul.f32 %v6050_v29, %v6049_v46  ;;  %v6058_v29 = vld [vmem:[#allocation16_spill] sm:$0xff] }
 0x205   :  { %v2351_v27 = vsel %vm2344_vm13, %v2347_v25, %v2350_v35  ;;  %v2506_v60 = vsel %vm2499_vm15, %v2502_v18, %v2505_v6  ;;  %v2818_v9 = vshrl.u32 %v2800_v59, %v2816_v31  ;;  %v2821_v24 = vadd.s32 127, %v2820_v47  ;;  %v6055_v35 = vld [vmem:[#allocation2_spill] sm:$0xff]  ;;  %v6056_v18 = vld [vmem:[#allocation3_spill] sm:$0xff] }
 0x206   :  { %v2352_v54 = vsel %vm2342_vm2, nan, %v2351_v27  ;;  %v2507_v4 = vsel %vm2342_vm2, nan, %v2506_v60  ;;  %v5641_v50 = vsub.f32 %v2150_v41, %v5619_v3  ;;  %v5643_v26 = vadd.f32 %v2158_v1, %v2157_v45  ;;  %v3337_v3 = vld [vmem:[%s5951_s1 + $0x20] sm:$0xff] }
 0x207   :  { %v2508_v16 = vmul.f32 %v2507_v4, %v6048_v48  ;;  %v2510_v30 = vsel %vm2509_vm3, %v5614_v12, %v2352_v54  ;;  %v2819_v39 = vor.u32 %v2818_v9, %v2817_v32  ;;  %v2822_v43 = vshll.u32 %v2821_v24, 23  ;;  %v6057_v48 = vld [vmem:[#allocation13_spill] sm:$0xff] }
 0x208   :  { %v5645_v0 = vadd.f32 %v2165_v7, %v2164_v61  ;;  %v2515_v11 = vmul.f32 %v2510_v30, %v5631_v51  ;;  %vm2708_vm4 = vcmp.lt.s32.totalorder %v6051_v20, 0  ;;  %v2523_v55 = vmul.f32 %v2510_v30, %v5641_v50 }
 0x209   :  { %v2511_v15 = vsel %vm2509_vm3, %v5616_v33, %v2508_v16  ;;  %v2823_v12 = vor.u32 4788187, %v2822_v43  ;;  %v2532_v37 = vmul.f32 %v2510_v30, %v5643_v26  ;;  %v6052_v57 = vand.u32 2147483647, %v6051_v20 }
 0x20a   :  { %v2512_v2 = vmul.f32 %v3336_v56, %v2511_v15  ;;  %v2513_v1 = vmul.f32 %v3337_v3, %v2511_v15  ;;  %v2514_v33 = vmul.f32 %v3338_v63, %v2511_v15  ;;  %v2826_v36 = vcvt.s32.f32 %v2819_v39 }
 0x20b   :  { %vm5663_vm5 = vcmp.le.f32.partialorder %v6052_v57, 0.7853982  ;;  %v2824_v52 = vand.u32 2147483647, %v2823_v12  ;;  %v2647_v6 = vmul.f32 %v5631_v51, %v6055_v35  ;;  %v2830_v8 = vsub.s32 4, %v5607_v53 }
 0x20c   :  { %v2516_v19 = vmul.f32 %v2512_v2, %v5641_v50  ;;  %v2518_v40 = vmul.f32 %v2513_v1, %v5643_v26  ;;  %v2520_v28 = vmul.f32 %v2514_v33, %v5645_v0  ;;  %v2522_v23 = vmul.f32 %v2512_v2, %v5631_v51 }
 0x20d   :  { %v2525_v22 = vmul.f32 %v2514_v33, %v5643_v26  ;;  %v2527_v14 = vmul.f32 %v2513_v1, %v5645_v0  ;;  %v2529_v7 = vmul.f32 %v2513_v1, %v5631_v51  ;;  %v2530_v44 = vmul.f32 %v2514_v33, %v5641_v50 }
 0x20e   :  { %v2517_v41 = vadd.f32 %v2516_v19, %v2515_v11  ;;  %v2524_v62 = vsub.f32 %v2522_v23, %v2523_v55  ;;  %v2534_v5 = vmul.f32 %v2512_v2, %v5645_v0  ;;  %v2536_v42 = vmul.f32 %v2514_v33, %v5631_v51 }
 0x20f   :  { %v2531_v49 = vadd.f32 %v2530_v44, %v2529_v7  ;;  %v2537_v10 = vmul.f32 %v2513_v1, %v5641_v50  ;;  %v2539_v34 = vmul.f32 %v2512_v2, %v5643_v26  ;;  %v2827_v58 = vmul.f32 %v2826_v36, %v2824_v52  ;;  %v6059_v1 = vld [vmem:[#allocation4_spill] sm:$0xff] }
 0x210   :  { %v2519_v59 = vadd.f32 %v2518_v40, %v2517_v41  ;;  %v2526_v13 = vsub.f32 %v2524_v62, %v2525_v22  ;;  %v2541_v47 = vmul.f32 %v2510_v30, %v5645_v0  ;;  %v2648_v27 = vmul.f32 %v5641_v50, %v6056_v18  ;;  %v6061_v62 = vld [vmem:[#allocation5_spill] sm:$0xff] }
 0x211   :  { %v2533_v31 = vsub.f32 %v2531_v49, %v2532_v37  ;;  %v2538_v32 = vsub.f32 %v2536_v42, %v2537_v10  ;;  %v2828_v45 = vxor.u32 2147483648, %v2827_v58  ;;  %v2654_v60 = vmul.f32 %v5641_v50, %v6055_v35 }
 0x212   :  { %v5683_v61 = vadd.f32 %v2520_v28, %v2519_v59  ;;  %v5685_v25 = vadd.f32 %v2527_v14, %v2526_v13  ;;  %v2655_v54 = vmul.f32 %v5631_v51, %v6056_v18  ;;  %vm1276_vm6 = vcmp.eq.f32.partialorder %v6057_v48, inf }
 0x213   :  { %v5691_v9 = vsub.f32 %v2533_v31, %v2534_v5  ;;  %v2540_v24 = vadd.f32 %v2539_v34, %v2538_v32  ;;  %v2829_v4 = vsel %vm2708_vm4, %v2828_v45, %v2827_v58  ;;  %v2831_v39 = vsel %vm2708_vm4, %v2830_v8, %v5607_v53 }
 0x214   :  { %v2543_v16 = vmul.f32 %v5683_v61, %v5683_v61  ;;  %v2544_v30 = vmul.f32 %v5685_v25, %v5685_v25  ;;  %v2832_v43 = vsel %vm5663_vm5, %v6051_v20, %v2829_v4  ;;  %3319 = vrsqrt.f32 %v6058_v29 }
 0x215   :  { %v5709_v15 = vsub.f32 %v2540_v24, %v2541_v47  ;;  %v2546_v11 = vmul.f32 %v5691_v9, %v5691_v9  ;;  %v2834_v12 = vmul.f32 %v2832_v43, %v2832_v43  ;;  %v1275_v56 = vmul.f32 %v5612_v38, %v6057_v48 }
 0x216   :  { %v2545_v2 = vadd.f32 %v2544_v30, %v2543_v16  ;;  %v2649_v3 = vsub.f32 %v2647_v6, %v2648_v27  ;;  %v2650_v53 = vmul.f32 %v5643_v26, %v6059_v1  ;;  %v2833_v33 = vsel %vm5663_vm5, 0, %v2831_v39 }
 0x217   :  { %v2548_v63 = vmul.f32 %v5709_v15, %v5709_v15  ;;  %v2835_v55 = vmul.f32 -0.001358992, %v2834_v12  ;;  %v2842_v37 = vmul.f32 -0.00019511016, %v2834_v12  ;;  %v1264_v57 = vadd.f32 -0.2145988, %v5638_v17 }
 0x218   :  { %v2547_v52 = vadd.f32 %v2546_v11, %v2545_v2  ;;  %v2656_v36 = vadd.f32 %v2655_v54, %v2654_v60  ;;  %v2657_v38 = vmul.f32 %v5645_v0, %v6059_v1  ;;  %v2661_v19 = vmul.f32 %v5643_v26, %v6055_v35 }
 0x219   :  { %v2662_v40 = vmul.f32 %v5645_v0, %v6056_v18  ;;  %v2836_v28 = vadd.f32 0.041655596, %v2835_v55  ;;  %v2843_v23 = vadd.f32 0.008332121, %v2842_v37  ;;  %v2685_v14 = vmul.f32 0.0026041667, %v6060_v21 }
 0x21a   :  { %v5728_v22 = vadd.f32 %v2548_v63, %v2547_v52  ;;  %v2689_v7 = vmul.f32 0.00026041668, %v6060_v21  ;;  %v3004_v17 = vadd.s32 3, %v2833_v33  ;;  %v5732_v44 = vpop.eup %3319  ;;  %v2651_v41 = vsub.f32 %v2649_v3, %v2650_v53 }
 0x21b   :  { %v2652_v5 = vmul.f32 %v5645_v0, %v6061_v62  ;;  %v2837_v42 = vmul.f32 %v2836_v28, %v2834_v12  ;;  %v2844_v49 = vmul.f32 %v2843_v23, %v2834_v12  ;;  %v2658_v10 = vadd.f32 %v2657_v38, %v2656_v36 }
 0x21c   :  { %3321 = vrsqrt.f32 %v5728_v22  ;;  %v2659_v34 = vmul.f32 %v5643_v26, %v6061_v62  ;;  %v2664_v58 = vmul.f32 %v5631_v51, %v6059_v1  ;;  %v2663_v59 = vsub.f32 %v2661_v19, %v2662_v40 }
 0x21d   :  { %v2668_v13 = vmul.f32 %v5645_v0, %v6055_v35  ;;  %v2838_v6 = vadd.f32 -0.4999988, %v2837_v42  ;;  %v2845_v8 = vadd.f32 -0.16666654, %v2844_v49  ;;  %v2669_v31 = vmul.f32 %v5643_v26, %v6056_v18 }
 0x21e   :  { %v2686_v32 = vadd.f32 -0.125, %v2685_v14  ;;  %v2850_v47 = vand.u32 3, %v2833_v33  ;;  %v3005_v45 = vand.u32 3, %v3004_v17  ;;  %v1277_v27 = vsel %vm1276_vm6, %v6057_v48, %v1275_v56 }
 0x21f   :  { %v2690_v60 = vadd.f32 -0.020833334, %v2689_v7  ;;  %v2839_v24 = vmul.f32 %v2838_v6, %v2834_v12  ;;  %v2846_v54 = vmul.f32 %v2845_v8, %v2834_v12  ;;  %v1265_v4 = vmul.f32 %v1264_v57, %v6049_v46  ;;  %v3341_v8 = vld [vmem:[%s5952_s2 + $0x10] sm:$0xff] }
 0x220   :  { %vm1278_vm7 = vcmp.eq.f32.partialorder %v6057_v48, 0.0  ;;  %v5750_v0 = vsub.f32 %v2651_v41, %v2652_v5  ;;  %v2666_v35 = vmul.f32 %v5641_v50, %v6061_v62  ;;  %v2671_v26 = vmul.f32 %v5641_v50, %v6059_v1 }
 0x221   :  { %v5756_v18 = vsub.f32 %v2658_v10, %v2659_v34  ;;  %v2665_v16 = vadd.f32 %v2664_v58, %v2663_v59  ;;  %v2840_v30 = vadd.f32 1.0, %v2839_v24  ;;  %v2847_v39 = vadd.f32 1.0, %v2846_v54 }
 0x222   :  { %v3322_v11 = vpop.eup %3321  ;;  %v2670_v56 = vadd.f32 %v2669_v31, %v2668_v13  ;;  %v2687_v12 = vmul.f32 %v2686_v32, %v6060_v21  ;;  %vm2855_vm8 = vcmp.eq.s32.totalorder %v2850_v47, 2  ;;  %vm3010_vm9 = vcmp.eq.s32.totalorder %v3005_v45, 2 }
 0x223   :  { %v2551_v46 = vmul.f32 %v3322_v11, %v5728_v22  ;;  %v2691_v2 = vmul.f32 %v2690_v60, %v6060_v21  ;;  %v2848_v3 = vmul.f32 %v2847_v39, %v2832_v43  ;;  %v2856_v53 = vxor.u32 2147483648, %v2840_v30 }
 0x224   :  { %vm2851_vm10 = vcmp.lt.s32.totalorder %v2850_v47, 2  ;;  %vm2852_vm11 = vcmp.eq.s32.totalorder %v2850_v47, 0  ;;  %vm3006_vm12 = vcmp.lt.s32.totalorder %v3005_v45, 2  ;;  %vm3007_vm13 = vcmp.eq.s32.totalorder %v3005_v45, 0 }
 0x225   :  { %v2552_v50 = vmul.f32 %v3322_v11, %v2551_v46  ;;  %v2853_v1 = vxor.u32 2147483648, %v2848_v3  ;;  %v2857_v63 = vsel %vm2855_vm8, %v2856_v53, %v2848_v3  ;;  %v3012_v33 = vsel %vm3010_vm9, %v2856_v53, %v2848_v3 }
 0x226   :  { %vm2556_vm14 = vweird.f32 %v5728_v22  ;;  %v2673_v55 = vmul.f32 %v5631_v51, %v6061_v62  ;;  %v2688_v37 = vadd.f32 1.0, %v2687_v12  ;;  %vm2849_vm15 = vweird.f32 %v6051_v20  ;;  %v6062_v20 = vld [vmem:[#allocation23_spill] sm:$0xff]  ;;  %v3339_v22 = vld [vmem:[%s5952_s2] sm:$0xff] }
 0x227   :  { %v2553_v57 = vmul.f32 0.5, %v2552_v50  ;;  %vm2557_vm0 = vweird.f32 %v3322_v11  ;;  %v2854_v43 = vsel %vm2852_vm11, %v2840_v30, %v2853_v1  ;;  %v3009_v52 = vsel %vm3007_vm13, %v2840_v30, %v2853_v1 }
 0x228   :  { %v2672_v36 = vsub.f32 %v2670_v56, %v2671_v26  ;;  %v2692_v38 = vadd.f32 0.5, %v2691_v2  ;;  %v2858_v19 = vsel %vm2851_vm10, %v2854_v43, %v2857_v63  ;;  %v3013_v40 = vsel %vm3006_vm12, %v3009_v52, %v3012_v33  ;;  %vm2558_vm2 = vmor %vm2556_vm14, %vm2557_vm0 }
 0x229   :  { %v2554_v28 = vsub.f32 1.5, %v2553_v57  ;;  %v2859_v23 = vsel %vm2849_vm15, nan, %v2858_v19  ;;  %v3014_v14 = vsel %vm2849_vm15, nan, %v3013_v40  ;;  %vm3016_vm1 = vcmp.lt.f32.partialorder %v6060_v21, 1e-06 }
 0x22a   :  { %v1266_v7 = vadd.f32 1.5707963, %v1265_v4  ;;  %v1292_v51 = vmul.f32 %v5732_v44, %v6058_v29  ;;  %v3015_v17 = vmul.f32 %v3014_v14, %v6062_v20  ;;  %v3017_v41 = vsel %vm3016_vm1, %v2688_v37, %v2859_v23 }
 0x22b   :  { %v6063_v62 = vand.u32 2147483648, %v6057_v48  ;;  %v2555_v42 = vmul.f32 %v3322_v11, %v2554_v28  ;;  %v2667_v49 = vadd.f32 %v2666_v35, %v2665_v16  ;;  %v2674_v10 = vadd.f32 %v2673_v55, %v2672_v36  ;;  %v3340_v48 = vld [vmem:[%s5952_s2 + $0x8] sm:$0xff] }
 0x22c   :  { %v3018_v34 = vsel %vm3016_vm1, %v2692_v38, %v3015_v17  ;;  %v3022_v21 = vmul.f32 %v3017_v41, %v5750_v0  ;;  %v3030_v58 = vmul.f32 %v3017_v41, %v5756_v18  ;;  %v1293_v47 = vmul.f32 %v5732_v44, %v1292_v51  ;;  %v6064_v38 = vld [vmem:[#allocation11_spill] sm:$0xff] }
 0x22d   :  { %v1280_v5 = vsel %vm1278_vm7, %v6063_v62, %v1277_v27  ;;  %v5779_v59 = vsel %vm2558_vm2, %v3322_v11, %v2555_v42  ;;  %v3019_v13 = vmul.f32 %v3339_v22, %v3018_v34  ;;  %v3020_v6 = vmul.f32 %v3340_v48, %v3018_v34 }
 0x22e   :  { %v3021_v31 = vmul.f32 %v3341_v8, %v3018_v34  ;;  %v1281_v32 = vmul.f32 %v1280_v5, %v1266_v7  ;;  %v5793_v45 = vmul.f32 %v5779_v59, %v5683_v61  ;;  %v3039_v54 = vmul.f32 %v3017_v41, %v2667_v49 }
 0x22f   :  { %v3023_v27 = vmul.f32 %v3019_v13, %v5756_v18  ;;  %v3025_v60 = vmul.f32 %v3020_v6, %v2667_v49  ;;  %v3029_v24 = vmul.f32 %v3019_v13, %v5750_v0  ;;  %v3036_v16 = vmul.f32 %v3020_v6, %v5750_v0 }
 0x230   :  { %v2561_v4 = vmul.f32 2.0, %v5793_v45  ;;  %v3027_v35 = vmul.f32 %v3021_v31, %v2674_v10  ;;  %v3032_v26 = vmul.f32 %v3021_v31, %v2667_v49  ;;  %v3034_v11 = vmul.f32 %v3020_v6, %v2674_v10 }
 0x231   :  { %v3024_v30 = vadd.f32 %v3023_v27, %v3022_v21  ;;  %v3031_v39 = vsub.f32 %v3029_v24, %v3030_v58  ;;  %v3037_v56 = vmul.f32 %v3021_v31, %v5756_v18  ;;  %v3043_v12 = vmul.f32 %v3021_v31, %v5750_v0 }
 0x232   :  { %v2562_v61 = vmul.f32 %v2561_v4, %v5793_v45  ;;  %v3044_v46 = vmul.f32 %v3020_v6, %v5756_v18  ;;  %v3046_v2 = vmul.f32 %v3019_v13, %v2667_v49  ;;  %v3041_v1 = vmul.f32 %v3019_v13, %v2674_v10 }
 0x233   :  { %v3026_v3 = vadd.f32 %v3025_v60, %v3024_v30  ;;  %v3033_v53 = vsub.f32 %v3031_v39, %v3032_v26  ;;  %v3038_v50 = vadd.f32 %v3037_v56, %v3036_v16  ;;  %v1294_v63 = vmul.f32 0.5, %v1293_v47 }
 0x234   :  { %v3282_v33 = vadd.f32 -1.0, %v2562_v61  ;;  %v3045_v55 = vsub.f32 %v3043_v12, %v3044_v46  ;;  %v3048_v37 = vmul.f32 %v3017_v41, %v2674_v10  ;;  %v1283_v57 = vsub.f32 3.1415927, %v1281_v32  ;;  %v6066_v12 = vld [vmem:[#allocation9_spill] sm:$0xff] }
 0x235   :  { %v5803_v43 = vadd.f32 %v3027_v35, %v3026_v3  ;;  %v5805_v52 = vadd.f32 %v3034_v11, %v3033_v53  ;;  %v3040_v36 = vsub.f32 %v3038_v50, %v3039_v54  ;;  %vm1282_vm3 = vcmp.ge.f32.partialorder %v6064_v38, 0.0 }
 0x236   :  { %v5808_v0 = vclamps-f32 %v3282_v33, 1.0  ;;  %v3047_v18 = vadd.f32 %v3046_v2, %v3045_v55  ;;  %v1284_v51 = vsel %vm1282_vm3, %v1281_v32, %v1283_v57  ;;  %v1295_v20 = vsub.f32 1.5, %v1294_v63  ;;  %v6065_v32 = vld [vmem:[#allocation10_spill] sm:$0xff] }
 0x237   :  { %v5810_v19 = vsub.f32 %v3040_v36, %v3041_v1  ;;  %v3050_v40 = vmul.f32 %v5803_v43, %v5803_v43  ;;  %v3051_v28 = vmul.f32 %v5805_v52, %v5805_v52  ;;  %vm1297_vm4 = vweird.f32 %v6058_v29  ;;  %v6067_v33 = vld [vmem:[#allocation6_spill] sm:$0xff] }
 0x238   :  { %v5817_v23 = vand.u32 2147483647, %v5808_v0  ;;  %v2601_v14 = vmul.f32 %v5808_v0, %v5808_v0  ;;  %v5821_v7 = vsub.f32 %v3047_v18, %v3048_v37  ;;  %vm1298_vm5 = vweird.f32 %v5732_v44  ;;  %v6068_v37 = vld [vmem:[#allocation7_spill] sm:$0xff] }
 0x239   :  { %v3052_v17 = vadd.f32 %v3051_v28, %v3050_v40  ;;  %v3053_v41 = vmul.f32 %v5810_v19, %v5810_v19  ;;  %v1285_v22 = vmul.f32 2.0, %v1284_v51  ;;  %v1296_v48 = vmul.f32 %v5732_v44, %v1295_v20  ;;  %vm1299_vm6 = vmor %vm1297_vm4, %vm1298_vm5  ;;  %v6069_v40 = vld [vmem:[#allocation8_spill] sm:$0xff] }
 0x23a   :  { %v2567_v62 = vmul.f32 -0.0012624911, %v5817_v23  ;;  %v2581_v5 = vsub.f32 1.0, %v5817_v23  ;;  %v2602_v42 = vsub.f32 1.0, %v2601_v14  ;;  %v3055_v49 = vmul.f32 %v5821_v7, %v5821_v7 }
 0x23b   :  { %v3054_v10 = vadd.f32 %v3053_v41, %v3052_v17  ;;  %v1286_v29 = vmul.f32 %v1285_v22, %v6065_v32  ;;  %v1300_v47 = vsel %vm1299_vm6, %v5732_v44, %v1296_v48  ;;  %vm2596_vm14 = vcmp.ge.f32.partialorder %v5808_v0, 0.0 }
 0x23c   :  { %v2568_v34 = vadd.f32 0.00667009, %v2567_v62  ;;  %v2582_v21 = vmax.f32 %v2581_v5, 0.0  ;;  %v2603_v58 = vmax.f32 %v2602_v42, 0.0 }
 0x23d   :  { %v3056_v13 = vadd.f32 %v3055_v49, %v3054_v10  ;;  %v1301_v4 = vmul.f32 %v1300_v47, %v1286_v29 }
 0x23e   :  { %v2569_v6 = vmul.f32 %v2568_v34, %v5817_v23  ;;  %3323 = vrsqrt.f32 %v2582_v21  ;;  %v5833_v8 = vadd.f32 1e-20, %v2603_v58  ;;  %vm2590_vm10 = vcmp.eq.f32.partialorder %v2582_v21, inf }
 0x23f   :  { %3325 = vrsqrt.f32 %v3056_v13  ;;  %v1302_v44 = vmul.f32 %v1301_v4, %v6066_v12  ;;  %vm3063_vm7 = vweird.f32 %v3056_v13  ;;  %v2593_v51 = vand.u32 2147483648, %v2582_v21 }
 0x240   :  { %v2570_v31 = vadd.f32 -0.017088126, %v2569_v6  ;;  %3327 = vrsqrt.f32 %v5833_v8  ;;  %vm2592_vm11 = vcmp.eq.f32.partialorder %v2582_v21, 0.0  ;;  %vm2611_vm12 = vweird.f32 %v5833_v8 }
 0x241   :  { %v1303_v55 = vmul.f32 %v1302_v44, %v6067_v33  ;;  %v1304_v57 = vmul.f32 %v1302_v44, %v6068_v37  ;;  %v1305_v28 = vmul.f32 %v1302_v44, %v6069_v40 }
 0x242   :  { %v2571_v27 = vmul.f32 %v2570_v31, %v5817_v23 }
 0x243   :  { %v1306_v62 = vmul.f32 200.0, %v1303_v55  ;;  %v1313_v5 = vmul.f32 200.0, %v1304_v57  ;;  %v1321_v22 = vmul.f32 200.0, %v1305_v28 }
 0x244   :  { %v3324_v60 = vpop.eup %3323  ;;  %v2572_v24 = vadd.f32 0.03089188, %v2571_v27 }
 0x245   :  { %v3326_v54 = vpop.eup %3325  ;;  %v2584_v35 = vmul.f32 %v3324_v60, %v2582_v21  ;;  %v1307_v6 = vand.u32 2147483647, %v1306_v62  ;;  %v1309_v31 = vmul.f32 0.5, %v1306_v62  ;;  %v1314_v32 = vand.u32 2147483647, %v1313_v5 }
 0x246   :  { %v2573_v26 = vmul.f32 %v2572_v24, %v5817_v23  ;;  %v3058_v16 = vmul.f32 %v3326_v54, %v3056_v13  ;;  %v5840_v30 = vpop.eup %3327  ;;  %vm3064_vm8 = vweird.f32 %v3326_v54  ;;  %v1316_v47 = vmul.f32 0.5, %v1313_v5 }
 0x247   :  { %v2585_v39 = vmul.f32 %v3324_v60, %v2584_v35  ;;  %v2606_v56 = vmul.f32 %v5840_v30, %v5833_v8  ;;  %vm3065_vm9 = vmor %vm3063_vm7, %vm3064_vm8  ;;  %vm2612_vm13 = vweird.f32 %v5840_v30  ;;  %vm5864_vm15 = vcmp.lt.f32.partialorder %v1307_v6, 1.0 }
 0x248   :  { %v2574_v11 = vadd.f32 -0.050174303, %v2573_v26  ;;  %v3059_v61 = vmul.f32 %v3326_v54, %v3058_v16  ;;  %v1324_v4 = vmul.f32 0.5, %v1321_v22  ;;  %vm5868_vm0 = vmor %vm2611_vm12, %vm2612_vm13  ;;  %v3222_v26 = vadd.f32 -0.5, %v1307_v6 }
 0x249   :  { %v2586_v46 = vmul.f32 0.5, %v2585_v39  ;;  %v2607_v1 = vmul.f32 %v5840_v30, %v2606_v56  ;;  %v1317_v16 = vmul.f32 %v1316_v47, %v1313_v5  ;;  %v3223_v0 = vadd.f32 -0.5, %v1314_v32 }
 0x24a   :  { %v2575_v2 = vmul.f32 %v2574_v11, %v5817_v23  ;;  %v3060_v3 = vmul.f32 0.5, %v3059_v61  ;;  %vm5874_vm1 = vcmp.lt.f32.partialorder %v1314_v32, 1.0  ;;  %v1325_v33 = vmul.f32 %v1324_v4, %v1321_v22  ;;  %v1329_v4 = vld [vmem:[%s5953_s3] sm:$0xff] }
 0x24b   :  { %v2587_v53 = vsub.f32 1.5, %v2586_v46  ;;  %v2608_v17 = vmul.f32 0.5, %v2607_v1 }
 0x24c   :  { %v2576_v50 = vadd.f32 0.08897899, %v2575_v2  ;;  %v3061_v63 = vsub.f32 1.5, %v3060_v3 }
 0x24d   :  { %v2588_v36 = vmul.f32 %v3324_v60, %v2587_v53  ;;  %v2609_v48 = vsub.f32 1.5, %v2608_v17 }
 0x24e   :  { %v2577_v38 = vmul.f32 %v2576_v50, %v5817_v23  ;;  %v3062_v18 = vmul.f32 %v3326_v54, %v3061_v63  ;;  %v1319_v63 = vsel %vm5874_vm1, %v1317_v16, %v3223_v0 }
 0x24f   :  { %v2589_v14 = vmul.f32 %v2588_v36, %v2582_v21  ;;  %v2610_v60 = vmul.f32 %v5840_v30, %v2609_v48 }
 0x250   :  { %v2578_v20 = vadd.f32 -0.2145988, %v2577_v38  ;;  %v5851_v41 = vsel %vm3065_vm9, %v3326_v54, %v3062_v18  ;;  %v1310_v54 = vmul.f32 %v1309_v31, %v1306_v62 }
 0x251   :  { %v2591_v42 = vsel %vm2590_vm10, %v2582_v21, %v2589_v14  ;;  %v5855_v49 = vmul.f32 %v5851_v41, %v5803_v43  ;;  %v2614_v46 = vsel %vm5868_vm0, %v5840_v30, %v2610_v60 }
 0x252   :  { %v2579_v10 = vmul.f32 %v2578_v20, %v5817_v23  ;;  %v2594_v34 = vsel %vm2592_vm11, %v2593_v51, %v2591_v42  ;;  %v1322_v23 = vand.u32 2147483647, %v1321_v22  ;;  %v1312_v1 = vsel %vm5864_vm15, %v1310_v54, %v3222_v26 }
 0x253   :  { %v3068_v58 = vmul.f32 2.0, %v5855_v49  ;;  %v1320_v18 = vadd.f32 %v1319_v63, %v1312_v1 }
 0x254   :  { %v2580_v13 = vadd.f32 1.5707963, %v2579_v10  ;;  %vm5883_vm2 = vcmp.lt.f32.partialorder %v1322_v23, 1.0  ;;  %v3224_v55 = vadd.f32 -0.5, %v1322_v23 }
 0x255   :  { %v3069_v29 = vmul.f32 %v3068_v58, %v5855_v49 }
 0x256   :  { %v2595_v27 = vmul.f32 %v2594_v34, %v2580_v13  ;;  %v1327_v40 = vsel %vm5883_vm2, %v1325_v33, %v3224_v55 }
 0x257   :  { %v3296_v43 = vadd.f32 -1.0, %v3069_v29  ;;  %v1328_v10 = vadd.f32 %v1327_v40, %v1320_v18 }
 0x258   :  { %v2597_v21 = vsub.f32 3.1415927, %v2595_v27 }
 0x259   :  { %v5872_v8 = vclamps-f32 %v3296_v43, 1.0 }
 0x25a   :  { %v2598_v39 = vsel %vm2596_vm14, %v2595_v27, %v2597_v21 }
 0x25b   :  { %v2599_v56 = vmul.f32 2.0, %v2598_v39  ;;  %v5879_v61 = vand.u32 2147483647, %v5872_v8  ;;  %v3108_v12 = vmul.f32 %v5872_v8, %v5872_v8  ;;  %vm3103_vm10 = vcmp.ge.f32.partialorder %v5872_v8, 0.0 }
 0x25d   :  { %v2600_v2 = vmul.f32 %v2599_v56, %v5793_v45  ;;  %v3074_v3 = vmul.f32 -0.0012624911, %v5879_v61  ;;  %v3088_v53 = vsub.f32 1.0, %v5879_v61  ;;  %v3109_v50 = vsub.f32 1.0, %v3108_v12  ;;  %v3287_v56 = vld [vmem:[%s5953_s3 + $0x8] sm:$0xff] }
 0x25e   :  { %v1330_v12 = vmul.f32 %v1329_v4, %v1328_v10 }
 0x25f   :  { %v2615_v37 = vmul.f32 %v2614_v46, %v2600_v2  ;;  %v3075_v57 = vadd.f32 0.00667009, %v3074_v3  ;;  %v5897_v36 = vmax.f32 %v3088_v53, 0.0  ;;  %v3110_v30 = vmax.f32 %v3109_v50, 0.0 }
 0x261   :  { %v2616_v45 = vmul.f32 %v2615_v37, %v5779_v59  ;;  %v3076_v38 = vmul.f32 %v3075_v57, %v5879_v61  ;;  %3329 = vrsqrt.f32 %v5897_v36  ;;  %v5904_v28 = vadd.f32 1e-20, %v3110_v30 }
 0x262   :  { %vm3097_vm6 = vcmp.eq.f32.partialorder %v5897_v36, inf  ;;  %v3100_v37 = vand.u32 2147483648, %v5897_v36  ;;  %vm3099_vm7 = vcmp.eq.f32.partialorder %v5897_v36, 0.0 }
 0x263   :  { %v2617_v14 = vmul.f32 %v2616_v45, %v5685_v25  ;;  %v2618_v51 = vmul.f32 %v2616_v45, %v5691_v9  ;;  %v2619_v20 = vmul.f32 %v2616_v45, %v5709_v15  ;;  %v3077_v17 = vadd.f32 -0.017088126, %v3076_v38 }
 0x264   :  { %3331 = vrsqrt.f32 %v5904_v28  ;;  %vm3118_vm8 = vweird.f32 %v5904_v28 }
 0x265   :  { %v2620_v59 = vmul.f32 200.0, %v2617_v14  ;;  %v2627_v62 = vmul.f32 200.0, %v2618_v51  ;;  %v2635_v5 = vmul.f32 200.0, %v2619_v20  ;;  %v3078_v42 = vmul.f32 %v3077_v17, %v5879_v61 }
 0x267   :  { %v3330_v34 = vpop.eup %3329  ;;  %v2621_v58 = vand.u32 2147483647, %v2620_v59  ;;  %v2623_v22 = vmul.f32 0.5, %v2620_v59  ;;  %v2628_v13 = vand.u32 2147483647, %v2627_v62  ;;  %v2630_v48 = vmul.f32 0.5, %v2627_v62 }
 0x268   :  { %v2636_v6 = vand.u32 2147483647, %v2635_v5  ;;  %v2638_v25 = vmul.f32 0.5, %v2635_v5  ;;  %v3079_v31 = vadd.f32 0.03089188, %v3078_v42  ;;  %v3091_v9 = vmul.f32 %v3330_v34, %v5897_v36 }
 0x269   :  { %vm5912_vm3 = vcmp.lt.f32.partialorder %v2621_v58, 1.0  ;;  %v2624_v32 = vmul.f32 %v2623_v22, %v2620_v59  ;;  %v3284_v29 = vadd.f32 -0.5, %v2621_v58  ;;  %vm2629_vm4 = vcmp.lt.f32.partialorder %v2628_v13, 1.0 }
 0x26a   :  { %v3332_v47 = vpop.eup %3331  ;;  %v2631_v27 = vmul.f32 %v2630_v48, %v2627_v62  ;;  %v3285_v43 = vadd.f32 -0.5, %v2628_v13  ;;  %vm2637_vm5 = vcmp.lt.f32.partialorder %v2636_v6, 1.0  ;;  %v2639_v23 = vmul.f32 %v2638_v25, %v2635_v5 }
 0x26b   :  { %v2626_v21 = vsel %vm5912_vm3, %v2624_v32, %v3284_v29  ;;  %v3286_v60 = vadd.f32 -0.5, %v2636_v6  ;;  %v3080_v24 = vmul.f32 %v3079_v31, %v5879_v61  ;;  %v3092_v54 = vmul.f32 %v3330_v34, %v3091_v9 }
 0x26c   :  { %v2633_v35 = vsel %vm2629_vm4, %v2631_v27, %v3285_v43  ;;  %v3113_v26 = vmul.f32 %v3332_v47, %v5904_v28  ;;  %vm3119_vm9 = vweird.f32 %v3332_v47  ;;  %v3301_v43 = vld [vmem:[%s5953_s3 + $0x10] sm:$0xff] }
 0x26d   :  { %v2634_v16 = vadd.f32 %v2633_v35, %v2626_v21  ;;  %v2641_v0 = vsel %vm2637_vm5, %v2639_v23, %v3286_v60  ;;  %v3081_v39 = vadd.f32 -0.050174303, %v3080_v24  ;;  %v3093_v11 = vmul.f32 0.5, %v3092_v54  ;;  %vm3120_vm11 = vmor %vm3118_vm8, %vm3119_vm9 }
 0x26e   :  { %v3114_v1 = vmul.f32 %v3332_v47, %v3113_v26 }
 0x26f   :  { %v2642_v44 = vadd.f32 %v2641_v0, %v2634_v16  ;;  %v3082_v46 = vmul.f32 %v3081_v39, %v5879_v61  ;;  %v3094_v2 = vsub.f32 1.5, %v3093_v11 }
 0x270   :  { %v3115_v45 = vmul.f32 0.5, %v3114_v1 }
 0x271   :  { %v2645_v3 = vmul.f32 %v3287_v56, %v2642_v44  ;;  %v3083_v53 = vadd.f32 0.08897899, %v3082_v46  ;;  %v3095_v50 = vmul.f32 %v3330_v34, %v3094_v2 }
 0x272   :  { %v3116_v14 = vsub.f32 1.5, %v3115_v45 }
 0x273   :  { %v2646_v63 = vadd.f32 %v2645_v3, %v1330_v12  ;;  %v3084_v33 = vmul.f32 %v3083_v53, %v5879_v61  ;;  %v3096_v55 = vmul.f32 %v3095_v50, %v5897_v36 }
 0x274   :  { %v3117_v17 = vmul.f32 %v3332_v47, %v3116_v14 }
 0x275   :  { %v3085_v57 = vadd.f32 -0.2145988, %v3084_v33  ;;  %v3098_v30 = vsel %vm3097_vm6, %v5897_v36, %v3096_v55  ;;  %3155 = vst [vmem:[%s5954_s4] sm:$0xff] %v2646_v63 }
 0x276   :  { %v3101_v18 = vsel %vm3099_vm7, %v3100_v37, %v3098_v30  ;;  %v3121_v62 = vsel %vm3120_vm11, %v3332_v47, %v3117_v17 }
 0x277   :  { %v3086_v38 = vmul.f32 %v3085_v57, %v5879_v61 }
 0x279   :  { %v3087_v40 = vadd.f32 1.5707963, %v3086_v38 }
 0x27b   :  { %v3102_v51 = vmul.f32 %v3101_v18, %v3087_v40 }
 0x27d   :  { %v3104_v20 = vsub.f32 3.1415927, %v3102_v51 }
 0x27f   :  { %v3105_v36 = vsel %vm3103_vm10, %v3102_v51, %v3104_v20 }
 0x280   :  { %v3106_v59 = vmul.f32 2.0, %v3105_v36 }
 0x282   :  { %v3107_v5 = vmul.f32 %v3106_v59, %v5855_v49 }
 0x284   :  { %v3122_v42 = vmul.f32 %v3121_v62, %v3107_v5 }
 0x286   :  { %v3123_v61 = vmul.f32 %v3122_v42, %v5851_v41 }
 0x288   :  { %v3124_v10 = vmul.f32 %v3123_v61, %v5805_v52  ;;  %v3125_v34 = vmul.f32 %v3123_v61, %v5810_v19  ;;  %v3126_v28 = vmul.f32 %v3123_v61, %v5821_v7 }
 0x28a   :  { %v3127_v58 = vmul.f32 200.0, %v3124_v10  ;;  %v3134_v22 = vmul.f32 200.0, %v3125_v34  ;;  %v3142_v8 = vmul.f32 200.0, %v3126_v28 }
 0x28c   :  { %v3128_v13 = vand.u32 2147483647, %v3127_v58  ;;  %v3130_v48 = vmul.f32 0.5, %v3127_v58  ;;  %v3135_v6 = vand.u32 2147483647, %v3134_v22  ;;  %v3137_v25 = vmul.f32 0.5, %v3134_v22 }
 0x28d   :  { %v3143_v31 = vand.u32 2147483647, %v3142_v8  ;;  %v3145_v9 = vmul.f32 0.5, %v3142_v8 }
 0x28e   :  { %vm3129_vm12 = vcmp.lt.f32.partialorder %v3128_v13, 1.0  ;;  %v3131_v49 = vmul.f32 %v3130_v48, %v3127_v58  ;;  %v3298_v15 = vadd.f32 -0.5, %v3128_v13  ;;  %vm3136_vm13 = vcmp.lt.f32.partialorder %v3135_v6, 1.0 }
 0x28f   :  { %v3138_v41 = vmul.f32 %v3137_v25, %v3134_v22  ;;  %v3299_v32 = vadd.f32 -0.5, %v3135_v6  ;;  %vm3144_vm14 = vcmp.lt.f32.partialorder %v3143_v31, 1.0  ;;  %v3146_v52 = vmul.f32 %v3145_v9, %v3142_v8 }
 0x290   :  { %v3133_v19 = vsel %vm3129_vm12, %v3131_v49, %v3298_v15  ;;  %v3300_v29 = vadd.f32 -0.5, %v3143_v31 }
 0x291   :  { %v3140_v7 = vsel %vm3136_vm13, %v3138_v41, %v3299_v32 }
 0x292   :  { %v3141_v47 = vadd.f32 %v3140_v7, %v3133_v19  ;;  %v3148_v27 = vsel %vm3144_vm14, %v3146_v52, %v3300_v29 }
 0x294   :  { %v3149_v23 = vadd.f32 %v3148_v27, %v3141_v47 }
 0x296   :  { %v3152_v21 = vmul.f32 %v3301_v43, %v3149_v23 }
 0x298   :  { %3156 = vst [vmem:[%s5955_s5] sm:$0xff] %v3152_v21 }

</bundles_post_ra>
